<compile_context>
chip_gen: v5e
topology: v5e:2x2
jax: 0.10.0
libtpu: 0.0.40
codegen_flags: <defaults>
</compile_context>

<pallas_src>
import functools

import jax
import jax.numpy as jnp
from jax import lax
from jax.experimental import pallas as pl
from jax.experimental.pallas import tpu as pltpu

N_PAD = 128          # padded number of atoms (lanes / j axis)
S_PAD = 8            # padded number of systems
E_DIM = 8            # species-embedding width
MAX_Z = 120          # size of species tables

STRIP = 32           # i-axis strip size (sublanes per strip)
N_STRIPS = N_PAD // STRIP

# packed j-slab rows (quantity per atom-j, atoms on lanes)
JSLAB_ROWS = 24
ROW_POS = 0          # rows 0..2 : fractional (pbc) or cartesian (no pbc) coords
ROW_SYS = 3          # row 3     : system index (float, -1 sentinel for padding)
ROW_EMB = 4          # rows 4..11: species embedding (transposed)
ROW_CELL = 12        # rows 12..20: flattened row-vector cell of atom-j's system

# packed i-slab columns (quantity per atom-i, atoms on sublanes)
ISLAB_COLS = 16
COL_POS = 0          # cols 0..2 : fractional / cartesian coords
COL_SYS = 3          # col 3     : system index (float, -1 sentinel)
COL_EMB = 8          # cols 8..15: species embedding

# merged lane-dense output slab
OUT_ROWS = 16        # rows 0..2 : fx, fy, fz per atom (lanes = atoms)
                     # rows 8..15: system s -> lanes [E, vxx, vyy, vzz, vxy, vxz, vyz]


def _graphpes_pair_kernel(
    jslab_ref,   # (JSLAB_ROWS, N_PAD)       j-side packed slab
    islab_ref,   # (N_PAD, ISLAB_COLS)       i-side packed slab
    oneh_ref,    # (N_STRIPS*S_PAD, STRIP)   strip-blocked one-hot system membership
    out_ref,     # OUT (OUT_ROWS, N_PAD)     merged force / per-system slab
    coup_ref,    # scratch VMEM (N_PAD, N_PAD) f32: full species coupling
    *, cutoff, morse_a, morse_r0, pbc,
):
    cut2 = cutoff * cutoff
    pi_over_c = jnp.pi / cutoff

    # --- species coupling c[i,j] = e_i . e_j, computed once for all pairs ---
    emb_i_all = islab_ref[:, COL_EMB:COL_EMB + E_DIM]         # (N_PAD, E_DIM)
    embT = jslab_ref[ROW_EMB:ROW_EMB + E_DIM, :]              # (E_DIM, N_PAD)
    coup_ref[...] = jnp.dot(emb_i_all, embT, preferred_element_type=jnp.float32)

    # --- strip-invariant j-side rows, hoisted out of the strip loop ---
    fj0 = jslab_ref[ROW_POS + 0:ROW_POS + 1, :]
    fj1 = jslab_ref[ROW_POS + 1:ROW_POS + 2, :]
    fj2 = jslab_ref[ROW_POS + 2:ROW_POS + 3, :]
    sys_j = jslab_ref[ROW_SYS:ROW_SYS + 1, :]
    if pbc:
        cr = [jslab_ref[ROW_CELL + r:ROW_CELL + r + 1, :] for r in range(9)]

    zSN = jnp.zeros((S_PAD, N_PAD), jnp.float32)
    pe = zSN                      # per-(system, j) pair energy partials
    px, py, pz = zSN, zSN, zSN    # per-(system, j) sum_i g*d
    pxx, pyy, pzz = zSN, zSN, zSN
    pxy, pxz, pyz = zSN, zSN, zSN

    # strip-mine the i axis: (STRIP, N_PAD) pair tiles keep live vregs bounded.
    for k in range(N_STRIPS):
        lo = k * STRIP
        hi = lo + STRIP

        blk = islab_ref[lo:hi, :]                       # (STRIP, 16), one load
        fi0 = blk[:, COL_POS + 0:COL_POS + 1]
        fi1 = blk[:, COL_POS + 1:COL_POS + 2]
        fi2 = blk[:, COL_POS + 2:COL_POS + 3]
        sys_i = blk[:, COL_SYS:COL_SYS + 1]
        coup = coup_ref[lo:hi, :]                       # (STRIP, N_PAD) slice

        d0 = fj0 - fi0
        d1 = fj1 - fi1
        d2 = fj2 - fi2
        if pbc:
            # minimum-image in precomputed fractional space, then map to
            # cartesian with atom-j's row-vector cell (cross-system pairs give
            # garbage but are masked below).
            s0 = d0 - jnp.round(d0)
            s1 = d1 - jnp.round(d1)
            s2 = d2 - jnp.round(d2)
            dx = s0 * cr[0] + s1 * cr[3] + s2 * cr[6]
            dy = s0 * cr[1] + s1 * cr[4] + s2 * cr[7]
            dz = s0 * cr[2] + s1 * cr[5] + s2 * cr[8]
        else:
            dx, dy, dz = d0, d1, d2

        r2 = dx * dx + dy * dy + dz * dz
        mask = (sys_i == sys_j) & (r2 < cut2) & (r2 > 1e-16)
        r2_safe = jnp.where(mask, r2, 1.0)
        inv_r = lax.rsqrt(r2_safe)              # one EUP pass replaces sqrt + div
        r = r2_safe * inv_r

        # fold the mask ONCE into the coupling; pair_e / g need no extra select
        coup_m = jnp.where(mask, coup, 0.0)

        # Morse pair function with smooth cosine cutoff
        ea = jnp.exp(-morse_a * (r - morse_r0))
        phi = ea * (ea - 2.0)
        dphi = (2.0 * morse_a) * (ea - ea * ea)
        t = pi_over_c * r
        fc = 0.5 * (jnp.cos(t) + 1.0)
        dfc = (-0.5 * pi_over_c) * jnp.sin(t)

        pair_e = coup_m * (phi * fc)
        g = coup_m * ((dphi * fc + phi * dfc) * inv_r)
        gdx = g * dx
        gdy = g * dy
        gdz = g * dz

        # per-system partial sums over i via one-hot matmul on the MXU:
        # result[s, j] = sum_{i in strip, sys(i)=s} m[i, j]
        oneh = oneh_ref[k * S_PAD:(k + 1) * S_PAD, :]   # (S_PAD, STRIP)

        def psum(m):
            return jnp.dot(oneh, m, preferred_element_type=jnp.float32)

        pe = pe + psum(pair_e)
        px = px + psum(gdx)
        py = py + psum(gdy)
        pz = pz + psum(gdz)
        pxx = pxx + psum(gdx * dx)
        pyy = pyy + psum(gdy * dy)
        pzz = pzz + psum(gdz * dz)
        pxy = pxy + psum(gdx * dy)
        pxz = pxz + psum(gdx * dz)
        pyz = pyz + psum(gdy * dz)

    # ---- assemble the merged lane-dense output slab ----
    # forces on atom j: F_j = -sum_i g[i,j] d[i,j] = -sum_s P[s,j]
    fx = -jnp.sum(px, axis=0, keepdims=True)            # (1, N_PAD)
    fy = -jnp.sum(py, axis=0, keepdims=True)
    fz = -jnp.sum(pz, axis=0, keepdims=True)
    row_iota = lax.broadcasted_iota(jnp.int32, (8, N_PAD), 0)
    force_rows = (jnp.where(row_iota == 0, fx, 0.0)
                  + jnp.where(row_iota == 1, fy, 0.0)
                  + jnp.where(row_iota == 2, fz, 0.0))
    out_ref[0:8, :] = force_rows                         # one unmasked store

    # per-system energy / 6 unique virial components: row = system (sublane),
    # lane q = quantity q, remaining lanes zero -> one unmasked (8,128) store.
    lane_iota = lax.broadcasted_iota(jnp.int32, (S_PAD, N_PAD), 1)

    def place(m, q):
        return jnp.where(lane_iota == q, jnp.sum(m, axis=1, keepdims=True), 0.0)

    sys_rows = 0.5 * (place(pe, 0)
                      + place(pxx, 1) + place(pyy, 2) + place(pzz, 3)
                      + place(pxy, 4) + place(pxz, 5) + place(pyz, 6))
    out_ref[8:16, :] = sys_rows


class GraphPESWrapperPallas:
    """JAX/Pallas analogue of torch_sim GraphPESWrapper with a synthetic PES."""

    def __init__(self, cutoff=3.0, *, compute_forces=True, compute_stress=True,
                 seed=42):
        self.cutoff = float(cutoff)
        self.compute_forces = compute_forces
        self.compute_stress = compute_stress
        self.morse_a = 1.5
        self.morse_r0 = 1.2
        k1, k2 = jax.random.split(jax.random.PRNGKey(seed))
        # deterministic synthetic "model parameters"
        self.emb_table = 0.1 * jax.random.normal(k1, (MAX_Z + 1, E_DIM),
                                                 jnp.float32)
        self.eps_table = 0.01 * jax.random.normal(k2, (MAX_Z + 1,), jnp.float32)
        # jit the whole forward so slab packing / linalg / segment_sum fuse
        # around the pallas_call (one dispatch instead of ~15).
        self._forward = jax.jit(self._forward_impl, static_argnames=("pbc",))

    def __call__(self, positions, cell, atomic_numbers, system_idx, pbc=True):
        return self._forward(positions, cell, atomic_numbers, system_idx,
                             pbc=bool(pbc))

    def _forward_impl(self, positions, cell, atomic_numbers, system_idx, pbc):
        positions = positions.astype(jnp.float32)
        cell = cell.astype(jnp.float32)
        system_idx = system_idx.astype(jnp.int32)
        n_atoms = positions.shape[0]
        n_systems = cell.shape[0]
        assert n_atoms <= N_PAD and n_systems <= S_PAD

        emb_atoms = self.emb_table[atomic_numbers]       # (N, E)
        eps_atoms = self.eps_table[atomic_numbers]       # (N,)
        sys_f = system_idx.astype(jnp.float32)

        if pbc:
            inv_cell = jnp.linalg.inv(cell)
            # per-atom fractional coordinates (row-vector convention)
            pos_feat = jnp.einsum("na,nab->nb", positions, inv_cell[system_idx])
        else:
            pos_feat = positions

        # ---- packed, padded operands (3 DMAs) ----
        jslab = jnp.zeros((JSLAB_ROWS, N_PAD), jnp.float32)
        jslab = jslab.at[ROW_SYS, :].set(-1.0)           # padding sentinel
        jslab = jslab.at[ROW_POS:ROW_POS + 3, :n_atoms].set(pos_feat.T)
        jslab = jslab.at[ROW_SYS, :n_atoms].set(sys_f)
        jslab = jslab.at[ROW_EMB:ROW_EMB + E_DIM, :n_atoms].set(emb_atoms.T)
        if pbc:
            cell_atom = cell[system_idx].reshape(n_atoms, 9)
            jslab = jslab.at[ROW_CELL:ROW_CELL + 9, :n_atoms].set(cell_atom.T)

        islab = jnp.zeros((N_PAD, ISLAB_COLS), jnp.float32)
        islab = islab.at[:, COL_SYS].set(-1.0)           # padding sentinel
        islab = islab.at[:n_atoms, COL_POS:COL_POS + 3].set(pos_feat)
        islab = islab.at[:n_atoms, COL_SYS].set(sys_f)
        islab = islab.at[:n_atoms, COL_EMB:COL_EMB + E_DIM].set(emb_atoms)

        sys1h = jnp.zeros((S_PAD, N_PAD), jnp.float32).at[
            system_idx, jnp.arange(n_atoms)].set(1.0)
        oneh_strips = sys1h.reshape(S_PAD, N_STRIPS, STRIP).transpose(1, 0, 2)
        oneh_strips = oneh_strips.reshape(N_STRIPS * S_PAD, STRIP)

        kernel = functools.partial(
            _graphpes_pair_kernel, cutoff=self.cutoff,
            morse_a=self.morse_a, morse_r0=self.morse_r0, pbc=pbc)

        full = lambda shape: pl.BlockSpec(shape, lambda i: (0, 0))
        out_pad = pl.pallas_call(
            kernel,
            grid=(1,),
            in_specs=[
                full((JSLAB_ROWS, N_PAD)),
                full((N_PAD, ISLAB_COLS)),
                full((N_STRIPS * S_PAD, STRIP)),
            ],
            out_specs=full((OUT_ROWS, N_PAD)),
            out_shape=jax.ShapeDtypeStruct((OUT_ROWS, N_PAD), jnp.float32),
            scratch_shapes=[pltpu.VMEM((N_PAD, N_PAD), jnp.float32)],
            compiler_params=pltpu.CompilerParams(
                dimension_semantics=("arbitrary",)),
            cost_estimate=pl.CostEstimate(
                flops=4_000_000, transcendentals=66_000, bytes_accessed=40_000),
        )(jslab, islab, oneh_strips)

        # per-atom energy offsets are summed per system outside the kernel
        eps_sys = jax.ops.segment_sum(eps_atoms, system_idx, n_systems)
        energy = out_pad[8:8 + n_systems, 0] + eps_sys
        results = {"energy": energy}
        if self.compute_forces:
            results["forces"] = out_pad[0:3, :n_atoms].T
        if self.compute_stress:
            vxx = out_pad[8:8 + n_systems, 1]
            vyy = out_pad[8:8 + n_systems, 2]
            vzz = out_pad[8:8 + n_systems, 3]
            vxy = out_pad[8:8 + n_systems, 4]
            vxz = out_pad[8:8 + n_systems, 5]
            vyz = out_pad[8:8 + n_systems, 6]
            virial = jnp.stack([
                jnp.stack([vxx, vxy, vxz], axis=-1),
                jnp.stack([vxy, vyy, vyz], axis=-1),
                jnp.stack([vxz, vyz, vzz], axis=-1)], axis=-2)
            volume = jnp.abs(jnp.linalg.det(cell))
            results["stress"] = virial / volume[:, None, None]
        return results


def _reference(positions, cell, atomic_numbers, system_idx, pbc, model):
    """Pure-JAX reference with identical semantics."""
    n_systems = cell.shape[0]
    emb = model.emb_table[atomic_numbers]
    eps = model.eps_table[atomic_numbers]
    inv_cell = jnp.linalg.inv(cell) if pbc else jnp.zeros_like(cell)
    cell_j = cell[system_idx]
    inv_j = inv_cell[system_idx]
    d = positions[None, :, :] - positions[:, None, :]        # d[i,j] = Rj - Ri
    frac = jnp.einsum("ija,jab->ijb", d, inv_j)
    n = jnp.round(frac)
    d = d - jnp.einsum("ijb,jba->ija", n, cell_j)
    r = jnp.sqrt(jnp.sum(d * d, axis=-1))
    coup = emb @ emb.T
    same = system_idx[:, None] == system_idx[None, :]
    mask = same & (r < model.cutoff) & (r > 1e-8)
    r_safe = jnp.where(mask, r, 1.0)
    ea = jnp.exp(-model.morse_a * (r_safe - model.morse_r0))
    phi = ea * ea - 2.0 * ea
    dphi = -2.0 * model.morse_a * ea * ea + 2.0 * model.morse_a * ea
    t = (jnp.pi / model.cutoff) * r_safe
    fc = 0.5 * (jnp.cos(t) + 1.0)
    dfc = -0.5 * (jnp.pi / model.cutoff) * jnp.sin(t)
    pair_e = jnp.where(mask, coup * (phi * fc), 0.0)
    g = jnp.where(mask, coup * (dphi * fc + phi * dfc) / r_safe, 0.0)
    e_atom = 0.5 * jnp.sum(pair_e, axis=1) + eps
    energy = jax.ops.segment_sum(e_atom, system_idx, n_systems)
    forces = -jnp.einsum("ij,ija->ja", g, d)
    v_atom = 0.5 * jnp.einsum("ij,ija,ijb->iab", g, d, d)
    virial = jax.ops.segment_sum(v_atom, system_idx, n_systems)
    volume = jnp.abs(jnp.linalg.det(cell))
    stress = virial / volume[:, None, None]
    return {"energy": energy, "forces": forces, "stress": stress}


if __name__ == "__main__":
    key = jax.random.PRNGKey(0)
    k_p1, k_p2, k_z = jax.random.split(key, 3)
    n1, n2 = 12, 14
    cell = jnp.array(
        [[[6.0, 0.0, 0.0], [0.5, 6.2, 0.0], [0.0, 0.3, 5.8]],
         [[7.0, 0.0, 0.0], [0.0, 7.0, 0.0], [0.0, 0.0, 7.0]]],
        dtype=jnp.float32)
    pos1 = jax.random.uniform(k_p1, (n1, 3), jnp.float32) @ cell[0]
    pos2 = jax.random.uniform(k_p2, (n2, 3), jnp.float32) @ cell[1]
    positions = jnp.concatenate([pos1, pos2], axis=0)
    atomic_numbers = jax.random.randint(k_z, (n1 + n2,), 1, 104)
    system_idx = jnp.concatenate(
        [jnp.zeros(n1, jnp.int32), jnp.ones(n2, jnp.int32)])

    model = GraphPESWrapperPallas(cutoff=3.0,
                                  compute_forces=True, compute_stress=True)

    for pbc in (True, False):
        out = model(positions, cell, atomic_numbers, system_idx, pbc=pbc)
        jax.block_until_ready(out)
        ref = _reference(positions, cell, atomic_numbers, system_idx, pbc, model)
        for name in ("energy", "forces", "stress"):
            assert jnp.allclose(out[name], ref[name], rtol=1e-3, atol=1e-3), (
                pbc, name, out[name], ref[name])

    print("KERNEL_OK")
</pallas_src>

<mosaic_0001>
module attributes {stable_mosaic.version = 11 : i64} {
  func.func @_graphpes_pair_kernel(%arg0: i32, %arg1: memref<24x128xf32, #tpu.memory_space<vmem>>, %arg2: memref<128x16xf32, #tpu.memory_space<vmem>>, %arg3: memref<32x32xf32, #tpu.memory_space<vmem>>, %arg4: memref<16x128xf32, #tpu.memory_space<vmem>>, %arg5: memref<128x128xf32, #tpu.memory_space<vmem>>) attributes {dimension_semantics = [#tpu.dimension_semantics<arbitrary>], iteration_bounds = array<i64: 1>, scalar_prefetch = 0 : i64, scratch_operands = 1 : i64, tpu.core_type = #tpu.core_type<tc>, window_params = [{pipeline_mode = #tpu.pipeline_mode<synchronous>, transform_indices = @transform_0, window_bounds = array<i64: 24, 128>}, {pipeline_mode = #tpu.pipeline_mode<synchronous>, transform_indices = @transform_1, window_bounds = array<i64: 128, 16>}, {pipeline_mode = #tpu.pipeline_mode<synchronous>, transform_indices = @transform_2, window_bounds = array<i64: 32, 32>}, {pipeline_mode = #tpu.pipeline_mode<synchronous>, transform_indices = @transform_3, window_bounds = array<i64: 16, 128>}]} {
    %c0 = arith.constant 0 : index
    %c8 = arith.constant 8 : index
    %0 = vector.load %arg2[%c0, %c8] : memref<128x16xf32, #tpu.memory_space<vmem>>, vector<128x8xf32>
    %c4 = arith.constant 4 : index
    %c0_0 = arith.constant 0 : index
    %1 = vector.load %arg1[%c4, %c0_0] : memref<24x128xf32, #tpu.memory_space<vmem>>, vector<8x128xf32>
    %cst = arith.constant dense<0.000000e+00> : vector<128x128xf32>
    %2 = tpu.matmul %0, %1, %cst {dimension_numbers = #tpu.dot_dimension_numbers<[1], [0], [0], [1], [0, 0, 1, 1], [], []>} : vector<128x8xf32>, vector<8x128xf32>, vector<128x128xf32> -> vector<128x128xf32>
    %c0_1 = arith.constant 0 : index
    %c0_2 = arith.constant 0 : index
    %3 = vector.load %arg5[%c0_1, %c0_2] : memref<128x128xf32, #tpu.memory_space<vmem>>, vector<128x128xf32>
    tpu.vector_store %arg5[%c0_1, %c0_2], %2 {strides = array<i32>} : memref<128x128xf32, #tpu.memory_space<vmem>>, vector<128x128xf32>,
    %c0_3 = arith.constant 0 : index
    %c0_4 = arith.constant 0 : index
    %4 = vector.load %arg1[%c0_3, %c0_4] : memref<24x128xf32, #tpu.memory_space<vmem>>, vector<1x128xf32>
    %c1 = arith.constant 1 : index
    %c0_5 = arith.constant 0 : index
    %5 = vector.load %arg1[%c1, %c0_5] : memref<24x128xf32, #tpu.memory_space<vmem>>, vector<1x128xf32>
    %c2 = arith.constant 2 : index
    %c0_6 = arith.constant 0 : index
    %6 = vector.load %arg1[%c2, %c0_6] : memref<24x128xf32, #tpu.memory_space<vmem>>, vector<1x128xf32>
    %c3 = arith.constant 3 : index
    %c0_7 = arith.constant 0 : index
    %7 = vector.load %arg1[%c3, %c0_7] : memref<24x128xf32, #tpu.memory_space<vmem>>, vector<1x128xf32>
    %c12 = arith.constant 12 : index
    %c0_8 = arith.constant 0 : index
    %8 = vector.load %arg1[%c12, %c0_8] : memref<24x128xf32, #tpu.memory_space<vmem>>, vector<1x128xf32>
    %c13 = arith.constant 13 : index
    %c0_9 = arith.constant 0 : index
    %9 = vector.load %arg1[%c13, %c0_9] : memref<24x128xf32, #tpu.memory_space<vmem>>, vector<1x128xf32>
    %c14 = arith.constant 14 : index
    %c0_10 = arith.constant 0 : index
    %10 = vector.load %arg1[%c14, %c0_10] : memref<24x128xf32, #tpu.memory_space<vmem>>, vector<1x128xf32>
    %c15 = arith.constant 15 : index
    %c0_11 = arith.constant 0 : index
    %11 = vector.load %arg1[%c15, %c0_11] : memref<24x128xf32, #tpu.memory_space<vmem>>, vector<1x128xf32>
    %c16 = arith.constant 16 : index
    %c0_12 = arith.constant 0 : index
    %12 = vector.load %arg1[%c16, %c0_12] : memref<24x128xf32, #tpu.memory_space<vmem>>, vector<1x128xf32>
    %c17 = arith.constant 17 : index
    %c0_13 = arith.constant 0 : index
    %13 = vector.load %arg1[%c17, %c0_13] : memref<24x128xf32, #tpu.memory_space<vmem>>, vector<1x128xf32>
    %c18 = arith.constant 18 : index
    %c0_14 = arith.constant 0 : index
    %14 = vector.load %arg1[%c18, %c0_14] : memref<24x128xf32, #tpu.memory_space<vmem>>, vector<1x128xf32>
    %c19 = arith.constant 19 : index
    %c0_15 = arith.constant 0 : index
    %15 = vector.load %arg1[%c19, %c0_15] : memref<24x128xf32, #tpu.memory_space<vmem>>, vector<1x128xf32>
    %c20 = arith.constant 20 : index
    %c0_16 = arith.constant 0 : index
    %16 = vector.load %arg1[%c20, %c0_16] : memref<24x128xf32, #tpu.memory_space<vmem>>, vector<1x128xf32>
    %cst_17 = arith.constant 0.000000e+00 : f32
    %17 = vector.broadcast %cst_17 : f32 to vector<8x128xf32>
    %c0_18 = arith.constant 0 : index
    %c0_19 = arith.constant 0 : index
    %18 = vector.load %arg2[%c0_18, %c0_19] : memref<128x16xf32, #tpu.memory_space<vmem>>, vector<32x16xf32>
    %19 = vector.extract_strided_slice %18 {offsets = [0, 0], sizes = [32, 1], strides = [1, 1]} : vector<32x16xf32> to vector<32x1xf32>
    %20 = vector.extract_strided_slice %18 {offsets = [0, 1], sizes = [32, 1], strides = [1, 1]} : vector<32x16xf32> to vector<32x1xf32>
    %21 = vector.extract_strided_slice %18 {offsets = [0, 2], sizes = [32, 1], strides = [1, 1]} : vector<32x16xf32> to vector<32x1xf32>
    %22 = vector.extract_strided_slice %18 {offsets = [0, 3], sizes = [32, 1], strides = [1, 1]} : vector<32x16xf32> to vector<32x1xf32>
    %c0_20 = arith.constant 0 : index
    %c0_21 = arith.constant 0 : index
    %23 = vector.load %arg5[%c0_20, %c0_21] : memref<128x128xf32, #tpu.memory_space<vmem>>, vector<32x128xf32>
    %24 = vector.broadcast %4 : vector<1x128xf32> to vector<32x128xf32>
    %25 = vector.broadcast %19 : vector<32x1xf32> to vector<32x128xf32>
    %26 = arith.subf %24, %25 : vector<32x128xf32>
    %27 = vector.broadcast %5 : vector<1x128xf32> to vector<32x128xf32>
    %28 = vector.broadcast %20 : vector<32x1xf32> to vector<32x128xf32>
    %29 = arith.subf %27, %28 : vector<32x128xf32>
    %30 = vector.broadcast %6 : vector<1x128xf32> to vector<32x128xf32>
    %31 = vector.broadcast %21 : vector<32x1xf32> to vector<32x128xf32>
    %32 = arith.subf %30, %31 : vector<32x128xf32>
    %33 = math.roundeven %26 : vector<32x128xf32>
    %34 = arith.subf %26, %33 : vector<32x128xf32>
    %35 = math.roundeven %29 : vector<32x128xf32>
    %36 = arith.subf %29, %35 : vector<32x128xf32>
    %37 = math.roundeven %32 : vector<32x128xf32>
    %38 = arith.subf %32, %37 : vector<32x128xf32>
    %39 = vector.broadcast %8 : vector<1x128xf32> to vector<32x128xf32>
    %40 = arith.mulf %34, %39 : vector<32x128xf32>
    %41 = vector.broadcast %11 : vector<1x128xf32> to vector<32x128xf32>
    %42 = arith.mulf %36, %41 : vector<32x128xf32>
    %43 = arith.addf %40, %42 : vector<32x128xf32>
    %44 = vector.broadcast %14 : vector<1x128xf32> to vector<32x128xf32>
    %45 = arith.mulf %38, %44 : vector<32x128xf32>
    %46 = arith.addf %43, %45 : vector<32x128xf32>
    %47 = vector.broadcast %9 : vector<1x128xf32> to vector<32x128xf32>
    %48 = arith.mulf %34, %47 : vector<32x128xf32>
    %49 = vector.broadcast %12 : vector<1x128xf32> to vector<32x128xf32>
    %50 = arith.mulf %36, %49 : vector<32x128xf32>
    %51 = arith.addf %48, %50 : vector<32x128xf32>
    %52 = vector.broadcast %15 : vector<1x128xf32> to vector<32x128xf32>
    %53 = arith.mulf %38, %52 : vector<32x128xf32>
    %54 = arith.addf %51, %53 : vector<32x128xf32>
    %55 = vector.broadcast %10 : vector<1x128xf32> to vector<32x128xf32>
    %56 = arith.mulf %34, %55 : vector<32x128xf32>
    %57 = vector.broadcast %13 : vector<1x128xf32> to vector<32x128xf32>
    %58 = arith.mulf %36, %57 : vector<32x128xf32>
    %59 = arith.addf %56, %58 : vector<32x128xf32>
    %60 = vector.broadcast %16 : vector<1x128xf32> to vector<32x128xf32>
    %61 = arith.mulf %38, %60 : vector<32x128xf32>
    %62 = arith.addf %59, %61 : vector<32x128xf32>
    %63 = arith.mulf %46, %46 : vector<32x128xf32>
    %64 = arith.mulf %54, %54 : vector<32x128xf32>
    %65 = arith.addf %63, %64 : vector<32x128xf32>
    %66 = arith.mulf %62, %62 : vector<32x128xf32>
    %67 = arith.addf %65, %66 : vector<32x128xf32>
    %68 = vector.broadcast %22 : vector<32x1xf32> to vector<32x128xf32>
    %69 = vector.broadcast %7 : vector<1x128xf32> to vector<32x128xf32>
    %70 = arith.cmpf oeq, %68, %69 : vector<32x128xf32>
    %cst_22 = arith.constant 9.000000e+00 : f32
    %71 = vector.broadcast %cst_22 : f32 to vector<32x128xf32>
    %72 = arith.cmpf olt, %67, %71 : vector<32x128xf32>
    %73 = arith.andi %70, %72 : vector<32x128xi1>
    %cst_23 = arith.constant 1.000000e-16 : f32
    %74 = vector.broadcast %cst_23 : f32 to vector<32x128xf32>
    %75 = arith.cmpf ogt, %67, %74 : vector<32x128xf32>
    %76 = arith.andi %73, %75 : vector<32x128xi1>
    %cst_24 = arith.constant 1.000000e+00 : f32
    %77 = vector.broadcast %cst_24 : f32 to vector<32x128xf32>
    %78 = arith.select %76, %67, %77 : vector<32x128xi1>, vector<32x128xf32>
    %79 = math.rsqrt %78 : vector<32x128xf32>
    %80 = arith.mulf %78, %79 : vector<32x128xf32>
    %cst_25 = arith.constant 0.000000e+00 : f32
    %81 = vector.broadcast %cst_25 : f32 to vector<32x128xf32>
    %82 = arith.select %76, %23, %81 : vector<32x128xi1>, vector<32x128xf32>
    %cst_26 = arith.constant 1.200000e+00 : f32
    %83 = vector.broadcast %cst_26 : f32 to vector<32x128xf32>
    %84 = arith.subf %80, %83 : vector<32x128xf32>
    %cst_27 = arith.constant -1.500000e+00 : f32
    %85 = vector.broadcast %cst_27 : f32 to vector<32x128xf32>
    %86 = arith.mulf %85, %84 : vector<32x128xf32>
    %87 = math.exp %86 : vector<32x128xf32>
    %cst_28 = arith.constant 2.000000e+00 : f32
    %88 = vector.broadcast %cst_28 : f32 to vector<32x128xf32>
    %89 = arith.subf %87, %88 : vector<32x128xf32>
    %90 = arith.mulf %87, %89 : vector<32x128xf32>
    %91 = arith.mulf %87, %87 : vector<32x128xf32>
    %92 = arith.subf %87, %91 : vector<32x128xf32>
    %cst_29 = arith.constant 3.000000e+00 : f32
    %93 = vector.broadcast %cst_29 : f32 to vector<32x128xf32>
    %94 = arith.mulf %93, %92 : vector<32x128xf32>
    %cst_30 = arith.constant 1.04719758 : f32
    %95 = vector.broadcast %cst_30 : f32 to vector<32x128xf32>
    %96 = arith.mulf %95, %80 : vector<32x128xf32>
    %97 = math.cos %96 : vector<32x128xf32>
    %cst_31 = arith.constant 1.000000e+00 : f32
    %98 = vector.broadcast %cst_31 : f32 to vector<32x128xf32>
    %99 = arith.addf %97, %98 : vector<32x128xf32>
    %cst_32 = arith.constant 5.000000e-01 : f32
    %100 = vector.broadcast %cst_32 : f32 to vector<32x128xf32>
    %101 = arith.mulf %100, %99 : vector<32x128xf32>
    %102 = math.sin %96 : vector<32x128xf32>
    %cst_33 = arith.constant -0.52359879 : f32
    %103 = vector.broadcast %cst_33 : f32 to vector<32x128xf32>
    %104 = arith.mulf %103, %102 : vector<32x128xf32>
    %105 = arith.mulf %90, %101 : vector<32x128xf32>
    %106 = arith.mulf %82, %105 : vector<32x128xf32>
    %107 = arith.mulf %94, %101 : vector<32x128xf32>
    %108 = arith.mulf %90, %104 : vector<32x128xf32>
    %109 = arith.addf %107, %108 : vector<32x128xf32>
    %110 = arith.mulf %109, %79 : vector<32x128xf32>
    %111 = arith.mulf %82, %110 : vector<32x128xf32>
    %112 = arith.mulf %111, %46 : vector<32x128xf32>
    %113 = arith.mulf %111, %54 : vector<32x128xf32>
    %114 = arith.mulf %111, %62 : vector<32x128xf32>
    %c0_34 = arith.constant 0 : index
    %c0_35 = arith.constant 0 : index
    %115 = vector.load %arg3[%c0_34, %c0_35] : memref<32x32xf32, #tpu.memory_space<vmem>>, vector<8x32xf32>
    %cst_36 = arith.constant dense<0.000000e+00> : vector<8x128xf32>
    %116 = tpu.matmul %115, %106, %cst_36 {dimension_numbers = #tpu.dot_dimension_numbers<[1], [0], [0], [1], [0, 0, 1, 1], [], []>} : vector<8x32xf32>, vector<32x128xf32>, vector<8x128xf32> -> vector<8x128xf32>
    %117 = arith.addf %17, %116 : vector<8x128xf32>
    %cst_37 = arith.constant dense<0.000000e+00> : vector<8x128xf32>
    %118 = tpu.matmul %115, %112, %cst_37 {dimension_numbers = #tpu.dot_dimension_numbers<[1], [0], [0], [1], [0, 0, 1, 1], [], []>} : vector<8x32xf32>, vector<32x128xf32>, vector<8x128xf32> -> vector<8x128xf32>
    %119 = arith.addf %17, %118 : vector<8x128xf32>
    %cst_38 = arith.constant dense<0.000000e+00> : vector<8x128xf32>
    %120 = tpu.matmul %115, %113, %cst_38 {dimension_numbers = #tpu.dot_dimension_numbers<[1], [0], [0], [1], [0, 0, 1, 1], [], []>} : vector<8x32xf32>, vector<32x128xf32>, vector<8x128xf32> -> vector<8x128xf32>
    %121 = arith.addf %17, %120 : vector<8x128xf32>
    %cst_39 = arith.constant dense<0.000000e+00> : vector<8x128xf32>
    %122 = tpu.matmul %115, %114, %cst_39 {dimension_numbers = #tpu.dot_dimension_numbers<[1], [0], [0], [1], [0, 0, 1, 1], [], []>} : vector<8x32xf32>, vector<32x128xf32>, vector<8x128xf32> -> vector<8x128xf32>
    %123 = arith.addf %17, %122 : vector<8x128xf32>
    %124 = arith.mulf %112, %46 : vector<32x128xf32>
    %cst_40 = arith.constant dense<0.000000e+00> : vector<8x128xf32>
    %125 = tpu.matmul %115, %124, %cst_40 {dimension_numbers = #tpu.dot_dimension_numbers<[1], [0], [0], [1], [0, 0, 1, 1], [], []>} : vector<8x32xf32>, vector<32x128xf32>, vector<8x128xf32> -> vector<8x128xf32>
    %126 = arith.addf %17, %125 : vector<8x128xf32>
    %127 = arith.mulf %113, %54 : vector<32x128xf32>
    %cst_41 = arith.constant dense<0.000000e+00> : vector<8x128xf32>
    %128 = tpu.matmul %115, %127, %cst_41 {dimension_numbers = #tpu.dot_dimension_numbers<[1], [0], [0], [1], [0, 0, 1, 1], [], []>} : vector<8x32xf32>, vector<32x128xf32>, vector<8x128xf32> -> vector<8x128xf32>
    %129 = arith.addf %17, %128 : vector<8x128xf32>
    %130 = arith.mulf %114, %62 : vector<32x128xf32>
    %cst_42 = arith.constant dense<0.000000e+00> : vector<8x128xf32>
    %131 = tpu.matmul %115, %130, %cst_42 {dimension_numbers = #tpu.dot_dimension_numbers<[1], [0], [0], [1], [0, 0, 1, 1], [], []>} : vector<8x32xf32>, vector<32x128xf32>, vector<8x128xf32> -> vector<8x128xf32>
    %132 = arith.addf %17, %131 : vector<8x128xf32>
    %133 = arith.mulf %112, %54 : vector<32x128xf32>
    %cst_43 = arith.constant dense<0.000000e+00> : vector<8x128xf32>
    %134 = tpu.matmul %115, %133, %cst_43 {dimension_numbers = #tpu.dot_dimension_numbers<[1], [0], [0], [1], [0, 0, 1, 1], [], []>} : vector<8x32xf32>, vector<32x128xf32>, vector<8x128xf32> -> vector<8x128xf32>
    %135 = arith.addf %17, %134 : vector<8x128xf32>
    %136 = arith.mulf %112, %62 : vector<32x128xf32>
    %cst_44 = arith.constant dense<0.000000e+00> : vector<8x128xf32>
    %137 = tpu.matmul %115, %136, %cst_44 {dimension_numbers = #tpu.dot_dimension_numbers<[1], [0], [0], [1], [0, 0, 1, 1], [], []>} : vector<8x32xf32>, vector<32x128xf32>, vector<8x128xf32> -> vector<8x128xf32>
    %138 = arith.addf %17, %137 : vector<8x128xf32>
    %139 = arith.mulf %113, %62 : vector<32x128xf32>
    %cst_45 = arith.constant dense<0.000000e+00> : vector<8x128xf32>
    %140 = tpu.matmul %115, %139, %cst_45 {dimension_numbers = #tpu.dot_dimension_numbers<[1], [0], [0], [1], [0, 0, 1, 1], [], []>} : vector<8x32xf32>, vector<32x128xf32>, vector<8x128xf32> -> vector<8x128xf32>
    %141 = arith.addf %17, %140 : vector<8x128xf32>
    %c32 = arith.constant 32 : index
    %c0_46 = arith.constant 0 : index
    %142 = vector.load %arg2[%c32, %c0_46] : memref<128x16xf32, #tpu.memory_space<vmem>>, vector<32x16xf32>
    %143 = vector.extract_strided_slice %142 {offsets = [0, 0], sizes = [32, 1], strides = [1, 1]} : vector<32x16xf32> to vector<32x1xf32>
    %144 = vector.extract_strided_slice %142 {offsets = [0, 1], sizes = [32, 1], strides = [1, 1]} : vector<32x16xf32> to vector<32x1xf32>
    %145 = vector.extract_strided_slice %142 {offsets = [0, 2], sizes = [32, 1], strides = [1, 1]} : vector<32x16xf32> to vector<32x1xf32>
    %146 = vector.extract_strided_slice %142 {offsets = [0, 3], sizes = [32, 1], strides = [1, 1]} : vector<32x16xf32> to vector<32x1xf32>
    %c32_47 = arith.constant 32 : index
    %c0_48 = arith.constant 0 : index
    %147 = vector.load %arg5[%c32_47, %c0_48] : memref<128x128xf32, #tpu.memory_space<vmem>>, vector<32x128xf32>
    %148 = vector.broadcast %4 : vector<1x128xf32> to vector<32x128xf32>
    %149 = vector.broadcast %143 : vector<32x1xf32> to vector<32x128xf32>
    %150 = arith.subf %148, %149 : vector<32x128xf32>
    %151 = vector.broadcast %5 : vector<1x128xf32> to vector<32x128xf32>
    %152 = vector.broadcast %144 : vector<32x1xf32> to vector<32x128xf32>
    %153 = arith.subf %151, %152 : vector<32x128xf32>
    %154 = vector.broadcast %6 : vector<1x128xf32> to vector<32x128xf32>
    %155 = vector.broadcast %145 : vector<32x1xf32> to vector<32x128xf32>
    %156 = arith.subf %154, %155 : vector<32x128xf32>
    %157 = math.roundeven %150 : vector<32x128xf32>
    %158 = arith.subf %150, %157 : vector<32x128xf32>
    %159 = math.roundeven %153 : vector<32x128xf32>
    %160 = arith.subf %153, %159 : vector<32x128xf32>
    %161 = math.roundeven %156 : vector<32x128xf32>
    %162 = arith.subf %156, %161 : vector<32x128xf32>
    %163 = vector.broadcast %8 : vector<1x128xf32> to vector<32x128xf32>
    %164 = arith.mulf %158, %163 : vector<32x128xf32>
    %165 = vector.broadcast %11 : vector<1x128xf32> to vector<32x128xf32>
    %166 = arith.mulf %160, %165 : vector<32x128xf32>
    %167 = arith.addf %164, %166 : vector<32x128xf32>
    %168 = vector.broadcast %14 : vector<1x128xf32> to vector<32x128xf32>
    %169 = arith.mulf %162, %168 : vector<32x128xf32>
    %170 = arith.addf %167, %169 : vector<32x128xf32>
    %171 = vector.broadcast %9 : vector<1x128xf32> to vector<32x128xf32>
    %172 = arith.mulf %158, %171 : vector<32x128xf32>
    %173 = vector.broadcast %12 : vector<1x128xf32> to vector<32x128xf32>
    %174 = arith.mulf %160, %173 : vector<32x128xf32>
    %175 = arith.addf %172, %174 : vector<32x128xf32>
    %176 = vector.broadcast %15 : vector<1x128xf32> to vector<32x128xf32>
    %177 = arith.mulf %162, %176 : vector<32x128xf32>
    %178 = arith.addf %175, %177 : vector<32x128xf32>
    %179 = vector.broadcast %10 : vector<1x128xf32> to vector<32x128xf32>
    %180 = arith.mulf %158, %179 : vector<32x128xf32>
    %181 = vector.broadcast %13 : vector<1x128xf32> to vector<32x128xf32>
    %182 = arith.mulf %160, %181 : vector<32x128xf32>
    %183 = arith.addf %180, %182 : vector<32x128xf32>
    %184 = vector.broadcast %16 : vector<1x128xf32> to vector<32x128xf32>
    %185 = arith.mulf %162, %184 : vector<32x128xf32>
    %186 = arith.addf %183, %185 : vector<32x128xf32>
    %187 = arith.mulf %170, %170 : vector<32x128xf32>
    %188 = arith.mulf %178, %178 : vector<32x128xf32>
    %189 = arith.addf %187, %188 : vector<32x128xf32>
    %190 = arith.mulf %186, %186 : vector<32x128xf32>
    %191 = arith.addf %189, %190 : vector<32x128xf32>
    %192 = vector.broadcast %146 : vector<32x1xf32> to vector<32x128xf32>
    %193 = vector.broadcast %7 : vector<1x128xf32> to vector<32x128xf32>
    %194 = arith.cmpf oeq, %192, %193 : vector<32x128xf32>
    %cst_49 = arith.constant 9.000000e+00 : f32
    %195 = vector.broadcast %cst_49 : f32 to vector<32x128xf32>
    %196 = arith.cmpf olt, %191, %195 : vector<32x128xf32>
    %197 = arith.andi %194, %196 : vector<32x128xi1>
    %cst_50 = arith.constant 1.000000e-16 : f32
    %198 = vector.broadcast %cst_50 : f32 to vector<32x128xf32>
    %199 = arith.cmpf ogt, %191, %198 : vector<32x128xf32>
    %200 = arith.andi %197, %199 : vector<32x128xi1>
    %cst_51 = arith.constant 1.000000e+00 : f32
    %201 = vector.broadcast %cst_51 : f32 to vector<32x128xf32>
    %202 = arith.select %200, %191, %201 : vector<32x128xi1>, vector<32x128xf32>
    %203 = math.rsqrt %202 : vector<32x128xf32>
    %204 = arith.mulf %202, %203 : vector<32x128xf32>
    %cst_52 = arith.constant 0.000000e+00 : f32
    %205 = vector.broadcast %cst_52 : f32 to vector<32x128xf32>
    %206 = arith.select %200, %147, %205 : vector<32x128xi1>, vector<32x128xf32>
    %cst_53 = arith.constant 1.200000e+00 : f32
    %207 = vector.broadcast %cst_53 : f32 to vector<32x128xf32>
    %208 = arith.subf %204, %207 : vector<32x128xf32>
    %cst_54 = arith.constant -1.500000e+00 : f32
    %209 = vector.broadcast %cst_54 : f32 to vector<32x128xf32>
    %210 = arith.mulf %209, %208 : vector<32x128xf32>
    %211 = math.exp %210 : vector<32x128xf32>
    %cst_55 = arith.constant 2.000000e+00 : f32
    %212 = vector.broadcast %cst_55 : f32 to vector<32x128xf32>
    %213 = arith.subf %211, %212 : vector<32x128xf32>
    %214 = arith.mulf %211, %213 : vector<32x128xf32>
    %215 = arith.mulf %211, %211 : vector<32x128xf32>
    %216 = arith.subf %211, %215 : vector<32x128xf32>
    %cst_56 = arith.constant 3.000000e+00 : f32
    %217 = vector.broadcast %cst_56 : f32 to vector<32x128xf32>
    %218 = arith.mulf %217, %216 : vector<32x128xf32>
    %cst_57 = arith.constant 1.04719758 : f32
    %219 = vector.broadcast %cst_57 : f32 to vector<32x128xf32>
    %220 = arith.mulf %219, %204 : vector<32x128xf32>
    %221 = math.cos %220 : vector<32x128xf32>
    %cst_58 = arith.constant 1.000000e+00 : f32
    %222 = vector.broadcast %cst_58 : f32 to vector<32x128xf32>
    %223 = arith.addf %221, %222 : vector<32x128xf32>
    %cst_59 = arith.constant 5.000000e-01 : f32
    %224 = vector.broadcast %cst_59 : f32 to vector<32x128xf32>
    %225 = arith.mulf %224, %223 : vector<32x128xf32>
    %226 = math.sin %220 : vector<32x128xf32>
    %cst_60 = arith.constant -0.52359879 : f32
    %227 = vector.broadcast %cst_60 : f32 to vector<32x128xf32>
    %228 = arith.mulf %227, %226 : vector<32x128xf32>
    %229 = arith.mulf %214, %225 : vector<32x128xf32>
    %230 = arith.mulf %206, %229 : vector<32x128xf32>
    %231 = arith.mulf %218, %225 : vector<32x128xf32>
    %232 = arith.mulf %214, %228 : vector<32x128xf32>
    %233 = arith.addf %231, %232 : vector<32x128xf32>
    %234 = arith.mulf %233, %203 : vector<32x128xf32>
    %235 = arith.mulf %206, %234 : vector<32x128xf32>
    %236 = arith.mulf %235, %170 : vector<32x128xf32>
    %237 = arith.mulf %235, %178 : vector<32x128xf32>
    %238 = arith.mulf %235, %186 : vector<32x128xf32>
    %c8_61 = arith.constant 8 : index
    %c0_62 = arith.constant 0 : index
    %239 = vector.load %arg3[%c8_61, %c0_62] : memref<32x32xf32, #tpu.memory_space<vmem>>, vector<8x32xf32>
    %cst_63 = arith.constant dense<0.000000e+00> : vector<8x128xf32>
    %240 = tpu.matmul %239, %230, %cst_63 {dimension_numbers = #tpu.dot_dimension_numbers<[1], [0], [0], [1], [0, 0, 1, 1], [], []>} : vector<8x32xf32>, vector<32x128xf32>, vector<8x128xf32> -> vector<8x128xf32>
    %241 = arith.addf %117, %240 : vector<8x128xf32>
    %cst_64 = arith.constant dense<0.000000e+00> : vector<8x128xf32>
    %242 = tpu.matmul %239, %236, %cst_64 {dimension_numbers = #tpu.dot_dimension_numbers<[1], [0], [0], [1], [0, 0, 1, 1], [], []>} : vector<8x32xf32>, vector<32x128xf32>, vector<8x128xf32> -> vector<8x128xf32>
    %243 = arith.addf %119, %242 : vector<8x128xf32>
    %cst_65 = arith.constant dense<0.000000e+00> : vector<8x128xf32>
    %244 = tpu.matmul %239, %237, %cst_65 {dimension_numbers = #tpu.dot_dimension_numbers<[1], [0], [0], [1], [0, 0, 1, 1], [], []>} : vector<8x32xf32>, vector<32x128xf32>, vector<8x128xf32> -> vector<8x128xf32>
    %245 = arith.addf %121, %244 : vector<8x128xf32>
    %cst_66 = arith.constant dense<0.000000e+00> : vector<8x128xf32>
    %246 = tpu.matmul %239, %238, %cst_66 {dimension_numbers = #tpu.dot_dimension_numbers<[1], [0], [0], [1], [0, 0, 1, 1], [], []>} : vector<8x32xf32>, vector<32x128xf32>, vector<8x128xf32> -> vector<8x128xf32>
    %247 = arith.addf %123, %246 : vector<8x128xf32>
    %248 = arith.mulf %236, %170 : vector<32x128xf32>
    %cst_67 = arith.constant dense<0.000000e+00> : vector<8x128xf32>
    %249 = tpu.matmul %239, %248, %cst_67 {dimension_numbers = #tpu.dot_dimension_numbers<[1], [0], [0], [1], [0, 0, 1, 1], [], []>} : vector<8x32xf32>, vector<32x128xf32>, vector<8x128xf32> -> vector<8x128xf32>
    %250 = arith.addf %126, %249 : vector<8x128xf32>
    %251 = arith.mulf %237, %178 : vector<32x128xf32>
    %cst_68 = arith.constant dense<0.000000e+00> : vector<8x128xf32>
    %252 = tpu.matmul %239, %251, %cst_68 {dimension_numbers = #tpu.dot_dimension_numbers<[1], [0], [0], [1], [0, 0, 1, 1], [], []>} : vector<8x32xf32>, vector<32x128xf32>, vector<8x128xf32> -> vector<8x128xf32>
    %253 = arith.addf %129, %252 : vector<8x128xf32>
    %254 = arith.mulf %238, %186 : vector<32x128xf32>
    %cst_69 = arith.constant dense<0.000000e+00> : vector<8x128xf32>
    %255 = tpu.matmul %239, %254, %cst_69 {dimension_numbers = #tpu.dot_dimension_numbers<[1], [0], [0], [1], [0, 0, 1, 1], [], []>} : vector<8x32xf32>, vector<32x128xf32>, vector<8x128xf32> -> vector<8x128xf32>
    %256 = arith.addf %132, %255 : vector<8x128xf32>
    %257 = arith.mulf %236, %178 : vector<32x128xf32>
    %cst_70 = arith.constant dense<0.000000e+00> : vector<8x128xf32>
    %258 = tpu.matmul %239, %257, %cst_70 {dimension_numbers = #tpu.dot_dimension_numbers<[1], [0], [0], [1], [0, 0, 1, 1], [], []>} : vector<8x32xf32>, vector<32x128xf32>, vector<8x128xf32> -> vector<8x128xf32>
    %259 = arith.addf %135, %258 : vector<8x128xf32>
    %260 = arith.mulf %236, %186 : vector<32x128xf32>
    %cst_71 = arith.constant dense<0.000000e+00> : vector<8x128xf32>
    %261 = tpu.matmul %239, %260, %cst_71 {dimension_numbers = #tpu.dot_dimension_numbers<[1], [0], [0], [1], [0, 0, 1, 1], [], []>} : vector<8x32xf32>, vector<32x128xf32>, vector<8x128xf32> -> vector<8x128xf32>
    %262 = arith.addf %138, %261 : vector<8x128xf32>
    %263 = arith.mulf %237, %186 : vector<32x128xf32>
    %cst_72 = arith.constant dense<0.000000e+00> : vector<8x128xf32>
    %264 = tpu.matmul %239, %263, %cst_72 {dimension_numbers = #tpu.dot_dimension_numbers<[1], [0], [0], [1], [0, 0, 1, 1], [], []>} : vector<8x32xf32>, vector<32x128xf32>, vector<8x128xf32> -> vector<8x128xf32>
    %265 = arith.addf %141, %264 : vector<8x128xf32>
    %c64 = arith.constant 64 : index
    %c0_73 = arith.constant 0 : index
    %266 = vector.load %arg2[%c64, %c0_73] : memref<128x16xf32, #tpu.memory_space<vmem>>, vector<32x16xf32>
    %267 = vector.extract_strided_slice %266 {offsets = [0, 0], sizes = [32, 1], strides = [1, 1]} : vector<32x16xf32> to vector<32x1xf32>
    %268 = vector.extract_strided_slice %266 {offsets = [0, 1], sizes = [32, 1], strides = [1, 1]} : vector<32x16xf32> to vector<32x1xf32>
    %269 = vector.extract_strided_slice %266 {offsets = [0, 2], sizes = [32, 1], strides = [1, 1]} : vector<32x16xf32> to vector<32x1xf32>
    %270 = vector.extract_strided_slice %266 {offsets = [0, 3], sizes = [32, 1], strides = [1, 1]} : vector<32x16xf32> to vector<32x1xf32>
    %c64_74 = arith.constant 64 : index
    %c0_75 = arith.constant 0 : index
    %271 = vector.load %arg5[%c64_74, %c0_75] : memref<128x128xf32, #tpu.memory_space<vmem>>, vector<32x128xf32>
    %272 = vector.broadcast %4 : vector<1x128xf32> to vector<32x128xf32>
    %273 = vector.broadcast %267 : vector<32x1xf32> to vector<32x128xf32>
    %274 = arith.subf %272, %273 : vector<32x128xf32>
    %275 = vector.broadcast %5 : vector<1x128xf32> to vector<32x128xf32>
    %276 = vector.broadcast %268 : vector<32x1xf32> to vector<32x128xf32>
    %277 = arith.subf %275, %276 : vector<32x128xf32>
    %278 = vector.broadcast %6 : vector<1x128xf32> to vector<32x128xf32>
    %279 = vector.broadcast %269 : vector<32x1xf32> to vector<32x128xf32>
    %280 = arith.subf %278, %279 : vector<32x128xf32>
    %281 = math.roundeven %274 : vector<32x128xf32>
    %282 = arith.subf %274, %281 : vector<32x128xf32>
    %283 = math.roundeven %277 : vector<32x128xf32>
    %284 = arith.subf %277, %283 : vector<32x128xf32>
    %285 = math.roundeven %280 : vector<32x128xf32>
    %286 = arith.subf %280, %285 : vector<32x128xf32>
    %287 = vector.broadcast %8 : vector<1x128xf32> to vector<32x128xf32>
    %288 = arith.mulf %282, %287 : vector<32x128xf32>
    %289 = vector.broadcast %11 : vector<1x128xf32> to vector<32x128xf32>
    %290 = arith.mulf %284, %289 : vector<32x128xf32>
    %291 = arith.addf %288, %290 : vector<32x128xf32>
    %292 = vector.broadcast %14 : vector<1x128xf32> to vector<32x128xf32>
    %293 = arith.mulf %286, %292 : vector<32x128xf32>
    %294 = arith.addf %291, %293 : vector<32x128xf32>
    %295 = vector.broadcast %9 : vector<1x128xf32> to vector<32x128xf32>
    %296 = arith.mulf %282, %295 : vector<32x128xf32>
    %297 = vector.broadcast %12 : vector<1x128xf32> to vector<32x128xf32>
    %298 = arith.mulf %284, %297 : vector<32x128xf32>
    %299 = arith.addf %296, %298 : vector<32x128xf32>
    %300 = vector.broadcast %15 : vector<1x128xf32> to vector<32x128xf32>
    %301 = arith.mulf %286, %300 : vector<32x128xf32>
    %302 = arith.addf %299, %301 : vector<32x128xf32>
    %303 = vector.broadcast %10 : vector<1x128xf32> to vector<32x128xf32>
    %304 = arith.mulf %282, %303 : vector<32x128xf32>
    %305 = vector.broadcast %13 : vector<1x128xf32> to vector<32x128xf32>
    %306 = arith.mulf %284, %305 : vector<32x128xf32>
    %307 = arith.addf %304, %306 : vector<32x128xf32>
    %308 = vector.broadcast %16 : vector<1x128xf32> to vector<32x128xf32>
    %309 = arith.mulf %286, %308 : vector<32x128xf32>
    %310 = arith.addf %307, %309 : vector<32x128xf32>
    %311 = arith.mulf %294, %294 : vector<32x128xf32>
    %312 = arith.mulf %302, %302 : vector<32x128xf32>
    %313 = arith.addf %311, %312 : vector<32x128xf32>
    %314 = arith.mulf %310, %310 : vector<32x128xf32>
    %315 = arith.addf %313, %314 : vector<32x128xf32>
    %316 = vector.broadcast %270 : vector<32x1xf32> to vector<32x128xf32>
    %317 = vector.broadcast %7 : vector<1x128xf32> to vector<32x128xf32>
    %318 = arith.cmpf oeq, %316, %317 : vector<32x128xf32>
    %cst_76 = arith.constant 9.000000e+00 : f32
    %319 = vector.broadcast %cst_76 : f32 to vector<32x128xf32>
    %320 = arith.cmpf olt, %315, %319 : vector<32x128xf32>
    %321 = arith.andi %318, %320 : vector<32x128xi1>
    %cst_77 = arith.constant 1.000000e-16 : f32
    %322 = vector.broadcast %cst_77 : f32 to vector<32x128xf32>
    %323 = arith.cmpf ogt, %315, %322 : vector<32x128xf32>
    %324 = arith.andi %321, %323 : vector<32x128xi1>
    %cst_78 = arith.constant 1.000000e+00 : f32
    %325 = vector.broadcast %cst_78 : f32 to vector<32x128xf32>
    %326 = arith.select %324, %315, %325 : vector<32x128xi1>, vector<32x128xf32>
    %327 = math.rsqrt %326 : vector<32x128xf32>
    %328 = arith.mulf %326, %327 : vector<32x128xf32>
    %cst_79 = arith.constant 0.000000e+00 : f32
    %329 = vector.broadcast %cst_79 : f32 to vector<32x128xf32>
    %330 = arith.select %324, %271, %329 : vector<32x128xi1>, vector<32x128xf32>
    %cst_80 = arith.constant 1.200000e+00 : f32
    %331 = vector.broadcast %cst_80 : f32 to vector<32x128xf32>
    %332 = arith.subf %328, %331 : vector<32x128xf32>
    %cst_81 = arith.constant -1.500000e+00 : f32
    %333 = vector.broadcast %cst_81 : f32 to vector<32x128xf32>
    %334 = arith.mulf %333, %332 : vector<32x128xf32>
    %335 = math.exp %334 : vector<32x128xf32>
    %cst_82 = arith.constant 2.000000e+00 : f32
    %336 = vector.broadcast %cst_82 : f32 to vector<32x128xf32>
    %337 = arith.subf %335, %336 : vector<32x128xf32>
    %338 = arith.mulf %335, %337 : vector<32x128xf32>
    %339 = arith.mulf %335, %335 : vector<32x128xf32>
    %340 = arith.subf %335, %339 : vector<32x128xf32>
    %cst_83 = arith.constant 3.000000e+00 : f32
    %341 = vector.broadcast %cst_83 : f32 to vector<32x128xf32>
    %342 = arith.mulf %341, %340 : vector<32x128xf32>
    %cst_84 = arith.constant 1.04719758 : f32
    %343 = vector.broadcast %cst_84 : f32 to vector<32x128xf32>
    %344 = arith.mulf %343, %328 : vector<32x128xf32>
    %345 = math.cos %344 : vector<32x128xf32>
    %cst_85 = arith.constant 1.000000e+00 : f32
    %346 = vector.broadcast %cst_85 : f32 to vector<32x128xf32>
    %347 = arith.addf %345, %346 : vector<32x128xf32>
    %cst_86 = arith.constant 5.000000e-01 : f32
    %348 = vector.broadcast %cst_86 : f32 to vector<32x128xf32>
    %349 = arith.mulf %348, %347 : vector<32x128xf32>
    %350 = math.sin %344 : vector<32x128xf32>
    %cst_87 = arith.constant -0.52359879 : f32
    %351 = vector.broadcast %cst_87 : f32 to vector<32x128xf32>
    %352 = arith.mulf %351, %350 : vector<32x128xf32>
    %353 = arith.mulf %338, %349 : vector<32x128xf32>
    %354 = arith.mulf %330, %353 : vector<32x128xf32>
    %355 = arith.mulf %342, %349 : vector<32x128xf32>
    %356 = arith.mulf %338, %352 : vector<32x128xf32>
    %357 = arith.addf %355, %356 : vector<32x128xf32>
    %358 = arith.mulf %357, %327 : vector<32x128xf32>
    %359 = arith.mulf %330, %358 : vector<32x128xf32>
    %360 = arith.mulf %359, %294 : vector<32x128xf32>
    %361 = arith.mulf %359, %302 : vector<32x128xf32>
    %362 = arith.mulf %359, %310 : vector<32x128xf32>
    %c16_88 = arith.constant 16 : index
    %c0_89 = arith.constant 0 : index
    %363 = vector.load %arg3[%c16_88, %c0_89] : memref<32x32xf32, #tpu.memory_space<vmem>>, vector<8x32xf32>
    %cst_90 = arith.constant dense<0.000000e+00> : vector<8x128xf32>
    %364 = tpu.matmul %363, %354, %cst_90 {dimension_numbers = #tpu.dot_dimension_numbers<[1], [0], [0], [1], [0, 0, 1, 1], [], []>} : vector<8x32xf32>, vector<32x128xf32>, vector<8x128xf32> -> vector<8x128xf32>
    %365 = arith.addf %241, %364 : vector<8x128xf32>
    %cst_91 = arith.constant dense<0.000000e+00> : vector<8x128xf32>
    %366 = tpu.matmul %363, %360, %cst_91 {dimension_numbers = #tpu.dot_dimension_numbers<[1], [0], [0], [1], [0, 0, 1, 1], [], []>} : vector<8x32xf32>, vector<32x128xf32>, vector<8x128xf32> -> vector<8x128xf32>
    %367 = arith.addf %243, %366 : vector<8x128xf32>
    %cst_92 = arith.constant dense<0.000000e+00> : vector<8x128xf32>
    %368 = tpu.matmul %363, %361, %cst_92 {dimension_numbers = #tpu.dot_dimension_numbers<[1], [0], [0], [1], [0, 0, 1, 1], [], []>} : vector<8x32xf32>, vector<32x128xf32>, vector<8x128xf32> -> vector<8x128xf32>
    %369 = arith.addf %245, %368 : vector<8x128xf32>
    %cst_93 = arith.constant dense<0.000000e+00> : vector<8x128xf32>
    %370 = tpu.matmul %363, %362, %cst_93 {dimension_numbers = #tpu.dot_dimension_numbers<[1], [0], [0], [1], [0, 0, 1, 1], [], []>} : vector<8x32xf32>, vector<32x128xf32>, vector<8x128xf32> -> vector<8x128xf32>
    %371 = arith.addf %247, %370 : vector<8x128xf32>
    %372 = arith.mulf %360, %294 : vector<32x128xf32>
    %cst_94 = arith.constant dense<0.000000e+00> : vector<8x128xf32>
    %373 = tpu.matmul %363, %372, %cst_94 {dimension_numbers = #tpu.dot_dimension_numbers<[1], [0], [0], [1], [0, 0, 1, 1], [], []>} : vector<8x32xf32>, vector<32x128xf32>, vector<8x128xf32> -> vector<8x128xf32>
    %374 = arith.addf %250, %373 : vector<8x128xf32>
    %375 = arith.mulf %361, %302 : vector<32x128xf32>
    %cst_95 = arith.constant dense<0.000000e+00> : vector<8x128xf32>
    %376 = tpu.matmul %363, %375, %cst_95 {dimension_numbers = #tpu.dot_dimension_numbers<[1], [0], [0], [1], [0, 0, 1, 1], [], []>} : vector<8x32xf32>, vector<32x128xf32>, vector<8x128xf32> -> vector<8x128xf32>
    %377 = arith.addf %253, %376 : vector<8x128xf32>
    %378 = arith.mulf %362, %310 : vector<32x128xf32>
    %cst_96 = arith.constant dense<0.000000e+00> : vector<8x128xf32>
    %379 = tpu.matmul %363, %378, %cst_96 {dimension_numbers = #tpu.dot_dimension_numbers<[1], [0], [0], [1], [0, 0, 1, 1], [], []>} : vector<8x32xf32>, vector<32x128xf32>, vector<8x128xf32> -> vector<8x128xf32>
    %380 = arith.addf %256, %379 : vector<8x128xf32>
    %381 = arith.mulf %360, %302 : vector<32x128xf32>
    %cst_97 = arith.constant dense<0.000000e+00> : vector<8x128xf32>
    %382 = tpu.matmul %363, %381, %cst_97 {dimension_numbers = #tpu.dot_dimension_numbers<[1], [0], [0], [1], [0, 0, 1, 1], [], []>} : vector<8x32xf32>, vector<32x128xf32>, vector<8x128xf32> -> vector<8x128xf32>
    %383 = arith.addf %259, %382 : vector<8x128xf32>
    %384 = arith.mulf %360, %310 : vector<32x128xf32>
    %cst_98 = arith.constant dense<0.000000e+00> : vector<8x128xf32>
    %385 = tpu.matmul %363, %384, %cst_98 {dimension_numbers = #tpu.dot_dimension_numbers<[1], [0], [0], [1], [0, 0, 1, 1], [], []>} : vector<8x32xf32>, vector<32x128xf32>, vector<8x128xf32> -> vector<8x128xf32>
    %386 = arith.addf %262, %385 : vector<8x128xf32>
    %387 = arith.mulf %361, %310 : vector<32x128xf32>
    %cst_99 = arith.constant dense<0.000000e+00> : vector<8x128xf32>
    %388 = tpu.matmul %363, %387, %cst_99 {dimension_numbers = #tpu.dot_dimension_numbers<[1], [0], [0], [1], [0, 0, 1, 1], [], []>} : vector<8x32xf32>, vector<32x128xf32>, vector<8x128xf32> -> vector<8x128xf32>
    %389 = arith.addf %265, %388 : vector<8x128xf32>
    %c96 = arith.constant 96 : index
    %c0_100 = arith.constant 0 : index
    %390 = vector.load %arg2[%c96, %c0_100] : memref<128x16xf32, #tpu.memory_space<vmem>>, vector<32x16xf32>
    %391 = vector.extract_strided_slice %390 {offsets = [0, 0], sizes = [32, 1], strides = [1, 1]} : vector<32x16xf32> to vector<32x1xf32>
    %392 = vector.extract_strided_slice %390 {offsets = [0, 1], sizes = [32, 1], strides = [1, 1]} : vector<32x16xf32> to vector<32x1xf32>
    %393 = vector.extract_strided_slice %390 {offsets = [0, 2], sizes = [32, 1], strides = [1, 1]} : vector<32x16xf32> to vector<32x1xf32>
    %394 = vector.extract_strided_slice %390 {offsets = [0, 3], sizes = [32, 1], strides = [1, 1]} : vector<32x16xf32> to vector<32x1xf32>
    %c96_101 = arith.constant 96 : index
    %c0_102 = arith.constant 0 : index
    %395 = vector.load %arg5[%c96_101, %c0_102] : memref<128x128xf32, #tpu.memory_space<vmem>>, vector<32x128xf32>
    %396 = vector.broadcast %4 : vector<1x128xf32> to vector<32x128xf32>
    %397 = vector.broadcast %391 : vector<32x1xf32> to vector<32x128xf32>
    %398 = arith.subf %396, %397 : vector<32x128xf32>
    %399 = vector.broadcast %5 : vector<1x128xf32> to vector<32x128xf32>
    %400 = vector.broadcast %392 : vector<32x1xf32> to vector<32x128xf32>
    %401 = arith.subf %399, %400 : vector<32x128xf32>
    %402 = vector.broadcast %6 : vector<1x128xf32> to vector<32x128xf32>
    %403 = vector.broadcast %393 : vector<32x1xf32> to vector<32x128xf32>
    %404 = arith.subf %402, %403 : vector<32x128xf32>
    %405 = math.roundeven %398 : vector<32x128xf32>
    %406 = arith.subf %398, %405 : vector<32x128xf32>
    %407 = math.roundeven %401 : vector<32x128xf32>
    %408 = arith.subf %401, %407 : vector<32x128xf32>
    %409 = math.roundeven %404 : vector<32x128xf32>
    %410 = arith.subf %404, %409 : vector<32x128xf32>
    %411 = vector.broadcast %8 : vector<1x128xf32> to vector<32x128xf32>
    %412 = arith.mulf %406, %411 : vector<32x128xf32>
    %413 = vector.broadcast %11 : vector<1x128xf32> to vector<32x128xf32>
    %414 = arith.mulf %408, %413 : vector<32x128xf32>
    %415 = arith.addf %412, %414 : vector<32x128xf32>
    %416 = vector.broadcast %14 : vector<1x128xf32> to vector<32x128xf32>
    %417 = arith.mulf %410, %416 : vector<32x128xf32>
    %418 = arith.addf %415, %417 : vector<32x128xf32>
    %419 = vector.broadcast %9 : vector<1x128xf32> to vector<32x128xf32>
    %420 = arith.mulf %406, %419 : vector<32x128xf32>
    %421 = vector.broadcast %12 : vector<1x128xf32> to vector<32x128xf32>
    %422 = arith.mulf %408, %421 : vector<32x128xf32>
    %423 = arith.addf %420, %422 : vector<32x128xf32>
    %424 = vector.broadcast %15 : vector<1x128xf32> to vector<32x128xf32>
    %425 = arith.mulf %410, %424 : vector<32x128xf32>
    %426 = arith.addf %423, %425 : vector<32x128xf32>
    %427 = vector.broadcast %10 : vector<1x128xf32> to vector<32x128xf32>
    %428 = arith.mulf %406, %427 : vector<32x128xf32>
    %429 = vector.broadcast %13 : vector<1x128xf32> to vector<32x128xf32>
    %430 = arith.mulf %408, %429 : vector<32x128xf32>
    %431 = arith.addf %428, %430 : vector<32x128xf32>
    %432 = vector.broadcast %16 : vector<1x128xf32> to vector<32x128xf32>
    %433 = arith.mulf %410, %432 : vector<32x128xf32>
    %434 = arith.addf %431, %433 : vector<32x128xf32>
    %435 = arith.mulf %418, %418 : vector<32x128xf32>
    %436 = arith.mulf %426, %426 : vector<32x128xf32>
    %437 = arith.addf %435, %436 : vector<32x128xf32>
    %438 = arith.mulf %434, %434 : vector<32x128xf32>
    %439 = arith.addf %437, %438 : vector<32x128xf32>
    %440 = vector.broadcast %394 : vector<32x1xf32> to vector<32x128xf32>
    %441 = vector.broadcast %7 : vector<1x128xf32> to vector<32x128xf32>
    %442 = arith.cmpf oeq, %440, %441 : vector<32x128xf32>
    %cst_103 = arith.constant 9.000000e+00 : f32
    %443 = vector.broadcast %cst_103 : f32 to vector<32x128xf32>
    %444 = arith.cmpf olt, %439, %443 : vector<32x128xf32>
    %445 = arith.andi %442, %444 : vector<32x128xi1>
    %cst_104 = arith.constant 1.000000e-16 : f32
    %446 = vector.broadcast %cst_104 : f32 to vector<32x128xf32>
    %447 = arith.cmpf ogt, %439, %446 : vector<32x128xf32>
    %448 = arith.andi %445, %447 : vector<32x128xi1>
    %cst_105 = arith.constant 1.000000e+00 : f32
    %449 = vector.broadcast %cst_105 : f32 to vector<32x128xf32>
    %450 = arith.select %448, %439, %449 : vector<32x128xi1>, vector<32x128xf32>
    %451 = math.rsqrt %450 : vector<32x128xf32>
    %452 = arith.mulf %450, %451 : vector<32x128xf32>
    %cst_106 = arith.constant 0.000000e+00 : f32
    %453 = vector.broadcast %cst_106 : f32 to vector<32x128xf32>
    %454 = arith.select %448, %395, %453 : vector<32x128xi1>, vector<32x128xf32>
    %cst_107 = arith.constant 1.200000e+00 : f32
    %455 = vector.broadcast %cst_107 : f32 to vector<32x128xf32>
    %456 = arith.subf %452, %455 : vector<32x128xf32>
    %cst_108 = arith.constant -1.500000e+00 : f32
    %457 = vector.broadcast %cst_108 : f32 to vector<32x128xf32>
    %458 = arith.mulf %457, %456 : vector<32x128xf32>
    %459 = math.exp %458 : vector<32x128xf32>
    %cst_109 = arith.constant 2.000000e+00 : f32
    %460 = vector.broadcast %cst_109 : f32 to vector<32x128xf32>
    %461 = arith.subf %459, %460 : vector<32x128xf32>
    %462 = arith.mulf %459, %461 : vector<32x128xf32>
    %463 = arith.mulf %459, %459 : vector<32x128xf32>
    %464 = arith.subf %459, %463 : vector<32x128xf32>
    %cst_110 = arith.constant 3.000000e+00 : f32
    %465 = vector.broadcast %cst_110 : f32 to vector<32x128xf32>
    %466 = arith.mulf %465, %464 : vector<32x128xf32>
    %cst_111 = arith.constant 1.04719758 : f32
    %467 = vector.broadcast %cst_111 : f32 to vector<32x128xf32>
    %468 = arith.mulf %467, %452 : vector<32x128xf32>
    %469 = math.cos %468 : vector<32x128xf32>
    %cst_112 = arith.constant 1.000000e+00 : f32
    %470 = vector.broadcast %cst_112 : f32 to vector<32x128xf32>
    %471 = arith.addf %469, %470 : vector<32x128xf32>
    %cst_113 = arith.constant 5.000000e-01 : f32
    %472 = vector.broadcast %cst_113 : f32 to vector<32x128xf32>
    %473 = arith.mulf %472, %471 : vector<32x128xf32>
    %474 = math.sin %468 : vector<32x128xf32>
    %cst_114 = arith.constant -0.52359879 : f32
    %475 = vector.broadcast %cst_114 : f32 to vector<32x128xf32>
    %476 = arith.mulf %475, %474 : vector<32x128xf32>
    %477 = arith.mulf %462, %473 : vector<32x128xf32>
    %478 = arith.mulf %454, %477 : vector<32x128xf32>
    %479 = arith.mulf %466, %473 : vector<32x128xf32>
    %480 = arith.mulf %462, %476 : vector<32x128xf32>
    %481 = arith.addf %479, %480 : vector<32x128xf32>
    %482 = arith.mulf %481, %451 : vector<32x128xf32>
    %483 = arith.mulf %454, %482 : vector<32x128xf32>
    %484 = arith.mulf %483, %418 : vector<32x128xf32>
    %485 = arith.mulf %483, %426 : vector<32x128xf32>
    %486 = arith.mulf %483, %434 : vector<32x128xf32>
    %c24 = arith.constant 24 : index
    %c0_115 = arith.constant 0 : index
    %487 = vector.load %arg3[%c24, %c0_115] : memref<32x32xf32, #tpu.memory_space<vmem>>, vector<8x32xf32>
    %cst_116 = arith.constant dense<0.000000e+00> : vector<8x128xf32>
    %488 = tpu.matmul %487, %478, %cst_116 {dimension_numbers = #tpu.dot_dimension_numbers<[1], [0], [0], [1], [0, 0, 1, 1], [], []>} : vector<8x32xf32>, vector<32x128xf32>, vector<8x128xf32> -> vector<8x128xf32>
    %489 = arith.addf %365, %488 : vector<8x128xf32>
    %cst_117 = arith.constant dense<0.000000e+00> : vector<8x128xf32>
    %490 = tpu.matmul %487, %484, %cst_117 {dimension_numbers = #tpu.dot_dimension_numbers<[1], [0], [0], [1], [0, 0, 1, 1], [], []>} : vector<8x32xf32>, vector<32x128xf32>, vector<8x128xf32> -> vector<8x128xf32>
    %491 = arith.addf %367, %490 : vector<8x128xf32>
    %cst_118 = arith.constant dense<0.000000e+00> : vector<8x128xf32>
    %492 = tpu.matmul %487, %485, %cst_118 {dimension_numbers = #tpu.dot_dimension_numbers<[1], [0], [0], [1], [0, 0, 1, 1], [], []>} : vector<8x32xf32>, vector<32x128xf32>, vector<8x128xf32> -> vector<8x128xf32>
    %493 = arith.addf %369, %492 : vector<8x128xf32>
    %cst_119 = arith.constant dense<0.000000e+00> : vector<8x128xf32>
    %494 = tpu.matmul %487, %486, %cst_119 {dimension_numbers = #tpu.dot_dimension_numbers<[1], [0], [0], [1], [0, 0, 1, 1], [], []>} : vector<8x32xf32>, vector<32x128xf32>, vector<8x128xf32> -> vector<8x128xf32>
    %495 = arith.addf %371, %494 : vector<8x128xf32>
    %496 = arith.mulf %484, %418 : vector<32x128xf32>
    %cst_120 = arith.constant dense<0.000000e+00> : vector<8x128xf32>
    %497 = tpu.matmul %487, %496, %cst_120 {dimension_numbers = #tpu.dot_dimension_numbers<[1], [0], [0], [1], [0, 0, 1, 1], [], []>} : vector<8x32xf32>, vector<32x128xf32>, vector<8x128xf32> -> vector<8x128xf32>
    %498 = arith.addf %374, %497 : vector<8x128xf32>
    %499 = arith.mulf %485, %426 : vector<32x128xf32>
    %cst_121 = arith.constant dense<0.000000e+00> : vector<8x128xf32>
    %500 = tpu.matmul %487, %499, %cst_121 {dimension_numbers = #tpu.dot_dimension_numbers<[1], [0], [0], [1], [0, 0, 1, 1], [], []>} : vector<8x32xf32>, vector<32x128xf32>, vector<8x128xf32> -> vector<8x128xf32>
    %501 = arith.addf %377, %500 : vector<8x128xf32>
    %502 = arith.mulf %486, %434 : vector<32x128xf32>
    %cst_122 = arith.constant dense<0.000000e+00> : vector<8x128xf32>
    %503 = tpu.matmul %487, %502, %cst_122 {dimension_numbers = #tpu.dot_dimension_numbers<[1], [0], [0], [1], [0, 0, 1, 1], [], []>} : vector<8x32xf32>, vector<32x128xf32>, vector<8x128xf32> -> vector<8x128xf32>
    %504 = arith.addf %380, %503 : vector<8x128xf32>
    %505 = arith.mulf %484, %426 : vector<32x128xf32>
    %cst_123 = arith.constant dense<0.000000e+00> : vector<8x128xf32>
    %506 = tpu.matmul %487, %505, %cst_123 {dimension_numbers = #tpu.dot_dimension_numbers<[1], [0], [0], [1], [0, 0, 1, 1], [], []>} : vector<8x32xf32>, vector<32x128xf32>, vector<8x128xf32> -> vector<8x128xf32>
    %507 = arith.addf %383, %506 : vector<8x128xf32>
    %508 = arith.mulf %484, %434 : vector<32x128xf32>
    %cst_124 = arith.constant dense<0.000000e+00> : vector<8x128xf32>
    %509 = tpu.matmul %487, %508, %cst_124 {dimension_numbers = #tpu.dot_dimension_numbers<[1], [0], [0], [1], [0, 0, 1, 1], [], []>} : vector<8x32xf32>, vector<32x128xf32>, vector<8x128xf32> -> vector<8x128xf32>
    %510 = arith.addf %386, %509 : vector<8x128xf32>
    %511 = arith.mulf %485, %434 : vector<32x128xf32>
    %cst_125 = arith.constant dense<0.000000e+00> : vector<8x128xf32>
    %512 = tpu.matmul %487, %511, %cst_125 {dimension_numbers = #tpu.dot_dimension_numbers<[1], [0], [0], [1], [0, 0, 1, 1], [], []>} : vector<8x32xf32>, vector<32x128xf32>, vector<8x128xf32> -> vector<8x128xf32>
    %513 = arith.addf %389, %512 : vector<8x128xf32>
    %cst_126 = arith.constant dense<0.000000e+00> : vector<128xf32>
    %514 = vector.multi_reduction <add>, %491, %cst_126 [0] : vector<8x128xf32> to vector<128xf32>
    %515 = vector.shape_cast %514 : vector<128xf32> to vector<1x128xf32>
    %cst_127 = arith.constant 0.000000e+00 : f32
    %516 = vector.broadcast %cst_127 : f32 to vector<1x128xf32>
    %517 = arith.subf %516, %515 : vector<1x128xf32>
    %cst_128 = arith.constant dense<0.000000e+00> : vector<128xf32>
    %518 = vector.multi_reduction <add>, %493, %cst_128 [0] : vector<8x128xf32> to vector<128xf32>
    %519 = vector.shape_cast %518 : vector<128xf32> to vector<1x128xf32>
    %cst_129 = arith.constant 0.000000e+00 : f32
    %520 = vector.broadcast %cst_129 : f32 to vector<1x128xf32>
    %521 = arith.subf %520, %519 : vector<1x128xf32>
    %cst_130 = arith.constant dense<0.000000e+00> : vector<128xf32>
    %522 = vector.multi_reduction <add>, %495, %cst_130 [0] : vector<8x128xf32> to vector<128xf32>
    %523 = vector.shape_cast %522 : vector<128xf32> to vector<1x128xf32>
    %cst_131 = arith.constant 0.000000e+00 : f32
    %524 = vector.broadcast %cst_131 : f32 to vector<1x128xf32>
    %525 = arith.subf %524, %523 : vector<1x128xf32>
    %526 = tpu.iota {dimensions = array<i32: 0>} : vector<8x128xi32>
    %c0_i32 = arith.constant 0 : i32
    %527 = vector.broadcast %c0_i32 : i32 to vector<8x128xi32>
    %528 = arith.cmpi eq, %526, %527 : vector<8x128xi32>
    %cst_132 = arith.constant 0.000000e+00 : f32
    %529 = vector.shape_cast %517 : vector<1x128xf32> to vector<1x128xf32>
    %530 = vector.broadcast %529 : vector<1x128xf32> to vector<8x128xf32>
    %531 = vector.broadcast %cst_132 : f32 to vector<8x128xf32>
    %532 = arith.select %528, %530, %531 : vector<8x128xi1>, vector<8x128xf32>
    %c1_i32 = arith.constant 1 : i32
    %533 = vector.broadcast %c1_i32 : i32 to vector<8x128xi32>
    %534 = arith.cmpi eq, %526, %533 : vector<8x128xi32>
    %cst_133 = arith.constant 0.000000e+00 : f32
    %535 = vector.shape_cast %521 : vector<1x128xf32> to vector<1x128xf32>
    %536 = vector.broadcast %535 : vector<1x128xf32> to vector<8x128xf32>
    %537 = vector.broadcast %cst_133 : f32 to vector<8x128xf32>
    %538 = arith.select %534, %536, %537 : vector<8x128xi1>, vector<8x128xf32>
    %539 = arith.addf %532, %538 : vector<8x128xf32>
    %c2_i32 = arith.constant 2 : i32
    %540 = vector.broadcast %c2_i32 : i32 to vector<8x128xi32>
    %541 = arith.cmpi eq, %526, %540 : vector<8x128xi32>
    %cst_134 = arith.constant 0.000000e+00 : f32
    %542 = vector.shape_cast %525 : vector<1x128xf32> to vector<1x128xf32>
    %543 = vector.broadcast %542 : vector<1x128xf32> to vector<8x128xf32>
    %544 = vector.broadcast %cst_134 : f32 to vector<8x128xf32>
    %545 = arith.select %541, %543, %544 : vector<8x128xi1>, vector<8x128xf32>
    %546 = arith.addf %539, %545 : vector<8x128xf32>
    %c0_135 = arith.constant 0 : index
    %c0_136 = arith.constant 0 : index
    %547 = vector.load %arg4[%c0_135, %c0_136] : memref<16x128xf32, #tpu.memory_space<vmem>>, vector<8x128xf32>
    tpu.vector_store %arg4[%c0_135, %c0_136], %546 {strides = array<i32>} : memref<16x128xf32, #tpu.memory_space<vmem>>, vector<8x128xf32>,
    %548 = tpu.iota {dimensions = array<i32: 1>} : vector<8x128xi32>
    %c0_i32_137 = arith.constant 0 : i32
    %549 = vector.broadcast %c0_i32_137 : i32 to vector<8x128xi32>
    %550 = arith.cmpi eq, %548, %549 : vector<8x128xi32>
    %cst_138 = arith.constant dense<0.000000e+00> : vector<8xf32>
    %551 = vector.multi_reduction <add>, %489, %cst_138 [1] : vector<8x128xf32> to vector<8xf32>
    %552 = vector.shape_cast %551 : vector<8xf32> to vector<8x1xf32>
    %cst_139 = arith.constant 0.000000e+00 : f32
    %553 = vector.shape_cast %552 : vector<8x1xf32> to vector<8x1xf32>
    %554 = vector.broadcast %553 : vector<8x1xf32> to vector<8x128xf32>
    %555 = vector.broadcast %cst_139 : f32 to vector<8x128xf32>
    %556 = arith.select %550, %554, %555 : vector<8x128xi1>, vector<8x128xf32>
    %c1_i32_140 = arith.constant 1 : i32
    %557 = vector.broadcast %c1_i32_140 : i32 to vector<8x128xi32>
    %558 = arith.cmpi eq, %548, %557 : vector<8x128xi32>
    %cst_141 = arith.constant dense<0.000000e+00> : vector<8xf32>
    %559 = vector.multi_reduction <add>, %498, %cst_141 [1] : vector<8x128xf32> to vector<8xf32>
    %560 = vector.shape_cast %559 : vector<8xf32> to vector<8x1xf32>
    %cst_142 = arith.constant 0.000000e+00 : f32
    %561 = vector.shape_cast %560 : vector<8x1xf32> to vector<8x1xf32>
    %562 = vector.broadcast %561 : vector<8x1xf32> to vector<8x128xf32>
    %563 = vector.broadcast %cst_142 : f32 to vector<8x128xf32>
    %564 = arith.select %558, %562, %563 : vector<8x128xi1>, vector<8x128xf32>
    %565 = arith.addf %556, %564 : vector<8x128xf32>
    %c2_i32_143 = arith.constant 2 : i32
    %566 = vector.broadcast %c2_i32_143 : i32 to vector<8x128xi32>
    %567 = arith.cmpi eq, %548, %566 : vector<8x128xi32>
    %cst_144 = arith.constant dense<0.000000e+00> : vector<8xf32>
    %568 = vector.multi_reduction <add>, %501, %cst_144 [1] : vector<8x128xf32> to vector<8xf32>
    %569 = vector.shape_cast %568 : vector<8xf32> to vector<8x1xf32>
    %cst_145 = arith.constant 0.000000e+00 : f32
    %570 = vector.shape_cast %569 : vector<8x1xf32> to vector<8x1xf32>
    %571 = vector.broadcast %570 : vector<8x1xf32> to vector<8x128xf32>
    %572 = vector.broadcast %cst_145 : f32 to vector<8x128xf32>
    %573 = arith.select %567, %571, %572 : vector<8x128xi1>, vector<8x128xf32>
    %574 = arith.addf %565, %573 : vector<8x128xf32>
    %c3_i32 = arith.constant 3 : i32
    %575 = vector.broadcast %c3_i32 : i32 to vector<8x128xi32>
    %576 = arith.cmpi eq, %548, %575 : vector<8x128xi32>
    %cst_146 = arith.constant dense<0.000000e+00> : vector<8xf32>
    %577 = vector.multi_reduction <add>, %504, %cst_146 [1] : vector<8x128xf32> to vector<8xf32>
    %578 = vector.shape_cast %577 : vector<8xf32> to vector<8x1xf32>
    %cst_147 = arith.constant 0.000000e+00 : f32
    %579 = vector.shape_cast %578 : vector<8x1xf32> to vector<8x1xf32>
    %580 = vector.broadcast %579 : vector<8x1xf32> to vector<8x128xf32>
    %581 = vector.broadcast %cst_147 : f32 to vector<8x128xf32>
    %582 = arith.select %576, %580, %581 : vector<8x128xi1>, vector<8x128xf32>
    %583 = arith.addf %574, %582 : vector<8x128xf32>
    %c4_i32 = arith.constant 4 : i32
    %584 = vector.broadcast %c4_i32 : i32 to vector<8x128xi32>
    %585 = arith.cmpi eq, %548, %584 : vector<8x128xi32>
    %cst_148 = arith.constant dense<0.000000e+00> : vector<8xf32>
    %586 = vector.multi_reduction <add>, %507, %cst_148 [1] : vector<8x128xf32> to vector<8xf32>
    %587 = vector.shape_cast %586 : vector<8xf32> to vector<8x1xf32>
    %cst_149 = arith.constant 0.000000e+00 : f32
    %588 = vector.shape_cast %587 : vector<8x1xf32> to vector<8x1xf32>
    %589 = vector.broadcast %588 : vector<8x1xf32> to vector<8x128xf32>
    %590 = vector.broadcast %cst_149 : f32 to vector<8x128xf32>
    %591 = arith.select %585, %589, %590 : vector<8x128xi1>, vector<8x128xf32>
    %592 = arith.addf %583, %591 : vector<8x128xf32>
    %c5_i32 = arith.constant 5 : i32
    %593 = vector.broadcast %c5_i32 : i32 to vector<8x128xi32>
    %594 = arith.cmpi eq, %548, %593 : vector<8x128xi32>
    %cst_150 = arith.constant dense<0.000000e+00> : vector<8xf32>
    %595 = vector.multi_reduction <add>, %510, %cst_150 [1] : vector<8x128xf32> to vector<8xf32>
    %596 = vector.shape_cast %595 : vector<8xf32> to vector<8x1xf32>
    %cst_151 = arith.constant 0.000000e+00 : f32
    %597 = vector.shape_cast %596 : vector<8x1xf32> to vector<8x1xf32>
    %598 = vector.broadcast %597 : vector<8x1xf32> to vector<8x128xf32>
    %599 = vector.broadcast %cst_151 : f32 to vector<8x128xf32>
    %600 = arith.select %594, %598, %599 : vector<8x128xi1>, vector<8x128xf32>
    %601 = arith.addf %592, %600 : vector<8x128xf32>
    %c6_i32 = arith.constant 6 : i32
    %602 = vector.broadcast %c6_i32 : i32 to vector<8x128xi32>
    %603 = arith.cmpi eq, %548, %602 : vector<8x128xi32>
    %cst_152 = arith.constant dense<0.000000e+00> : vector<8xf32>
    %604 = vector.multi_reduction <add>, %513, %cst_152 [1] : vector<8x128xf32> to vector<8xf32>
    %605 = vector.shape_cast %604 : vector<8xf32> to vector<8x1xf32>
    %cst_153 = arith.constant 0.000000e+00 : f32
    %606 = vector.shape_cast %605 : vector<8x1xf32> to vector<8x1xf32>
    %607 = vector.broadcast %606 : vector<8x1xf32> to vector<8x128xf32>
    %608 = vector.broadcast %cst_153 : f32 to vector<8x128xf32>
    %609 = arith.select %603, %607, %608 : vector<8x128xi1>, vector<8x128xf32>
    %610 = arith.addf %601, %609 : vector<8x128xf32>
    %cst_154 = arith.constant 5.000000e-01 : f32
    %611 = vector.broadcast %cst_154 : f32 to vector<8x128xf32>
    %612 = arith.mulf %611, %610 : vector<8x128xf32>
    %c8_155 = arith.constant 8 : index
    %c0_156 = arith.constant 0 : index
    %613 = vector.load %arg4[%c8_155, %c0_156] : memref<16x128xf32, #tpu.memory_space<vmem>>, vector<8x128xf32>
    tpu.vector_store %arg4[%c8_155, %c0_156], %612 {strides = array<i32>} : memref<16x128xf32, #tpu.memory_space<vmem>>, vector<8x128xf32>,
    return
  }
  func.func @transform_0(%arg0: i32) -> (i32, i32) {
    %c0_i32 = arith.constant 0 : i32
    %c0_i32_0 = arith.constant 0 : i32
    %c0_i32_1 = arith.constant 0 : i32
    return %c0_i32, %c0_i32_0 : i32, i32
  }
  func.func @transform_1(%arg0: i32) -> (i32, i32) {
    %c0_i32 = arith.constant 0 : i32
    %c0_i32_0 = arith.constant 0 : i32
    %c0_i32_1 = arith.constant 0 : i32
    return %c0_i32, %c0_i32_0 : i32, i32
  }
  func.func @transform_2(%arg0: i32) -> (i32, i32) {
    %c0_i32 = arith.constant 0 : i32
    %c0_i32_0 = arith.constant 0 : i32
    %c0_i32_1 = arith.constant 0 : i32
    return %c0_i32, %c0_i32_0 : i32, i32
  }
  func.func @transform_3(%arg0: i32) -> (i32, i32) {
    %c0_i32 = arith.constant 0 : i32
    %c0_i32_0 = arith.constant 0 : i32
    %c0_i32_1 = arith.constant 0 : i32
    return %c0_i32, %c0_i32_0 : i32, i32
  }
}

</mosaic_0001>

<bundles_post_ra>
// kernel: custom-call.11
= control target key start
LH: loop header
LB: loop body
LE: loop exit
PB: predicated region body
PF: predicated region fallthrough
CT: control target
= control target key end

     0   :  { %5 = vsyncpa [#allocation6], 0  ;;  %s911_s0 = inlined_call_operand.vmem [shape: f32[2,3,3], index: 0, kind: input, shape index: {}]   ;;  %s912_s1 = inlined_call_operand.vmem [shape: f32[2,3,3], index: 1, kind: output, shape index: {0}]   ;;  %s913_s2 = inlined_call_operand.hbm [shape: s32[2,3], index: 2, kind: output, shape index: {1}]   ;;  %s914_s3 = inlined_call_operand.vmem [shape: s32[2,3], index: 3, kind: output, shape index: {2}]  }
   0x1   :  { %7 = vsyncpa [#allocation6 + $0x1], 0  ;;  %s735_s12 = smov 0   ;;  %s737_s13 = smov 0  }
   0x2   :  { %s739_s14 = smov 0   ;;  %s741_s15 = smov 0  }
   0x3 LB: > { %s756_s16 = sadd.s32 4294967295, %s708_s15   ;;  %s571_s17 = sadd.s32 4294967294, %s708_s15   ;;  %s708_s15 = sphi %s741_s15, %s920_s15   ;;  %s704_s14 = sphi %s739_s14, %s919_s14   ;;  %s700_s13 = sphi %s737_s13, %s918_s13   ;;  %s696_s12 = sphi %s735_s12, %s917_s12  }
   0x4   : > { %s760_s18 = sadd.s32 1, %s708_s15   ;;  %s17_s19 = sshrl.u32 %s708_s15, 3 }
   0x5   : > { %s18_s20 = sshrl.u32 %s760_s18, 3  ;;  %s22_s21 = sadd.s32 1, %s704_s14 }
   0x6   : > { %s19_s22 = ssub.s32 %s17_s19, %s18_s20  ;;  %p32_p0 = scmp.ne.s32.totalorder %s704_s14, %s700_s13 }
   0x7   : > { %p20_p1 = scmp.eq.s32.totalorder %s19_s22, 0  ;;  %p33_p2 = scmp.eq.s32.totalorder %s756_s16, 1 }
   0x8   : > { %p38_p3 = scmp.ne.s32.totalorder %s700_s13, %s696_s12  ;;  %p39_p4 = scmp.eq.s32.totalorder %s571_s17, 1 }
   0x9   : > { %s771_s23 = scalar_select %p20_p1, %s704_s14, %s22_s21  }
   0xa   : > { %p773_p5 = por %p33_p2, %p32_p0  ;;  %p777_p6 = por %p39_p4, %p38_p3 }
   0xb   : > { %p573_p7 = scmp.ge.s32.totalorder %s708_s15, 2 }
   0xc   : > { %s85_s26 = sand.u32 (!%p573_p7), 1, %s708_s15   ;;  %s575_s27 = sshll.u32 (!%p573_p7), %s708_s15, 2 }
   0xd   : > { %83 = sbr.rel (%p573_p7) target bundleno = 20 (0x14), region = 16  ;;  %s574_s28 = sshll.u32 (!%p573_p7), %s85_s26, 2 }
   0xe   : > { %s89_s4 = scalar_lea.vmem (!%p573_p7), %s911_s0, %s575_s27  ;;  %s87_s5 = scalar_lea.vmem (!%p573_p7), [#allocation1], %s574_s28 }
  0x12   : > { %v106_v0 = vld [vmem:[%s89_s4] sm:$0xf] }
  0x13   : > { %107 = vst [vmem:[%s87_s5] sm:$0xf] %v106_v0 }
  0x14 PF: > { %p576_p8 = scmp.ge.s32.totalorder %s708_s15, 1  ;;  %p124_p9 = scmp.lt.s32.totalorder %s708_s15, 3 }
  0x16   : > { %p125_p10 = pnand %p576_p8, %p124_p9 }
  0x18   : > { %128 = sbr.rel (%p125_p10) target bundleno = 484 (0x1e4), region = 50 }
  0x1d   : > { %s135_s6 = sand.u32 1, %s756_s16   ;;  %s146_s7 = sand.u32 1, %s700_s13   ;;  %v168_v1 = vlaneseq  ;;  %v714_v4 = vmov 0  }
  0x1e   : > { %s793_s8 = sshll.u32 %s135_s6, 2  ;;  %s797_s9 = sshll.u32 %s146_s7, 1 }
  0x1f   : > { %v800_v2 = vshrl.u32 %v168_v1, 7  ;;  %s137_s10 = scalar_lea.vmem [#allocation1], %s793_s8  ;;  %s163_s11 = sand.u32 7, %s756_s16  }
  0x20   : > { %v157_v3 = vld [vmem:[%s137_s10] sm:$0xf]  ;;  %s805_s17 = scalar_lea.vmem [#allocation4], %s163_s11  ;;  %s141_s19 = scalar_lea.vmem [#allocation3], %s793_s8 }
  0x21   : > { %158 = vst [vmem:[#allocation0] sm:$0xf] %v157_v3  ;;  %s148_s20 = scalar_lea.vmem [#allocation5], %s797_s9  ;;  %s154_s21 = scalar_lea.vmem [#allocation8], %s797_s9 }
  0x22   : > { %172 = vst [vmem:[#allocation9] sm:$0xff] %v800_v2  ;;  %s811_s22 = scalar_lea.vmem [#allocation7], %s163_s11  ;;  %s813_s26 = smov 0  }
  0x23   : > { %167 = vst [vmem:[%s805_s17] sm:$0x1] %v714_v4 }
  0x28   : > { %v161_v5 = vld [vmem:[#allocation0] sm:$0xff] }
  0x29   : > { %162 = vst [vmem:[#allocation2] sm:$0xff] %v161_v5 }
  0x2a LB: >> { %vm188_vm0 = vcmp.lt.s32.totalorder %v800_v2, 3  ;;  %v820_v8 = vstv %s712_s26  ;;  %s229_s27 = ssub.s32 128, %s712_s26  ;;  %v235_v39 = vand.u32 127, %v168_v1  ;;  %s241_s28 = scalar_lea.vmem [#allocation2], %s712_s26  ;;  %v238_v42 = vld [vmem:[%s805_s17] ss:$0 sm:$0xff]  ;;  %s712_s26 = sphi %s813_s26, %s178_s26  }
  0x2b   : >> { %vm187_vm1 = vcmp.ge.s32.totalorder %v800_v2, %v820_v8  ;;  %s247_s4 = scalar_lea.vmem [#allocation9], %s712_s26  ;;  %vm267_vm14 = vcmp.gt.s32.totalorder %v800_v2, %v820_v8  ;;  %s178_s26 = sadd.s32 1, %s712_s26  }
  0x2c   : >> { %vm189_vm3 = vmand %vm187_vm1, %vm188_vm0  ;;  %vm236_vm12 = vcmp.eq.s32.totalorder %v235_v39, %v820_v8  ;;  %v249_v44 = vld [vmem:[%s247_s4] ss:$0 sm:$0xff]  ;;  %p175_p11 = scmp.ge.s32.totalorder %s178_s26, 3  }
  0x2d   : > { %s409_s6 = sshrl.u32 (%p175_p11), %s756_s16, 3  ;;  %s415_s26 = sshll.u32 (%p175_p11), %s148_s20, 4  ;;  %s416_s26 = int_to_ptr.vmem [resolvable:$true] %s415_s26 }
  0x2e   : > { %s852_s10 = sshll.u32 (%p175_p11), %s409_s6, 1  ;;  %s363_s6 = scalar_lea.sflag (%p175_p11), [#allocation6], %s146_s7 }
  0x30   : >> { %v183_v6 = vld [vmem:[#allocation2] sm:$0xff]  ;;  %v243_v40 = vld [vmem:[%s241_s28] ss:$0 sm:$0xff] }
  0x31   : >> { %v184_v7 = vand.u32 2147483647, %v183_v6 }
  0x33   : >> { %vm581_vm2 = vcmp.gt.f32.partialorder %v184_v7, -inf }
  0x34   : >> { %vm191_vm4 = vmand %vm189_vm3, %vm581_vm2 }
  0x35   : >> { %v192_v9 = vsel %vm191_vm4, %v800_v2, %v820_v8  ;;  %v193_v10 = vsel %vm191_vm4, %v184_v7, -inf  ;;  %vm284_vm4 = vmand %vm267_vm14, %vm236_vm12 }
  0x36   : >> { %v194_v11 = vrot.slane %v193_v10, 1  ;;  %v195_v12 = vrot.slane %v192_v9, 1 }
  0x38   : >> { %vm196_vm5 = vcmp.ge.f32.partialorder %v194_v11, %v193_v10  ;;  %v199_v13 = vrot.slane %v194_v11, 1  ;;  %v200_v14 = vrot.slane %v195_v12, 1 }
  0x39   : >> { %v197_v15 = vsel %vm196_vm5, %v194_v11, %v193_v10  ;;  %v198_v16 = vsel %vm196_vm5, %v195_v12, %v192_v9  ;;  %vm259_vm5 = vcmp.gt.s32.totalorder %v235_v39, %v820_v8 }
  0x3a   : >> { %vm201_vm6 = vcmp.ge.f32.partialorder %v199_v13, %v197_v15  ;;  %v204_v17 = vrot.slane %v199_v13, 1  ;;  %v205_v18 = vrot.slane %v200_v14, 1 }
  0x3b   : >> { %v202_v19 = vsel %vm201_vm6, %v199_v13, %v197_v15  ;;  %v203_v20 = vsel %vm201_vm6, %v200_v14, %v198_v16 }
  0x3c   : >> { %vm206_vm7 = vcmp.ge.f32.partialorder %v204_v17, %v202_v19  ;;  %v209_v21 = vrot.slane %v204_v17, 1  ;;  %v210_v22 = vrot.slane %v205_v18, 1 }
  0x3d   : >> { %v207_v23 = vsel %vm206_vm7, %v204_v17, %v202_v19  ;;  %v208_v24 = vsel %vm206_vm7, %v205_v18, %v203_v20 }
  0x3e   : >> { %vm211_vm8 = vcmp.ge.f32.partialorder %v209_v21, %v207_v23  ;;  %v214_v25 = vrot.slane %v209_v21, 1  ;;  %v215_v26 = vrot.slane %v210_v22, 1 }
  0x3f   : >> { %v212_v27 = vsel %vm211_vm8, %v209_v21, %v207_v23  ;;  %v213_v28 = vsel %vm211_vm8, %v210_v22, %v208_v24 }
  0x40   : >> { %vm216_vm9 = vcmp.ge.f32.partialorder %v214_v25, %v212_v27  ;;  %v219_v29 = vrot.slane %v214_v25, 1  ;;  %v220_v30 = vrot.slane %v215_v26, 1 }
  0x41   : >> { %v217_v31 = vsel %vm216_vm9, %v214_v25, %v212_v27  ;;  %v218_v32 = vsel %vm216_vm9, %v215_v26, %v213_v28 }
  0x42   : >> { %vm221_vm10 = vcmp.ge.f32.partialorder %v219_v29, %v217_v31  ;;  %v224_v33 = vrot.slane %v219_v29, 1  ;;  %v225_v34 = vrot.slane %v220_v30, 1 }
  0x43   : >> { %v222_v35 = vsel %vm221_vm10, %v219_v29, %v217_v31  ;;  %v223_v36 = vsel %vm221_vm10, %v220_v30, %v218_v32 }
  0x44   : >> { %vm226_vm11 = vcmp.ge.f32.partialorder %v224_v33, %v222_v35 }
  0x45   : >> { %v228_v37 = vsel %vm226_vm11, %v225_v34, %v223_v36 }
  0x46   : >> { %230 = vrot.lane.b32.xlu0 %v228_v37, %s229_s27 }
  0xb8   : >> { %v231_v38 = vpop.permute.xlu0 %230 }
  0xb9   : >> { %590 = vpush %v231_v38 }
  0xea   : >> { %s591_s29 = spop %590 }
  0xeb   : >> { %v237_v41 = vstv %s591_s29  ;;  %s242_s30 = scalar_lea.vmem [#allocation2], %s591_s29  ;;  %s248_s5 = scalar_lea.vmem [#allocation9], %s591_s29 }
  0xec   : >> { %v244_v43 = vld [vmem:[%s242_s30] ss:$0 sm:$0xff]  ;;  %v239_v46 = vsel %vm236_vm12, %v237_v41, %v238_v42 }
  0xed   : >> { %v250_v45 = vld [vmem:[%s248_s5] ss:$0 sm:$0xff]  ;;  %245 = vst [vmem:[%s242_s30] sm:$0x1] %v243_v40  ;;  %vm253_vm13 = vcmp.ne.f32.partialorder %v244_v43, 0.0  ;;  %v260_v62 = vsel %vm259_vm5, %v244_v43, 0.0 }
  0xee   : >> { %246 = vst [vmem:[%s241_s28] sm:$0x1] %v244_v43  ;;  %vm254_vm15 = vmand %vm236_vm12, %vm253_vm13  ;;  %s413_s28 = scalar_lea.hbm (%p175_p11), %s913_s2, %s852_s10 }
  0xef   : >> { %251 = vst [vmem:[%s248_s5] sm:$0x1] %v249_v44  ;;  %v255_v47 = vsel %vm254_vm15, %v244_v43, 1.0  ;;  %s417_s29 = sshll.u32 (%p175_p11), %s413_s28, 4  ;;  %s418_s29 = int_to_ptr.hbm [resolvable:$true] %s417_s29 }
  0xf0   : >> { %252 = vst [vmem:[%s247_s4] sm:$0x1] %v250_v45  ;;  %v268_v48 = vsel %vm267_vm14, %v255_v47, 1.0  ;;  %s656_s11 = sshra.s32 (%p175_p11), %s418_s29, 4  ;;  %s657_s11 = int_to_ptr.hbm [resolvable:$true] %s656_s11 }
  0xf1   : >> { %640 = vrcp.f32 %v268_v48  ;;  %240 = vst [vmem:[%s805_s17] sm:$0x1] %v239_v46  ;;  %v280_v52 = vand.u32 2147483648, %v268_v48  ;;  %v278_v54 = vand.u32 2147483647, %v268_v48  ;;  %vm274_vm1 = vweird.f32 %v268_v48  ;;  %s585_s17 = sshll.u32 (%p175_p11), %s756_s16, 2  ;;  %s658_s16 = scalar_lea.hbm (%p175_p11), %s657_s11, 2 }
  0xf2   : > { %s372_s5 = scalar_lea.vmem (%p175_p11), %s912_s1, %s585_s17  ;;  %p659_p12 = scmp.ne.s32.totalorder (%p175_p11), %s657_s11, %s658_s16 }
  0xf3   : >> { %v281_v56 = vor.u32 1.1754944e-38, %v280_v52  ;;  %vm279_vm3 = vcmp.eq.f32.partialorder %v278_v54, 8.507059e+37  ;;  %s662_s17 = scalar_lea.hbm (%p175_p11), %s913_s2, 2  ;;  %p663_p1 = scmp.lt.s32.totalorder (%p175_p11), %s657_s11, %s913_s2 }
  0xf4   : > { %p660_p13 = pnand (%p175_p11), %p659_p12, %p773_p5  ;;  %p664_p2 = scmp.lt.s32.totalorder (%p175_p11), %s662_s17, %s658_s16 }
  0xf5   : >> { %v264_v58 = vld [vmem:[#allocation2] sm:$0xff] }
  0xf6   : > { %p661_p0 = pneg (%p175_p11), %p660_p13  ;;  %p665_p3 = por (%p175_p11), %p664_p2, %p663_p1 }
  0xf7   : >> { %v641_v49 = vpop.eup %640  ;;  %v291_v4 = vld [vmem:[#allocation9] sm:$0xff] (%p175_p11) }
  0xf8   : >> { %v270_v50 = vmul.f32 %v641_v49, %v268_v48  ;;  %vm275_vm0 = vweird.f32 %v641_v49  ;;  %v348_v1 = vld [vmem:[#allocation4] sm:$0x3] (%p175_p11)  ;;  %p666_p4 = pnand (%p175_p11), %p665_p3, %p661_p0 }
  0xf9   : >> { %vm276_vm2 = vmor %vm274_vm1, %vm275_vm0  ;;  %351 = vst [vmem:[%s148_s20] sm:$0x3] (%p175_p11), %v348_v1 }
  0xfa   : >> { %v271_v51 = vsub.f32 1.0, %v270_v50 }
  0xfc   : >> { %v272_v53 = vmul.f32 %v641_v49, %v271_v51 }
  0xfe   : >> { %v273_v55 = vadd.f32 %v641_v49, %v272_v53 }
 0x100   : >> { %v277_v57 = vsel %vm276_vm2, %v641_v49, %v273_v55 }
 0x101   : >> { %v282_v59 = vsel %vm279_vm3, %v281_v56, %v277_v57 }
 0x102   : >> { %v283_v60 = vmul.f32 %v282_v59, %v264_v58 }
 0x104   : >> { %v285_v61 = vsel %vm284_vm4, %v283_v60, 0.0 }
 0x105   : >> { %286 = vadd.xlane.f32.xlu0 %v285_v61 }
 0x12e   : > { %307 = vxpose.xlu0.b32.start.end [1/1] (short) (narrow) (%p175_p11), %v291_v4, 8 }
 0x178   : >> { %v287_v63 = vpop.xlane.xlu0 %286 }
 0x179   : >> { %v288_v0 = vmul.f32 %v287_v63, %v260_v62  ;;  %177 = sbr.rel (!%p175_p11) target bundleno = 42 (0x2a), region = 202 }
 0x17b   : >> { %v289_v3 = vsub.f32 %v283_v60, %v288_v0 }
 0x17d   : >> { %290 = vst [vmem:[#allocation2] sm:$0xff] %v289_v3 }
 0x184   : > { %v342_v5 = vld [vmem:[#allocation2] sm:$0xf] }
 0x185   : > { %345 = vst [vmem:[%s141_s19] sm:$0xf] %v342_v5 }
 0x18c   : > { %v389_v2 = vld [vmem:[%s141_s19] sm:$0xf] }
 0x18d   : > { %390 = vst [vmem:[%s372_s5] sm:$0xf] %v389_v2 }
 0x18e   : > { %669 = shalt.err (!%p666_p4)
}
 0x18f   : > { %592 = dma.vmem_to_hbm [thread:$0]  (%p773_p5), %s416_s26, 32, %s418_s29, %s363_s6  }
 0x190   : > { %s426_s19 = scalar_lea.vmem (%p773_p5), %s914_s3, %s852_s10 }
 0x1d2   : > { %v323_v6 = vpop.trf.xlu0 }
 0x1d3   : > { %339 = vst [vmem:[%s811_s22] sm:$0x1] %v323_v6 }
 0x1d7   : > { %423 = sbr.rel (!%p773_p5) target bundleno = 484 (0x1e4), region = 96 }
 0x1da   : > { %v354_v7 = vld [vmem:[#allocation7] sm:$0x3] }
 0x1db   : > { %357 = vst [vmem:[%s154_s21] sm:$0x3] %v354_v7 }
 0x1e2   : > { %v443_v8 = vld [vmem:[%s154_s21] sm:$0x3] }
 0x1e3   : > { %444 = vst [vmem:[%s426_s19] sm:$0x3] %v443_v8 }
 0x1e4 PF: > { %s472_s20 = sand.u32 1, %s696_s12   ;;  %p595_p8 = pnand %p573_p7, %p777_p6 }
 0x1e5   : > { %s473_s24 = scalar_lea.sflag [#allocation6], %s472_s20 }
 0x1e6   : > { %p596_p9 = pneg %p595_p8 }
 0x1e8   : > { %691 = dma.done.wait (%p596_p9), %s473_s24, 32  }
 0x1e9   : > { %693 = vsyncadd (%p596_p9), %s473_s24, 4294967264  ;;  %p10_p5 = scmp.ge.s32.totalorder %s760_s18, 4   ;;  %s917_s12 = smov %s700_s13 }
 0x1ea   : > { %s918_s13 = smov %s704_s14  ;;  %s919_s14 = smov %s771_s23 }
 0x1eb   : > { %s920_s15 = smov %s760_s18  ;;  %12 = sbr.rel (!%p10_p5) target bundleno = 3 (0x3), region = 213 }
 0x1f0   :  { %486 = vsyncpa [#allocation6], 1 }
 0x1f1   :  { %488 = vsyncpa [#allocation6 + $0x1], 1 }

// kernel: custom-call.13
= control target key start
LH: loop header
LB: loop body
LE: loop exit
PB: predicated region body
PF: predicated region fallthrough
CT: control target
= control target key end

     0   :  { %s373_s6 = smov 0   ;;  %s375_s7 = smov 0   ;;  %s422_s0 = inlined_call_operand.vmem [shape: f32[2,1,3,3], index: 0, kind: input, shape index: {}]   ;;  %s423_s1 = inlined_call_operand.vmem [shape: f32[2,1,3,3], index: 1, kind: output, shape index: {}]  }
   0x1   :  { %s377_s8 = smov 0  }
   0x2 LB: > { %s299_s9 = sadd.s32 4294967295, %s360_s8   ;;  %s33_s10 = sadd.s32 1, %s356_s7  ;;  %s360_s8 = sphi %s377_s8, %s7_s8   ;;  %s356_s7 = sphi %s375_s7, %s425_s7   ;;  %s352_s6 = sphi %s373_s6, %s424_s6  }
   0x3   : > { %p35_p0 = scmp.ge.s32.totalorder %s33_s10, 2  ;;  %p301_p1 = scmp.ge.s32.totalorder %s360_s8, 2 }
   0x4   : > { %s49_s11 = sand.u32 (!%p301_p1), 1, %s360_s8   ;;  %s303_s12 = sshll.u32 (!%p301_p1), %s356_s7, 2 }
   0x5   : > { %s427_s10 = smov (%p35_p0, %s33_s10), 0  ;;  %47 = sbr.rel (%p301_p1) target bundleno = 12 (0xc), region = 16 }
   0x6   : > { %s302_s13 = sshll.u32 (!%p301_p1), %s49_s11, 2  ;;  %s56_s16 = scalar_lea.vmem (!%p301_p1), %s422_s0, %s303_s12 }
   0x7   : > { %s51_s17 = scalar_lea.vmem (!%p301_p1), [#allocation1], %s302_s13 }
   0xa   : > { %v73_v0 = vld [vmem:[%s56_s16] sm:$0xf] }
   0xb   : > { %74 = vst [vmem:[%s51_s17] sm:$0xf] %v73_v0 }
   0xc PF: > { %p304_p2 = scmp.ge.s32.totalorder %s360_s8, 1  ;;  %p91_p3 = scmp.lt.s32.totalorder %s360_s8, 3 }
   0xe   : > { %p92_p4 = pnand %p304_p2, %p91_p3 }
  0x10   : > { %95 = sbr.rel (%p92_p4) target bundleno = 437 (0x1b5), region = 50 }
  0x15   : > { %s400_s18 = sand.u32 1, %s299_s9   ;;  %v113_v1 = vlaneseq  ;;  %v362_v20 = vmov -1.0   ;;  %s308_s22 = sshll.u32 %s352_s6, 2 }
  0x16   : > { %s305_s19 = sshll.u32 %s400_s18, 2  ;;  %s206_s25 = scalar_lea.vmem %s423_s1, %s308_s22 }
  0x17   : > { %s104_s20 = scalar_lea.vmem [#allocation1], %s305_s19  ;;  %v114_v3 = vand.u32 127, %v113_v1  ;;  %v117_v4 = vshrl.u32 %v113_v1, 7  ;;  %s108_s21 = scalar_lea.vmem [#allocation3], %s305_s19 }
  0x18   : > { %v111_v2 = vld [vmem:[%s104_s20] sm:$0xf] }
  0x19   : > { %112 = vst [vmem:[#allocation0] sm:$0xf] %v111_v2  ;;  %vm119_vm0 = vcmp.eq.s32.totalorder %v117_v4, %v114_v3  ;;  %vm115_vm1 = vcmp.lt.s32.totalorder %v114_v3, 3  ;;  %vm124_vm2 = vcmp.ge.s32.totalorder %v117_v4, %v114_v3  ;;  %vm151_vm8 = vcmp.eq.s32.totalorder %v114_v3, 0 }
  0x1a   : > { %vm125_vm3 = vmand %vm124_vm2, %vm115_vm1  ;;  %vm148_vm9 = vcmp.eq.s32.totalorder %v114_v3, %v117_v4  ;;  %v152_v21 = vsel %vm151_vm8, 1.0, %v362_v20  ;;  %vm159_vm10 = vcmp.eq.s32.totalorder %v114_v3, 1  ;;  %vm169_vm11 = vcmp.eq.s32.totalorder %v114_v3, 2 }
  0x1b   : > { %v153_v22 = vsel %vm148_vm9, %v152_v21, 0.0 }
  0x20   : > { %v120_v5 = vld [vmem:[#allocation0] sm:$0xff] }
  0x21   : > { %v121_v6 = vsel %vm119_vm0, %v120_v5, 0.0  ;;  %v126_v15 = vsel %vm125_vm3, %v120_v5, 0.0 }
  0x22   : > { %122 = vadd.xlane.f32.xlu0 %v121_v6 }
  0x95   : > { %v123_v7 = vpop.xlane.xlu0 %122 }
  0x96   : > { %336 = vrcp.f32 %v123_v7  ;;  %v138_v11 = vand.u32 2147483648, %v123_v7  ;;  %v136_v13 = vand.u32 2147483647, %v123_v7  ;;  %vm132_vm5 = vweird.f32 %v123_v7 }
  0x98   : > { %v139_v16 = vor.u32 1.1754944e-38, %v138_v11  ;;  %vm137_vm7 = vcmp.eq.f32.partialorder %v136_v13, 8.507059e+37 }
  0x9c   : > { %v337_v8 = vpop.eup %336 }
  0x9d   : > { %v128_v9 = vmul.f32 %v337_v8, %v123_v7  ;;  %vm133_vm4 = vweird.f32 %v337_v8 }
  0x9e   : > { %vm134_vm6 = vmor %vm132_vm5, %vm133_vm4 }
  0x9f   : > { %v129_v10 = vsub.f32 1.0, %v128_v9 }
  0xa1   : > { %v130_v12 = vmul.f32 %v337_v8, %v129_v10 }
  0xa3   : > { %v131_v14 = vadd.f32 %v337_v8, %v130_v12 }
  0xa5   : > { %v135_v17 = vsel %vm134_vm6, %v337_v8, %v131_v14 }
  0xa6   : > { %v140_v18 = vsel %vm137_vm7, %v139_v16, %v135_v17 }
  0xa7   : > { %v141_v19 = vmul.f32 %v140_v18, %v126_v15 }
  0xa9   : > { %142 = vst [vmem:[#allocation4] sm:$0xff] %v141_v19 }
  0xb0   : > { %v155_v23 = vld [vmem:[#allocation4 + $0x1] ss:$0 sm:$0xff]  ;;  %v165_v26 = vld [vmem:[#allocation4 + $0x2] ss:$0 sm:$0xff] }
  0xb1   : > { %v156_v24 = vxor.u32 2147483648, %v155_v23  ;;  %v166_v28 = vxor.u32 2147483648, %v165_v26 }
  0xb3   : > { %v160_v25 = vmul.f32 %v156_v24, %v153_v22 }
  0xb5   : > { %161 = vadd.xlane.f32.xlu0 %v160_v25 }
 0x128   : > { %v162_v27 = vpop.xlane.xlu0 %161 }
 0x129   : > { %v163_v29 = vsel %vm159_vm10, %v162_v27, %v153_v22 }
 0x12a   : > { %v170_v30 = vmul.f32 %v166_v28, %v163_v29 }
 0x12c   : > { %171 = vadd.xlane.f32.xlu1 %v170_v30 }
 0x19f   : > { %v172_v31 = vpop.xlane.xlu1 %171 }
 0x1a0   : > { %v173_v32 = vsel %vm169_vm11, %v172_v31, %v163_v29 }
 0x1a1   : > { %v188_v33 = vmul.f32 %v173_v32, %v140_v18 }
 0x1a3   : > { %v190_v34 = vsel %vm132_vm5, %v173_v32, %v188_v33 }
 0x1a4   : > { %191 = vst [vmem:[#allocation2] sm:$0xff] %v190_v34 }
 0x1ab   : > { %v194_v35 = vld [vmem:[#allocation2] sm:$0xf] }
 0x1ac   : > { %197 = vst [vmem:[%s108_s21] sm:$0xf] %v194_v35 }
 0x1b3   : > { %v223_v36 = vld [vmem:[%s108_s21] sm:$0xf] }
 0x1b4   : > { %224 = vst [vmem:[%s206_s25] sm:$0xf] %v223_v36 }
 0x1b5 PF: > { %s7_s8 = sadd.s32 1, %s360_s8   ;;  %s424_s6 = smov %s356_s7 }
 0x1b6   : > { %p4_p5 = scmp.ge.s32.totalorder %s7_s8, 4   ;;  %s425_s7 = smov %s427_s10 }
 0x1b8   :  { %6 = sbr.rel (!%p4_p5) target bundleno = 2 (0x2), region = 112 }

// kernel: custom-call.12
= control target key start
LH: loop header
LB: loop body
LE: loop exit
PB: predicated region body
PF: predicated region fallthrough
CT: control target
= control target key end

     0   :  { %s372_s6 = smov 0   ;;  %s374_s7 = smov 0   ;;  %s421_s0 = inlined_call_operand.vmem [shape: f32[2,1,3,3], index: 0, kind: input, shape index: {}]   ;;  %s422_s1 = inlined_call_operand.vmem [shape: f32[2,1,3,3], index: 1, kind: output, shape index: {}]  }
   0x1   :  { %s376_s8 = smov 0  }
   0x2 LB: > { %s298_s9 = sadd.s32 4294967295, %s359_s8   ;;  %s33_s10 = sadd.s32 1, %s355_s7  ;;  %s359_s8 = sphi %s376_s8, %s7_s8   ;;  %s355_s7 = sphi %s374_s7, %s424_s7   ;;  %s351_s6 = sphi %s372_s6, %s423_s6  }
   0x3   : > { %p35_p0 = scmp.ge.s32.totalorder %s33_s10, 2  ;;  %p300_p1 = scmp.ge.s32.totalorder %s359_s8, 2 }
   0x4   : > { %s49_s11 = sand.u32 (!%p300_p1), 1, %s359_s8   ;;  %s302_s12 = sshll.u32 (!%p300_p1), %s355_s7, 2 }
   0x5   : > { %s426_s10 = smov (%p35_p0, %s33_s10), 0  ;;  %47 = sbr.rel (%p300_p1) target bundleno = 12 (0xc), region = 16 }
   0x6   : > { %s301_s13 = sshll.u32 (!%p300_p1), %s49_s11, 2  ;;  %s56_s16 = scalar_lea.vmem (!%p300_p1), %s421_s0, %s302_s12 }
   0x7   : > { %s51_s17 = scalar_lea.vmem (!%p300_p1), [#allocation1], %s301_s13 }
   0xa   : > { %v73_v0 = vld [vmem:[%s56_s16] sm:$0xf] }
   0xb   : > { %74 = vst [vmem:[%s51_s17] sm:$0xf] %v73_v0 }
   0xc PF: > { %p303_p2 = scmp.ge.s32.totalorder %s359_s8, 1  ;;  %p91_p3 = scmp.lt.s32.totalorder %s359_s8, 3 }
   0xe   : > { %p92_p4 = pnand %p303_p2, %p91_p3 }
  0x10   : > { %95 = sbr.rel (%p92_p4) target bundleno = 437 (0x1b5), region = 50 }
  0x15   : > { %s399_s18 = sand.u32 1, %s298_s9   ;;  %v113_v1 = vlaneseq  ;;  %v361_v20 = vmov -1.0   ;;  %s307_s22 = sshll.u32 %s351_s6, 2 }
  0x16   : > { %s304_s19 = sshll.u32 %s399_s18, 2  ;;  %s205_s25 = scalar_lea.vmem %s422_s1, %s307_s22 }
  0x17   : > { %s104_s20 = scalar_lea.vmem [#allocation1], %s304_s19  ;;  %v114_v3 = vand.u32 127, %v113_v1  ;;  %v117_v4 = vshrl.u32 %v113_v1, 7  ;;  %s108_s21 = scalar_lea.vmem [#allocation3], %s304_s19 }
  0x18   : > { %v111_v2 = vld [vmem:[%s104_s20] sm:$0xf] }
  0x19   : > { %112 = vst [vmem:[#allocation0] sm:$0xf] %v111_v2  ;;  %vm119_vm0 = vcmp.eq.s32.totalorder %v117_v4, %v114_v3  ;;  %vm115_vm1 = vcmp.lt.s32.totalorder %v114_v3, 3  ;;  %vm124_vm2 = vcmp.le.s32.totalorder %v117_v4, %v114_v3  ;;  %vm151_vm8 = vcmp.eq.s32.totalorder %v114_v3, 2 }
  0x1a   : > { %vm125_vm3 = vmand %vm124_vm2, %vm115_vm1  ;;  %vm148_vm9 = vcmp.eq.s32.totalorder %v114_v3, %v117_v4  ;;  %v152_v21 = vsel %vm151_vm8, 1.0, %v361_v20  ;;  %vm159_vm10 = vcmp.eq.s32.totalorder %v114_v3, 1  ;;  %vm168_vm11 = vcmp.eq.s32.totalorder %v114_v3, 0 }
  0x1b   : > { %v153_v22 = vsel %vm148_vm9, %v152_v21, 0.0 }
  0x20   : > { %v120_v5 = vld [vmem:[#allocation0] sm:$0xff] }
  0x21   : > { %v121_v6 = vsel %vm119_vm0, %v120_v5, 0.0  ;;  %v126_v15 = vsel %vm125_vm3, %v120_v5, 0.0 }
  0x22   : > { %122 = vadd.xlane.f32.xlu0 %v121_v6 }
  0x95   : > { %v123_v7 = vpop.xlane.xlu0 %122 }
  0x96   : > { %335 = vrcp.f32 %v123_v7  ;;  %v138_v11 = vand.u32 2147483648, %v123_v7  ;;  %v136_v13 = vand.u32 2147483647, %v123_v7  ;;  %vm132_vm5 = vweird.f32 %v123_v7 }
  0x98   : > { %v139_v16 = vor.u32 1.1754944e-38, %v138_v11  ;;  %vm137_vm7 = vcmp.eq.f32.partialorder %v136_v13, 8.507059e+37 }
  0x9c   : > { %v336_v8 = vpop.eup %335 }
  0x9d   : > { %v128_v9 = vmul.f32 %v336_v8, %v123_v7  ;;  %vm133_vm4 = vweird.f32 %v336_v8 }
  0x9e   : > { %vm134_vm6 = vmor %vm132_vm5, %vm133_vm4 }
  0x9f   : > { %v129_v10 = vsub.f32 1.0, %v128_v9 }
  0xa1   : > { %v130_v12 = vmul.f32 %v336_v8, %v129_v10 }
  0xa3   : > { %v131_v14 = vadd.f32 %v336_v8, %v130_v12 }
  0xa5   : > { %v135_v17 = vsel %vm134_vm6, %v336_v8, %v131_v14 }
  0xa6   : > { %v140_v18 = vsel %vm137_vm7, %v139_v16, %v135_v17 }
  0xa7   : > { %v141_v19 = vmul.f32 %v140_v18, %v126_v15 }
  0xa9   : > { %142 = vst [vmem:[#allocation4] sm:$0xff] %v141_v19 }
  0xb0   : > { %v155_v23 = vld [vmem:[#allocation4 + $0x1] ss:$0 sm:$0xff]  ;;  %v164_v26 = vld [vmem:[#allocation4] ss:$0 sm:$0xff] }
  0xb1   : > { %v156_v24 = vxor.u32 2147483648, %v155_v23  ;;  %v165_v28 = vxor.u32 2147483648, %v164_v26 }
  0xb3   : > { %v160_v25 = vmul.f32 %v156_v24, %v153_v22 }
  0xb5   : > { %161 = vadd.xlane.f32.xlu0 %v160_v25 }
 0x128   : > { %v162_v27 = vpop.xlane.xlu0 %161 }
 0x129   : > { %v163_v29 = vsel %vm159_vm10, %v162_v27, %v153_v22 }
 0x12a   : > { %v169_v30 = vmul.f32 %v165_v28, %v163_v29 }
 0x12c   : > { %170 = vadd.xlane.f32.xlu1 %v169_v30 }
 0x19f   : > { %v171_v31 = vpop.xlane.xlu1 %170 }
 0x1a0   : > { %v172_v32 = vsel %vm168_vm11, %v171_v31, %v163_v29 }
 0x1a1   : > { %v187_v33 = vmul.f32 %v172_v32, %v140_v18 }
 0x1a3   : > { %v189_v34 = vsel %vm132_vm5, %v172_v32, %v187_v33 }
 0x1a4   : > { %190 = vst [vmem:[#allocation2] sm:$0xff] %v189_v34 }
 0x1ab   : > { %v193_v35 = vld [vmem:[#allocation2] sm:$0xf] }
 0x1ac   : > { %196 = vst [vmem:[%s108_s21] sm:$0xf] %v193_v35 }
 0x1b3   : > { %v222_v36 = vld [vmem:[%s108_s21] sm:$0xf] }
 0x1b4   : > { %223 = vst [vmem:[%s205_s25] sm:$0xf] %v222_v36 }
 0x1b5 PF: > { %s7_s8 = sadd.s32 1, %s359_s8   ;;  %s423_s6 = smov %s355_s7 }
 0x1b6   : > { %p4_p5 = scmp.ge.s32.totalorder %s7_s8, 4   ;;  %s424_s7 = smov %s426_s10 }
 0x1b8   :  { %6 = sbr.rel (!%p4_p5) target bundleno = 2 (0x2), region = 111 }

// kernel: _forward_impl.1
= control target key start
LH: loop header
LB: loop body
LE: loop exit
PB: predicated region body
PF: predicated region fallthrough
CT: control target
= control target key end

     0   :  { %v13755_v0 = vmov 0   ;;  %v13759_v4 = vmov 1   ;;  %s8336_s18 = smov 120   ;;  %v13753_v8 = vmov 2   ;;  %v13757_v11 = vmov 3   ;;  %s13749_s1 = inlined_call_operand.vmem [shape: f32[128,16], index: 1, kind: input, shape index: {}]   ;;  %s13750_s0 = inlined_call_operand.vmem [shape: f32[24,128], index: 0, kind: input, shape index: {}]   ;;  %s13751_s2 = inlined_call_operand.vmem [shape: f32[32,32], index: 2, kind: input, shape index: {}]   ;;  %s13752_s3 = inlined_call_operand.vmem [shape: f32[16,128], index: 3, kind: output, shape index: {}]  }
   0x1   :  { %8174 = vset.pattern.permute.xlu2 %v13755_v0  ;;  %v8369_v1 = vld [vmem:[%s13749_s1 + $0x38] sm:$0xff]  ;;  %v8374_v2 = vld [vmem:[%s13749_s1 + $0x10] sm:$0xff]  ;;  %v8379_v3 = vld [vmem:[%s13749_s1] sm:$0xff]  ;;  %8177 = vset.pattern.permute.xlu1 %v13759_v4  ;;  %vm13854_vm2 = vcmask 64512  }
   0x2   :  { %1861 = vperm.xlu2 %8174, %v8369_v1   ;;  %51 = vrot.lane.b32.xlu1 %v8374_v2, %s8336_s18  ;;  %v8391_v5 = vld [vmem:[%s13749_s1 + $0x18] sm:$0xff]  ;;  %v8396_v6 = vld [vmem:[%s13749_s1 + $0x8] sm:$0xff]  ;;  %v1838_v7 = vld [vmem:[%s13749_s1 + $0x30] sm:$0xff] }
   0x3   :  { %47 = vrot.lane.b32.xlu0 %v8379_v3, %s8336_s18  ;;  %v8412_v9 = vld [vmem:[%s13749_s1 + $0x28] sm:$0xff]  ;;  %v18_v10 = vld [vmem:[%s13749_s1 + $0x20] sm:$0xff]  ;;  %v8449_v12 = vld [vmem:[%s13749_s1 + $0x58] sm:$0xff] }
   0x4   :  { %8176 = vset.pattern.permute.xlu0 %v13755_v0  ;;  %v30_v13 = vld [vmem:[%s13750_s0 + $0x4] sm:$0xff]  ;;  %v8460_v14 = vld [vmem:[%s13750_s0] ss:$0 sm:$0xff]  ;;  %v8474_v20 = vld [vmem:[%s13750_s0 + $0x1] ss:$0 sm:$0xff] }
   0x5   :  { %127 = vmatpush.msra.mxu0 %v30_v13  ;;  %7778 = vmatpush.msra.mxu2 %v30_v13  ;;  %v8479_v23 = vld [vmem:[%s13749_s1 + $0x78] sm:$0xff]  ;;  %v8488_v32 = vld [vmem:[%s13750_s0 + $0x2] ss:$0 sm:$0xff]  ;;  %v8493_v33 = vld [vmem:[%s13750_s0 + $0xc] ss:$0 sm:$0xff] }
   0x6   :  { %v8498_v36 = vld [vmem:[%s13750_s0 + $0xd] ss:$0 sm:$0xff]  ;;  %v8503_v37 = vld [vmem:[%s13750_s0 + $0xe] ss:$0 sm:$0xff]  ;;  %v8512_v40 = vld [vmem:[%s13749_s1 + $0x40] sm:$0xff] }
   0x7   :  { %v8520_v43 = vld [vmem:[%s13750_s0 + $0xf] ss:$0 sm:$0xff]  ;;  %v8525_v44 = vld [vmem:[%s13750_s0 + $0x10] ss:$0 sm:$0xff]  ;;  %v8530_v45 = vld [vmem:[%s13750_s0 + $0x11] ss:$0 sm:$0xff] }
   0x8   :  { %v8547_v63 = vld [vmem:[%s13749_s1 + $0x70] sm:$0xff] }
   0x9   :  { %v8564_v13 = vld [vmem:[%s13750_s0 + $0x12] ss:$0 sm:$0xff] }
   0xa   :  { %8175 = vset.pattern.permute.xlu2 %v13759_v4  ;;  %53 = vrot.lane.b32.xlu1 %v8391_v5, %s8336_s18 }
   0xb   :  { %49 = vrot.lane.b32.xlu0 %v8396_v6, %s8336_s18  ;;  %1881 = vperm.xlu2 %8175, %v8369_v1  }
  0x12   :  { %1877 = vperm.xlu1 %8177, %v1838_v7  }
  0x13   :  { %1856 = vperm.xlu0 %8176, %v1838_v7   ;;  %8178 = vset.pattern.permute.xlu2 %v13753_v8 }
  0x14   :  { %1901 = vperm.xlu2 %8178, %v8369_v1  }
  0x1a   :  { %8179 = vset.pattern.permute.xlu1 %v13755_v0 }
  0x1b   :  { %1851 = vperm.xlu0 %8176, %v8412_v9   ;;  %232 = vperm.xlu1 %8179, %v8391_v5  }
  0x1c   :  { %8180 = vset.pattern.permute.xlu2 %v13759_v4 }
  0x1d   :  { %253 = vperm.xlu2 %8180, %v8391_v5  }
  0x23   :  { %55 = vrot.lane.b32.xlu0 %v18_v10, %s8336_s18  ;;  %8181 = vset.pattern.permute.xlu1 %v13759_v4 }
  0x24   :  { %1873 = vperm.xlu1 %8181, %v8412_v9   ;;  %8187 = vset.pattern.permute.xlu0 %v13759_v4 }
  0x25   :  { %8182 = vset.pattern.permute.xlu2 %v13753_v8 }
  0x26   :  { %1897 = vperm.xlu2 %8182, %v1838_v7  }
  0x2b   :  { %245 = vperm.xlu0 %8187, %v8396_v6  }
  0x2c   :  { %8183 = vset.pattern.permute.xlu1 %v13755_v0 }
  0x2d   :  { %227 = vperm.xlu1 %8183, %v8374_v2  }
  0x2e   :  { %8184 = vset.pattern.permute.xlu2 %v13759_v4 }
  0x2f   :  { %249 = vperm.xlu2 %8184, %v8374_v2  }
  0x33   :  { %8193 = vset.pattern.permute.xlu0 %v13757_v11 }
  0x34   :  { %2021 = vperm.xlu0 %8193, %v1838_v7  }
  0x35   :  { %1846 = vperm.xlu1 %8183, %v18_v10  }
  0x37   :  { %1869 = vperm.xlu2 %8184, %v18_v10  }
  0x3c   :  { %2013 = vperm.xlu0 %8193, %v18_v10  }
  0x3d   :  { %8185 = vset.pattern.permute.xlu1 %v13753_v8 }
  0x3e   :  { %1893 = vperm.xlu1 %8185, %v8412_v9  }
  0x3f   :  { %8186 = vset.pattern.permute.xlu2 %v13755_v0 }
  0x40   :  { %222 = vperm.xlu2 %8186, %v8396_v6  }
  0x44   :  { %8195 = vset.pattern.permute.xlu0 %v13753_v8 }
  0x45   :  { %274 = vperm.xlu0 %8195, %v8391_v5  }
  0x46   :  { %270 = vperm.xlu1 %8185, %v8374_v2  }
  0x48   :  { %8188 = vset.pattern.permute.xlu2 %v13753_v8 }
  0x49   :  { %1889 = vperm.xlu2 %8188, %v18_v10  }
  0x4d   :  { %266 = vperm.xlu0 %8195, %v8396_v6  }
  0x4e   :  { %8189 = vset.pattern.permute.xlu1 %v13755_v0 }
  0x4f   :  { %217 = vperm.xlu1 %8189, %v8379_v3  }
  0x51   :  { %8190 = vset.pattern.permute.xlu2 %v13759_v4 }
  0x52   :  { %241 = vperm.xlu2 %8190, %v8379_v3  }
  0x55   :  { %3925 = vperm.xlu0 %8195, %v8449_v12  }
  0x57   :  { %8191 = vset.pattern.permute.xlu1 %v13753_v8 }
  0x58   :  { %262 = vperm.xlu1 %8191, %v8379_v3  }
  0x5a   :  { %57 = vrot.lane.b32.xlu2 %v8412_v9, %s8336_s18 }
  0x5b   :  { %8192 = vset.pattern.permute.xlu2 %v13757_v11 }
  0x5c   :  { %v1862_v15 = vpop.permute.xlu2 %1861 }
  0x5d   :  { %v1867_v16 = vsub.f32 %v8460_v14, %v1862_v15  ;;  %8199 = vset.pattern.permute.xlu0 %v13755_v0 }
  0x5e   :  { %3885 = vperm.xlu0 %8199, %v8449_v12  }
  0x5f   :  { %v7901_v17 = vcvt.f32.s32 %v1867_v16  ;;  %v7904_v19 = vand.u32 2147483648, %v1867_v16  ;;  %v7899_v21 = vand.u32 2147483647, %v1867_v16 }
  0x60   :  { %59 = vrot.lane.b32.xlu1 %v1838_v7, %s8336_s18  ;;  %v8553_v7 = vld [vmem:[%s13750_s0 + $0x13] ss:$0 sm:$0xff] }
  0x61   :  { %v7902_v18 = vcvt.s32.f32 %v7901_v17  ;;  %8194 = vset.pattern.permute.xlu1 %v13757_v11  ;;  %vm7900_vm0 = vcmp.lt.f32.partialorder %v7899_v21, 8388608.0 }
  0x62   :  { %2025 = vperm.xlu2 %8192, %v8369_v1  }
  0x63   :  { %v7903_v22 = vand.u32 2147483647, %v7902_v18 }
  0x65   :  { %v1882_v24 = vpop.permute.xlu2 %1881  ;;  %v7905_v25 = vor.u32 %v7904_v19, %v7903_v22 }
  0x66   :  { %v1887_v26 = vsub.f32 %v8474_v20, %v1882_v24  ;;  %5715 = vperm.xlu0 %8199, %v8479_v23  }
  0x67   :  { %v7906_v28 = vsel %vm7900_vm0, %v7905_v25, %v1867_v16 }
  0x68   :  { %v7933_v27 = vcvt.f32.s32 %v1887_v26  ;;  %407 = vperm.xlu1 %8194, %v8391_v5   ;;  %v7931_v29 = vand.u32 2147483647, %v1887_v26  ;;  %v7936_v31 = vand.u32 2147483648, %v1887_v26  ;;  %v1915_v34 = vsub.f32 %v1867_v16, %v7906_v28 }
  0x6a   :  { %2017 = vperm.xlu2 %8192, %v8412_v9   ;;  %v7934_v30 = vcvt.s32.f32 %v7933_v27  ;;  %vm8505_vm1 = vcmp.lt.f32.partialorder %v7931_v29, 8388608.0  ;;  %v1935_v46 = vmul.f32 %v8493_v33, %v1915_v34  ;;  %v1955_v49 = vmul.f32 %v8498_v36, %v1915_v34  ;;  %v8558_v9 = vld [vmem:[%s13750_s0 + $0x14] ss:$0 sm:$0xff] }
  0x6b   :  { %v1975_v50 = vmul.f32 %v8503_v37, %v1915_v34 }
  0x6c   :  { %v7935_v35 = vand.u32 2147483647, %v7934_v30 }
  0x6e   :  { %v1902_v39 = vpop.permute.xlu2 %1901  ;;  %8203 = vset.pattern.permute.xlu0 %v13759_v4  ;;  %v7937_v41 = vor.u32 %v7936_v31, %v7935_v35 }
  0x6f   :  { %v1907_v42 = vsub.f32 %v8488_v32, %v1902_v39  ;;  %3893 = vperm.xlu0 %8203, %v8512_v40  }
  0x70   :  { %61 = vrot.lane.b32.xlu1 %v8369_v1, %s8336_s18  ;;  %v7938_v47 = vsel %vm8505_vm1, %v7937_v41, %v1887_v26 }
  0x71   :  { %v7965_v48 = vcvt.f32.s32 %v1907_v42  ;;  %v1923_v51 = vsub.f32 %v1887_v26, %v7938_v47  ;;  %v7963_v52 = vand.u32 2147483647, %v1907_v42  ;;  %v7968_v54 = vand.u32 2147483648, %v1907_v42 }
  0x72   :  { %403 = vperm.xlu2 %8192, %v8374_v2  }
  0x73   :  { %v7966_v53 = vcvt.s32.f32 %v7965_v48  ;;  %v1939_v55 = vmul.f32 %v8520_v43, %v1923_v51  ;;  %v1959_v56 = vmul.f32 %v8525_v44, %v1923_v51  ;;  %v1979_v57 = vmul.f32 %v8530_v45, %v1923_v51 }
  0x74   :  { %v52_v58 = vpop.permute.xlu1 %51  ;;  %vm7964_vm3 = vcmp.lt.f32.partialorder %v7963_v52, 8388608.0 }
  0x75   :  { %v7967_v59 = vand.u32 2147483647, %v7966_v53  ;;  %v48_v60 = vpop.permute.xlu0 %47  ;;  %v1963_v61 = vadd.f32 %v1959_v56, %v1955_v49  ;;  %v1983_v62 = vadd.f32 %v1979_v57, %v1975_v50  ;;  %v1943_v1 = vadd.f32 %v1939_v55, %v1935_v46 }
  0x76   :  { %7594 = vmatmul.msk.f32.vlgmr.msra.gmra.mxu0 %vm13854_vm2, %v48_v60 }
  0x77   :  { %v7969_v2 = vor.u32 %v7968_v54, %v7967_v59  ;;  %v254_v5 = vpop.permute.xlu2 %253  ;;  %5731 = vperm.xlu0 %8203, %v8547_v63  }
  0x78   :  { %399 = vperm.xlu1 %8194, %v8396_v6   ;;  %v8570_v19 = vsub.f32 %v8474_v20, %v254_v5 }
  0x79   :  { %v7970_v10 = vsel %vm7964_vm3, %v7969_v2, %v1907_v42 }
  0x7a   :  { %v1931_v15 = vsub.f32 %v1907_v42, %v7970_v10  ;;  %395 = vperm.xlu2 %8192, %v8379_v3   ;;  %v7837_v26 = vcvt.f32.s32 %v8570_v19  ;;  %v8595_v42 = vld [vmem:[%s13749_s1 + $0x50] sm:$0xff]  ;;  %v7835_v48 = vand.u32 2147483647, %v8570_v19  ;;  %v7840_v50 = vand.u32 2147483648, %v8570_v19 }
  0x7c   :  { %v1967_v16 = vmul.f32 %v8553_v7, %v1931_v15  ;;  %v1987_v17 = vmul.f32 %v8558_v9, %v1931_v15  ;;  %v54_v18 = vpop.permute.xlu1 %53  ;;  %v1947_v6 = vmul.f32 %v8564_v13, %v1931_v15  ;;  %v7838_v30 = vcvt.s32.f32 %v7837_v26 }
  0x7d   :  { %v50_v21 = vpop.permute.xlu0 %49  ;;  %vm8622_vm6 = vcmp.lt.f32.partialorder %v7835_v48, 8388608.0 }
  0x7e   :  { %v8573_v22 = vadd.f32 %v1987_v17, %v1983_v62  ;;  %7595 = vmatmul.msk.f32.gmra.mxu0 %vm13854_vm2, %v50_v21  ;;  %v8576_v24 = vadd.f32 %v1967_v16, %v1963_v61  ;;  %v8579_v3 = vadd.f32 %v1947_v6, %v1943_v1  ;;  %v7839_v49 = vand.u32 2147483647, %v7838_v30 }
  0x7f   :  { %8211 = vset.pattern.permute.xlu0 %v13753_v8 }
  0x80   :  { %13984 = vst [vmem:[#allocation3_spill] sm:$0xff] %v8573_v22  ;;  %8196 = vset.pattern.permute.xlu1 %v13759_v4  ;;  %v1898_v25 = vpop.permute.xlu2 %1897  ;;  %5751 = vperm.xlu0 %8211, %v8547_v63   ;;  %v7841_v2 = vor.u32 %v7840_v50, %v7839_v49 }
  0x81   :  { %13985 = vst [vmem:[#allocation4_spill] sm:$0xff] %v8576_v24  ;;  %3905 = vperm.xlu1 %8196, %v8449_v12   ;;  %v1906_v27 = vsub.f32 %v8488_v32, %v1898_v25 }
  0x82   :  { %13986 = vst [vmem:[#allocation5_spill] sm:$0xff] %v8579_v3  ;;  %63 = vrot.lane.b32.xlu2 %v8512_v40, %s8336_s18 }
  0x83   :  { %v7957_v28 = vcvt.f32.s32 %v1906_v27  ;;  %8198 = vset.pattern.permute.xlu2 %v13759_v4  ;;  %v7960_v35 = vand.u32 2147483648, %v1906_v27  ;;  %v7955_v41 = vand.u32 2147483647, %v1906_v27 }
  0x84   :  { %v1878_v29 = vpop.permute.xlu1 %1877 }
  0x85   :  { %v1857_v31 = vpop.permute.xlu0 %1856  ;;  %v7958_v34 = vcvt.s32.f32 %v7957_v28  ;;  %v1886_v38 = vsub.f32 %v8474_v20, %v1878_v29  ;;  %vm8607_vm4 = vcmp.lt.f32.partialorder %v7955_v41, 8388608.0  ;;  %v8629_v29 = vld [vmem:[%s13749_s1 + $0x48] sm:$0xff] }
  0x86   :  { %v1866_v39 = vsub.f32 %v8460_v14, %v1857_v31  ;;  %7596 = vmatmul.msk.f32.gmra.mxu0 %vm13854_vm2, %v52_v58 }
  0x87   :  { %v7959_v46 = vand.u32 2147483647, %v7958_v34  ;;  %v7925_v47 = vcvt.f32.s32 %v1886_v38  ;;  %v7923_v58 = vand.u32 2147483647, %v1886_v38  ;;  %v7928_v62 = vand.u32 2147483648, %v1886_v38 }
  0x88   :  { %8216 = vset.pattern.permute.xlu0 %v13757_v11  ;;  %v7893_v51 = vcvt.f32.s32 %v1866_v39  ;;  %v7891_v55 = vand.u32 2147483647, %v1866_v39  ;;  %v7896_v60 = vand.u32 2147483648, %v1866_v39 }
  0x89   :  { %8197 = vset.pattern.permute.xlu1 %v13755_v0  ;;  %v250_v52 = vpop.permute.xlu2 %249  ;;  %4037 = vperm.xlu0 %8216, %v8512_v40   ;;  %v7961_v53 = vor.u32 %v7960_v35, %v7959_v46  ;;  %v7926_v54 = vcvt.s32.f32 %v7925_v47  ;;  %vm7924_vm7 = vcmp.lt.f32.partialorder %v7923_v58, 8388608.0  ;;  %v7842_v47 = vsel %vm8622_vm6, %v7841_v2, %v8570_v19 }
  0x8a   :  { %3901 = vperm.xlu2 %8198, %v8595_v42   ;;  %3880 = vperm.xlu1 %8197, %v8595_v42   ;;  %v8605_v56 = vsub.f32 %v8474_v20, %v250_v52  ;;  %v7894_v59 = vcvt.s32.f32 %v7893_v51  ;;  %vm8614_vm5 = vcmp.lt.f32.partialorder %v7891_v55, 8388608.0 }
  0x8b   :  { %v7927_v61 = vand.u32 2147483647, %v7926_v54  ;;  %v7962_v16 = vsel %vm8607_vm4, %v7961_v53, %v1906_v27 }
  0x8c   :  { %v7829_v1 = vcvt.f32.s32 %v8605_v56  ;;  %v7895_v5 = vand.u32 2147483647, %v7894_v59  ;;  %v8632_v34 = vsub.f32 %v1906_v27, %v7962_v16  ;;  %v7832_v49 = vand.u32 2147483648, %v8605_v56 }
  0x8d   :  { %v1852_v10 = vpop.permute.xlu0 %1851  ;;  %v233_v15 = vpop.permute.xlu1 %232  ;;  %v7929_v17 = vor.u32 %v7928_v62, %v7927_v61  ;;  %v7827_v2 = vand.u32 2147483647, %v8605_v56 }
  0x8e   :  { %v8619_v6 = vsub.f32 %v8460_v14, %v1852_v10  ;;  %7597 = vmatmul.msk.f32.gmra.mxu0 %vm13854_vm2, %v54_v18  ;;  %v7897_v26 = vor.u32 %v7896_v60, %v7895_v5  ;;  %v7830_v28 = vcvt.s32.f32 %v7829_v1  ;;  %v238_v41 = vsub.f32 %v8460_v14, %v233_v15 }
  0x8f   :  { %v7930_v30 = vsel %vm7924_vm7, %v7929_v17, %v1886_v38  ;;  %v1966_v57 = vmul.f32 %v8553_v7, %v8632_v34  ;;  %v8661_v15 = vsub.f32 %v8570_v19, %v7842_v47  ;;  %vm8675_vm9 = vcmp.lt.f32.partialorder %v7827_v2, 8388608.0 }
  0x90   :  { %v7885_v31 = vcvt.f32.s32 %v8619_v6  ;;  %v1922_v35 = vsub.f32 %v1886_v38, %v7930_v30  ;;  %v7898_v18 = vsel %vm8614_vm5, %v7897_v26, %v1866_v39  ;;  %v7831_v52 = vand.u32 2147483647, %v7830_v28 }
  0x91   :  { %v1870_v46 = vpop.permute.xlu2 %1869  ;;  %5879 = vperm.xlu0 %8216, %v8479_v23   ;;  %v1914_v48 = vsub.f32 %v1866_v39, %v7898_v18  ;;  %v7888_v55 = vand.u32 2147483648, %v8619_v6  ;;  %v7883_v58 = vand.u32 2147483647, %v8619_v6  ;;  %v7805_v60 = vcvt.f32.s32 %v238_v41 }
  0x92   :  { %v7886_v50 = vcvt.s32.f32 %v7885_v31  ;;  %3897 = vperm.xlu2 %8198, %v8629_v29   ;;  %3875 = vperm.xlu1 %8197, %v8629_v29   ;;  %v1938_v27 = vmul.f32 %v8520_v43, %v1922_v35  ;;  %v1958_v38 = vmul.f32 %v8525_v44, %v1922_v35  ;;  %v1978_v51 = vmul.f32 %v8530_v45, %v1922_v35 }
  0x93   :  { %v1934_v53 = vmul.f32 %v8493_v33, %v1914_v48  ;;  %v1954_v54 = vmul.f32 %v8498_v36, %v1914_v48  ;;  %v1974_v39 = vmul.f32 %v8503_v37, %v1914_v48  ;;  %v8663_v16 = vor.u32 %v7832_v49, %v7831_v52 }
  0x94   :  { %v7887_v59 = vand.u32 2147483647, %v7886_v50  ;;  %v7803_v21 = vand.u32 2147483647, %v238_v41  ;;  %v7806_v25 = vcvt.s32.f32 %v7805_v60  ;;  %vm8665_vm8 = vcmp.lt.f32.partialorder %v7883_v58, 8388608.0 }
  0x95   :  { %v56_v61 = vpop.permute.xlu0 %55  ;;  %v1962_v62 = vadd.f32 %v1958_v38, %v1954_v54  ;;  %v8654_v1 = vadd.f32 %v1978_v51, %v1974_v39  ;;  %v8658_v10 = vadd.f32 %v1938_v27, %v1934_v53  ;;  %v8670_v28 = vsub.f32 %v8474_v20, %v1870_v46 }
  0x96   :  { %7598 = vmatmul.msk.f32.gmra.mxu0 %vm13854_vm2, %v56_v61  ;;  %v1874_v5 = vpop.permute.xlu1 %1873  ;;  %v7889_v17 = vor.u32 %v7888_v55, %v7887_v59  ;;  %v7807_v19 = vand.u32 2147483647, %v7806_v25  ;;  %v7808_v18 = vand.u32 2147483648, %v238_v41  ;;  %v337_v48 = vmul.f32 %v8525_v44, %v8661_v15 }
  0x97   :  { %v1885_v30 = vsub.f32 %v8474_v20, %v1874_v5  ;;  %v8673_v31 = vadd.f32 %v1966_v57, %v1962_v62  ;;  %v360_v50 = vmul.f32 %v8530_v45, %v8661_v15  ;;  %v8690_v27 = vmul.f32 %v8558_v9, %v8632_v34 }
  0x98   :  { %v7890_v38 = vsel %vm8665_vm8, %v7889_v17, %v8619_v6  ;;  %v7809_v51 = vor.u32 %v7808_v18, %v7807_v19  ;;  %vm7804_vm10 = vcmp.lt.f32.partialorder %v7803_v21, 8388608.0  ;;  %v7909_v53 = vcvt.f32.s32 %v8670_v28 }
  0x99   :  { %13995 = vst [vmem:[#allocation6_spill] sm:$0xff] %v8673_v31  ;;  %v7917_v46 = vcvt.f32.s32 %v1885_v30  ;;  %v7915_v57 = vand.u32 2147483647, %v1885_v30  ;;  %v8702_v60 = vsub.f32 %v8619_v6, %v7890_v38  ;;  %v1946_v5 = vmul.f32 %v8564_v13, %v8632_v34 }
  0x9a   :  { %8201 = vset.pattern.permute.xlu2 %v13755_v0  ;;  %8200 = vset.pattern.permute.xlu1 %v13753_v8  ;;  %v223_v47 = vpop.permute.xlu2 %222  ;;  %v7810_v55 = vsel %vm7804_vm10, %v7809_v51, %v238_v41  ;;  %v7920_v17 = vand.u32 2147483648, %v1885_v30 }
  0x9b   :  { %3870 = vperm.xlu2 %8201, %v8512_v40   ;;  %3921 = vperm.xlu1 %8200, %v8595_v42   ;;  %v236_v49 = vsub.f32 %v8460_v14, %v223_v47  ;;  %v7918_v54 = vcvt.s32.f32 %v7917_v46  ;;  %v8704_v61 = vsub.f32 %v238_v41, %v7810_v55  ;;  %v7910_v47 = vcvt.s32.f32 %v7909_v53 }
  0x9c   :  { %vm8712_vm11 = vcmp.lt.f32.partialorder %v7915_v57, 8388608.0  ;;  %v1953_v57 = vmul.f32 %v8498_v36, %v8702_v60  ;;  %v8743_v41 = vadd.f32 %v1946_v5, %v8658_v10 }
  0x9d   :  { %v246_v39 = vpop.permute.xlu0 %245  ;;  %v7789_v58 = vcvt.f32.s32 %v236_v49  ;;  %v7919_v62 = vand.u32 2147483647, %v7918_v54  ;;  %v7787_v21 = vand.u32 2147483647, %v236_v49  ;;  %v332_v19 = vmul.f32 %v8498_v36, %v8704_v61 }
  0x9e   :  { %v257_v59 = vsub.f32 %v8474_v20, %v246_v39  ;;  %v355_v18 = vmul.f32 %v8503_v37, %v8704_v61  ;;  %v7792_v6 = vand.u32 2147483648, %v236_v49  ;;  %14003 = vst [vmem:[#allocation8_spill] sm:$0xff] %v8743_v41 }
  0x9f   :  { %v228_v2 = vpop.permute.xlu1 %227  ;;  %v7790_v25 = vcvt.s32.f32 %v7789_v58  ;;  %v7921_v46 = vor.u32 %v7920_v17, %v7919_v62  ;;  %v8716_v34 = vadd.f32 %v337_v48, %v332_v19  ;;  %vm8727_vm12 = vcmp.lt.f32.partialorder %v7787_v21, 8388608.0 }
  0xa0   :  { %v7821_v26 = vcvt.f32.s32 %v257_v59  ;;  %v7819_v51 = vand.u32 2147483647, %v257_v59  ;;  %v8718_v54 = vadd.f32 %v360_v50, %v355_v18  ;;  %v237_v55 = vsub.f32 %v8460_v14, %v228_v2 }
  0xa1   :  { %v7791_v38 = vand.u32 2147483647, %v7790_v25  ;;  %v7922_v58 = vsel %vm8712_vm11, %v7921_v46, %v1885_v30  ;;  %v7824_v48 = vand.u32 2147483648, %v257_v59  ;;  %v1973_v50 = vmul.f32 %v8503_v37, %v8702_v60 }
  0xa2   :  { %v7822_v39 = vcvt.s32.f32 %v7821_v26  ;;  %v8734_v2 = vsub.f32 %v1885_v30, %v7922_v58  ;;  %v7907_v26 = vand.u32 2147483647, %v8670_v28  ;;  %v7797_v19 = vcvt.f32.s32 %v237_v55 }
  0xa3   :  { %8202 = vset.pattern.permute.xlu2 %v13753_v8  ;;  %3917 = vperm.xlu1 %8200, %v8629_v29   ;;  %v1890_v53 = vpop.permute.xlu2 %1889  ;;  %v7793_v17 = vor.u32 %v7792_v6, %v7791_v38  ;;  %vm7820_vm13 = vcmp.lt.f32.partialorder %v7819_v51, 8388608.0  ;;  %v7912_v38 = vand.u32 2147483648, %v8670_v28  ;;  %v7911_v8 = vand.u32 2147483647, %v7910_v47 }
  0xa4   :  { %3913 = vperm.xlu2 %8202, %v8512_v40   ;;  %v7823_v25 = vand.u32 2147483647, %v7822_v39  ;;  %v8738_v18 = vsub.f32 %v8488_v32, %v1890_v53  ;;  %v1957_v40 = vmul.f32 %v8525_v44, %v8734_v2  ;;  %v1977_v30 = vmul.f32 %v8530_v45, %v8734_v2 }
  0xa5   :  { %v7794_v6 = vsel %vm8727_vm12, %v7793_v17, %v236_v49  ;;  %v7798_v58 = vcvt.s32.f32 %v7797_v19  ;;  %v7795_v52 = vand.u32 2147483647, %v237_v55  ;;  %v7800_v62 = vand.u32 2147483648, %v237_v55 }
  0xa6   :  { %v8740_v21 = vpop.permute.xlu0 %2021  ;;  %v286_v39 = vsub.f32 %v236_v49, %v7794_v6  ;;  %v7825_v53 = vor.u32 %v7824_v48, %v7823_v25  ;;  %v8752_v0 = vadd.f32 %v1957_v40, %v1953_v57  ;;  %v8754_v10 = vadd.f32 %v1977_v30, %v1973_v50 }
  0xa7   :  { %14002 = vst [vmem:[#allocation7_spill] sm:$0xff] %v8740_v21  ;;  %v1847_v46 = vpop.permute.xlu1 %1846  ;;  %v7941_v5 = vcvt.f32.s32 %v8738_v18  ;;  %v7799_v21 = vand.u32 2147483647, %v7798_v58  ;;  %v14004_v49 = vsel %vm8675_vm9, %v8663_v16, %v8605_v56  ;;  %v7939_v57 = vand.u32 2147483647, %v8738_v18 }
  0xa8   :  { %v330_v11 = vmul.f32 %v8498_v36, %v286_v39  ;;  %v7826_v4 = vsel %vm7820_vm13, %v7825_v53, %v257_v59  ;;  %v353_v51 = vmul.f32 %v8503_v37, %v286_v39  ;;  %v295_v47 = vsub.f32 %v8605_v56, %v14004_v49 }
  0xa9   :  { %v294_v17 = vsub.f32 %v257_v59, %v7826_v4  ;;  %v7942_v22 = vcvt.s32.f32 %v7941_v5  ;;  %v7944_v48 = vand.u32 2147483648, %v8738_v18  ;;  %v8771_v50 = vadd.f32 %v8690_v27, %v8654_v1 }
  0xaa   :  { %v14006_v59 = vmov 1   ;;  %v7913_v35 = vor.u32 %v7912_v38, %v7911_v8  ;;  %v7801_v56 = vor.u32 %v7800_v62, %v7799_v21  ;;  %v14007_v19 = vmov 3  }
  0xab   :  { %65 = vrot.lane.b32.xlu1 %v8629_v29, %s8336_s18  ;;  %14005 = vst [vmem:[#allocation9_spill] sm:$0xff] %v8771_v50  ;;  %v335_v25 = vmul.f32 %v8525_v44, %v294_v17  ;;  %v358_v16 = vmul.f32 %v8530_v45, %v294_v17  ;;  %v314_v40 = vmul.f32 %v8520_v43, %v8661_v15  ;;  %vm8781_vm14 = vcmp.lt.f32.partialorder %v7907_v26, 8388608.0 }
  0xac   :  { %v242_v4 = vpop.permute.xlu2 %241  ;;  %67 = vrot.lane.b32.xlu2 %v8595_v42, %s8336_s18  ;;  %8204 = vset.pattern.permute.xlu1 %v14006_v59  ;;  %vm7796_vm15 = vcmp.lt.f32.partialorder %v7795_v52, 8388608.0  ;;  %v7943_v27 = vand.u32 2147483647, %v7942_v22  ;;  %v1864_v21 = vsub.f32 %v8460_v14, %v1847_v46  ;;  %v313_v53 = vmul.f32 %v8520_v43, %v295_v47 }
  0xad   :  { %8205 = vset.pattern.permute.xlu2 %v14007_v19  ;;  %v8787_v6 = vadd.f32 %v335_v25, %v330_v11  ;;  %v8789_v8 = vadd.f32 %v358_v16, %v353_v51  ;;  %v7802_v38 = vsel %vm7796_vm15, %v7801_v56, %v237_v55  ;;  %vm8793_vm0 = vcmp.lt.f32.partialorder %v7939_v57, 8388608.0 }
  0xae   :  { %v8785_v30 = vpop.permute.xlu0 %2013  ;;  %v287_v58 = vsub.f32 %v237_v55, %v7802_v38  ;;  %v7945_v26 = vor.u32 %v7944_v48, %v7943_v27  ;;  %v336_v22 = vmul.f32 %v8525_v44, %v295_v47  ;;  %v359_v52 = vmul.f32 %v8530_v45, %v295_v47 }
  0xaf   :  { %14010 = vst [vmem:[#allocation10_spill] sm:$0xff] %v8785_v30  ;;  %v7914_v11 = vsel %vm8781_vm14, %v7913_v35, %v8670_v28  ;;  %v7877_v62 = vcvt.f32.s32 %v1864_v21  ;;  %v1933_v46 = vmul.f32 %v8493_v33, %v8702_v60  ;;  %v309_v55 = vmul.f32 %v8493_v33, %v8704_v61 }
  0xb0   :  { %v1894_v5 = vpop.permute.xlu1 %1893  ;;  %v331_v51 = vmul.f32 %v8498_v36, %v287_v58  ;;  %v354_v49 = vmul.f32 %v8503_v37, %v287_v58  ;;  %v1937_v57 = vmul.f32 %v8520_v43, %v8734_v2  ;;  %v308_v47 = vmul.f32 %v8493_v33, %v287_v58 }
  0xb1   :  { %v7946_v48 = vsel %vm8793_vm0, %v7945_v26, %v8738_v18  ;;  %v7878_v35 = vcvt.s32.f32 %v7877_v62  ;;  %v1920_v60 = vsub.f32 %v8670_v28, %v7914_v11  ;;  %v7875_v16 = vand.u32 2147483647, %v1864_v21 }
  0xb2   :  { %v8816_v25 = vadd.f32 %v336_v22, %v331_v51  ;;  %v8818_v61 = vadd.f32 %v359_v52, %v354_v49  ;;  %v307_v2 = vmul.f32 %v8493_v33, %v286_v39  ;;  %v312_v1 = vmul.f32 %v8520_v43, %v294_v17 }
  0xb3   :  { %5735 = vperm.xlu1 %8204, %v8479_v23   ;;  %v7879_v27 = vand.u32 2147483647, %v7878_v35  ;;  %v7880_v38 = vand.u32 2147483648, %v1864_v21  ;;  %v1928_v58 = vsub.f32 %v8738_v18, %v7946_v48  ;;  %v8826_v28 = vsub.f32 %v8474_v20, %v242_v4 }
  0xb4   :  { %4049 = vperm.xlu2 %8205, %v8449_v12   ;;  %v58_v56 = vpop.permute.xlu2 %57  ;;  %v1905_v15 = vsub.f32 %v8488_v32, %v1894_v5  ;;  %v8831_v52 = vadd.f32 %v1937_v57, %v1933_v46  ;;  %v8833_v11 = vadd.f32 %v313_v53, %v308_v47  ;;  %v8835_v39 = vadd.f32 %v314_v40, %v309_v55 }
  0xb5   :  { %7599 = vmatmul.msk.f32.gmra.mxu0 %vm13854_vm2, %v58_v56  ;;  %v7881_v26 = vor.u32 %v7880_v38, %v7879_v27  ;;  %vm7876_vm1 = vcmp.lt.f32.partialorder %v7875_v16, 8388608.0  ;;  %v1936_v51 = vmul.f32 %v8520_v43, %v1920_v60  ;;  %v8838_v49 = vadd.f32 %v312_v1, %v307_v2 }
  0xb6   :  { %v7949_v17 = vcvt.f32.s32 %v1905_v15  ;;  %v1956_v20 = vmul.f32 %v8525_v44, %v1920_v60  ;;  %v7813_v5 = vcvt.f32.s32 %v8826_v28  ;;  %v1976_v46 = vmul.f32 %v8530_v45, %v1920_v60 }
  0xb7   :  { %v8829_v22 = vpop.permute.xlu0 %274  ;;  %v7882_v18 = vsel %vm7876_vm1, %v7881_v26, %v1864_v21  ;;  %v1964_v53 = vmul.f32 %v8553_v7, %v1928_v58  ;;  %v1984_v40 = vmul.f32 %v8558_v9, %v1928_v58  ;;  %v1944_v55 = vmul.f32 %v8564_v13, %v1928_v58 }
  0xb8   :  { %v271_v62 = vpop.permute.xlu1 %270  ;;  %v1912_v4 = vsub.f32 %v1864_v21, %v7882_v18  ;;  %v7950_v48 = vcvt.s32.f32 %v7949_v17  ;;  %v7947_v35 = vand.u32 2147483647, %v1905_v15  ;;  %v14013_v16 = vmov 0  }
  0xb9   :  { %v7952_v60 = vand.u32 2147483648, %v1905_v15  ;;  %v279_v2 = vsub.f32 %v8488_v32, %v271_v62  ;;  %v14014_v1 = vmov 2   ;;  %v7811_v50 = vand.u32 2147483647, %v8826_v28 }
  0xba   :  { %v1932_v57 = vmul.f32 %v8493_v33, %v1912_v4  ;;  %v1952_v47 = vmul.f32 %v8498_v36, %v1912_v4  ;;  %v1972_v21 = vmul.f32 %v8503_v37, %v1912_v4  ;;  %v7951_v56 = vand.u32 2147483647, %v7950_v48 }
  0xbb   :  { %69 = vrot.lane.b32.xlu1 %v8449_v12, %s8336_s18  ;;  %v7814_v12 = vcvt.s32.f32 %v7813_v5  ;;  %vm7948_vm3 = vcmp.lt.f32.partialorder %v7947_v35, 8388608.0  ;;  %v7861_v24 = vcvt.f32.s32 %v279_v2  ;;  %vm8869_vm4 = vcmp.lt.f32.partialorder %v7811_v50, 8388608.0 }
  0xbc   :  { %8206 = vset.pattern.permute.xlu2 %v14013_v16  ;;  %8207 = vset.pattern.permute.xlu1 %v14014_v1  ;;  %v1960_v27 = vadd.f32 %v1956_v20, %v1952_v47  ;;  %v1980_v38 = vadd.f32 %v1976_v46, %v1972_v21  ;;  %v1940_v58 = vadd.f32 %v1936_v51, %v1932_v57  ;;  %v7816_v20 = vand.u32 2147483648, %v8826_v28 }
  0xbd   :  { %5710 = vperm.xlu2 %8206, %v8547_v63   ;;  %v7953_v26 = vor.u32 %v7952_v60, %v7951_v56  ;;  %v7815_v31 = vand.u32 2147483647, %v7814_v12  ;;  %v7862_v5 = vcvt.s32.f32 %v7861_v24  ;;  %v7864_v35 = vand.u32 2147483648, %v279_v2 }
  0xbe   :  { %v8855_v17 = vadd.f32 %v1944_v55, %v1940_v58  ;;  %v8857_v18 = vadd.f32 %v1964_v53, %v1960_v27  ;;  %v8859_v4 = vadd.f32 %v1984_v40, %v1980_v38  ;;  %v7859_v40 = vand.u32 2147483647, %v279_v2  ;;  %v8866_v55 = vpop.permute.xlu2 %2025 }
  0xbf   :  { %v267_v48 = vpop.permute.xlu0 %266  ;;  %v7954_v62 = vsel %vm7948_vm3, %v7953_v26, %v1905_v15  ;;  %14018 = vst [vmem:[#allocation14_spill] sm:$0xff] %v8866_v55  ;;  %v7863_v21 = vand.u32 2147483647, %v7862_v5  ;;  %v7817_v24 = vor.u32 %v7816_v20, %v7815_v31 }
  0xc0   :  { %14015 = vst [vmem:[#allocation11_spill] sm:$0xff] %v8855_v17  ;;  %v1929_v46 = vsub.f32 %v1905_v15, %v7954_v62  ;;  %v278_v51 = vsub.f32 %v8488_v32, %v267_v48  ;;  %vm7860_vm5 = vcmp.lt.f32.partialorder %v7859_v40, 8388608.0 }
  0xc1   :  { %14016 = vst [vmem:[#allocation12_spill] sm:$0xff] %v8857_v18  ;;  %v218_v3 = vpop.permute.xlu1 %217  ;;  %v7818_v58 = vsel %vm8869_vm4, %v7817_v24, %v8826_v28 }
  0xc2   :  { %14017 = vst [vmem:[#allocation13_spill] sm:$0xff] %v8859_v4  ;;  %v1985_v53 = vmul.f32 %v8558_v9, %v1929_v46  ;;  %v235_v57 = vsub.f32 %v8460_v14, %v218_v3  ;;  %v7853_v56 = vcvt.f32.s32 %v278_v51  ;;  %v1965_v15 = vmul.f32 %v8553_v7, %v1929_v46  ;;  %v8883_v14 = vld [vmem:[%s13749_s1 + $0x60] sm:$0xff] }
  0xc3   :  { %5755 = vperm.xlu1 %8207, %v8479_v23   ;;  %v1945_v60 = vmul.f32 %v8564_v13, %v1929_v46  ;;  %v7865_v3 = vor.u32 %v7864_v35, %v7863_v21  ;;  %v7851_v50 = vand.u32 2147483647, %v278_v51  ;;  %v7856_v38 = vand.u32 2147483648, %v278_v51  ;;  %5867 = vperm.xlu0 %8216, %v8883_v14  }
  0xc4   :  { %v8876_v23 = vadd.f32 %v1985_v53, %v8754_v10  ;;  %v7854_v27 = vcvt.s32.f32 %v7853_v56  ;;  %v7781_v31 = vcvt.f32.s32 %v235_v57  ;;  %v7779_v53 = vand.u32 2147483647, %v235_v57 }
  0xc5   :  { %8208 = vset.pattern.permute.xlu2 %v14007_v19  ;;  %v7866_v12 = vsel %vm7860_vm5, %v7865_v3, %v279_v2  ;;  %v8895_v62 = vadd.f32 %v1945_v60, %v8831_v52  ;;  %vm8897_vm6 = vcmp.lt.f32.partialorder %v7851_v50, 8388608.0  ;;  %v8902_v40 = vadd.f32 %v1965_v15, %v8752_v0 }
  0xc6   :  { %14021 = vst [vmem:[#allocation15_spill] sm:$0xff] %v8876_v23  ;;  %4045 = vperm.xlu2 %8208, %v8595_v42   ;;  %v7855_v10 = vand.u32 2147483647, %v7854_v27  ;;  %v8889_v42 = vld [vmem:[%s13749_s1 + $0x68] sm:$0xff]  ;;  %v303_v26 = vsub.f32 %v279_v2, %v7866_v12  ;;  %v7782_v48 = vcvt.s32.f32 %v7781_v31  ;;  %v7784_v35 = vand.u32 2147483648, %v235_v57  ;;  %v8907_v52 = vpop.permute.xlu2 %2017 }
  0xc7   :  { %14022 = vst [vmem:[#allocation16_spill] sm:$0xff] %v8895_v62  ;;  %v293_v60 = vsub.f32 %v8826_v28, %v7818_v58  ;;  %vm7780_vm7 = vcmp.lt.f32.partialorder %v7779_v53, 8388608.0 }
  0xc8   :  { %v7857_v5 = vor.u32 %v7856_v38, %v7855_v10  ;;  %14025 = vst [vmem:[#allocation17_spill] sm:$0xff] %v8902_v40  ;;  %v345_v47 = vmul.f32 %v8553_v7, %v303_v26  ;;  %v368_v2 = vmul.f32 %v8558_v9, %v303_v26  ;;  %v7783_v21 = vand.u32 2147483647, %v7782_v48 }
  0xc9   :  { %14026 = vst [vmem:[#allocation18_spill] sm:$0xff] %v8907_v52  ;;  %v322_v24 = vmul.f32 %v8564_v13, %v303_v26  ;;  %v311_v12 = vmul.f32 %v8520_v43, %v293_v60  ;;  %v334_v10 = vmul.f32 %v8525_v44, %v293_v60 }
  0xca   :  { %v263_v20 = vpop.permute.xlu1 %262  ;;  %v8914_v0 = vadd.f32 %v368_v2, %v8818_v61  ;;  %v7785_v15 = vor.u32 %v7784_v35, %v7783_v21  ;;  %v8918_v3 = vadd.f32 %v345_v47, %v8816_v25  ;;  %v7858_v50 = vsel %vm8897_vm6, %v7857_v5, %v278_v51 }
  0xcb   :  { %8209 = vset.pattern.permute.xlu1 %v14013_v16  ;;  %v277_v56 = vsub.f32 %v8488_v32, %v263_v20  ;;  %v8924_v31 = vadd.f32 %v322_v24, %v8833_v11  ;;  %v357_v25 = vmul.f32 %v8530_v45, %v293_v60  ;;  %v302_v58 = vsub.f32 %v278_v51, %v7858_v50 }
  0xcc   :  { %5705 = vperm.xlu1 %8209, %v8889_v42   ;;  %14027 = vst [vmem:[#allocation19_spill] sm:$0xff] %v8914_v0  ;;  %v7786_v38 = vsel %vm7780_vm7, %v7785_v15, %v235_v57 }
  0xcd   :  { %14028 = vst [vmem:[#allocation20_spill] sm:$0xff] %v8918_v3  ;;  %v7845_v27 = vcvt.f32.s32 %v277_v56  ;;  %v285_v28 = vsub.f32 %v235_v57, %v7786_v38  ;;  %v7843_v5 = vand.u32 2147483647, %v277_v56  ;;  %v7848_v57 = vand.u32 2147483648, %v277_v56 }
  0xce   :  { %8210 = vset.pattern.permute.xlu2 %v14006_v59  ;;  %14029 = vst [vmem:[#allocation21_spill] sm:$0xff] %v8924_v31  ;;  %v344_v45 = vmul.f32 %v8553_v7, %v302_v58  ;;  %v367_v15 = vmul.f32 %v8558_v9, %v302_v58 }
  0xcf   :  { %5727 = vperm.xlu2 %8210, %v8889_v42   ;;  %v7846_v61 = vcvt.s32.f32 %v7845_v27  ;;  %v306_v48 = vmul.f32 %v8493_v33, %v285_v28  ;;  %v329_v20 = vmul.f32 %v8498_v36, %v285_v28  ;;  %v352_v46 = vmul.f32 %v8503_v37, %v285_v28  ;;  %v8936_v33 = vpop.permute.xlu2 %403 }
  0xd0   :  { %vm7844_vm8 = vcmp.lt.f32.partialorder %v7843_v5, 8388608.0  ;;  %v321_v36 = vmul.f32 %v8564_v13, %v302_v58  ;;  %v8944_v21 = vadd.f32 %v344_v45, %v8787_v6 }
  0xd1   :  { %v7847_v11 = vand.u32 2147483647, %v7846_v61  ;;  %v338_v43 = vadd.f32 %v334_v10, %v329_v20  ;;  %v361_v53 = vadd.f32 %v357_v25, %v352_v46  ;;  %v315_v44 = vadd.f32 %v311_v12, %v306_v48  ;;  %v8979_v25 = vld [vmem:[%s13750_s0 + $0x3] ss:$0 sm:$0xff] }
  0xd2   :  { %v60_v26 = vpop.permute.xlu1 %59  ;;  %14030 = vst [vmem:[#allocation22_spill] sm:$0xff] %v8944_v21  ;;  %v8950_v60 = vadd.f32 %v321_v36, %v8838_v49  ;;  %v379_v38 = vmul.f32 %v8944_v21, %v8944_v21  ;;  %v8971_v61 = vadd.f32 %v367_v15, %v8789_v8 }
  0xd3   :  { %7600 = vmatmul.msk.f32.gmra.mxu0 %vm13854_vm2, %v60_v26  ;;  %v7849_v51 = vor.u32 %v7848_v57, %v7847_v11 }
  0xd4   :  { %8212 = vset.pattern.permute.xlu1 %v14007_v19  ;;  %14031 = vst [vmem:[#allocation23_spill] sm:$0xff] %v8950_v60  ;;  %v375_v49 = vmul.f32 %v8950_v60, %v8950_v60  ;;  %v387_v8 = vmul.f32 %v8971_v61, %v8971_v61 }
  0xd5   :  { %4041 = vperm.xlu1 %8212, %v8629_v29   ;;  %v7850_v37 = vsel %vm7844_vm8, %v7849_v51, %v277_v56  ;;  %14035 = vst [vmem:[#allocation27_spill] sm:$0xff] %v8971_v61 }
  0xd6   :  { %v301_v47 = vsub.f32 %v277_v56, %v7850_v37  ;;  %v383_v26 = vadd.f32 %v379_v38, %v375_v49 }
  0xd7   :  { %8213 = vset.pattern.permute.xlu2 %v14013_v16  ;;  %v396_v28 = vpop.permute.xlu2 %395 }
  0xd8   :  { %5700 = vperm.xlu2 %8213, %v8883_v14   ;;  %v343_v29 = vmul.f32 %v8553_v7, %v301_v47  ;;  %v366_v35 = vmul.f32 %v8558_v9, %v301_v47  ;;  %v320_v24 = vmul.f32 %v8564_v13, %v301_v47  ;;  %vm411_vm9 = vcmp.eq.f32.partialorder %v396_v28, %v8979_v25 }
  0xd9   :  { %v391_v48 = vadd.f32 %v387_v8, %v383_v26 }
  0xda   :  { %v8941_v2 = vpop.permute.xlu1 %407  ;;  %v8953_v50 = vadd.f32 %v366_v35, %v361_v53  ;;  %v8955_v27 = vadd.f32 %v320_v24, %v315_v44  ;;  %v8957_v56 = vadd.f32 %v343_v29, %v338_v43 }
  0xdb   :  { %vm416_vm15 = vcmp.lt.f32.partialorder %v391_v48, 9.0  ;;  %vm424_vm1 = vcmp.gt.f32.partialorder %v391_v48, 1e-16 }
  0xdc   :  { %14032 = vst [vmem:[#allocation24_spill] sm:$0xff] %v8953_v50  ;;  %v374_v6 = vmul.f32 %v8955_v27, %v8955_v27  ;;  %v378_v13 = vmul.f32 %v8957_v56, %v8957_v56  ;;  %v386_v12 = vmul.f32 %v8953_v50, %v8953_v50 }
  0xdd   :  { %14033 = vst [vmem:[#allocation25_spill] sm:$0xff] %v8955_v27  ;;  %8214 = vset.pattern.permute.xlu1 %v14006_v59 }
  0xde   :  { %14034 = vst [vmem:[#allocation26_spill] sm:$0xff] %v8957_v56  ;;  %5723 = vperm.xlu1 %8214, %v8883_v14   ;;  %v382_v59 = vadd.f32 %v378_v13, %v374_v6 }
  0xdf   :  { %v64_v5 = vpop.permute.xlu2 %63 }
  0xe0   :  { %8215 = vset.pattern.permute.xlu2 %v14014_v1  ;;  %v390_v58 = vadd.f32 %v386_v12, %v382_v59 }
  0xe1   :  { %5747 = vperm.xlu2 %8215, %v8889_v42  }
  0xe2   :  { %v62_v10 = vpop.permute.xlu1 %61  ;;  %vm415_vm10 = vcmp.lt.f32.partialorder %v390_v58, 9.0  ;;  %vm423_vm12 = vcmp.gt.f32.partialorder %v390_v58, 1e-16 }
  0xe3   :  { %7601 = vmatmul.msk.f32.gmra.mxu0 %vm13854_vm2, %v62_v10  ;;  %vm419_vm11 = vmand %vm411_vm9, %vm415_vm10 }
  0xe4   :  { %vm8987_vm13 = vmand %vm419_vm11, %vm423_vm12 }
  0xe5   :  { %v431_v46 = vsel %vm8987_vm13, %v390_v58, 1.0 }
  0xe6   :  { %8217 = vset.pattern.permute.xlu1 %v14014_v1  ;;  %8233 = vrsqrt.f32 %v431_v46  ;;  %v280_v1 = vsub.f32 %v8488_v32, %v8829_v22  ;;  %vm441_vm5 = vweird.f32 %v431_v46 }
  0xe7   :  { %5743 = vperm.xlu1 %8217, %v8883_v14  }
  0xe8   :  { %v7869_v32 = vcvt.f32.s32 %v280_v1  ;;  %v7872_v15 = vand.u32 2147483648, %v280_v1  ;;  %v7867_v13 = vand.u32 2147483647, %v280_v1 }
  0xe9   :  { %71 = vrot.lane.b32.xlu2 %v8883_v14, %s8336_s18  ;;  %v29_v14 = vld [vmem:[%s13749_s1 + $0x78] sm:$0xff] }
  0xea   :  { %v400_v11 = vpop.permute.xlu1 %399  ;;  %8219 = vset.pattern.permute.xlu2 %v14007_v19  ;;  %v7870_v37 = vcvt.s32.f32 %v7869_v32  ;;  %vm7868_vm7 = vcmp.lt.f32.partialorder %v7867_v13, 8388608.0  ;;  %v13768_v13 = vmov 2131351028  }
  0xeb   :  { %vm412_vm14 = vcmp.eq.f32.partialorder %v400_v11, %v8979_v25  ;;  %7602 = vmatmul.msk.f32.gmra.mxu0 %vm13854_vm2, %v64_v5 }
  0xec   :  { %vm420_vm0 = vmand %vm412_vm14, %vm416_vm15  ;;  %v8234_v53 = vpop.eup %8233  ;;  %v7871_v24 = vand.u32 2147483647, %v7870_v37 }
  0xed   :  { %vm9000_vm3 = vmand %vm420_vm0, %vm424_vm1  ;;  %v436_v44 = vmul.f32 %v8234_v53, %v431_v46  ;;  %vm442_vm4 = vweird.f32 %v8234_v53 }
  0xee   :  { %v9009_v43 = vsel %vm9000_vm3, %v391_v48, 1.0  ;;  %vm443_vm6 = vmor %vm441_vm5, %vm442_vm4  ;;  %v7873_v59 = vor.u32 %v7872_v15, %v7871_v24  ;;  %v13770_v24 = vmov 2475754826  }
  0xef   :  { %73 = vrot.lane.b32.xlu1 %v8889_v42, %s8336_s18  ;;  %8235 = vrsqrt.f32 %v9009_v43  ;;  %v437_v22 = vmul.f32 %v8234_v53, %v436_v44  ;;  %vm451_vm10 = vweird.f32 %v9009_v43  ;;  %v376_v44 = vmul.f32 %v8924_v31, %v8924_v31 }
  0xf0   :  { %8218 = vset.pattern.permute.xlu1 %v14007_v19 }
  0xf1   :  { %77 = vrot.lane.b32.xlu2 %v29_v14, %s8336_s18  ;;  %v438_v51 = vmul.f32 0.5, %v437_v22 }
  0xf3   :  { %v129_v45 = vpop.f32.mrf.mxu0  ;;  %v439_v29 = vsub.f32 1.5, %v438_v51  ;;  %v388_v51 = vmul.f32 %v8914_v0, %v8914_v0 }
  0xf4   :  { %v9018_v36 = vsel %vm8987_vm13, %v129_v45, 0.0 }
  0xf5   :  { %14040 = vst [vmem:[#allocation28_spill] sm:$0xff] %v9018_v36  ;;  %v8236_v47 = vpop.eup %8235  ;;  %v440_v35 = vmul.f32 %v8234_v53, %v439_v29 }
  0xf6   :  { %v446_v19 = vmul.f32 %v8236_v47, %v9009_v43  ;;  %vm452_vm8 = vweird.f32 %v8236_v47 }
  0xf7   :  { %5875 = vperm.xlu1 %8218, %v8547_v63   ;;  %v9023_v49 = vsel %vm443_vm6, %v8234_v53, %v440_v35  ;;  %vm453_vm11 = vmor %vm451_vm10, %vm452_vm8  ;;  %vm413_vm6 = vcmp.eq.f32.partialorder %v8936_v33, %v8979_v25 }
  0xf8   :  { %v447_v6 = vmul.f32 %v8236_v47, %v446_v19  ;;  %v9026_v38 = vmul.f32 %v9023_v49, %v431_v46 }
  0xf9   :  { %5871 = vperm.xlu2 %8219, %v8889_v42   ;;  %v7874_v42 = vsel %vm7868_vm7, %v7873_v59, %v280_v1 }
  0xfa   :  { %v9033_v12 = vmul.f32 1.0471976, %v9026_v38  ;;  %v448_v10 = vmul.f32 0.5, %v447_v6  ;;  %v304_v46 = vsub.f32 %v280_v1, %v7874_v42  ;;  %v380_v1 = vmul.f32 %v8918_v3, %v8918_v3 }
  0xfb   :  { %v132_v28 = vpop.f32.mrf.mxu0 }
  0xfc   :  { %v9030_v63 = vsel %vm9000_vm3, %v132_v28, 0.0  ;;  %v526_v58 = vand.u32 2139095040, %v9033_v12  ;;  %v449_v8 = vsub.f32 1.5, %v448_v10  ;;  %v13767_v48 = vand.u32 2147483647, %v9033_v12 }
  0xfd   :  { %14041 = vst [vmem:[#allocation29_spill] sm:$0xff] %v9030_v63  ;;  %v9041_v14 = vmul.f32 %v8553_v7, %v304_v46  ;;  %v369_v53 = vmul.f32 %v8558_v9, %v304_v46  ;;  %v9052_v7 = vpop.permute.xlu2 %3901  ;;  %v13774_v9 = vmov 683565275   ;;  %v13772_v10 = vmov 2102212464  }
  0xfe   :  { %v527_v26 = vshrl.u32 %v526_v58, 23  ;;  %v450_v11 = vmul.f32 %v8236_v47, %v449_v8  ;;  %v530_v57 = vand.u32 8388607, %v13767_v48  ;;  %14043 = vst [vmem:[#allocation31_spill] sm:$0xff] %v9052_v7 }
 0x100   :  { %v7618_v20 = vadd.s32 4294967169, %v527_v26  ;;  %v9048_v45 = vsel %vm453_vm11, %v8236_v47, %v450_v11  ;;  %v531_v37 = vor.u32 8388608, %v530_v57  ;;  %v13778_v26 = vmov 920167782  }
 0x101   :  { %14042 = vst [vmem:[#allocation30_spill] sm:$0xff] %v9048_v45  ;;  %v9060_v6 = vmul.f32 %v9048_v45, %v9009_v43 }
 0x102   :  { %v533_v5 = vadd.s32 1, %v7618_v20  ;;  %v9074_v48 = vshll.u32 %v531_v37, 8 }
 0x104   :  { %vm534_vm9 = vcmp.gt.s32.totalorder %v533_v5, 0 }
 0x105   :  { %v535_v32 = vsel %vm534_vm9, %v533_v5, 0  ;;  %v13776_v5 = vmov 1326507024  }
 0x106   :  { %v537_v22 = vand.u32 31, %v535_v32  ;;  %v9054_v19 = vshrl.u32 %v535_v32, 5 }
 0x108   :  { %v538_v29 = vsub.s32 32, %v537_v22  ;;  %v540_v35 = vshll.u32 %v13774_v9, %v537_v22  ;;  %v543_v15 = vshll.u32 %v13770_v24, %v537_v22  ;;  %v546_v59 = vshll.u32 %v13768_v13, %v537_v22 }
 0x109   :  { %v549_v42 = vshll.u32 %v13772_v10, %v537_v22  ;;  %v552_v20 = vshll.u32 %v13778_v26, %v537_v22  ;;  %vm555_vm12 = vcmp.lt.s32.totalorder %v9054_v19, 1  ;;  %v384_v9 = vadd.f32 %v380_v1, %v376_v44 }
 0x10a   :  { %v541_v47 = vshrl.u32 %v13770_v24, %v538_v29  ;;  %v544_v28 = vshrl.u32 %v13768_v13, %v538_v29  ;;  %v547_v58 = vshrl.u32 %v13772_v10, %v538_v29  ;;  %v550_v8 = vshrl.u32 %v13778_v26, %v538_v29 }
 0x10b   :  { %v553_v43 = vshrl.u32 %v13776_v5, %v538_v29  ;;  %v9078_v10 = vmul.f32 1.0471976, %v9060_v6  ;;  %vm558_vm13 = vcmp.lt.s32.totalorder %v9054_v19, 4  ;;  %vm557_vm14 = vcmp.lt.s32.totalorder %v9054_v19, 3 }
 0x10c   :  { %v9070_v11 = vor.u32 %v541_v47, %v540_v35  ;;  %v9072_v57 = vor.u32 %v544_v28, %v543_v15  ;;  %v548_v32 = vor.u32 %v547_v58, %v546_v59  ;;  %v551_v13 = vor.u32 %v550_v8, %v549_v42  ;;  %v8297_v35 = vld [vmem:[%s13750_s0 + $0x12] ss:$0 sm:$0xff] }
 0x10d   :  { %v554_v24 = vor.u32 %v553_v43, %v552_v20  ;;  %v323_v15 = vmul.f32 %v8297_v35, %v304_v46  ;;  %vm556_vm15 = vcmp.lt.s32.totalorder %v9054_v19, 2  ;;  %v572_v59 = vand.u32 65535, %v9074_v48  ;;  %v9164_v19 = vld [vmem:[%s13750_s0 + $0x1] ss:$0 sm:$0xff] }
 0x10e   :  { %v563_v22 = vsel %vm555_vm12, %v9070_v11, %v9072_v57  ;;  %v567_v37 = vsel %vm555_vm12, %v9072_v57, %v548_v32  ;;  %v564_v44 = vsel %vm558_vm13, %v551_v13, 920167782  ;;  %v573_v42 = vshrl.u32 %v9074_v48, 16 }
 0x10f   :  { %v568_v1 = vsel %vm558_vm13, %v554_v24, 1326507024  ;;  %v565_v47 = vsel %vm557_vm14, %v548_v32, %v564_v44  ;;  %v680_v24 = vand.u32 2139095040, %v9078_v10  ;;  %v9108_v44 = vpop.permute.xlu2 %3897 }
 0x110   :  { %v569_v28 = vsel %vm557_vm14, %v551_v13, %v568_v1  ;;  %v566_v46 = vsel %vm556_vm15, %v563_v22, %v565_v47  ;;  %v9111_v13 = vadd.f32 %v369_v53, %v8718_v54  ;;  %v9113_v1 = vadd.f32 %v388_v51, %v384_v9 }
 0x111   :  { %v570_v58 = vsel %vm556_vm15, %v567_v37, %v569_v28  ;;  %v596_v43 = vand.u32 65535, %v566_v46  ;;  %v597_v35 = vshrl.u32 %v566_v46, 16  ;;  %v9116_v47 = vadd.f32 %v323_v15, %v8835_v39 }
 0x112   :  { %v574_v8 = vand.u32 65535, %v570_v58  ;;  %v575_v20 = vshrl.u32 %v570_v58, 16  ;;  %14044 = vst [vmem:[#allocation32_spill] sm:$0xff] %v9111_v13  ;;  %v681_v26 = vshrl.u32 %v680_v24, 23  ;;  %v9120_v58 = vadd.f32 %v9041_v14, %v8716_v34 }
 0x113   :  { %14045 = vst [vmem:[#allocation33_spill] sm:$0xff] %v9116_v47  ;;  %v599_v37 = vmul.u32 %v597_v35, %v572_v59  ;;  %v600_v28 = vmul.u32 %v596_v43, %v573_v42  ;;  %v14047_v46 = vmov 683565275   ;;  %v598_v53 = vmul.u32 %v596_v43, %v572_v59 }
 0x114   :  { %v577_v5 = vmul.u32 %v575_v20, %v572_v59  ;;  %v578_v22 = vmul.u32 %v574_v8, %v573_v42  ;;  %14046 = vst [vmem:[#allocation34_spill] sm:$0xff] %v9120_v58  ;;  %v539_v50 = vshrl.u32 %v14047_v46, %v538_v29  ;;  %v576_v61 = vmul.u32 %v574_v8, %v572_v59 }
 0x115   :  { %v579_v54 = vmul.u32 %v575_v20, %v573_v42  ;;  %v601_v51 = vmul.u32 %v597_v35, %v573_v42  ;;  %v602_v9 = vshll.u32 %v599_v37, 16  ;;  %v604_v39 = vshll.u32 %v600_v28, 16 }
 0x116   :  { %v580_v56 = vshll.u32 %v577_v5, 16  ;;  %v582_v21 = vshll.u32 %v578_v22, 16  ;;  %v7621_v3 = vadd.s32 4294967169, %v681_v26  ;;  %v560_v34 = vsel %vm558_vm13, %v548_v32, 2102212464  ;;  %v9134_v32 = vpop.permute.xlu0 %3925 }
 0x117   :  { %vm606_vm1 = vc.u32 %v598_v53, %v602_v9  ;;  %v608_v24 = vadd.s32 %v602_v9, %v598_v53  ;;  %v377_v59 = vmul.f32 %v9116_v47, %v9116_v47  ;;  %14048 = vst [vmem:[#allocation35_spill] sm:$0xff] %v9134_v32  ;;  %v3871_v35 = vpop.permute.xlu2 %3870  ;;  %v381_v53 = vmul.f32 %v9120_v58, %v9120_v58 }
 0x118   :  { %vm584_vm0 = vc.u32 %v576_v61, %v580_v56  ;;  %v586_v0 = vadd.s32 %v580_v56, %v576_v61  ;;  %v607_v29 = vsel %vm606_vm1, 1, %v14013_v16  ;;  %v559_v56 = vsel %vm555_vm12, %v539_v50, %v9070_v11  ;;  %v9144_v50 = vld [vmem:[%s13750_s0] ss:$0 sm:$0xff] }
 0x119   :  { %v585_v15 = vsel %vm584_vm0, 1, %v14013_v16  ;;  %v609_v8 = vadd.s32 %v607_v29, %v601_v51  ;;  %vm610_vm4 = vc.u32 %v608_v24, %v604_v39  ;;  %v581_v61 = vshrl.u32 %v577_v5, 16 }
 0x11a   :  { %v587_v14 = vadd.s32 %v585_v15, %v579_v54  ;;  %vm588_vm3 = vc.u32 %v586_v0, %v582_v21  ;;  %v611_v20 = vsel %vm610_vm4, 1, %v14013_v16  ;;  %v561_v0 = vsel %vm557_vm14, %v9072_v57, %v560_v34 }
 0x11b   :  { %v589_v42 = vsel %vm588_vm3, 1, %v14013_v16  ;;  %v603_v21 = vshrl.u32 %v599_v37, 16  ;;  %v613_v43 = vadd.s32 %v611_v20, %v609_v8  ;;  %v687_v54 = vadd.s32 1, %v7621_v3 }
 0x11c   :  { %v591_v26 = vadd.s32 %v589_v42, %v587_v14  ;;  %v583_v51 = vshrl.u32 %v578_v22, 16  ;;  %v9147_v5 = vsub.f32 %v9144_v50, %v3871_v35  ;;  %v605_v11 = vshrl.u32 %v600_v28, 16 }
 0x11d   :  { %v614_v15 = vadd.s32 %v613_v43, %v603_v21  ;;  %v13792_v57 = vand.u32 2147483647, %v9078_v10  ;;  %vm688_vm5 = vcmp.gt.s32.totalorder %v687_v54, 0  ;;  %v562_v3 = vsel %vm556_vm15, %v559_v56, %v561_v0 }
 0x11e   :  { %v592_v9 = vadd.s32 %v591_v26, %v581_v61  ;;  %v9154_v22 = vadd.s32 %v608_v24, %v604_v39  ;;  %v689_v34 = vsel %vm688_vm5, %v687_v54, 0  ;;  %v389_v14 = vmul.f32 %v9111_v13, %v9111_v13 }
 0x11f   :  { %v615_v29 = vadd.s32 %v614_v15, %v605_v11  ;;  %v691_v28 = vand.u32 31, %v689_v34  ;;  %vm417_vm7 = vcmp.lt.f32.partialorder %v9113_v1, 9.0  ;;  %v385_v42 = vadd.f32 %v381_v53, %v377_v59  ;;  %v28_v59 = vld [vmem:[%s13749_s1 + $0x70] sm:$0xff] }
 0x120   :  { %v9152_v37 = vadd.s32 %v592_v9, %v583_v51  ;;  %v9168_v39 = vsub.f32 %v9164_v19, %v9108_v44  ;;  %v616_v24 = vmul.u32 %v9074_v48, %v562_v3  ;;  %v7973_v56 = vcvt.f32.s32 %v9147_v5  ;;  %75 = vrot.lane.b32.xlu1 %v28_v59, %s8336_s18  ;;  %vm9208_vm10 = vmand %vm413_vm6, %vm417_vm7 }
 0x121   :  { %v619_v8 = vadd.s32 1, %v615_v29  ;;  %v9174_v61 = vsub.s32 32, %v691_v28  ;;  %v684_v26 = vand.u32 8388607, %v13792_v57  ;;  %v9181_v20 = vshrl.u32 %v689_v34, 5 }
 0x122   :  { %vm618_vm8 = vc.u32 %v9152_v37, %v9154_v22  ;;  %v694_v44 = vshll.u32 %v14047_v46, %v691_v28  ;;  %v14049_v0 = vmov 2475754826   ;;  %v14050_v35 = vmov 2131351028  }
 0x123   :  { %v697_v21 = vshll.u32 %v14049_v0, %v691_v28  ;;  %v620_v48 = vsel %vm618_vm8, %v619_v8, %v615_v29  ;;  %v695_v43 = vshrl.u32 %v14049_v0, %v9174_v61  ;;  %v700_v54 = vshll.u32 %v14050_v35, %v691_v28  ;;  %v9198_v29 = vpop.permute.xlu0 %3885 }
 0x124   :  { %v14051_v53 = vmov 2102212464   ;;  %v621_v9 = vadd.s32 %v620_v48, %v616_v24  ;;  %v698_v11 = vshrl.u32 %v14050_v35, %v9174_v61  ;;  %v14052_v3 = vmov 920167782   ;;  %14053 = vst [vmem:[#allocation36_spill] sm:$0xff] %v9198_v29 }
 0x125   :  { %v703_v51 = vshll.u32 %v14051_v53, %v691_v28  ;;  %v701_v15 = vshrl.u32 %v14051_v53, %v9174_v61  ;;  %v704_v34 = vshrl.u32 %v14052_v3, %v9174_v61  ;;  %v9196_v57 = vadd.f32 %v389_v14, %v385_v42 }
 0x126   :  { %v9200_v8 = vor.u32 %v695_v43, %v694_v44  ;;  %vm425_vm9 = vcmp.gt.f32.partialorder %v9113_v1, 1e-16  ;;  %v622_v59 = vadd.s32 536870912, %v621_v9  ;;  %v9212_v48 = vor.u32 %v698_v11, %v697_v21 }
 0x127   :  { %v702_v14 = vor.u32 %v701_v15, %v700_v54  ;;  %v705_v42 = vor.u32 %v704_v34, %v703_v51  ;;  %v8013_v13 = vcvt.f32.s32 %v9168_v39  ;;  %v685_v44 = vor.u32 8388608, %v684_v26  ;;  %vm9233_vm14 = vmand %vm9208_vm10, %vm425_vm9 }
 0x128   :  { %v706_v43 = vshll.u32 %v14052_v3, %v691_v28  ;;  %v14056_v58 = vmov 1326507024   ;;  %v9218_v31 = vshrl.u32 %v622_v59, 30  ;;  %v7974_v33 = vcvt.s32.f32 %v7973_v56 }
 0x129   :  { %v707_v27 = vshrl.u32 %v14056_v58, %v9174_v61  ;;  %vm709_vm11 = vcmp.lt.s32.totalorder %v9181_v20, 1  ;;  %vm712_vm12 = vcmp.lt.s32.totalorder %v9181_v20, 4  ;;  %vm711_vm13 = vcmp.lt.s32.totalorder %v9181_v20, 3 }
 0x12a   :  { %v717_v26 = vsel %vm709_vm11, %v9200_v8, %v9212_v48  ;;  %v718_v28 = vsel %vm712_vm12, %v705_v42, 920167782  ;;  %v14057_v56 = vmov 0  ;;  %v624_v21 = vshll.u32 %v9218_v31, 30 }
 0x12b   :  { %v708_v60 = vor.u32 %v707_v27, %v706_v43  ;;  %v14058_v56 = vsel %vm9233_vm14, 4294967295, %v14057_v56  ;;  %v7610_v27 = vadd.f32 -1.2, %v9026_v38  ;;  %vm710_vm15 = vcmp.lt.s32.totalorder %v9181_v20, 2 }
 0x12c   :  { %14059 = vst [vmem:[#allocation37_spill] sm:$0xff] %v14058_v56  ;;  %v719_v54 = vsel %vm711_vm13, %v702_v14, %v718_v28  ;;  %v721_v11 = vsel %vm709_vm11, %v9212_v48, %v702_v14  ;;  %v9249_v34 = vshll.u32 %v685_v44, 8  ;;  %v9251_v38 = vcvt.s32.f32 %v8013_v13 }
 0x12d   :  { %v720_v51 = vsel %vm710_vm15, %v717_v26, %v719_v54  ;;  %v722_v15 = vsel %vm712_vm12, %v708_v60, 1326507024  ;;  %v9253_v24 = vsub.s32 %v621_v9, %v624_v21  ;;  %v9260_v43 = vsel %vm9233_vm14, %v9113_v1, 1.0  ;;  %v9268_v21 = vpop.permute.xlu0 %5715 }
 0x12e   :  { %v723_v59 = vsel %vm711_vm13, %v705_v42, %v722_v15  ;;  %v7975_v26 = vand.u32 2147483647, %v7974_v33  ;;  %v7976_v28 = vand.u32 2147483648, %v9147_v5  ;;  %v751_v44 = vshrl.u32 %v720_v51, 16  ;;  %14060 = vst [vmem:[#allocation38_spill] sm:$0xff] %v9268_v21 }
 0x12f   :  { %v724_v60 = vsel %vm710_vm15, %v721_v11, %v723_v59  ;;  %v487_v54 = vmul.f32 -1.5, %v7610_v27  ;;  %vm626_vm0 = vcmp.lt.s32.totalorder %v9253_v24, 0  ;;  %v627_v13 = vsub.s32 0, %v9253_v24 }
 0x130   :  { %v750_v9 = vand.u32 65535, %v720_v51  ;;  %v726_v1 = vand.u32 65535, %v9249_v34  ;;  %v728_v15 = vand.u32 65535, %v724_v60  ;;  %v729_v33 = vshrl.u32 %v724_v60, 16 }
 0x131   :  { %v628_v55 = vsel %vm626_vm0, %v627_v13, %v9253_v24  ;;  %v7971_v11 = vand.u32 2147483647, %v9147_v5  ;;  %v727_v27 = vshrl.u32 %v9249_v34, 16  ;;  %8237 = vrsqrt.f32 %v9260_v43 }
 0x132   :  { %v629_v59 = vclz %v628_v55  ;;  %v731_v56 = vmul.u32 %v729_v33, %v726_v1  ;;  %v753_v7 = vmul.u32 %v751_v44, %v726_v1  ;;  %v491_v51 = vmul.f32 1.442695, %v487_v54 }
 0x133   :  { %v9276_v42 = vor.u32 %v7976_v28, %v7975_v26  ;;  %v732_v29 = vmul.u32 %v728_v15, %v727_v27  ;;  %v9278_v41 = vmul.u32 %v750_v9, %v727_v27  ;;  %v617_v60 = vadd.s32 %v9154_v22, %v9152_v37 }
 0x134   :  { %v7619_v47 = vadd.s32 4294967294, %v629_v59  ;;  %v693_v13 = vshrl.u32 %v14047_v46, %v9174_v61  ;;  %v714_v55 = vsel %vm712_vm12, %v702_v14, 2102212464  ;;  %v730_v21 = vmul.u32 %v728_v15, %v726_v1 }
 0x135   :  { %v733_v32 = vmul.u32 %v729_v33, %v727_v27  ;;  %v734_v52 = vshll.u32 %v731_v56, 16  ;;  %v752_v23 = vmul.u32 %v750_v9, %v726_v1  ;;  %vm9286_vm3 = vcmp.lt.f32.partialorder %v7971_v11, 8388608.0 }
 0x136   :  { %vm7620_vm1 = vcmp.lt.s32.totalorder %v7619_v47, 0  ;;  %v736_v28 = vshll.u32 %v732_v29, 16  ;;  %v755_v54 = vmul.u32 %v751_v44, %v727_v27  ;;  %v756_v40 = vshll.u32 %v753_v7, 16 }
 0x137   :  { %v632_v37 = vsel %vm7620_vm1, 0, %v7619_v47  ;;  %vm738_vm4 = vc.u32 %v730_v21, %v734_v52  ;;  %v740_v22 = vadd.s32 %v734_v52, %v730_v21  ;;  %v758_v61 = vshll.u32 %v9278_v41, 16  ;;  %v9291_v59 = vpop.eup %8237  ;;  %v3894_v21 = vpop.permute.xlu0 %3893 }
 0x138   :  { %v633_v14 = vsub.s32 32, %v632_v37  ;;  %v634_v15 = vshll.u32 %v9253_v24, %v632_v37  ;;  %v637_v33 = vsub.s32 4294967266, %v632_v37  ;;  %v739_v9 = vsel %vm738_vm4, 1, %v14013_v16 }
 0x139   :  { %v741_v1 = vadd.s32 %v739_v9, %v733_v32  ;;  %vm742_vm5 = vc.u32 %v740_v22, %v736_v28  ;;  %vm760_vm6 = vc.u32 %v752_v23, %v756_v40  ;;  %v762_v11 = vadd.s32 %v756_v40, %v752_v23  ;;  %v3914_v32 = vpop.permute.xlu2 %3913 }
 0x13a   :  { %v635_v62 = vshrl.u32 %v617_v60, %v633_v14  ;;  %v638_v44 = vadd.s32 127, %v637_v33  ;;  %v743_v47 = vsel %vm742_vm5, 1, %v14013_v16  ;;  %v761_v52 = vsel %vm760_vm6, 1, %v14013_v16 }
 0x13b   :  { %v735_v27 = vshrl.u32 %v731_v56, 16  ;;  %v745_v30 = vadd.s32 %v743_v47, %v741_v1  ;;  %v763_v4 = vadd.s32 %v761_v52, %v755_v54  ;;  %vm764_vm7 = vc.u32 %v762_v11, %v758_v61 }
 0x13c   :  { %v636_v63 = vor.u32 %v635_v62, %v634_v15  ;;  %v639_v24 = vshll.u32 %v638_v44, 23  ;;  %v737_v37 = vshrl.u32 %v732_v29, 16  ;;  %v765_v45 = vsel %vm764_vm7, 1, %v14013_v16 }
 0x13d   :  { %vm525_vm8 = vcmp.lt.s32.totalorder %v9033_v12, 0  ;;  %v746_v23 = vadd.s32 %v745_v30, %v735_v27  ;;  %v757_v40 = vshrl.u32 %v753_v7, 16  ;;  %v767_v60 = vadd.s32 %v765_v45, %v763_v4 }
 0x13e   :  { %v3908_v28 = vsub.f32 %v9164_v19, %v3894_v21  ;;  %8239 = vpow2.f32 %v491_v51  ;;  %v14063_v22 = vand.u32 2147483647, %v9033_v12  ;;  %v640_v62 = vor.u32 4788187, %v639_v24  ;;  %v8300_v19 = vld [vmem:[%s13750_s0 + $0x2] ss:$0 sm:$0xff] }
 0x13f   :  { %v713_v29 = vsel %vm709_vm11, %v693_v13, %v9200_v8  ;;  %v715_v30 = vsel %vm711_vm13, %v9212_v48, %v714_v55  ;;  %v9312_v7 = vadd.s32 %v746_v23, %v737_v37  ;;  %v759_v4 = vshrl.u32 %v9278_v41, 16 }
 0x140   :  { %vm9302_vm9 = vcmp.le.f32.partialorder %v14063_v22, 0.7853982  ;;  %v768_v45 = vadd.s32 %v767_v60, %v757_v40  ;;  %v9318_v51 = vsub.f32 %v8300_v19, %v3914_v32  ;;  %v641_v54 = vand.u32 2147483647, %v640_v62 }
 0x141   :  { %v643_v14 = vcvt.s32.f32 %v636_v63  ;;  %v9320_v15 = vadd.s32 %v762_v11, %v758_v61  ;;  %v8005_v8 = vcvt.f32.s32 %v3908_v28  ;;  %v7978_v48 = vsel %vm9286_vm3, %v9276_v42, %v9147_v5 }
 0x142   :  { %v716_v41 = vsel %vm710_vm15, %v713_v29, %v715_v30  ;;  %v769_v13 = vadd.s32 %v768_v45, %v759_v4  ;;  %v456_v55 = vmul.f32 %v9291_v59, %v9260_v43  ;;  %v8003_v63 = vand.u32 2147483647, %v3908_v28 }
 0x143   :  { %v644_v33 = vmul.f32 %v643_v14, %v641_v54  ;;  %vm772_vm10 = vc.u32 %v9312_v7, %v9320_v15  ;;  %v8006_v61 = vcvt.s32.f32 %v8005_v8  ;;  %v647_v9 = vsub.s32 4, %v9218_v31 }
 0x144   :  { %v773_v1 = vadd.s32 1, %v769_v13  ;;  %v8008_v11 = vand.u32 2147483648, %v3908_v28  ;;  %v8037_v26 = vcvt.f32.s32 %v9318_v51  ;;  %v9334_v42 = vpop.eup %8239  ;;  %vm414_vm11 = vcmp.eq.f32.partialorder %v8941_v2, %v8979_v25  ;;  %v8303_v2 = vld [vmem:[%s13750_s0 + $0x14] ss:$0 sm:$0xff] }
 0x145   :  { %v645_v20 = vxor.u32 2147483648, %v644_v33  ;;  %v770_v44 = vmul.u32 %v9249_v34, %v716_v41  ;;  %v8007_v47 = vand.u32 2147483647, %v8006_v61  ;;  %v8035_v52 = vand.u32 2147483647, %v9318_v51 }
 0x146   :  { %v774_v21 = vsel %vm772_vm10, %v773_v1, %v769_v13  ;;  %v8038_v27 = vcvt.s32.f32 %v8037_v26  ;;  %v8040_v24 = vand.u32 2147483648, %v9318_v51  ;;  %v457_v37 = vmul.f32 %v9291_v59, %v456_v55  ;;  %v9381_v55 = vld [vmem:[%s13750_s0 + $0xe] ss:$0 sm:$0xff] }
 0x147   :  { %vm418_vm12 = vcmp.lt.f32.partialorder %v9196_v57, 9.0  ;;  %v646_v32 = vsel %vm525_vm8, %v645_v20, %v644_v33  ;;  %v9346_v23 = vsub.f32 %v9147_v5, %v7978_v48  ;;  %v775_v40 = vadd.s32 %v774_v21, %v770_v44  ;;  %v9399_v44 = vld [vmem:[%s13750_s0 + $0x11] ss:$0 sm:$0xff] }
 0x148   :  { %vm9348_vm13 = vcmp.lt.f32.partialorder %v8003_v63, 8388608.0  ;;  %v9355_v60 = vsel %vm9302_vm9, %v9033_v12, %v646_v32  ;;  %v7611_v22 = vadd.f32 -1.2, %v9060_v6  ;;  %v8009_v62 = vor.u32 %v8008_v11, %v8007_v47  ;;  %vm9412_vm0 = vmand %vm414_vm11, %vm418_vm12 }
 0x149   :  { %v8039_v29 = vand.u32 2147483647, %v8038_v27  ;;  %v9360_v30 = vmul.f32 %v9334_v42, %v9334_v42  ;;  %v648_v5 = vsel %vm525_vm8, %v647_v9, %v9218_v31  ;;  %v651_v4 = vmul.f32 %v9355_v60, %v9355_v60 }
 0x14a   :  { %v776_v45 = vadd.s32 536870912, %v775_v40  ;;  %v8010_v19 = vsel %vm9348_vm13, %v8009_v62, %v3908_v28  ;;  %vm9369_vm15 = vcmp.lt.f32.partialorder %v8035_v52, 8388608.0  ;;  %v458_v14 = vmul.f32 0.5, %v457_v37 }
 0x14b   :  { %v8041_v6 = vor.u32 %v8040_v24, %v8039_v29  ;;  %v8016_v8 = vand.u32 2147483648, %v9168_v39  ;;  %v652_v48 = vmul.f32 -0.001358992, %v651_v4  ;;  %v659_v41 = vmul.f32 -0.00019511016, %v651_v4  ;;  %v9403_v24 = vpop.permute.xlu1 %3905 }
 0x14c   :  { %v9374_v13 = vshrl.u32 %v776_v45, 30  ;;  %v650_v31 = vsel %vm9302_vm9, 0, %v648_v5  ;;  %v3996_v33 = vmul.f32 %v9381_v55, %v9346_v23  ;;  %v488_v63 = vmul.f32 -1.5, %v7611_v22 }
 0x14d   :  { %v9385_v61 = vsub.f32 %v3908_v28, %v8010_v19  ;;  %v653_v9 = vadd.f32 0.041655596, %v652_v48  ;;  %v660_v1 = vadd.f32 0.008332121, %v659_v41  ;;  %v8042_v56 = vsel %vm9369_vm15, %v8041_v6, %v9318_v51 }
 0x14e   :  { %v778_v11 = vshll.u32 %v9374_v13, 30  ;;  %v9392_v26 = vadd.f32 -2.0, %v9334_v42  ;;  %v511_v20 = vsub.f32 %v9334_v42, %v9360_v30  ;;  %v459_v47 = vsub.f32 1.5, %v458_v14 }
 0x14f   :  { %v4000_v28 = vmul.f32 %v9399_v44, %v9385_v61  ;;  %v654_v52 = vmul.f32 %v653_v9, %v651_v4  ;;  %v661_v21 = vmul.f32 %v660_v1, %v651_v4  ;;  %v1291_v27 = vadd.s32 3, %v650_v31 }
 0x150   :  { %v9405_v37 = vsub.s32 %v775_v40, %v778_v11  ;;  %v667_v34 = vand.u32 3, %v650_v31  ;;  %v493_v22 = vmul.f32 1.442695, %v488_v63  ;;  %v9417_v29 = vsub.f32 %v9318_v51, %v8042_v56 }
 0x151   :  { %v4004_v62 = vadd.f32 %v4000_v28, %v3996_v33  ;;  %v655_v5 = vadd.f32 -0.4999988, %v654_v52  ;;  %v662_v45 = vadd.f32 -0.16666654, %v661_v21  ;;  %v460_v19 = vmul.f32 %v9291_v59, %v459_v47 }
 0x152   :  { %vm780_vm1 = vcmp.lt.s32.totalorder %v9405_v37, 0  ;;  %v781_v40 = vsub.s32 0, %v9405_v37  ;;  %v4008_v25 = vmul.f32 %v8303_v2, %v9417_v29  ;;  %vm462_vm3 = vweird.f32 %v9291_v59 }
 0x153   :  { %vm426_vm4 = vcmp.gt.f32.partialorder %v9196_v57, 1e-16  ;;  %v656_v51 = vmul.f32 %v655_v5, %v651_v4  ;;  %v663_v54 = vmul.f32 %v662_v45, %v651_v4  ;;  %v1292_v6 = vand.u32 3, %v1291_v27 }
 0x154   :  { %v782_v14 = vsel %vm780_vm1, %v781_v40, %v9405_v37  ;;  %vm9431_vm5 = vmand %vm9412_vm0, %vm426_vm4  ;;  %v14072_v48 = vmov 0  ;;  %vm666_vm6 = vweird.f32 %v9033_v12  ;;  %vm668_vm7 = vcmp.lt.s32.totalorder %v667_v34, 2 }
 0x155   :  { %v14073_v48 = vsel %vm9431_vm5, 4294967295, %v14072_v48  ;;  %8241 = vpow2.f32 %v493_v22  ;;  %v783_v41 = vclz %v782_v14  ;;  %vm461_vm8 = vweird.f32 %v9260_v43 }
 0x156   :  { %14074 = vst [vmem:[#allocation39_spill] sm:$0xff] %v14073_v48  ;;  %v657_v31 = vadd.f32 1.0, %v656_v51  ;;  %v664_v33 = vadd.f32 1.0, %v663_v54  ;;  %vm669_vm9 = vcmp.eq.s32.totalorder %v667_v34, 0  ;;  %v9437_v4 = vadd.f32 %v4008_v25, %v4004_v62  ;;  %vm463_vm10 = vmor %vm461_vm8, %vm462_vm3 }
 0x157   :  { %vm672_vm11 = vcmp.eq.s32.totalorder %v667_v34, 2  ;;  %v7622_v63 = vadd.s32 4294967294, %v783_v41  ;;  %v9442_v9 = vsel %vm463_vm10, %v9291_v59, %v460_v19  ;;  %v9447_v1 = vsel %vm9431_vm5, %v9196_v57, 1.0  ;;  %v9457_v57 = vpop.permute.xlu1 %3880 }
 0x158   :  { %14075 = vst [vmem:[#allocation40_spill] sm:$0xff] %v9437_v4  ;;  %v665_v11 = vmul.f32 %v664_v33, %v9355_v60  ;;  %v673_v56 = vxor.u32 2147483648, %v657_v31  ;;  %vm1293_vm12 = vcmp.lt.s32.totalorder %v1292_v6, 2  ;;  %vm1294_vm13 = vcmp.eq.s32.totalorder %v1292_v6, 0 }
 0x159   :  { %14076 = vst [vmem:[#allocation41_spill] sm:$0xff] %v9442_v9  ;;  %vm1297_vm15 = vcmp.eq.s32.totalorder %v1292_v6, 2  ;;  %v771_v28 = vadd.s32 %v9320_v15, %v9312_v7  ;;  %vm7623_vm0 = vcmp.lt.s32.totalorder %v7622_v63, 0  ;;  %v9454_v47 = vmul.f32 %v9442_v9, %v9260_v43 }
 0x15a   :  { %v670_v59 = vxor.u32 2147483648, %v665_v11  ;;  %v786_v52 = vsel %vm7623_vm0, 0, %v7622_v63  ;;  %v801_v21 = vsub.s32 4, %v9374_v13  ;;  %14077 = vst [vmem:[#allocation42_spill] sm:$0xff] %v9457_v57  ;;  %8243 = vrsqrt.f32 %v9447_v1 }
 0x15b   :  { %v9460_v60 = vpop.eup %8241  ;;  %v674_v27 = vsel %vm672_vm11, %v673_v56, %v665_v11  ;;  %v1299_v32 = vsel %vm1297_vm15, %v673_v56, %v665_v11  ;;  %v787_v22 = vsub.s32 32, %v786_v52  ;;  %v791_v7 = vsub.s32 4294967266, %v786_v52 }
 0x15c   :  { %v671_v15 = vsel %vm669_vm9, %v657_v31, %v670_v59  ;;  %v1296_v43 = vsel %vm1294_vm13, %v657_v31, %v670_v59  ;;  %v788_v62 = vshll.u32 %v9405_v37, %v786_v52  ;;  %v9467_v5 = vmul.f32 1.0471976, %v9454_v47 }
 0x15d   :  { %v675_v45 = vsel %vm668_vm7, %v671_v15, %v674_v27  ;;  %v1300_v40 = vsel %vm1293_vm12, %v1296_v43, %v1299_v32  ;;  %v789_v2 = vshrl.u32 %v771_v28, %v787_v22  ;;  %v792_v25 = vadd.s32 127, %v791_v7 }
 0x15e   :  { %v14078_v19 = vand.u32 2147483647, %v9168_v39  ;;  %v14081_v54 = vand.u32 2147483647, %v9251_v38  ;;  %v676_v14 = vsel %vm666_vm6, nan, %v675_v45  ;;  %v1301_v34 = vsel %vm666_vm6, nan, %v1300_v40 }
 0x15f   :  { %v1139_v6 = vadd.f32 1.0, %v676_v14  ;;  %v1767_v41 = vmul.f32 -0.5235988, %v1301_v34  ;;  %v790_v31 = vor.u32 %v789_v2, %v788_v62  ;;  %v793_v33 = vshll.u32 %v792_v25, 23  ;;  %v3876_v15 = vpop.permute.xlu1 %3875 }
 0x160   :  { %vm9473_vm1 = vcmp.lt.f32.partialorder %v14078_v19, 8388608.0  ;;  %v8017_v37 = vor.u32 %v8016_v8, %v14081_v54  ;;  %v9485_v63 = vpop.eup %8243  ;;  %v9489_v11 = vmul.f32 %v9334_v42, %v9392_v26  ;;  %v515_v38 = vmul.f32 3.0, %v511_v20 }
 0x161   :  { %vm679_vm3 = vcmp.lt.s32.totalorder %v9078_v10, 0  ;;  %v834_v8 = vand.u32 2139095040, %v9467_v5  ;;  %v9496_v12 = vmul.f32 0.5, %v1139_v6  ;;  %v794_v56 = vor.u32 4788187, %v793_v33 }
 0x162   :  { %14082 = vst [vmem:[#allocation43_spill] sm:$0xff] %v9489_v11  ;;  %v802_v28 = vsel %vm679_vm3, %v801_v21, %v9374_v13  ;;  %v13814_v59 = vand.u32 2147483647, %v9467_v5  ;;  %v8018_v26 = vsel %vm9473_vm1, %v8017_v37, %v9168_v39  ;;  %v508_v42 = vmul.f32 %v9460_v60, %v9460_v60 }
 0x163   :  { %14083 = vst [vmem:[#allocation44_spill] sm:$0xff] %v9496_v12  ;;  %v14084_v30 = vand.u32 2147483647, %v9078_v10  ;;  %v835_v52 = vshrl.u32 %v834_v8, 23  ;;  %v1779_v27 = vmul.f32 %v9496_v12, %v515_v38  ;;  %v1783_v13 = vmul.f32 %v1767_v41, %v9489_v11  ;;  %v9548_v38 = vld [vmem:[%s13750_s0 + $0x10] ss:$0 sm:$0xff] }
 0x164   :  { %v795_v21 = vand.u32 2147483647, %v794_v56  ;;  %v797_v32 = vcvt.s32.f32 %v790_v31  ;;  %v466_v43 = vmul.f32 %v9485_v63, %v9447_v1  ;;  %v838_v40 = vand.u32 8388607, %v13814_v59 }
 0x165   :  { %vm9509_vm4 = vcmp.le.f32.partialorder %v14084_v30, 0.7853982  ;;  %v7624_v7 = vadd.s32 4294967169, %v835_v52  ;;  %v1787_v62 = vadd.f32 %v1783_v13, %v1779_v27  ;;  %v9522_v2 = vsub.f32 %v9144_v50, %v3876_v15 }
 0x166   :  { %v804_v22 = vsel %vm9509_vm4, 0, %v802_v28  ;;  %v798_v45 = vmul.f32 %v797_v32, %v795_v21  ;;  %v9525_v25 = vsub.f32 %v9168_v39, %v8018_v26  ;;  %v7615_v54 = vadd.f32 -2.0, %v9460_v60 }
 0x167   :  { %v841_v19 = vadd.s32 1, %v7624_v7  ;;  %v1791_v51 = vmul.f32 %v1787_v62, %v9023_v49  ;;  %v512_v37 = vsub.f32 %v9460_v60, %v508_v42  ;;  %v9532_v34 = vmul.f32 %v8855_v17, %v8855_v17 }
 0x168   :  { %14087 = vst [vmem:[#allocation45_spill] sm:$0xff] %v9525_v25  ;;  %v799_v14 = vxor.u32 2147483648, %v798_v45  ;;  %v1446_v6 = vadd.s32 3, %v804_v22  ;;  %v467_v50 = vmul.f32 %v9485_v63, %v466_v43  ;;  %v839_v49 = vor.u32 8388608, %v838_v40 }
 0x169   :  { %vm842_vm6 = vcmp.gt.s32.totalorder %v841_v19, 0  ;;  %v9536_v41 = vmul.f32 %v1791_v51, %v9018_v36  ;;  %v7981_v31 = vcvt.f32.s32 %v9522_v2  ;;  %v9543_v33 = vmul.f32 %v8857_v18, %v8857_v18 }
 0x16a   :  { %v800_v39 = vsel %vm679_vm3, %v799_v14, %v798_v45  ;;  %v9552_v8 = vmul.f32 %v9548_v38, %v9525_v25  ;;  %v843_v28 = vsel %vm842_vm6, %v841_v19, 0  ;;  %v9561_v26 = vmul.f32 %v9399_v44, %v9525_v25 }
 0x16b   :  { %14088 = vst [vmem:[#allocation46_spill] sm:$0xff] %v9536_v41  ;;  %v9557_v56 = vsel %vm9509_vm4, %v9078_v10, %v800_v39  ;;  %v9564_v42 = vmul.f32 %v9460_v60, %v7615_v54  ;;  %v9566_v30 = vmul.f32 3.0, %v512_v37  ;;  %v9570_v27 = vand.u32 3, %v804_v22 }
 0x16c   :  { %v805_v52 = vmul.f32 %v9557_v56, %v9557_v56  ;;  %v9572_v13 = vand.u32 3, %v1446_v6  ;;  %v845_v20 = vand.u32 31, %v843_v28  ;;  %v9574_v21 = vmul.f32 0.5, %v467_v50 }
 0x16d   :  { %14089 = vst [vmem:[#allocation47_spill] sm:$0xff] %v9564_v42  ;;  %v9576_v15 = vshll.u32 %v839_v49, 8  ;;  %v7982_v44 = vcvt.s32.f32 %v7981_v31  ;;  %v9578_v43 = vshrl.u32 %v843_v28, 5  ;;  %v7979_v59 = vand.u32 2147483647, %v9522_v2 }
 0x16e   :  { %v806_v32 = vmul.f32 -0.001358992, %v805_v52  ;;  %v813_v7 = vmul.f32 -0.00019511016, %v805_v52  ;;  %v846_v60 = vsub.s32 32, %v845_v20  ;;  %v848_v62 = vshll.u32 %v14047_v46, %v845_v20 }
 0x16f   :  { %v851_v45 = vshll.u32 %v14049_v0, %v845_v20  ;;  %v854_v19 = vshll.u32 %v14050_v35, %v845_v20  ;;  %v857_v51 = vshll.u32 %v14051_v53, %v845_v20  ;;  %v860_v6 = vshll.u32 %v14052_v3, %v845_v20 }
 0x170   :  { %v807_v40 = vadd.f32 0.041655596, %v806_v32  ;;  %v814_v22 = vadd.f32 0.008332121, %v813_v7  ;;  %v849_v54 = vshrl.u32 %v14049_v0, %v846_v60  ;;  %v852_v37 = vshrl.u32 %v14050_v35, %v846_v60 }
 0x171   :  { %v855_v14 = vshrl.u32 %v14051_v53, %v846_v60  ;;  %v858_v49 = vshrl.u32 %v14052_v3, %v846_v60  ;;  %v861_v31 = vshrl.u32 %v14056_v58, %v846_v60  ;;  %vm826_vm7 = vcmp.eq.s32.totalorder %v9570_v27, 2 }
 0x172   :  { %v808_v50 = vmul.f32 %v807_v40, %v805_v52  ;;  %v815_v39 = vmul.f32 %v814_v22, %v805_v52  ;;  %v9590_v28 = vor.u32 %v849_v54, %v848_v62  ;;  %v9592_v32 = vor.u32 %v852_v37, %v851_v45 }
 0x173   :  { %v9594_v7 = vor.u32 %v855_v14, %v854_v19  ;;  %vm1452_vm8 = vcmp.eq.s32.totalorder %v9572_v13, 2  ;;  %v859_v20 = vor.u32 %v858_v49, %v857_v51  ;;  %v862_v40 = vor.u32 %v861_v31, %v860_v6 }
 0x174   :  { %v809_v18 = vadd.f32 -0.4999988, %v808_v50  ;;  %v816_v17 = vadd.f32 -0.16666654, %v815_v39  ;;  %vm823_vm9 = vcmp.eq.s32.totalorder %v9570_v27, 0  ;;  %vm1449_vm10 = vcmp.eq.s32.totalorder %v9572_v13, 0 }
 0x175   :  { %vm863_vm11 = vcmp.lt.s32.totalorder %v9578_v43, 1  ;;  %v880_v62 = vand.u32 65535, %v9576_v15  ;;  %v7983_v45 = vand.u32 2147483647, %v7982_v44  ;;  %v7984_v22 = vand.u32 2147483648, %v9522_v2 }
 0x176   :  { %v810_v19 = vmul.f32 %v809_v18, %v805_v52  ;;  %v817_v54 = vmul.f32 %v816_v17, %v805_v52  ;;  %vm822_vm12 = vcmp.lt.s32.totalorder %v9570_v27, 2  ;;  %vm1448_vm13 = vcmp.lt.s32.totalorder %v9572_v13, 2 }
 0x177   :  { %vm866_vm15 = vcmp.lt.s32.totalorder %v9578_v43, 4  ;;  %v871_v51 = vsel %vm863_vm11, %v9590_v28, %v9592_v32  ;;  %vm820_vm0 = vweird.f32 %v9078_v10  ;;  %vm865_vm1 = vcmp.lt.s32.totalorder %v9578_v43, 3 }
 0x178   :  { %v872_v44 = vsel %vm866_vm15, %v859_v20, 920167782  ;;  %v875_v17 = vsel %vm863_vm11, %v9592_v32, %v9594_v7  ;;  %v876_v18 = vsel %vm866_vm15, %v862_v40, 1326507024  ;;  %v811_v52 = vadd.f32 1.0, %v810_v19 }
 0x179   :  { %v818_v37 = vadd.f32 1.0, %v817_v54  ;;  %vm864_vm3 = vcmp.lt.s32.totalorder %v9578_v43, 2  ;;  %v873_v14 = vsel %vm865_vm1, %v9594_v7, %v872_v44  ;;  %v877_v50 = vsel %vm865_vm1, %v859_v20, %v876_v18  ;;  %v9726_v43 = vld [vmem:[%s13750_s0 + $0x3] ss:$0 sm:$0xff] }
 0x17a   :  { %v874_v6 = vsel %vm864_vm3, %v871_v51, %v873_v14  ;;  %v881_v39 = vshrl.u32 %v9576_v15, 16  ;;  %v7985_v49 = vor.u32 %v7984_v22, %v7983_v45  ;;  %v827_v40 = vxor.u32 2147483648, %v811_v52 }
 0x17b   :  { %v819_v31 = vmul.f32 %v818_v37, %v9557_v56  ;;  %v878_v19 = vsel %vm864_vm3, %v875_v17, %v877_v50  ;;  %vm9633_vm4 = vcmp.lt.f32.partialorder %v7979_v59, 8388608.0  ;;  %v905_v36 = vshrl.u32 %v874_v6, 16 }
 0x17c   :  { %v882_v44 = vand.u32 65535, %v878_v19  ;;  %v883_v41 = vshrl.u32 %v878_v19, 16  ;;  %v469_v51 = vsub.f32 1.5, %v9574_v21  ;;  %v847_v20 = vshrl.u32 %v14047_v46, %v846_v60 }
 0x17d   :  { %v824_v14 = vxor.u32 2147483648, %v819_v31  ;;  %v904_v18 = vand.u32 65535, %v874_v6  ;;  %v7986_v56 = vsel %vm9633_vm4, %v7985_v49, %v9522_v2  ;;  %v828_v45 = vsel %vm826_vm7, %v827_v40, %v819_v31 }
 0x17e   :  { %v1454_v59 = vsel %vm1452_vm8, %v827_v40, %v819_v31  ;;  %v885_v22 = vmul.u32 %v883_v41, %v880_v62  ;;  %v886_v17 = vmul.u32 %v882_v44, %v881_v39  ;;  %v884_v60 = vmul.u32 %v882_v44, %v880_v62 }
 0x17f   :  { %v825_v37 = vsel %vm823_vm9, %v811_v52, %v824_v14  ;;  %v1451_v21 = vsel %vm1449_vm10, %v811_v52, %v824_v14  ;;  %v907_v6 = vmul.u32 %v905_v36, %v880_v62  ;;  %vm472_vm6 = vweird.f32 %v9485_v63 }
 0x180   :  { %v829_v50 = vsel %vm822_vm12, %v825_v37, %v828_v45  ;;  %v1455_v49 = vsel %vm1448_vm13, %v1451_v21, %v1454_v59  ;;  %v887_v19 = vmul.u32 %v883_v41, %v881_v39  ;;  %v888_v31 = vshll.u32 %v885_v22, 16 }
 0x181   :  { %v830_v40 = vsel %vm820_vm0, nan, %v829_v50  ;;  %v1456_v54 = vsel %vm820_vm0, nan, %v1455_v49  ;;  %v890_v12 = vshll.u32 %v886_v17, 16  ;;  %v908_v52 = vmul.u32 %v904_v18, %v881_v39 }
 0x182   :  { %vm471_vm7 = vweird.f32 %v9447_v1  ;;  %v1140_v44 = vadd.f32 1.0, %v830_v40  ;;  %v1768_v14 = vmul.f32 -0.5235988, %v1456_v54  ;;  %vm892_vm8 = vc.u32 %v884_v60, %v888_v31 }
 0x183   :  { %v894_v27 = vadd.s32 %v888_v31, %v884_v60  ;;  %v889_v45 = vshrl.u32 %v885_v22, 16  ;;  %v893_v13 = vsel %vm892_vm8, 1, %v14013_v16  ;;  %v906_v59 = vmul.u32 %v904_v18, %v880_v62 }
 0x184   :  { %v910_v41 = vshll.u32 %v907_v6, 16  ;;  %v9661_v37 = vmul.f32 0.5, %v1140_v44  ;;  %v895_v21 = vadd.s32 %v893_v13, %v887_v19  ;;  %v909_v50 = vmul.u32 %v905_v36, %v881_v39 }
 0x185   :  { %vm896_vm9 = vc.u32 %v894_v27, %v890_v12  ;;  %v1784_v10 = vmul.f32 %v1768_v14, %v9564_v42  ;;  %v912_v11 = vshll.u32 %v908_v52, 16  ;;  %v868_v62 = vsel %vm866_vm15, %v9594_v7, 2102212464  ;;  %v9682_v7 = vld [vmem:[%s13750_s0 + $0xd] ss:$0 sm:$0xff] }
 0x186   :  { %14092 = vst [vmem:[#allocation48_spill] sm:$0xff] %v9661_v37  ;;  %v897_v49 = vsel %vm896_vm9, 1, %v14013_v16  ;;  %vm914_vm10 = vc.u32 %v906_v59, %v910_v41  ;;  %v1780_v40 = vmul.f32 %v9661_v37, %v9566_v30  ;;  %v916_v31 = vadd.s32 %v910_v41, %v906_v59  ;;  %v14097_v59 = vld [vmem:[#allocation29_spill] sm:$0xff] }
 0x187   :  { %v899_v60 = vadd.s32 %v897_v49, %v895_v21  ;;  %v915_v22 = vsel %vm914_vm10, 1, %v14013_v16  ;;  %v9672_v36 = vsub.f32 %v9522_v2, %v7986_v56  ;;  %v470_v12 = vmul.f32 %v9485_v63, %v469_v51  ;;  %v14094_v56 = vld [vmem:[#allocation30_spill] sm:$0xff]  ;;  %v14099_v49 = vld [vmem:[#allocation13_spill] sm:$0xff] }
 0x188   :  { %v917_v18 = vadd.s32 %v915_v22, %v909_v50  ;;  %v1788_v39 = vadd.f32 %v1784_v10, %v1780_v40  ;;  %v867_v19 = vsel %vm863_vm11, %v847_v20, %v9590_v28  ;;  %vm918_vm12 = vc.u32 %v916_v31, %v912_v11  ;;  %vm473_vm11 = vmor %vm471_vm7, %vm472_vm6 }
 0x189   :  { %14093 = vst [vmem:[#allocation49_spill] sm:$0xff] %v9672_v36  ;;  %v900_v30 = vadd.s32 %v899_v60, %v889_v45  ;;  %v891_v54 = vshrl.u32 %v886_v17, 16  ;;  %v919_v44 = vsel %vm918_vm12, 1, %v14013_v16  ;;  %v3977_v2 = vmul.f32 %v9682_v7, %v9672_v36 }
 0x18a   :  { %v3997_v51 = vmul.f32 %v9381_v55, %v9672_v36  ;;  %v1792_v14 = vmul.f32 %v1788_v39, %v14094_v56  ;;  %v869_v28 = vsel %vm865_vm1, %v9592_v32, %v868_v62  ;;  %v911_v20 = vshrl.u32 %v907_v6, 16  ;;  %v10044_v36 = vpop.permute.xlu2 %67 }
 0x18b   :  { %v921_v17 = vadd.s32 %v919_v44, %v917_v18  ;;  %v901_v27 = vadd.s32 %v900_v30, %v891_v54  ;;  %v9697_v45 = vadd.f32 %v9552_v8, %v3977_v2  ;;  %v9703_v55 = vsel %vm473_vm11, %v9485_v63, %v470_v12 }
 0x18c   :  { %v9700_v13 = vadd.f32 %v9561_v26, %v3997_v51  ;;  %14096 = vst [vmem:[#allocation50_spill] sm:$0xff] %v9703_v55  ;;  %v9706_v41 = vmul.f32 %v1792_v14, %v14097_v59  ;;  %v913_v32 = vshrl.u32 %v908_v52, 16  ;;  %v2000_v21 = vadd.f32 %v9543_v33, %v9532_v34 }
 0x18d   :  { %14095 = vst [vmem:[#allocation30_spill] sm:$0xff] %v9697_v45  ;;  %v922_v6 = vadd.s32 %v921_v17, %v911_v20  ;;  %v920_v50 = vadd.s32 %v916_v31, %v912_v11  ;;  %v9712_v10 = vmul.f32 %v9703_v55, %v9447_v1  ;;  %v870_v8 = vsel %vm864_vm3, %v867_v19, %v869_v28  ;;  %v14100_v31 = vld [vmem:[#allocation10_spill] sm:$0xff] }
 0x18e   :  { %14098 = vst [vmem:[#allocation51_spill] sm:$0xff] %v9706_v41  ;;  %v2004_v63 = vmul.f32 %v14099_v49, %v14099_v49  ;;  %v924_v34 = vmul.u32 %v9576_v15, %v870_v8  ;;  %vm2028_vm15 = vcmp.eq.f32.partialorder %v14100_v31, %v9726_v43  ;;  %v14101_v44 = vmov 0 }
 0x18f   :  { %v923_v26 = vadd.s32 %v922_v6, %v913_v32  ;;  %vm926_vm13 = vc.u32 %v901_v27, %v920_v50  ;;  %v9719_v40 = vmul.f32 1.0471976, %v9712_v10  ;;  %v7612_v2 = vadd.f32 -1.2, %v9454_v47 }
 0x190   :  { %v2008_v60 = vadd.f32 %v2004_v63, %v2000_v21  ;;  %v925_v21 = vadd.s32 %v920_v50, %v901_v27 }
 0x191   :  { %v927_v52 = vadd.s32 1, %v923_v26  ;;  %v988_v33 = vand.u32 2139095040, %v9719_v40  ;;  %v13823_v19 = vand.u32 2147483647, %v9719_v40  ;;  %v489_v6 = vmul.f32 -1.5, %v7612_v2 }
 0x192   :  { %vm2032_vm0 = vcmp.lt.f32.partialorder %v2008_v60, 9.0  ;;  %vm2040_vm3 = vcmp.gt.f32.partialorder %v2008_v60, 1e-16 }
 0x193   :  { %v928_v11 = vsel %vm926_vm13, %v927_v52, %v923_v26  ;;  %v989_v22 = vshrl.u32 %v988_v33, 23  ;;  %vm2036_vm1 = vmand %vm2028_vm15, %vm2032_vm0  ;;  %v992_v56 = vand.u32 8388607, %v13823_v19  ;;  %vm833_vm13 = vcmp.lt.s32.totalorder %v9467_v5, 0 }
 0x194   :  { %v929_v1 = vadd.s32 %v928_v11, %v924_v34  ;;  %vm9734_vm6 = vmand %vm2036_vm1, %vm2040_vm3 }
 0x195   :  { %v7627_v18 = vadd.s32 4294967169, %v989_v22  ;;  %v14102_v44 = vsel %vm9734_vm6, 4294967295, %v14101_v44  ;;  %v9743_v28 = vsel %vm9734_vm6, %v2008_v60, 1.0  ;;  %v993_v8 = vor.u32 8388608, %v992_v56 }
 0x196   :  { %v930_v62 = vadd.s32 536870912, %v929_v1  ;;  %14103 = vst [vmem:[#allocation10_spill] sm:$0xff] %v14102_v44  ;;  %8245 = vrsqrt.f32 %v9743_v28  ;;  %v9762_v56 = vmul.f32 1.442695, %v489_v6 }
 0x197   :  { %v995_v15 = vadd.s32 1, %v7627_v18 }
 0x198   :  { %v9730_v12 = vshrl.u32 %v930_v62, 30  ;;  %8247 = vpow2.f32 %v9762_v56 }
 0x199   :  { %vm996_vm4 = vcmp.gt.s32.totalorder %v995_v15, 0 }
 0x19a   :  { %v932_v39 = vshll.u32 %v9730_v12, 30  ;;  %v997_v54 = vsel %vm996_vm4, %v995_v15, 0 }
 0x19b   :  { %v999_v14 = vand.u32 31, %v997_v54  ;;  %v9746_v47 = vshrl.u32 %v997_v54, 5 }
 0x19c   :  { %v933_v30 = vsub.s32 %v929_v1, %v932_v39 }
 0x19d   :  { %v1000_v32 = vsub.s32 32, %v999_v14  ;;  %v1002_v63 = vshll.u32 %v14047_v46, %v999_v14  ;;  %v1005_v52 = vshll.u32 %v14049_v0, %v999_v14  ;;  %v1008_v11 = vshll.u32 %v14050_v35, %v999_v14 }
 0x19e   :  { %vm934_vm7 = vcmp.lt.s32.totalorder %v933_v30, 0  ;;  %v935_v51 = vsub.s32 0, %v933_v30  ;;  %v1011_v27 = vshll.u32 %v14051_v53, %v999_v14  ;;  %v1014_v18 = vshll.u32 %v14052_v3, %v999_v14 }
 0x19f   :  { %v1003_v34 = vshrl.u32 %v14049_v0, %v1000_v32  ;;  %v1006_v60 = vshrl.u32 %v14050_v35, %v1000_v32  ;;  %v1009_v33 = vshrl.u32 %v14051_v53, %v1000_v32  ;;  %v1012_v50 = vshrl.u32 %v14052_v3, %v1000_v32 }
 0x1a0   :  { %v936_v20 = vsel %vm934_vm7, %v935_v51, %v933_v30  ;;  %v1015_v1 = vshrl.u32 %v14056_v58, %v1000_v32  ;;  %v9760_v51 = vpop.eup %8245  ;;  %vm1017_vm9 = vcmp.lt.s32.totalorder %v9746_v47, 1  ;;  %vm1020_vm10 = vcmp.lt.s32.totalorder %v9746_v47, 4 }
 0x1a1   :  { %v937_v17 = vclz %v936_v20  ;;  %v1004_v31 = vor.u32 %v1003_v34, %v1002_v63  ;;  %v9757_v62 = vor.u32 %v1006_v60, %v1005_v52  ;;  %v1010_v54 = vor.u32 %v1009_v33, %v1008_v11 }
 0x1a2   :  { %v1013_v2 = vor.u32 %v1012_v50, %v1011_v27  ;;  %v1016_v20 = vor.u32 %v1015_v1, %v1014_v18  ;;  %vm1018_vm12 = vcmp.lt.s32.totalorder %v9746_v47, 2  ;;  %vm1019_vm11 = vcmp.lt.s32.totalorder %v9746_v47, 3 }
 0x1a3   :  { %v7625_v26 = vadd.s32 4294967294, %v937_v17  ;;  %v9765_v17 = vshll.u32 %v993_v8, 8  ;;  %v1025_v14 = vsel %vm1017_vm9, %v1004_v31, %v9757_v62  ;;  %v955_v8 = vsub.s32 4, %v9730_v12 }
 0x1a4   :  { %v1026_v6 = vsel %vm1020_vm10, %v1013_v2, 920167782  ;;  %v1030_v11 = vsel %vm1020_vm10, %v1016_v20, 1326507024  ;;  %v1001_v18 = vshrl.u32 %v14047_v46, %v1000_v32 }
 0x1a5   :  { %vm7626_vm8 = vcmp.lt.s32.totalorder %v7625_v26, 0  ;;  %v1031_v50 = vsel %vm1019_vm11, %v1013_v2, %v1030_v11  ;;  %v1034_v1 = vand.u32 65535, %v9765_v17  ;;  %v2053_v11 = vmul.f32 %v9760_v51, %v9743_v28 }
 0x1a6   :  { %v940_v22 = vsel %vm7626_vm8, 0, %v7625_v26  ;;  %vm2059_vm8 = vweird.f32 %v9760_v51 }
 0x1a7   :  { %v941_v15 = vsub.s32 32, %v940_v22  ;;  %v945_v39 = vsub.s32 4294967266, %v940_v22  ;;  %v942_v19 = vshll.u32 %v933_v30, %v940_v22  ;;  %v1027_v30 = vsel %vm1019_vm11, %v1010_v54, %v1026_v6 }
 0x1a8   :  { %v1028_v60 = vsel %vm1018_vm12, %v1025_v14, %v1027_v30 }
 0x1a9   :  { %v943_v26 = vshrl.u32 %v925_v21, %v941_v15  ;;  %v946_v63 = vadd.s32 127, %v945_v39  ;;  %v1029_v21 = vsel %vm1017_vm9, %v9757_v62, %v1010_v54  ;;  %v1058_v22 = vand.u32 65535, %v1028_v60 }
 0x1aa   :  { %v1032_v15 = vsel %vm1018_vm12, %v1029_v21, %v1031_v50  ;;  %v1035_v39 = vshrl.u32 %v9765_v17, 16  ;;  %v1059_v20 = vshrl.u32 %v1028_v60, 16  ;;  %v1021_v21 = vsel %vm1017_vm9, %v1001_v18, %v1004_v31 }
 0x1ab   :  { %v944_v52 = vor.u32 %v943_v26, %v942_v19  ;;  %v947_v34 = vshll.u32 %v946_v63, 23  ;;  %v14104_v19 = vand.u32 2147483647, %v9467_v5  ;;  %v1036_v14 = vand.u32 65535, %v1032_v15 }
 0x1ac   :  { %v1037_v6 = vshrl.u32 %v1032_v15, 16  ;;  %v1061_v2 = vmul.u32 %v1059_v20, %v1034_v1  ;;  %v1062_v30 = vmul.u32 %v1058_v22, %v1035_v39  ;;  %v1060_v60 = vmul.u32 %v1058_v22, %v1034_v1 }
 0x1ad   :  { %vm9788_vm15 = vcmp.le.f32.partialorder %v14104_v19, 0.7853982  ;;  %v948_v27 = vor.u32 4788187, %v947_v34  ;;  %v951_v63 = vcvt.s32.f32 %v944_v52  ;;  %v956_v34 = vsel %vm833_vm13, %v955_v8, %v9730_v12 }
 0x1ae   :  { %v1039_v19 = vmul.u32 %v1037_v6, %v1034_v1  ;;  %v1040_v50 = vmul.u32 %v1036_v14, %v1035_v39  ;;  %v1022_v52 = vsel %vm1020_vm10, %v1010_v54, 2102212464  ;;  %v1064_v15 = vshll.u32 %v1061_v2, 16 }
 0x1af   :  { %v949_v26 = vand.u32 2147483647, %v948_v27  ;;  %v1063_v27 = vmul.u32 %v1059_v20, %v1035_v39  ;;  %v1038_v59 = vmul.u32 %v1036_v14, %v1034_v1  ;;  %v1041_v12 = vmul.u32 %v1037_v6, %v1035_v39 }
 0x1b0   :  { %v1042_v8 = vshll.u32 %v1039_v19, 16  ;;  %v1044_v37 = vshll.u32 %v1040_v50, 16  ;;  %v1066_v42 = vshll.u32 %v1062_v30, 16  ;;  %vm1068_vm0 = vc.u32 %v1060_v60, %v1064_v15 }
 0x1b1   :  { %v952_v32 = vmul.f32 %v951_v63, %v949_v26  ;;  %v1070_v41 = vadd.s32 %v1064_v15, %v1060_v60  ;;  %v1069_v18 = vsel %vm1068_vm0, 1, %v14013_v16  ;;  %v1065_v14 = vshrl.u32 %v1061_v2, 16 }
 0x1b2   :  { %vm1046_vm1 = vc.u32 %v1038_v59, %v1042_v8  ;;  %v1048_v31 = vadd.s32 %v1042_v8, %v1038_v59  ;;  %v1071_v1 = vadd.s32 %v1069_v18, %v1063_v27  ;;  %v1043_v15 = vshrl.u32 %v1039_v19, 16 }
 0x1b3   :  { %v953_v49 = vxor.u32 2147483648, %v952_v32  ;;  %v1047_v22 = vsel %vm1046_vm1, 1, %v14013_v16  ;;  %vm1072_vm3 = vc.u32 %v1070_v41, %v1066_v42  ;;  %v958_v27 = vsel %vm9788_vm15, 0, %v956_v34 }
 0x1b4   :  { %v1049_v20 = vadd.s32 %v1047_v22, %v1041_v12  ;;  %vm1050_vm4 = vc.u32 %v1048_v31, %v1044_v37  ;;  %v1073_v63 = vsel %vm1072_vm3, 1, %v14013_v16  ;;  %v2054_v37 = vmul.f32 %v9760_v51, %v2053_v11 }
 0x1b5   :  { %v954_v26 = vsel %vm833_vm13, %v953_v49, %v952_v32  ;;  %v1023_v49 = vsel %vm1019_vm11, %v9757_v62, %v1022_v52  ;;  %v1051_v59 = vsel %vm1050_vm4, 1, %v14013_v16  ;;  %v1075_v6 = vadd.s32 %v1073_v63, %v1071_v1 }
 0x1b6   :  { %v957_v54 = vsel %vm9788_vm15, %v9467_v5, %v954_v26  ;;  %v1053_v8 = vadd.s32 %v1051_v59, %v1049_v20  ;;  %v1067_v26 = vshrl.u32 %v1062_v30, 16  ;;  %v1045_v22 = vshrl.u32 %v1040_v50, 16 }
 0x1b7   :  { %v959_v39 = vmul.f32 %v957_v54, %v957_v54  ;;  %v1076_v12 = vadd.s32 %v1075_v6, %v1065_v14  ;;  %v1024_v62 = vsel %vm1018_vm12, %v1021_v21, %v1023_v49  ;;  %v9828_v33 = vadd.s32 %v1070_v41, %v1066_v42 }
 0x1b8   :  { %v1054_v44 = vadd.s32 %v1053_v8, %v1043_v15  ;;  %v1601_v34 = vadd.s32 3, %v958_v27  ;;  %v2055_v20 = vmul.f32 0.5, %v2054_v37  ;;  %v1078_v50 = vmul.u32 %v9765_v17, %v1024_v62  ;;  %v14107_v17 = vld [vmem:[#allocation16_spill] sm:$0xff]  ;;  %v14108_v8 = vld [vmem:[#allocation17_spill] sm:$0xff] }
 0x1b9   :  { %v960_v32 = vmul.f32 -0.001358992, %v959_v39  ;;  %v967_v60 = vmul.f32 -0.00019511016, %v959_v39  ;;  %v1077_v2 = vadd.s32 %v1076_v12, %v1067_v26  ;;  %v975_v42 = vand.u32 3, %v958_v27 }
 0x1ba   :  { %v9826_v1 = vadd.s32 %v1054_v44, %v1045_v22  ;;  %v2056_v47 = vsub.f32 1.5, %v2055_v20  ;;  %v8248_v44 = vpop.eup %8247  ;;  %v1602_v41 = vand.u32 3, %v1601_v34  ;;  %vm2058_vm9 = vweird.f32 %v9743_v28 }
 0x1bb   :  { %v961_v31 = vadd.f32 0.041655596, %v960_v32  ;;  %v968_v18 = vadd.f32 0.008332121, %v967_v60  ;;  %v1081_v30 = vadd.s32 1, %v1077_v2  ;;  %v1993_v15 = vmul.f32 %v14107_v17, %v14107_v17  ;;  %vm2060_vm10 = vmor %vm2058_vm9, %vm2059_vm8 }
 0x1bc   :  { %vm1080_vm7 = vc.u32 %v9826_v1, %v9828_v33  ;;  %v2057_v14 = vmul.f32 %v9760_v51, %v2056_v47  ;;  %v1997_v26 = vmul.f32 %v14108_v8, %v14108_v8  ;;  %vm974_vm12 = vweird.f32 %v9467_v5 }
 0x1bd   :  { %v962_v52 = vmul.f32 %v961_v31, %v959_v39  ;;  %v969_v19 = vmul.f32 %v968_v18, %v959_v39  ;;  %v1082_v56 = vsel %vm1080_vm7, %v1081_v30, %v1077_v2  ;;  %v509_v31 = vmul.f32 %v8248_v44, %v8248_v44 }
 0x1be   :  { %v1083_v59 = vadd.s32 %v1082_v56, %v1078_v50  ;;  %v9843_v27 = vsel %vm2060_vm10, %v9760_v51, %v2057_v14  ;;  %vm976_vm11 = vcmp.lt.s32.totalorder %v975_v42, 2  ;;  %vm1607_vm13 = vcmp.eq.s32.totalorder %v1602_v41, 2 }
 0x1bf   :  { %v963_v11 = vadd.f32 -0.4999988, %v962_v52  ;;  %v970_v63 = vadd.f32 -0.16666654, %v969_v19  ;;  %14109 = vst [vmem:[#allocation52_spill] sm:$0xff] %v9843_v27  ;;  %vm977_vm15 = vcmp.eq.s32.totalorder %v975_v42, 0  ;;  %v513_v30 = vsub.f32 %v8248_v44, %v509_v31 }
 0x1c0   :  { %v1084_v60 = vadd.s32 536870912, %v1083_v59  ;;  %vm980_vm0 = vcmp.eq.s32.totalorder %v975_v42, 2  ;;  %vm1603_vm1 = vcmp.lt.s32.totalorder %v1602_v41, 2  ;;  %vm1604_vm3 = vcmp.eq.s32.totalorder %v1602_v41, 0 }
 0x1c1   :  { %v964_v21 = vmul.f32 %v963_v11, %v959_v39  ;;  %v971_v49 = vmul.f32 %v970_v63, %v959_v39  ;;  %v7616_v34 = vadd.f32 -2.0, %v8248_v44  ;;  %v2001_v47 = vadd.f32 %v1997_v26, %v1993_v15 }
 0x1c2   :  { %v9840_v37 = vshrl.u32 %v1084_v60, 30 }
 0x1c3   :  { %v965_v6 = vadd.f32 1.0, %v964_v21  ;;  %v972_v32 = vadd.f32 1.0, %v971_v49  ;;  %v14111_v49 = vld [vmem:[#allocation15_spill] sm:$0xff] }
 0x1c4   :  { %v1086_v62 = vshll.u32 %v9840_v37, 30  ;;  %v2005_v41 = vmul.f32 %v14111_v49, %v14111_v49  ;;  %v14131_v49 = vld [vmem:[#allocation36_spill] sm:$0xff] }
 0x1c5   :  { %v973_v39 = vmul.f32 %v972_v32, %v957_v54  ;;  %v981_v12 = vxor.u32 2147483648, %v965_v6  ;;  %v9849_v54 = vmul.f32 %v9843_v27, %v9743_v28  ;;  %v517_v32 = vmul.f32 3.0, %v513_v30  ;;  %v14117_v30 = vld [vmem:[#allocation35_spill] sm:$0xff] }
 0x1c6   :  { %v1087_v19 = vsub.s32 %v1083_v59, %v1086_v62  ;;  %v7613_v59 = vadd.f32 -1.2, %v9712_v10 }
 0x1c7   :  { %v978_v18 = vxor.u32 2147483648, %v973_v39  ;;  %v1609_v22 = vsel %vm1607_vm13, %v981_v12, %v973_v39  ;;  %14110 = vst [vmem:[#allocation53_spill] sm:$0xff] %v9849_v54  ;;  %v982_v51 = vsel %vm980_vm0, %v981_v12, %v973_v39  ;;  %v9860_v42 = vmul.f32 1.0471976, %v9849_v54 }
 0x1c8   :  { %vm1088_vm4 = vcmp.lt.s32.totalorder %v1087_v19, 0  ;;  %v1089_v56 = vsub.s32 0, %v1087_v19  ;;  %v2009_v39 = vadd.f32 %v2005_v41, %v2001_v47  ;;  %v490_v31 = vmul.f32 -1.5, %v7613_v59  ;;  %v14118_v41 = vld [vmem:[#allocation38_spill] sm:$0xff] }
 0x1c9   :  { %v979_v2 = vsel %vm977_vm15, %v965_v6, %v978_v18  ;;  %v1606_v52 = vsel %vm1604_vm3, %v965_v6, %v978_v18  ;;  %14112 = vst [vmem:[#allocation54_spill] sm:$0xff] %v9860_v42  ;;  %v9862_v6 = vmul.f32 %v8248_v44, %v7616_v34  ;;  %v2143_v18 = vand.u32 2139095040, %v9860_v42  ;;  %v9878_v34 = vld [vmem:[%s13750_s0 + $0x2] ss:$0 sm:$0xff] }
 0x1ca   :  { %v983_v20 = vsel %vm976_vm11, %v979_v2, %v982_v51  ;;  %v1610_v11 = vsel %vm1603_vm1, %v1606_v52, %v1609_v22  ;;  %v1090_v14 = vsel %vm1088_vm4, %v1089_v56, %v1087_v19  ;;  %v14116_v22 = vld [vmem:[#allocation18_spill] sm:$0xff]  ;;  %vm2033_vm9 = vcmp.lt.f32.partialorder %v2009_v39, 9.0 }
 0x1cb   :  { %v984_v63 = vsel %vm974_vm12, nan, %v983_v20  ;;  %v1611_v50 = vsel %vm974_vm12, nan, %v1610_v11  ;;  %14113 = vst [vmem:[#allocation55_spill] sm:$0xff] %v9862_v6  ;;  %v1091_v5 = vclz %v1090_v14  ;;  %vm2029_vm8 = vcmp.eq.f32.partialorder %v14116_v22, %v9726_v43 }
 0x1cc   :  { %v1141_v28 = vadd.f32 1.0, %v984_v63  ;;  %v1769_v21 = vmul.f32 -0.5235988, %v1611_v50  ;;  %v2144_v62 = vshrl.u32 %v2143_v18, 23  ;;  %v1079_v2 = vadd.s32 %v9828_v33, %v9826_v1  ;;  %vm2037_vm10 = vmand %vm2029_vm8, %vm2033_vm9 }
 0x1cd   :  { %v7628_v12 = vadd.s32 4294967294, %v1091_v5  ;;  %v9882_v20 = vsub.f32 %v9878_v34, %v14117_v30  ;;  %v497_v11 = vmul.f32 1.442695, %v490_v31  ;;  %vm2041_vm12 = vcmp.gt.f32.partialorder %v2009_v39, 1e-16 }
 0x1ce   :  { %v9864_v60 = vmul.f32 0.5, %v1141_v28  ;;  %v1785_v26 = vmul.f32 %v1769_v21, %v9862_v6  ;;  %v7650_v47 = vadd.s32 4294967169, %v2144_v62  ;;  %v9888_v21 = vld [vmem:[%s13750_s0] ss:$0 sm:$0xff]  ;;  %vm9895_vm11 = vmand %vm2037_vm10, %vm2041_vm12  ;;  %v14119_v5 = vmov 0 }
 0x1cf   :  { %vm7629_vm7 = vcmp.lt.s32.totalorder %v7628_v12, 0  ;;  %v8061_v33 = vcvt.f32.s32 %v9882_v20  ;;  %v9892_v59 = vsub.f32 %v9888_v21, %v14118_v41  ;;  %8249 = vpow2.f32 %v497_v11  ;;  %v14125_v11 = vld [vmem:[#allocation4_spill] sm:$0xff] }
 0x1d0   :  { %14114 = vst [vmem:[#allocation56_spill] sm:$0xff] %v9864_v60  ;;  %v1781_v15 = vmul.f32 %v9864_v60, %v517_v32  ;;  %v1094_v44 = vsel %vm7629_vm7, 0, %v7628_v12  ;;  %v2150_v32 = vadd.s32 1, %v7650_v47  ;;  %v14120_v5 = vsel %vm9895_vm11, 4294967295, %v14119_v5  ;;  %v14123_v12 = vld [vmem:[#allocation6_spill] sm:$0xff] }
 0x1d1   :  { %v1095_v51 = vsub.s32 32, %v1094_v44  ;;  %v1099_v52 = vsub.s32 4294967266, %v1094_v44  ;;  %v1096_v63 = vshll.u32 %v1087_v19, %v1094_v44  ;;  %v1109_v19 = vsub.s32 4, %v9840_v37  ;;  %14121 = vst [vmem:[#allocation18_spill] sm:$0xff] %v14120_v5 }
 0x1d2   :  { %v9869_v10 = vadd.f32 %v1785_v26, %v1781_v15  ;;  %v14122_v15 = vld [vmem:[#allocation8_spill] sm:$0xff]  ;;  %v1998_v31 = vmul.f32 %v14123_v12, %v14123_v12  ;;  %vm987_vm13 = vcmp.lt.s32.totalorder %v9719_v40, 0  ;;  %v8062_v44 = vcvt.s32.f32 %v8061_v33 }
 0x1d3   :  { %v1097_v50 = vshrl.u32 %v1079_v2, %v1095_v51  ;;  %v1100_v56 = vadd.s32 127, %v1099_v52  ;;  %v1994_v26 = vmul.f32 %v14122_v15, %v14122_v15  ;;  %v8093_v62 = vcvt.f32.s32 %v9892_v59  ;;  %v14124_v52 = vld [vmem:[#allocation5_spill] sm:$0xff] }
 0x1d4   :  { %14115 = vst [vmem:[#allocation57_spill] sm:$0xff] %v9869_v10  ;;  %v1110_v2 = vsel %vm987_vm13, %v1109_v19, %v9840_v37  ;;  %v9910_v51 = vsel %vm9895_vm11, %v2009_v39, 1.0  ;;  %v1995_v30 = vmul.f32 %v14124_v52, %v14124_v52  ;;  %vm2151_vm15 = vcmp.gt.s32.totalorder %v2150_v32, 0 }
 0x1d5   :  { %v1098_v28 = vor.u32 %v1097_v50, %v1096_v63  ;;  %v1101_v1 = vshll.u32 %v1100_v56, 23  ;;  %v1999_v63 = vmul.f32 %v14125_v11, %v14125_v11  ;;  %v2002_v56 = vadd.f32 %v1998_v31, %v1994_v26  ;;  %v8250_v37 = vpop.eup %8249 }
 0x1d6   :  { %v14126_v47 = vand.u32 2147483647, %v9719_v40  ;;  %8251 = vrsqrt.f32 %v9910_v51  ;;  %v8063_v19 = vand.u32 2147483647, %v8062_v44  ;;  %v9928_v26 = vcvt.s32.f32 %v8093_v62 }
 0x1d7   :  { %v1102_v14 = vor.u32 4788187, %v1101_v1  ;;  %v1105_v22 = vcvt.s32.f32 %v1098_v28  ;;  %v14129_v1 = vld [vmem:[#allocation9_spill] sm:$0xff]  ;;  %v9930_v31 = vsel %vm2151_vm15, %v2150_v32, 0  ;;  %v510_v8 = vmul.f32 %v8250_v37, %v8250_v37 }
 0x1d8   :  { %vm9918_vm0 = vcmp.le.f32.partialorder %v14126_v47, 0.7853982  ;;  %v2006_v39 = vmul.f32 %v14129_v1, %v14129_v1  ;;  %v9940_v1 = vsub.f32 %v9888_v21, %v14131_v49  ;;  %v7617_v11 = vadd.f32 -2.0, %v8250_v37 }
 0x1d9   :  { %v1103_v18 = vand.u32 2147483647, %v1102_v14  ;;  %v1112_v41 = vsel %vm9918_vm0, 0, %v1110_v2  ;;  %v8064_v14 = vand.u32 2147483648, %v9882_v20  ;;  %v514_v17 = vsub.f32 %v8250_v37, %v510_v8 }
 0x1da   :  { %v9944_v44 = vadd.f32 %v2006_v39, %v2002_v56  ;;  %v1756_v62 = vadd.s32 3, %v1112_v41  ;;  %v9962_v56 = vld [vmem:[%s13750_s0 + $0xc] ss:$0 sm:$0xff]  ;;  %v3976_v39 = vmul.f32 %v9682_v7, %v9346_v23  ;;  %v10010_v10 = vmul.f32 %v8250_v37, %v7617_v11 }
 0x1db   :  { %v1106_v50 = vmul.f32 %v1105_v22, %v1103_v18  ;;  %v9932_v18 = vadd.f32 %v1999_v63, %v1995_v30  ;;  %v14130_v22 = vld [vmem:[#allocation3_spill] sm:$0xff]  ;;  %v9956_v12 = vor.u32 %v8064_v14, %v8063_v19  ;;  %v9966_v28 = vmul.f32 %v9962_v56, %v9346_v23  ;;  %v9984_v23 = vpop.permute.xlu1 %3921 }
 0x1dc   :  { %v9936_v47 = vmul.f32 %v14130_v22, %v14130_v22  ;;  %v2154_v22 = vand.u32 31, %v9930_v31  ;;  %v3980_v19 = vmul.f32 %v9548_v38, %v9385_v61  ;;  %v9977_v14 = vld [vmem:[%s13750_s0 + $0x1] ss:$0 sm:$0xff]  ;;  %v9982_v15 = vand.u32 3, %v1756_v62  ;;  %14132 = vst [vmem:[#allocation35_spill] sm:$0xff] %v9984_v23 }
 0x1dd   :  { %v1107_v33 = vxor.u32 2147483648, %v1106_v50  ;;  %v9998_v62 = vand.u32 3, %v1112_v41  ;;  %14134 = vst [vmem:[#allocation36_spill] sm:$0xff] %v10010_v10  ;;  %vm1128_vm10 = vweird.f32 %v9719_v40  ;;  %v10038_v4 = vshrl.u32 %v9930_v31, 5 }
 0x1de   :  { %v9988_v60 = vsub.s32 32, %v2154_v22  ;;  %v3984_v38 = vadd.f32 %v3980_v19, %v3976_v39  ;;  %vm1762_vm1 = vcmp.eq.s32.totalorder %v9982_v15, 2  ;;  %v14135_v19 = vand.u32 2147483647, %v9860_v42 }
 0x1df   :  { %v1108_v2 = vsel %vm987_vm13, %v1107_v33, %v1106_v50  ;;  %v5732_v33 = vpop.permute.xlu0 %5731  ;;  %vm1131_vm3 = vcmp.eq.s32.totalorder %v9998_v62, 0  ;;  %vm1134_vm4 = vcmp.eq.s32.totalorder %v9998_v62, 2  ;;  %vm1759_vm7 = vcmp.eq.s32.totalorder %v9982_v15, 0 }
 0x1e0   :  { %v9949_v32 = vsel %vm9918_vm0, %v9719_v40, %v1108_v2  ;;  %v9970_v2 = vpop.eup %8251  ;;  %v9980_v63 = vsub.f32 %v9977_v14, %v5732_v33  ;;  %v9994_v33 = vld [vmem:[%s13750_s0 + $0xf] ss:$0 sm:$0xff]  ;;  %v10017_v9 = vand.u32 8388607, %v14135_v19  ;;  %v2167_v54 = vshrl.u32 %v14052_v3, %v9988_v60 }
 0x1e1   :  { %v1113_v49 = vmul.f32 %v9949_v32, %v9949_v32  ;;  %14133 = vst [vmem:[#allocation38_spill] sm:$0xff] %v9994_v33  ;;  %v3960_v8 = vmul.f32 %v9994_v33, %v9385_v61  ;;  %v2063_v52 = vmul.f32 %v9970_v2, %v9910_v51  ;;  %v10012_v61 = vmul.f32 3.0, %v514_v17 }
 0x1e2   :  { %v2158_v17 = vshrl.u32 %v14049_v0, %v9988_v60  ;;  %vm1130_vm8 = vcmp.lt.s32.totalorder %v9998_v62, 2  ;;  %vm1758_vm9 = vcmp.lt.s32.totalorder %v9982_v15, 2  ;;  %v2164_v37 = vshrl.u32 %v14051_v53, %v9988_v60 }
 0x1e3   :  { %v1114_v50 = vmul.f32 -0.001358992, %v1113_v49  ;;  %v1121_v30 = vmul.f32 -0.00019511016, %v1113_v49  ;;  %v2166_v19 = vshll.u32 %v14051_v53, %v2154_v22  ;;  %v2157_v42 = vshll.u32 %v14047_v46, %v2154_v22 }
 0x1e4   :  { %v2163_v48 = vshll.u32 %v14050_v35, %v2154_v22  ;;  %v2148_v33 = vor.u32 8388608, %v10017_v9  ;;  %vm2175_vm12 = vcmp.lt.s32.totalorder %v10038_v4, 4  ;;  %v10060_v9 = vld [vmem:[%s13750_s0 + $0x12] ss:$0 sm:$0xff]  ;;  %vm2172_vm13 = vcmp.lt.s32.totalorder %v10038_v4, 1 }
 0x1e5   :  { %v1115_v27 = vadd.f32 0.041655596, %v1114_v50  ;;  %v1122_v5 = vadd.f32 0.008332121, %v1121_v30  ;;  %v10005_v30 = vld [vmem:[%s13750_s0 + $0x13] ss:$0 sm:$0xff]  ;;  %v2168_v45 = vor.u32 %v2167_v54, %v2166_v19  ;;  %v10047_v25 = vor.u32 %v2158_v17, %v2157_v42 }
 0x1e6   :  { %v3988_v50 = vmul.f32 %v10005_v30, %v9417_v29  ;;  %v3968_v42 = vmul.f32 %v10060_v9, %v9417_v29  ;;  %vm2174_vm15 = vcmp.lt.s32.totalorder %v10038_v4, 3  ;;  %v10114_v40 = vshll.u32 %v2148_v33, 8 }
 0x1e7   :  { %v1116_v6 = vmul.f32 %v1115_v27, %v1113_v49  ;;  %v1123_v55 = vmul.f32 %v1122_v5, %v1113_v49  ;;  %v2161_v27 = vshrl.u32 %v14050_v35, %v9988_v60  ;;  %v14143_v33 = vand.u32 2147483647, %v9928_v26 }
 0x1e9   :  { %v1117_v41 = vadd.f32 -0.4999988, %v1116_v6  ;;  %v1124_v39 = vadd.f32 -0.16666654, %v1123_v55  ;;  %v2170_v55 = vshrl.u32 %v14056_v58, %v9988_v60  ;;  %v2064_v6 = vmul.f32 %v9970_v2, %v2063_v52  ;;  %v3918_v58 = vpop.permute.xlu1 %3917 }
 0x1ea   :  { %v2160_v52 = vshll.u32 %v14049_v0, %v2154_v22  ;;  %v10052_v0 = vor.u32 %v2164_v37, %v2163_v48  ;;  %v3929_v54 = vsub.f32 %v9878_v34, %v3918_v58 }
 0x1eb   :  { %v1118_v5 = vmul.f32 %v1117_v41, %v1113_v49  ;;  %v1125_v11 = vmul.f32 %v1124_v39, %v1113_v49  ;;  %v2169_v49 = vshll.u32 %v14052_v3, %v2154_v22  ;;  %v10064_v22 = vadd.f32 %v3988_v50, %v3984_v38 }
 0x1ec   :  { %v10049_v23 = vor.u32 %v2161_v27, %v2160_v52  ;;  %v8045_v17 = vcvt.f32.s32 %v3929_v54 }
 0x1ed   :  { %v1119_v41 = vadd.f32 1.0, %v1118_v5  ;;  %v1126_v39 = vadd.f32 1.0, %v1125_v11  ;;  %v2171_v31 = vor.u32 %v2170_v55, %v2169_v49  ;;  %v3964_v5 = vadd.f32 %v3960_v8, %v9966_v28  ;;  %14136 = vst [vmem:[#allocation58_spill] sm:$0xff] %v10064_v22 }
 0x1ee   :  { %v2181_v28 = vsel %vm2175_vm12, %v2168_v45, 920167782  ;;  %v2065_v8 = vmul.f32 0.5, %v2064_v6  ;;  %v14138_v55 = vand.u32 2147483647, %v9882_v20  ;;  %v2184_v15 = vsel %vm2172_vm13, %v10049_v23, %v10052_v0 }
 0x1ef   :  { %v1127_v53 = vmul.f32 %v1126_v39, %v9949_v32  ;;  %v1135_v57 = vxor.u32 2147483648, %v1119_v41  ;;  %v2185_v58 = vsel %vm2175_vm12, %v2171_v31, 1326507024  ;;  %v10080_v27 = vadd.f32 %v3968_v42, %v3964_v5 }
 0x1f0   :  { %vm10084_vm0 = vcmp.lt.f32.partialorder %v14138_v55, 8388608.0  ;;  %v2186_v62 = vsel %vm2174_vm15, %v2168_v45, %v2185_v58  ;;  %v8046_v39 = vcvt.s32.f32 %v8045_v17  ;;  %v8043_v42 = vand.u32 2147483647, %v3929_v54 }
 0x1f1   :  { %v1132_v32 = vxor.u32 2147483648, %v1127_v53  ;;  %v1764_v48 = vsel %vm1762_vm1, %v1135_v57, %v1127_v53  ;;  %v1136_v38 = vsel %vm1134_vm4, %v1135_v57, %v1127_v53  ;;  %14137 = vst [vmem:[#allocation59_spill] sm:$0xff] %v10080_v27  ;;  %v2180_v53 = vsel %vm2172_vm13, %v10047_v25, %v10049_v23  ;;  %v66_v31 = vpop.permute.xlu1 %65 }
 0x1f2   :  { %v2182_v57 = vsel %vm2174_vm15, %v10052_v0, %v2181_v28  ;;  %vm2173_vm1 = vcmp.lt.s32.totalorder %v10038_v4, 2  ;;  %7603 = vmatmul.msk.f32.gmra.mxu0 %vm13854_vm2, %v66_v31  ;;  %v10119_v28 = vpop.permute.xlu2 %4049  ;;  %v8047_v58 = vand.u32 2147483647, %v8046_v39  ;;  %v8048_v17 = vand.u32 2147483648, %v3929_v54 }
 0x1f3   :  { %v1133_v29 = vsel %vm1131_vm3, %v1119_v41, %v1132_v32  ;;  %v1761_v50 = vsel %vm1759_vm7, %v1119_v41, %v1132_v32  ;;  %v10112_v5 = vsel %vm2173_vm1, %v2180_v53, %v2182_v57  ;;  %v2066_v32 = vsub.f32 1.5, %v2065_v8  ;;  %14142 = vst [vmem:[#allocation61_spill] sm:$0xff] %v10119_v28 }
 0x1f4   :  { %v1137_v11 = vsel %vm1130_vm8, %v1133_v29, %v1136_v38  ;;  %v1765_v37 = vsel %vm1758_vm9, %v1761_v50, %v1764_v48  ;;  %v10123_v45 = vsel %vm2173_vm1, %v2184_v15, %v2186_v62  ;;  %v7997_v29 = vcvt.f32.s32 %v9940_v1 }
 0x1f5   :  { %v1138_v19 = vsel %vm1128_vm10, nan, %v1137_v11  ;;  %v1766_v52 = vsel %vm1128_vm10, nan, %v1765_v37  ;;  %v14144_v50 = vand.u32 2147483648, %v9892_v59  ;;  %v14145_v8 = vcvt.f32.s32 %v9980_v63 }
 0x1f6   :  { %v1142_v49 = vadd.f32 1.0, %v1138_v19  ;;  %v1770_v41 = vmul.f32 -0.5235988, %v1766_v52  ;;  %v13846_v57 = vshrl.u32 %v10112_v5, 16  ;;  %v8049_v19 = vor.u32 %v8048_v17, %v8047_v58 }
 0x1f7   :  { %v8097_v55 = vor.u32 %v14144_v50, %v14143_v33  ;;  %v8118_v11 = vcvt.s32.f32 %v14145_v8  ;;  %v14146_v52 = vand.u32 2147483647, %v9892_v59  ;;  %v13847_v26 = vshrl.u32 %v10123_v45, 16  ;;  %v14150_v33 = vld [vmem:[#allocation7_spill] sm:$0xff] }
 0x1f8   :  { %v10117_v48 = vmul.f32 0.5, %v1142_v49  ;;  %v1786_v53 = vmul.f32 %v1770_v41, %v10010_v10  ;;  %vm8044_vm4 = vcmp.lt.f32.partialorder %v8043_v42, 8388608.0  ;;  %vm2069_vm7 = vweird.f32 %v9970_v2 }
 0x1f9   :  { %vm10139_vm3 = vcmp.lt.f32.partialorder %v14146_v52, 8388608.0  ;;  %v8050_v49 = vsel %vm8044_vm4, %v8049_v19, %v3929_v54  ;;  %v2067_v41 = vmul.f32 %v9970_v2, %v2066_v32  ;;  %v8119_v39 = vand.u32 2147483647, %v8118_v11 }
 0x1fa   :  { %14141 = vst [vmem:[#allocation60_spill] sm:$0xff] %v10117_v48  ;;  %v1782_v37 = vmul.f32 %v10117_v48, %v10012_v61  ;;  %v2189_v61 = vand.u32 65535, %v10114_v40  ;;  %v8120_v31 = vand.u32 2147483648, %v9980_v63  ;;  %v2191_v58 = vand.u32 65535, %v10123_v45  ;;  %7604 = vmatmul.msk.f32.gmra.mxu0 %vm13854_vm2, %v10044_v36  ;;  %v5711_v52 = vpop.permute.xlu2 %5710 }
 0x1fb   :  { %v10151_v17 = vsub.f32 %v3929_v54, %v8050_v49  ;;  %vm2030_vm8 = vcmp.eq.f32.partialorder %v14150_v33, %v9726_v43  ;;  %v8115_v42 = vand.u32 2147483647, %v9980_v63  ;;  %v2213_v50 = vand.u32 65535, %v10112_v5 }
 0x1fc   :  { %v10145_v62 = vadd.f32 %v1786_v53, %v1782_v37  ;;  %v10159_v8 = vmul.u32 %v13846_v57, %v2189_v61  ;;  %v5736_v37 = vpop.permute.xlu1 %5735  ;;  %vm2068_vm9 = vweird.f32 %v9910_v51  ;;  %v8066_v54 = vsel %vm10084_vm0, %v9956_v12, %v9882_v20  ;;  %v10174_v53 = vld [vmem:[%s13750_s0 + $0x14] ss:$0 sm:$0xff] }
 0x1fd   :  { %v2190_v32 = vshrl.u32 %v10114_v40, 16  ;;  %v10169_v11 = vmul.u32 %v13847_v26, %v2189_v61  ;;  %v4009_v19 = vmul.f32 %v10174_v53, %v10151_v17  ;;  %vm2070_vm10 = vmor %vm2068_vm9, %vm2069_vm7  ;;  %vm2034_vm0 = vcmp.lt.f32.partialorder %v9944_v44, 9.0 }
 0x1fe   :  { %14149 = vst [vmem:[#allocation62_spill] sm:$0xff] %v10145_v62  ;;  %v7998_v12 = vcvt.s32.f32 %v7997_v29  ;;  %v8098_v6 = vsel %vm10139_vm3, %v8097_v55, %v9892_v59  ;;  %v10187_v49 = vsub.f32 %v9977_v14, %v5736_v37  ;;  %v10190_v38 = vsel %vm2070_vm10, %v9970_v2, %v2067_v41  ;;  %v14156_v37 = vld [vmem:[#allocation31_spill] sm:$0xff]  ;;  %vm10250_vm10 = vmand %vm2030_vm8, %vm2034_vm0 }
 0x1ff   :  { %14151 = vst [vmem:[#allocation7_spill] sm:$0xff] %v10190_v38  ;;  %v8121_v57 = vor.u32 %v8120_v31, %v8119_v39  ;;  %v10192_v26 = vmul.u32 %v2191_v58, %v2190_v32  ;;  %v10195_v36 = vadd.f32 %v4009_v19, %v9700_v13  ;;  %v5720_v28 = vsub.f32 %v9888_v21, %v5711_v52 }
 0x200   :  { %v10199_v29 = vsub.f32 %v9882_v20, %v8066_v54  ;;  %vm10201_vm4 = vcmp.lt.f32.partialorder %v8115_v42, 8388608.0  ;;  %v10205_v15 = vmul.u32 %v2213_v50, %v2190_v32  ;;  %v2219_v2 = vshll.u32 %v10159_v8, 16 }
 0x201   :  { %14152 = vst [vmem:[#allocation63_spill] sm:$0xff] %v10195_v36  ;;  %v2197_v41 = vshll.u32 %v10169_v11, 16  ;;  %v8085_v39 = vcvt.f32.s32 %v5720_v28  ;;  %v8125_v31 = vcvt.f32.s32 %v10187_v49  ;;  %v10212_v13 = vmul.f32 %v10190_v38, %v9910_v51 }
 0x202   :  { %v10216_v20 = vsub.f32 %v9977_v14, %v14156_v37  ;;  %v7999_v42 = vand.u32 2147483647, %v7998_v12  ;;  %v10219_v54 = vsub.f32 %v9892_v59, %v8098_v6  ;;  %v2215_v19 = vmul.u32 %v2213_v50, %v2189_v61 }
 0x203   :  { %14155 = vst [vmem:[#allocation64_spill] sm:$0xff] %v10212_v13  ;;  %v8122_v52 = vsel %vm10201_vm4, %v8121_v57, %v9980_v63  ;;  %v2193_v36 = vmul.u32 %v2191_v58, %v2189_v61  ;;  %v2199_v48 = vshll.u32 %v10192_v26, 16  ;;  %vm2042_vm3 = vcmp.gt.f32.partialorder %v9944_v44, 1e-16 }
 0x204   :  { %vm10226_vm7 = vc.u32 %v2215_v19, %v2219_v2  ;;  %v10230_v37 = vadd.s32 %v2219_v2, %v2215_v19  ;;  %v8086_v12 = vcvt.s32.f32 %v8085_v39  ;;  %v8126_v38 = vcvt.s32.f32 %v8125_v31  ;;  %v70_v59 = vpop.permute.xlu1 %69 }
 0x205   :  { %vm10232_vm9 = vc.u32 %v2193_v36, %v2197_v41  ;;  %v2203_v6 = vadd.s32 %v2197_v41, %v2193_v36  ;;  %7605 = vmatmul.msk.f32.gmra.mxu0 %vm13854_vm2, %v70_v59  ;;  %v10239_v61 = vmul.f32 1.0471976, %v10212_v13  ;;  %v10242_v58 = vsub.f32 %v9980_v63, %v8122_v52  ;;  %vm10289_vm2 = vmand %vm10250_vm10, %vm2042_vm3 }
 0x206   :  { %v8083_v55 = vand.u32 2147483647, %v5720_v28  ;;  %v8087_v2 = vand.u32 2147483647, %v8086_v12  ;;  %v8123_v39 = vand.u32 2147483647, %v10187_v49 }
 0x207   :  { %14161 = vst [vmem:[#allocation31_spill] sm:$0xff] %v10239_v61  ;;  %v14164_v41 = vand.u32 2147483647, %v9940_v1  ;;  %v2224_v63 = vsel %vm10226_vm7, 1, %v14013_v16  ;;  %v8088_v19 = vand.u32 2147483648, %v5720_v28  ;;  %v8128_v12 = vand.u32 2147483648, %v10187_v49 }
 0x208   :  { %v8127_v52 = vand.u32 2147483647, %v8126_v38  ;;  %v14167_v43 = vshrl.u32 %v10123_v45, 16  ;;  %v2202_v59 = vsel %vm10232_vm9, 1, %v14013_v16  ;;  %v14169_v10 = vshll.u32 %v10205_v15, 16 }
 0x209   :  { %vm10256_vm4 = vcmp.lt.f32.partialorder %v14164_v41, 8388608.0  ;;  %v14168_v41 = vshrl.u32 %v10112_v5, 16  ;;  %vm10274_vm0 = vc.u32 %v2203_v6, %v2199_v48  ;;  %vm10278_vm7 = vcmp.lt.f32.partialorder %v8083_v55, 8388608.0  ;;  %v10301_v55 = vld [vmem:[%s13750_s0 + $0x10] ss:$0 sm:$0xff] }
 0x20a   :  { %v2196_v33 = vmul.u32 %v14167_v43, %v2190_v32  ;;  %vm2227_vm8 = vc.u32 %v10230_v37, %v14169_v10  ;;  %v8089_v45 = vor.u32 %v8088_v19, %v8087_v2  ;;  %v8129_v43 = vor.u32 %v8128_v12, %v8127_v52  ;;  %v10315_v19 = vld [vmem:[%s13750_s0 + $0x11] ss:$0 sm:$0xff] }
 0x20b   :  { %v2218_v57 = vmul.u32 %v14168_v41, %v2190_v32  ;;  %v14174_v50 = vand.u32 2147483648, %v9940_v1  ;;  %vm8124_vm9 = vcmp.lt.f32.partialorder %v8123_v39, 8388608.0  ;;  %v2297_v5 = vand.u32 2139095040, %v10239_v61 }
 0x20c   :  { %v14175_v10 = vmov 0  ;;  %v2204_v48 = vadd.s32 %v2202_v59, %v2196_v33  ;;  %v2228_v32 = vsel %vm2227_vm8, 1, %v14013_v16  ;;  %v8090_v6 = vsel %vm10278_vm7, %v8089_v45, %v5720_v28 }
 0x20d   :  { %v8001_v62 = vor.u32 %v14174_v50, %v7999_v42  ;;  %v2226_v22 = vadd.s32 %v2224_v63, %v2218_v57  ;;  %v14176_v10 = vsel %vm10289_vm2, 4294967295, %v14175_v10  ;;  %v8130_v42 = vsel %vm8124_vm9, %v8129_v43, %v10187_v49 }
 0x20e   :  { %14177 = vst [vmem:[#allocation65_spill] sm:$0xff] %v14176_v10  ;;  %v8021_v57 = vcvt.f32.s32 %v10216_v20  ;;  %v5812_v2 = vmul.f32 %v10301_v55, %v10242_v58  ;;  %v2206_v39 = vsel %vm10274_vm0, 1, %v14013_v16  ;;  %v10308_v36 = vsub.f32 %v5720_v28, %v8090_v6  ;;  %v10330_v28 = vld [vmem:[%s13750_s0 + $0xe] ss:$0 sm:$0xff] }
 0x20f   :  { %v5809_v63 = vmul.f32 %v9682_v7, %v10219_v54  ;;  %v5832_v52 = vmul.f32 %v10315_v19, %v10242_v58  ;;  %v10320_v12 = vsub.f32 %v10187_v49, %v8130_v42  ;;  %v10325_v33 = vsel %vm10289_vm2, %v9944_v44, 1.0 }
 0x210   :  { %14178 = vst [vmem:[#allocation66_spill] sm:$0xff] %v10308_v36  ;;  %v5829_v59 = vmul.f32 %v10330_v28, %v10219_v54  ;;  %v2230_v41 = vadd.s32 %v2228_v32, %v2226_v22  ;;  %v5808_v51 = vmul.f32 %v9682_v7, %v10308_v36  ;;  %v2298_v38 = vshrl.u32 %v2297_v5, 23 }
 0x211   :  { %14179 = vst [vmem:[#allocation67_spill] sm:$0xff] %v10320_v12  ;;  %v2208_v49 = vadd.s32 %v2206_v39, %v2204_v48  ;;  %v5828_v45 = vmul.f32 %v10330_v28, %v10308_v36  ;;  %v5813_v44 = vmul.f32 %v10301_v55, %v10320_v12  ;;  %v5833_v43 = vmul.f32 %v10315_v19, %v10320_v12 }
 0x212   :  { %v10344_v50 = vsub.f32 %v9977_v14, %v9403_v24  ;;  %v2220_v22 = vshrl.u32 %v10159_v8, 16  ;;  %v10347_v32 = vadd.f32 %v5812_v2, %v5808_v51  ;;  %8253 = vrsqrt.f32 %v10325_v33 }
 0x213   :  { %v2198_v7 = vshrl.u32 %v10169_v11, 16  ;;  %v10351_v5 = vadd.f32 %v5832_v52, %v5828_v45  ;;  %v10353_v48 = vadd.f32 %v5813_v44, %v5809_v63  ;;  %v10355_v6 = vadd.f32 %v5833_v43, %v5829_v59 }
 0x214   :  { %14180 = vst [vmem:[#allocation68_spill] sm:$0xff] %v10347_v32  ;;  %v8022_v42 = vcvt.s32.f32 %v8021_v57  ;;  %v8002_v24 = vsel %vm10256_vm4, %v8001_v62, %v9940_v1  ;;  %v2231_v39 = vadd.s32 %v2230_v41, %v2220_v22  ;;  %v7653_v10 = vadd.s32 4294967169, %v2298_v38 }
 0x215   :  { %14181 = vst [vmem:[#allocation69_spill] sm:$0xff] %v10351_v5  ;;  %v2209_v8 = vadd.s32 %v2208_v49, %v2198_v7  ;;  %v10362_v2 = vadd.f32 %v9936_v47, %v9932_v18  ;;  %v8029_v11 = vcvt.f32.s32 %v10344_v50  ;;  %v2222_v52 = vshrl.u32 %v10205_v15, 16 }
 0x216   :  { %14182 = vst [vmem:[#allocation70_spill] sm:$0xff] %v10353_v48  ;;  %v2304_v63 = vadd.s32 1, %v7653_v10  ;;  %v10368_v59 = vmul.f32 %v10005_v30, %v10199_v29  ;;  %v8019_v57 = vand.u32 2147483647, %v10216_v20  ;;  %v3939_v62 = vsub.f32 %v9940_v1, %v8002_v24 }
 0x217   :  { %14183 = vst [vmem:[#allocation71_spill] sm:$0xff] %v10355_v6  ;;  %v2200_v31 = vshrl.u32 %v10192_v26, 16  ;;  %v8023_v51 = vand.u32 2147483647, %v8022_v42  ;;  %v8024_v18 = vand.u32 2147483648, %v10216_v20  ;;  %v2232_v47 = vadd.s32 %v2231_v39, %v2222_v52 }
 0x218   :  { %14184 = vst [vmem:[#allocation72_spill] sm:$0xff] %v10362_v2  ;;  %v10373_v41 = vpop.eup %8253  ;;  %vm2305_vm3 = vcmp.gt.s32.totalorder %v2304_v63, 0  ;;  %v2156_v10 = vshrl.u32 %v14047_v46, %v9988_v60  ;;  %v2177_v38 = vsel %vm2175_vm12, %v10052_v0, 2102212464  ;;  %v10385_v1 = vmul.f32 %v10174_v53, %v10199_v29 }
 0x219   :  { %v10381_v49 = vadd.s32 %v2209_v8, %v2200_v31  ;;  %v2306_v45 = vsel %vm2305_vm3, %v2304_v63, 0  ;;  %v8030_v26 = vcvt.s32.f32 %v8029_v11  ;;  %v13856_v44 = vand.u32 2147483647, %v10239_v61 }
 0x21a   :  { %14186 = vst [vmem:[#allocation74_spill] sm:$0xff] %v10385_v1  ;;  %v2308_v43 = vand.u32 31, %v2306_v45  ;;  %vm10388_vm10 = vcmp.lt.f32.partialorder %v8019_v57, 8388608.0  ;;  %v10393_v60 = vmul.f32 %v9962_v56, %v3939_v62  ;;  %v2176_v0 = vsel %vm2172_vm13, %v2156_v10, %v10047_v25  ;;  %v10413_v25 = vld [vmem:[%s13750_s0 + $0xd] ss:$0 sm:$0xff] }
 0x21b   :  { %14185 = vst [vmem:[#allocation73_spill] sm:$0xff] %v10381_v49  ;;  %v14189_v7 = vshll.u32 %v10205_v15, 16  ;;  %v2178_v24 = vsel %vm2174_vm15, %v10049_v23, %v2177_v38  ;;  %v2236_v39 = vadd.s32 1, %v2232_v47  ;;  %v2073_v11 = vmul.f32 %v10373_v41, %v10325_v33 }
 0x21c   :  { %v10406_v8 = vsub.s32 32, %v2308_v43  ;;  %v8025_v52 = vor.u32 %v8024_v18, %v8023_v51  ;;  %v10416_v15 = vmul.f32 %v10413_v25, %v3939_v62  ;;  %v8031_v23 = vand.u32 2147483647, %v8030_v26  ;;  %v14192_v18 = vld [vmem:[#allocation42_spill] sm:$0xff] }
 0x21d   :  { %v10401_v42 = vadd.s32 %v10230_v37, %v14189_v7  ;;  %v8027_v37 = vand.u32 2147483647, %v10344_v50  ;;  %v8032_v63 = vand.u32 2147483648, %v10344_v50  ;;  %v2301_v57 = vand.u32 8388607, %v13856_v44 }
 0x21e   :  { %v14191_v31 = vmov 2475754826   ;;  %v10428_v10 = vsub.f32 %v9888_v21, %v14192_v18  ;;  %v2179_v38 = vsel %vm2173_vm1, %v2176_v0, %v2178_v24  ;;  %v2315_v7 = vshrl.u32 %v14050_v35, %v10406_v8 }
 0x21f   :  { %14190 = vst [vmem:[#allocation75_spill] sm:$0xff] %v10401_v42  ;;  %vm2235_vm12 = vc.u32 %v10381_v49, %v10401_v42  ;;  %v2312_v51 = vshrl.u32 %v14191_v31, %v10406_v8  ;;  %v14193_v26 = vmov 2102212464   ;;  %v2311_v32 = vshll.u32 %v14047_v46, %v2308_v43 }
 0x220   :  { %v2318_v1 = vshrl.u32 %v14193_v26, %v10406_v8  ;;  %v2237_v5 = vsel %vm2235_vm12, %v2236_v39, %v2232_v47  ;;  %v2314_v44 = vshll.u32 %v14191_v31, %v2308_v43  ;;  %v2074_v36 = vmul.f32 %v10373_v41, %v2073_v11 }
 0x221   :  { %v10439_v61 = vshrl.u32 %v2306_v45, 5  ;;  %v2317_v21 = vshll.u32 %v14050_v35, %v2308_v43  ;;  %v2320_v4 = vshll.u32 %v14193_v26, %v2308_v43  ;;  %v2321_v0 = vshrl.u32 %v14052_v3, %v10406_v8 }
 0x222   :  { %v2233_v24 = vmul.u32 %v10114_v40, %v2179_v38  ;;  %v2302_v18 = vor.u32 8388608, %v2301_v57  ;;  %v10446_v13 = vor.u32 %v2312_v51, %v2311_v32  ;;  %v10448_v47 = vor.u32 %v2315_v7, %v2314_v44  ;;  %v14198_v44 = vld [vmem:[#allocation45_spill] sm:$0xff] }
 0x223   :  { %v10450_v39 = vor.u32 %v2318_v1, %v2317_v21  ;;  %v2322_v27 = vor.u32 %v2321_v0, %v2320_v4  ;;  %v2323_v45 = vshll.u32 %v14052_v3, %v2308_v43  ;;  %v14194_v11 = vmov 1326507024   ;;  %v14197_v4 = vld [vmem:[#allocation35_spill] sm:$0xff]  ;;  %v14202_v3 = vld [vmem:[#allocation49_spill] sm:$0xff] }
 0x224   :  { %v2324_v48 = vshrl.u32 %v14194_v11, %v10406_v8  ;;  %v8026_v6 = vsel %vm10388_vm10, %v8025_v52, %v10216_v20  ;;  %v10459_v42 = vmul.f32 %v10330_v28, %v3939_v62  ;;  %v10461_v40 = vadd.s32 %v2237_v5, %v2233_v24 }
 0x225   :  { %v2075_v32 = vmul.f32 0.5, %v2074_v36  ;;  %vm10463_vm13 = vcmp.lt.f32.partialorder %v8027_v37, 8388608.0  ;;  %v8033_v1 = vor.u32 %v8032_v63, %v8031_v23  ;;  %vm2326_vm15 = vcmp.lt.s32.totalorder %v10439_v61, 1 }
 0x226   :  { %v2325_v57 = vor.u32 %v2324_v48, %v2323_v45  ;;  %v7989_v43 = vcvt.f32.s32 %v10428_v10  ;;  %vm2329_vm1 = vcmp.lt.s32.totalorder %v10439_v61, 4  ;;  %v2334_v62 = vsel %vm2326_vm15, %v10446_v13, %v10448_v47 }
 0x227   :  { %v10474_v5 = vshll.u32 %v2302_v18, 8  ;;  %vm2328_vm4 = vcmp.lt.s32.totalorder %v10439_v61, 3  ;;  %v2335_v36 = vsel %vm2329_vm1, %v2322_v27, 920167782  ;;  %v2338_v48 = vsel %vm2326_vm15, %v10448_v47, %v10450_v39 }
 0x228   :  { %v2339_v22 = vsel %vm2329_vm1, %v2325_v57, 1326507024  ;;  %v2239_v52 = vadd.s32 536870912, %v10461_v40  ;;  %vm2327_vm8 = vcmp.lt.s32.totalorder %v10439_v61, 2  ;;  %v2336_v37 = vsel %vm2328_vm4, %v10450_v39, %v2335_v36 }
 0x229   :  { %v2076_v23 = vsub.f32 1.5, %v2075_v32  ;;  %v10491_v63 = vsub.f32 %v10216_v20, %v8026_v6  ;;  %v8034_v51 = vsel %vm10463_vm13, %v8033_v1, %v10344_v50  ;;  %v2337_v38 = vsel %vm2327_vm8, %v2334_v62, %v2336_v37  ;;  %v14199_v1 = vld [vmem:[#allocation38_spill] sm:$0xff] }
 0x22a   :  { %v2340_v7 = vsel %vm2328_vm4, %v2322_v27, %v2339_v22  ;;  %v7990_v21 = vcvt.s32.f32 %v7989_v43  ;;  %v10502_v0 = vsub.f32 %v9878_v34, %v14197_v4  ;;  %v2343_v20 = vand.u32 65535, %v10474_v5 }
 0x22b   :  { %v2341_v24 = vsel %vm2327_vm8, %v2338_v48, %v2340_v7  ;;  %v2344_v6 = vshrl.u32 %v10474_v5, 16  ;;  %v2368_v32 = vshrl.u32 %v2337_v38, 16  ;;  %v3961_v57 = vmul.f32 %v14199_v1, %v14198_v44 }
 0x22c   :  { %v2345_v18 = vand.u32 65535, %v2341_v24  ;;  %v2346_v45 = vshrl.u32 %v2341_v24, 16  ;;  %v10510_v62 = vshrl.u32 %v2239_v52, 30  ;;  %v2077_v27 = vmul.f32 %v10373_v41, %v2076_v23  ;;  %v5752_v23 = vpop.permute.xlu0 %5751 }
 0x22d   :  { %vm2079_vm0 = vweird.f32 %v10373_v41  ;;  %v10515_v43 = vsub.f32 %v10344_v50, %v8034_v51  ;;  %v7987_v36 = vand.u32 2147483647, %v10428_v10  ;;  %v7992_v37 = vand.u32 2147483648, %v10428_v10 }
 0x22e   :  { %14200 = vst [vmem:[#allocation42_spill] sm:$0xff] %v10510_v62  ;;  %v2348_v48 = vmul.u32 %v2346_v45, %v2343_v20  ;;  %v10518_v22 = vmul.u32 %v2345_v18, %v2344_v6  ;;  %v2367_v7 = vand.u32 65535, %v2337_v38  ;;  %v2370_v4 = vmul.u32 %v2368_v32, %v2343_v20 }
 0x22f   :  { %vm2078_vm7 = vweird.f32 %v10325_v33  ;;  %v7991_v52 = vand.u32 2147483647, %v7990_v21  ;;  %v8053_v24 = vcvt.f32.s32 %v10502_v0  ;;  %v2347_v44 = vmul.u32 %v2345_v18, %v2343_v20 }
 0x230   :  { %v2351_v49 = vshll.u32 %v2348_v48, 16  ;;  %vm2080_vm9 = vmor %vm2078_vm7, %vm2079_vm0  ;;  %v10524_v50 = vsub.f32 %v9878_v34, %v5752_v23  ;;  %v2241_v51 = vshll.u32 %v10510_v62, 30  ;;  %v2373_v2 = vshll.u32 %v2370_v4, 16 }
 0x231   :  { %v10528_v31 = vsel %vm2080_vm9, %v10373_v41, %v2077_v27  ;;  %v2350_v38 = vmul.u32 %v2346_v45, %v2344_v6  ;;  %v2353_v26 = vshll.u32 %v10518_v22, 16  ;;  %v3957_v35 = vmul.f32 %v9962_v56, %v14202_v3 }
 0x232   :  { %14201 = vst [vmem:[#allocation35_spill] sm:$0xff] %v10528_v31  ;;  %vm2355_vm3 = vc.u32 %v2347_v44, %v2351_v49  ;;  %v2357_v21 = vadd.s32 %v2351_v49, %v2347_v44  ;;  %v2369_v11 = vmul.u32 %v2367_v7, %v2343_v20  ;;  %v10534_v12 = vmul.u32 %v2367_v7, %v2344_v6 }
 0x233   :  { %v2356_v18 = vsel %vm2355_vm3, 1, %v14013_v16  ;;  %v8054_v34 = vcvt.s32.f32 %v8053_v24  ;;  %v10538_v41 = vmul.f32 %v10528_v31, %v10325_v33  ;;  %v7993_v45 = vor.u32 %v7992_v37, %v7991_v52 }
 0x234   :  { %v2358_v23 = vadd.s32 %v2356_v18, %v2350_v38  ;;  %vm2359_vm10 = vc.u32 %v2357_v21, %v2353_v26  ;;  %v2372_v62 = vmul.u32 %v2368_v32, %v2344_v6  ;;  %vm2377_vm12 = vc.u32 %v2369_v11, %v2373_v2 }
 0x235   :  { %14203 = vst [vmem:[#allocation45_spill] sm:$0xff] %v10538_v41  ;;  %v2360_v27 = vsel %vm2359_vm10, 1, %v14013_v16  ;;  %v10543_v3 = vmul.f32 %v14199_v1, %v10491_v63  ;;  %v8149_v49 = vcvt.f32.s32 %v10524_v50  ;;  %v10547_v20 = vsub.s32 %v10461_v40, %v2241_v51 }
 0x236   :  { %v2378_v26 = vsel %vm2377_vm12, 1, %v14013_v16  ;;  %v2375_v7 = vshll.u32 %v10534_v12, 16  ;;  %v2379_v33 = vadd.s32 %v2373_v2, %v2369_v11  ;;  %v3965_v37 = vadd.f32 %v3961_v57, %v3957_v35  ;;  %v10565_v57 = vpop.permute.xlu2 %4045 }
 0x237   :  { %v2380_v24 = vadd.s32 %v2378_v26, %v2372_v62  ;;  %vm10551_vm13 = vcmp.lt.f32.partialorder %v7987_v36, 8388608.0  ;;  %v8055_v6 = vand.u32 2147483647, %v8054_v34  ;;  %v2362_v32 = vadd.s32 %v2360_v27, %v2358_v23  ;;  %14207 = vst [vmem:[#allocation49_spill] sm:$0xff] %v10565_v57 }
 0x238   :  { %v10556_v44 = vmul.f32 1.0471976, %v10538_v41  ;;  %v3983_v40 = vmul.f32 %v10301_v55, %v10515_v43  ;;  %v7994_v51 = vsel %vm10551_vm13, %v7993_v45, %v10428_v10  ;;  %v8051_v2 = vand.u32 2147483647, %v10502_v0 }
 0x239   :  { %vm2381_vm0 = vc.u32 %v2379_v33, %v2375_v7  ;;  %v8056_v35 = vand.u32 2147483648, %v10502_v0  ;;  %v8150_v11 = vcvt.s32.f32 %v8149_v49  ;;  %v2352_v62 = vshrl.u32 %v2348_v48, 16 }
 0x23a   :  { %14206 = vst [vmem:[#allocation38_spill] sm:$0xff] %v10556_v44  ;;  %v2382_v36 = vsel %vm2381_vm0, 1, %v14013_v16  ;;  %v2244_v38 = vsub.s32 0, %v10547_v20  ;;  %v2374_v21 = vshrl.u32 %v2370_v4, 16  ;;  %v2451_v34 = vand.u32 2139095040, %v10556_v44 }
 0x23b   :  { %v2384_v18 = vadd.s32 %v2382_v36, %v2380_v24  ;;  %v8057_v23 = vor.u32 %v8056_v35, %v8055_v6  ;;  %vm2243_vm7 = vcmp.lt.s32.totalorder %v10547_v20, 0  ;;  %v3989_v45 = vmul.f32 %v10005_v30, %v10151_v17  ;;  %v135_v6 = vpop.f32.mrf.mxu0 }
 0x23c   :  { %v2363_v27 = vadd.s32 %v2362_v32, %v2352_v62  ;;  %v8147_v49 = vand.u32 2147483647, %v10524_v50  ;;  %v2376_v26 = vshrl.u32 %v10534_v12, 16  ;;  %v2452_v52 = vshrl.u32 %v2451_v34, 23 }
 0x23d   :  { %v2385_v48 = vadd.s32 %v2384_v18, %v2374_v21  ;;  %v8151_v31 = vand.u32 2147483647, %v8150_v11  ;;  %v8152_v57 = vand.u32 2147483648, %v10524_v50  ;;  %v2354_v4 = vshrl.u32 %v10518_v22, 16  ;;  %v14209_v22 = vld [vmem:[#allocation30_spill] sm:$0xff] }
 0x23e   :  { %v3969_v24 = vmul.f32 %v10060_v9, %v10151_v17  ;;  %v2245_v35 = vsel %vm2243_vm7, %v2244_v38, %v10547_v20  ;;  %v2331_v32 = vsel %vm2329_vm1, %v10450_v39, 2102212464  ;;  %v7656_v36 = vadd.s32 4294967169, %v2452_v52 }
 0x23f   :  { %v2386_v62 = vadd.s32 %v2385_v48, %v2376_v26  ;;  %v2310_v12 = vshrl.u32 %v14047_v46, %v10406_v8  ;;  %v10585_v11 = vadd.s32 %v2363_v27, %v2354_v4  ;;  %v10590_v18 = vadd.f32 %v3989_v45, %v14209_v22 }
 0x240   :  { %v10587_v21 = vadd.f32 %v3969_v24, %v3965_v37  ;;  %v3963_v17 = vmul.f32 %v14199_v1, %v10515_v43  ;;  %v3938_v38 = vsub.f32 %v10428_v10, %v7994_v51  ;;  %vm10595_vm9 = vcmp.lt.f32.partialorder %v8051_v2, 8388608.0 }
 0x241   :  { %14210 = vst [vmem:[#allocation30_spill] sm:$0xff] %v10590_v18  ;;  %v2458_v39 = vadd.s32 1, %v7656_v36  ;;  %v2246_v26 = vclz %v2245_v35  ;;  %v2330_v8 = vsel %vm2326_vm15, %v2310_v12, %v10446_v13  ;;  %v2332_v37 = vsel %vm2328_vm4, %v10448_v47, %v2331_v32  ;;  %v5728_v13 = vpop.permute.xlu2 %5727  ;;  %v14239_v18 = vld [vmem:[#allocation75_spill] sm:$0xff] }
 0x242   :  { %14208 = vst [vmem:[#allocation76_spill] sm:$0xff] %v10587_v21  ;;  %v10605_v45 = vadd.s32 %v2379_v33, %v2375_v7  ;;  %v8058_v10 = vsel %vm10595_vm9, %v8057_v23, %v10502_v0  ;;  %v8153_v51 = vor.u32 %v8152_v57, %v8151_v31  ;;  %v2390_v2 = vadd.s32 1, %v2386_v62 }
 0x243   :  { %vm2459_vm1 = vcmp.gt.s32.totalorder %v2458_v39, 0  ;;  %v3987_v27 = vadd.f32 %v3983_v40, %v10416_v15  ;;  %vm10611_vm3 = vcmp.lt.f32.partialorder %v8147_v49, 8388608.0  ;;  %v3982_v7 = vmul.f32 %v10301_v55, %v10491_v63 }
 0x244   :  { %vm2389_vm15 = vc.u32 %v10585_v11, %v10605_v45  ;;  %v2460_v47 = vsel %vm2459_vm1, %v2458_v39, 0  ;;  %v4003_v33 = vmul.f32 %v10315_v19, %v10515_v43  ;;  %v2333_v31 = vsel %vm2327_vm8, %v2330_v8, %v2332_v37  ;;  %v14223_v8 = vld [vmem:[#allocation67_spill] sm:$0xff] }
 0x245   :  { %v10623_v57 = vand.u32 31, %v2460_v47  ;;  %v4002_v15 = vmul.f32 %v10315_v19, %v10491_v63  ;;  %v3978_v40 = vmul.f32 %v10413_v25, %v3938_v38  ;;  %v10629_v23 = vsub.f32 %v10502_v0, %v8058_v10 }
 0x246   :  { %v7651_v49 = vadd.s32 4294967294, %v2246_v26  ;;  %v3998_v52 = vmul.f32 %v10330_v28, %v3938_v38  ;;  %v8154_v43 = vsel %vm10611_vm3, %v8153_v51, %v10524_v50  ;;  %v10636_v61 = vsub.f32 %v9977_v14, %v5728_v13 }
 0x247   :  { %v2391_v4 = vsel %vm2389_vm15, %v2390_v2, %v2386_v62  ;;  %v3967_v24 = vadd.f32 %v3963_v17, %v10393_v60  ;;  %v3971_v63 = vmul.f32 %v10060_v9, %v10199_v29  ;;  %v10642_v35 = vadd.f32 %v10368_v59, %v3987_v27  ;;  %v138_v62 = vpop.f32.mrf.mxu0  ;;  %v14227_v27 = vld [vmem:[#allocation53_spill] sm:$0xff] }
 0x248   :  { %v2387_v0 = vmul.u32 %v10474_v5, %v2333_v31  ;;  %v10646_v32 = vadd.f32 %v4003_v33, %v10459_v42  ;;  %v5789_v36 = vmul.f32 %v9962_v56, %v10219_v54  ;;  %v10651_v14 = vmul.f32 %v9962_v56, %v3938_v38 }
 0x249   :  { %14215 = vst [vmem:[#allocation77_spill] sm:$0xff] %v10642_v35  ;;  %v10654_v60 = vsub.s32 32, %v10623_v57  ;;  %v4010_v29 = vmul.f32 %v10174_v53, %v10629_v23  ;;  %v10659_v59 = vsub.f32 %v10524_v50, %v8154_v43  ;;  %vm7652_vm4 = vcmp.lt.s32.totalorder %v7651_v49, 0  ;;  %v5756_v43 = vpop.permute.xlu1 %5755 }
 0x24a   :  { %14216 = vst [vmem:[#allocation78_spill] sm:$0xff] %v10646_v32  ;;  %v10661_v5 = vadd.s32 %v2391_v4, %v2387_v0  ;;  %v10663_v42 = vadd.f32 %v3982_v7, %v3978_v40  ;;  %v4006_v12 = vadd.f32 %v4002_v15, %v3998_v52  ;;  %v10667_v56 = vsel %vm9233_vm14, %v135_v6, 0.0  ;;  %v10702_v7 = vpop.permute.xlu2 %5700 }
 0x24b   :  { %14217 = vst [vmem:[#allocation79_spill] sm:$0xff] %v10659_v59  ;;  %v8109_v22 = vcvt.f32.s32 %v10636_v61  ;;  %v10672_v17 = vmul.f32 %v14199_v1, %v10242_v58  ;;  %v10676_v50 = vsel %vm9431_vm5, %v138_v62, 0.0  ;;  %v10678_v34 = vadd.f32 %v3971_v63, %v3967_v24  ;;  %v10719_v62 = vld [vmem:[%s13750_s0 + $0x2] ss:$0 sm:$0xff] }
 0x24c   :  { %v10682_v39 = vmul.f32 %v10642_v35, %v10642_v35  ;;  %v10686_v6 = vmul.f32 %v10005_v30, %v10629_v23  ;;  %v10688_v26 = vsel %vm7652_vm4, 0, %v7651_v49  ;;  %v5793_v58 = vmul.f32 %v14199_v1, %v14223_v8 }
 0x24d   :  { %14219 = vst [vmem:[#allocation37_spill] sm:$0xff] %v10672_v17  ;;  %v14224_v37 = vmov 1326507024   ;;  %v10694_v51 = vadd.f32 %v4010_v29, %v4006_v12  ;;  %v10698_v2 = vmul.f32 %v10005_v30, %v10659_v59  ;;  %v7642_v48 = vadd.f32 -1.2, %v14227_v27  ;;  %v14238_v17 = vld [vmem:[#allocation73_spill] sm:$0xff] }
 0x24e   :  { %14221 = vst [vmem:[#allocation39_spill] sm:$0xff] %v10678_v34  ;;  %v2478_v10 = vshrl.u32 %v14224_v37, %v10654_v60  ;;  %v2393_v13 = vadd.s32 536870912, %v10661_v5  ;;  %v8110_v33 = vcvt.s32.f32 %v8109_v22  ;;  %v14228_v1 = vmov 2131351028  }
 0x24f   :  { %14222 = vst [vmem:[#allocation80_spill] sm:$0xff] %v10682_v39  ;;  %v2469_v15 = vshrl.u32 %v14228_v1, %v10654_v60  ;;  %v14229_v40 = vmov 920167782   ;;  %v2254_v52 = vsub.s32 4294967266, %v10688_v26  ;;  %v10710_v4 = vshrl.u32 %v2460_v47, 5 }
 0x250   :  { %14225 = vst [vmem:[#allocation67_spill] sm:$0xff] %v10694_v51  ;;  %v2477_v49 = vshll.u32 %v14229_v40, %v10623_v57  ;;  %v14230_v24 = vmov 2102212464   ;;  %v2475_v0 = vshrl.u32 %v14229_v40, %v10654_v60  ;;  %v5761_v29 = vsub.f32 %v10719_v62, %v5756_v43  ;;  %v8321_v40 = vld [vmem:[%s13750_s0] ss:$0 sm:$0xff] }
 0x251   :  { %14226 = vst [vmem:[#allocation81_spill] sm:$0xff] %v10698_v2  ;;  %v2472_v63 = vshrl.u32 %v14230_v24, %v10654_v60  ;;  %v10722_v12 = vadd.f32 %v5793_v58, %v5789_v36  ;;  %v14231_v54 = vmov 2475754826   ;;  %v2104_v38 = vmul.f32 -1.5, %v7642_v48 }
 0x252   :  { %v2468_v22 = vshll.u32 %v14231_v54, %v10623_v57  ;;  %v2479_v47 = vor.u32 %v2478_v10, %v2477_v49  ;;  %v10726_v8 = vshrl.u32 %v2393_v13, 30  ;;  %v2471_v27 = vshll.u32 %v14228_v1, %v10623_v57 }
 0x253   :  { %v2474_v31 = vshll.u32 %v14230_v24, %v10623_v57  ;;  %v10734_v35 = vmul.f32 %v10174_v53, %v10659_v59  ;;  %v8111_v43 = vand.u32 2147483647, %v8110_v33  ;;  %v14234_v36 = vand.u32 2147483647, %v10556_v44 }
 0x254   :  { %14232 = vst [vmem:[#allocation53_spill] sm:$0xff] %v10726_v8  ;;  %v10738_v39 = vor.u32 %v2469_v15, %v2468_v22  ;;  %v8157_v10 = vcvt.f32.s32 %v5761_v29  ;;  %v10740_v48 = vor.u32 %v2472_v63, %v2471_v27  ;;  %vm2483_vm14 = vcmp.lt.s32.totalorder %v10710_v4, 4  ;;  %v10752_v15 = vld [vmem:[%s13750_s0 + $0x3] ss:$0 sm:$0xff]  ;;  %v14236_v63 = vld [vmem:[#allocation14_spill] sm:$0xff]  ;;  %v10758_v27 = vpop.permute.xlu2 %5747 }
 0x255   :  { %14233 = vst [vmem:[#allocation82_spill] sm:$0xff] %v10734_v35  ;;  %v2455_v58 = vand.u32 8388607, %v14234_v36  ;;  %v10742_v13 = vor.u32 %v2475_v0, %v2474_v31  ;;  %v2255_v49 = vadd.s32 127, %v2254_v52  ;;  %v8107_v32 = vand.u32 2147483647, %v10636_v61 }
 0x256   :  { %v8112_v34 = vand.u32 2147483648, %v10636_v61  ;;  %v2493_v33 = vsel %vm2483_vm14, %v2479_v47, 1326507024  ;;  %14235 = vst [vmem:[#allocation83_spill] sm:$0xff] %v10752_v15  ;;  %vm2031_vm5 = vcmp.eq.f32.partialorder %v14236_v63, %v10752_v15  ;;  %v2108_v31 = vmul.f32 1.442695, %v2104_v38 }
 0x257   :  { %v2250_v0 = vsub.s32 32, %v10688_v26  ;;  %v2395_v52 = vshll.u32 %v10726_v8, 30  ;;  %v8158_v22 = vcvt.s32.f32 %v8157_v10  ;;  %v8155_v36 = vand.u32 2147483647, %v5761_v29  ;;  %v14237_v47 = vld [vmem:[#allocation72_spill] sm:$0xff] }
 0x258   :  { %v2456_v35 = vor.u32 8388608, %v2455_v58  ;;  %vm2480_vm8 = vcmp.lt.s32.totalorder %v10710_v4, 1  ;;  %vm2482_vm10 = vcmp.lt.s32.totalorder %v10710_v4, 3  ;;  %vm2035_vm12 = vcmp.lt.f32.partialorder %v14237_v47, 9.0 }
 0x259   :  { %v8159_v2 = vand.u32 2147483647, %v8158_v22  ;;  %v8160_v59 = vand.u32 2147483648, %v5761_v29  ;;  %v2492_v38 = vsel %vm2480_vm8, %v10738_v39, %v10740_v48  ;;  %v2494_v10 = vsel %vm2482_vm10, %v10742_v13, %v2493_v33  ;;  %v5706_v22 = vpop.permute.xlu1 %5705  ;;  %vm10818_vm3 = vmand %vm2031_vm5, %vm2035_vm12 }
 0x25a   :  { %v2234_v58 = vadd.s32 %v14239_v18, %v14238_v17  ;;  %v2256_v21 = vshll.u32 %v2255_v49, 23  ;;  %vm10772_vm13 = vcmp.lt.f32.partialorder %v8107_v32, 8388608.0  ;;  %v8113_v44 = vor.u32 %v8112_v34, %v8111_v43 }
 0x25b   :  { %v10777_v41 = vsub.s32 %v10661_v5, %v2395_v52  ;;  %v8161_v37 = vor.u32 %v8160_v59, %v8159_v2  ;;  %v5719_v24 = vsub.f32 %v8321_v40, %v5706_v22  ;;  %vm2481_vm0 = vcmp.lt.s32.totalorder %v10710_v4, 2  ;;  %v14276_v4 = vld [vmem:[#allocation58_spill] sm:$0xff] }
 0x25c   :  { %8255 = vpow2.f32 %v2108_v31  ;;  %v2251_v18 = vshll.u32 %v10547_v20, %v10688_v26  ;;  %vm8156_vm7 = vcmp.lt.f32.partialorder %v8155_v36, 8388608.0  ;;  %v10787_v32 = vsel %vm2481_vm0, %v2492_v38, %v2494_v10  ;;  %v72_v31 = vpop.permute.xlu2 %71 }
 0x25d   :  { %v2252_v17 = vshrl.u32 %v2234_v58, %v2250_v0  ;;  %v8162_v5 = vsel %vm8156_vm7, %v8161_v37, %v5761_v29  ;;  %v8077_v34 = vcvt.f32.s32 %v5719_v24  ;;  %v10789_v59 = vshll.u32 %v2456_v35, 8 }
 0x25e   :  { %v10791_v2 = vor.u32 4788187, %v2256_v21  ;;  %v8114_v43 = vsel %vm10772_vm13, %v8113_v44, %v10636_v61  ;;  %v5785_v49 = vsub.f32 %v5761_v29, %v8162_v5  ;;  %v2466_v20 = vshrl.u32 %v14231_v54, %v10654_v60 }
 0x25f   :  { %vm2397_vm9 = vcmp.lt.s32.totalorder %v10777_v41, 0  ;;  %v2398_v26 = vsub.s32 0, %v10777_v41  ;;  %v8078_v33 = vcvt.s32.f32 %v8077_v34  ;;  %v13887_v37 = vshrl.u32 %v10787_v32, 16 }
 0x260   :  { %v5821_v35 = vmul.f32 %v10005_v30, %v5785_v49  ;;  %v5841_v21 = vmul.f32 %v10174_v53, %v5785_v49  ;;  %v8075_v0 = vand.u32 2147483647, %v5719_v24  ;;  %vm14242_vm1 = vcmask 64512  }
 0x261   :  { %7606 = vmatmul.msk.f32.gmra.mxu0 %vm14242_vm1, %v72_v31  ;;  %v5801_v44 = vmul.f32 %v10060_v9, %v5785_v49  ;;  %v10806_v29 = vsub.f32 %v8321_v40, %v10702_v7  ;;  %v8079_v8 = vand.u32 2147483647, %v8078_v33  ;;  %v8080_v52 = vand.u32 2147483648, %v5719_v24  ;;  %v14245_v9 = vld [vmem:[#allocation71_spill] sm:$0xff]  ;;  %v14248_v40 = vld [vmem:[#allocation70_spill] sm:$0xff]  ;;  %v10840_v49 = vpop.permute.xlu1 %4041  ;;  %vm14258_vm12 = vmmov %vm14242_vm1 }
 0x262   :  { %v10809_v36 = vand.u32 65535, %v10789_v59  ;;  %v10811_v38 = vpop.eup %8255  ;;  %v10823_v53 = vadd.f32 %v5841_v21, %v14245_v9  ;;  %v10829_v10 = vadd.f32 %v5821_v35, %v14248_v40  ;;  %v2465_v58 = vshll.u32 %v14047_v46, %v10623_v57  ;;  %14251 = vst [vmem:[#allocation71_spill] sm:$0xff] %v10840_v49  ;;  %v14252_v57 = vld [vmem:[#allocation41_spill] sm:$0xff] }
 0x263   :  { %v10826_v7 = vadd.f32 %v5801_v44, %v10722_v12  ;;  %v10834_v22 = vsub.f32 %v10636_v61, %v8114_v43  ;;  %v2399_v63 = vsel %vm2397_vm9, %v2398_v26, %v10777_v41  ;;  %v8069_v5 = vcvt.f32.s32 %v10806_v29  ;;  %v14253_v61 = vld [vmem:[#allocation57_spill] sm:$0xff] }
 0x264   :  { %14246 = vst [vmem:[#allocation14_spill] sm:$0xff] %v10823_v53  ;;  %v8081_v34 = vor.u32 %v8080_v52, %v8079_v8  ;;  %vm8076_vm15 = vcmp.lt.f32.partialorder %v8075_v0, 8388608.0  ;;  %v10842_v12 = vor.u32 %v2466_v20, %v2465_v58  ;;  %v10847_v33 = vmul.u32 %v13887_v37, %v10809_v36  ;;  %v78_v30 = vpop.permute.xlu2 %77 }
 0x265   :  { %14247 = vst [vmem:[#allocation72_spill] sm:$0xff] %v10826_v7  ;;  %vm2043_vm4 = vcmp.gt.f32.partialorder %v14237_v47, 1e-16  ;;  %v10852_v43 = vmul.f32 %v14253_v61, %v14252_v57  ;;  %v8070_v26 = vcvt.s32.f32 %v8069_v5  ;;  %v2489_v35 = vsel %vm2483_vm14, %v10742_v13, 920167782  ;;  %7609 = vmatmul.msk.f32.vlgmr.msra.gmra.mxu2 %vm14258_vm12, %v78_v30 }
 0x266   :  { %14249 = vst [vmem:[#allocation73_spill] sm:$0xff] %v10829_v10  ;;  %v8082_v31 = vsel %vm8076_vm15, %v8081_v34, %v5719_v24  ;;  %vm10859_vm5 = vmand %vm10818_vm3, %vm2043_vm4  ;;  %v14254_v20 = vmov 0  ;;  %v10864_v21 = vadd.f32 -2.0, %v10811_v38  ;;  %v2253_v0 = vor.u32 %v2252_v17, %v2251_v18 }
 0x267   :  { %14250 = vst [vmem:[#allocation75_spill] sm:$0xff] %v10834_v22  ;;  %v14255_v20 = vsel %vm10859_vm5, 4294967295, %v14254_v20  ;;  %v2400_v44 = vclz %v2399_v63  ;;  %v10866_v8 = vsub.f32 %v5719_v24, %v8082_v31  ;;  %v2258_v52 = vand.u32 2147483647, %v10791_v2 }
 0x268   :  { %14256 = vst [vmem:[#allocation70_spill] sm:$0xff] %v14255_v20  ;;  %v5811_v9 = vmul.f32 %v10301_v55, %v10834_v22  ;;  %v5831_v13 = vmul.f32 %v10315_v19, %v10834_v22  ;;  %v2499_v40 = vand.u32 65535, %v10787_v32  ;;  %v2488_v18 = vsel %vm2480_vm8, %v10842_v12, %v10738_v39 }
 0x269   :  { %14257 = vst [vmem:[#allocation41_spill] sm:$0xff] %v10866_v8  ;;  %v2490_v24 = vsel %vm2482_vm10, %v10740_v48, %v2489_v35  ;;  %v2505_v17 = vshll.u32 %v10847_v33, 16  ;;  %v10886_v2 = vsel %vm10859_vm5, %v14237_v47, 1.0  ;;  %v8071_v58 = vand.u32 2147483647, %v8070_v26  ;;  %v5724_v47 = vpop.permute.xlu1 %5723 }
 0x26a   :  { %v8072_v63 = vand.u32 2147483648, %v10806_v29  ;;  %v5807_v5 = vmul.f32 %v10413_v25, %v10866_v8  ;;  %v5827_v34 = vmul.f32 %v10330_v28, %v10866_v8  ;;  %v2260_v57 = vcvt.s32.f32 %v2253_v0  ;;  %v14261_v0 = vld [vmem:[#allocation54_spill] sm:$0xff] }
 0x26b   :  { %v7654_v61 = vadd.s32 4294967294, %v2400_v44  ;;  %v8067_v31 = vand.u32 2147483647, %v10806_v29  ;;  %v2498_v35 = vshrl.u32 %v10789_v59, 16  ;;  %v2491_v26 = vsel %vm2481_vm0, %v2488_v18, %v2490_v24  ;;  %v14262_v44 = vld [vmem:[#allocation59_spill] sm:$0xff] }
 0x26c   :  { %v10895_v30 = vadd.f32 %v5811_v9, %v5807_v5  ;;  %v10897_v37 = vadd.f32 %v5831_v13, %v5827_v34  ;;  %v2501_v53 = vmul.u32 %v2499_v40, %v10809_v36  ;;  %v10904_v10 = vmul.f32 %v10811_v38, %v10811_v38  ;;  %v8322_v18 = vld [vmem:[%s13750_s0 + $0x1] ss:$0 sm:$0xff] }
 0x26d   :  { %vm2142_vm13 = vcmp.lt.s32.totalorder %v14261_v0, 0  ;;  %v10909_v7 = vmul.f32 %v14262_v44, %v14262_v44  ;;  %v10911_v9 = vmul.u32 %v2499_v40, %v2498_v35  ;;  %8257 = vrsqrt.f32 %v10886_v2 }
 0x26e   :  { %14259 = vst [vmem:[#allocation57_spill] sm:$0xff] %v10895_v30  ;;  %v2261_v13 = vmul.f32 %v2260_v57, %v2258_v52  ;;  %v8073_v5 = vor.u32 %v8072_v63, %v8071_v58  ;;  %v5738_v24 = vsub.f32 %v8322_v18, %v5724_v47  ;;  %vm2509_vm7 = vc.u32 %v2501_v53, %v2505_v17  ;;  %v10934_v58 = vld [vmem:[%s13750_s0 + $0x12] ss:$0 sm:$0xff] }
 0x26f   :  { %14260 = vst [vmem:[#allocation84_spill] sm:$0xff] %v10897_v37  ;;  %v10919_v34 = vadd.f32 %v10543_v3, %v10651_v14  ;;  %vm7655_vm9 = vcmp.lt.s32.totalorder %v7654_v61, 0  ;;  %vm10921_vm1 = vcmp.lt.f32.partialorder %v8067_v31, 8388608.0  ;;  %v2522_v40 = vshrl.u32 %v2491_v26, 16 }
 0x270   :  { %v14265_v49 = vand.u32 2147483647, %v14261_v0  ;;  %14268 = vst [vmem:[#allocation54_spill] sm:$0xff] %v10934_v58  ;;  %v10938_v3 = vmul.f32 %v10934_v58, %v10629_v23  ;;  %v10942_v14 = vadd.f32 %v10686_v6, %v10663_v42  ;;  %v8101_v63 = vcvt.f32.s32 %v5738_v24 }
 0x271   :  { %v2521_v57 = vand.u32 65535, %v2491_v26  ;;  %v2507_v47 = vshll.u32 %v10911_v9, 16  ;;  %v2510_v18 = vsel %vm2509_vm7, 1, %v14013_v16  ;;  %v2511_v20 = vadd.s32 %v2505_v17, %v2501_v53  ;;  %v14271_v17 = vld [vmem:[#allocation64_spill] sm:$0xff] }
 0x272   :  { %vm10927_vm3 = vcmp.le.f32.partialorder %v14265_v49, 0.7853982  ;;  %14269 = vst [vmem:[#allocation85_spill] sm:$0xff] %v10942_v14  ;;  %v14270_v49 = vshrl.u32 %v10787_v32, 16  ;;  %v2262_v15 = vxor.u32 2147483648, %v2261_v13  ;;  %v10948_v37 = vsel %vm7655_vm9, 0, %v7654_v61 }
 0x273   :  { %v8074_v23 = vsel %vm10921_vm1, %v8073_v5, %v10806_v29  ;;  %v8102_v30 = vcvt.s32.f32 %v8101_v63  ;;  %v10953_v42 = vpop.eup %8257  ;;  %v8099_v6 = vand.u32 2147483647, %v5738_v24  ;;  %vm2513_vm15 = vc.u32 %v2511_v20, %v2507_v47 }
 0x274   :  { %v2504_v31 = vmul.u32 %v14270_v49, %v2498_v35  ;;  %v2524_v32 = vmul.u32 %v2522_v40, %v10809_v36  ;;  %v8104_v58 = vand.u32 2147483648, %v5738_v24  ;;  %v2514_v8 = vsel %vm2513_vm15, 1, %v14013_v16 }
 0x275   :  { %v8103_v49 = vand.u32 2147483647, %v8102_v30  ;;  %v2525_v53 = vmul.u32 %v2521_v57, %v2498_v35  ;;  %v7643_v61 = vadd.f32 -1.2, %v14271_v17  ;;  %v2408_v1 = vsub.s32 4294967266, %v10948_v37 }
 0x276   :  { %v2512_v26 = vadd.s32 %v2510_v18, %v2504_v31  ;;  %v2523_v44 = vmul.u32 %v2521_v57, %v10809_v36  ;;  %v2527_v5 = vshll.u32 %v2524_v32, 16  ;;  %v2263_v63 = vsel %vm2142_vm13, %v2262_v15, %v2261_v13 }
 0x277   :  { %v10963_v31 = vsub.f32 %v10806_v29, %v8074_v23  ;;  %v8105_v20 = vor.u32 %v8104_v58, %v8103_v49  ;;  %v2083_v30 = vmul.f32 %v10953_v42, %v10886_v2  ;;  %vm8100_vm4 = vcmp.lt.f32.partialorder %v8099_v6, 8388608.0 }
 0x278   :  { %v2516_v47 = vadd.s32 %v2514_v8, %v2512_v26  ;;  %v2526_v18 = vmul.u32 %v2522_v40, %v2498_v35  ;;  %vm2531_vm12 = vc.u32 %v2523_v44, %v2527_v5  ;;  %v2529_v54 = vshll.u32 %v2525_v53, 16 }
 0x279   :  { %14272 = vst [vmem:[#allocation64_spill] sm:$0xff] %v10963_v31  ;;  %v8106_v17 = vsel %vm8100_vm4, %v8105_v20, %v5738_v24  ;;  %v2532_v22 = vsel %vm2531_vm12, 1, %v14013_v16  ;;  %v2533_v36 = vadd.s32 %v2527_v5, %v2523_v44  ;;  %v10971_v15 = vsel %vm10927_vm3, %v14261_v0, %v2263_v63 }
 0x27a   :  { %v2409_v29 = vadd.s32 127, %v2408_v1  ;;  %v10973_v13 = vsub.f32 %v5738_v24, %v8106_v17  ;;  %v2506_v58 = vshrl.u32 %v10847_v33, 16  ;;  %v5806_v8 = vmul.f32 %v10413_v25, %v10963_v31 }
 0x27b   :  { %v5826_v35 = vmul.f32 %v10330_v28, %v10963_v31  ;;  %v2534_v40 = vadd.s32 %v2532_v22, %v2526_v18  ;;  %vm2535_vm7 = vc.u32 %v2533_v36, %v2529_v54  ;;  %v2084_v1 = vmul.f32 %v10953_v42, %v2083_v30 }
 0x27c   :  { %14273 = vst [vmem:[#allocation86_spill] sm:$0xff] %v10973_v13  ;;  %v5810_v57 = vmul.f32 %v10301_v55, %v10973_v13  ;;  %v5830_v23 = vmul.f32 %v10315_v19, %v10973_v13  ;;  %v2517_v6 = vadd.s32 %v2516_v47, %v2506_v58  ;;  %v10987_v33 = vmul.f32 %v10971_v15, %v10971_v15 }
 0x27d   :  { %v2404_v25 = vsub.s32 32, %v10948_v37  ;;  %v2485_v28 = vsel %vm2483_vm14, %v10740_v48, 2102212464  ;;  %v2536_v22 = vsel %vm2535_vm7, 1, %v14013_v16  ;;  %v2464_v19 = vshrl.u32 %v14047_v46, %v10654_v60 }
 0x27e   :  { %v10994_v24 = vadd.f32 %v5810_v57, %v5806_v8  ;;  %v10996_v55 = vadd.f32 %v5830_v23, %v5826_v35  ;;  %v2508_v26 = vshrl.u32 %v10911_v9, 16  ;;  %v2388_v49 = vadd.s32 %v10605_v45, %v10585_v11 }
 0x27f   :  { %v2410_v44 = vshll.u32 %v2409_v29, 23  ;;  %v2528_v5 = vshrl.u32 %v2524_v32, 16  ;;  %v2538_v63 = vadd.s32 %v2536_v22, %v2534_v40  ;;  %v2484_v48 = vsel %vm2480_vm8, %v2464_v19, %v10842_v12 }
 0x280   :  { %14274 = vst [vmem:[#allocation87_spill] sm:$0xff] %v10994_v24  ;;  %v2486_v20 = vsel %vm2482_vm10, %v10738_v39, %v2485_v28  ;;  %v11009_v30 = vadd.s32 %v2517_v6, %v2508_v26  ;;  %v2085_v47 = vmul.f32 0.5, %v2084_v1  ;;  %v11013_v60 = vadd.f32 %v10938_v3, %v10919_v34  ;;  %v14279_v6 = vld [vmem:[#allocation42_spill] sm:$0xff] }
 0x281   :  { %v2406_v9 = vshrl.u32 %v2388_v49, %v2404_v25  ;;  %v2530_v11 = vshrl.u32 %v2525_v53, 16  ;;  %v2539_v45 = vadd.s32 %v2538_v63, %v2528_v5  ;;  %v2105_v32 = vmul.f32 -1.5, %v7643_v61 }
 0x282   :  { %14275 = vst [vmem:[#allocation88_spill] sm:$0xff] %v11013_v60  ;;  %v11015_v18 = vadd.s32 %v2533_v36, %v2529_v54  ;;  %v2086_v17 = vsub.f32 1.5, %v2085_v47  ;;  %vm2089_vm14 = vweird.f32 %v10953_v42  ;;  %v2405_v12 = vshll.u32 %v10777_v41, %v10948_v37 }
 0x283   :  { %v2411_v39 = vor.u32 4788187, %v2410_v44  ;;  %v2487_v29 = vsel %vm2481_vm0, %v2484_v48, %v2486_v20  ;;  %v2540_v58 = vadd.s32 %v2539_v45, %v2530_v11  ;;  %v2269_v34 = vmul.f32 -0.001358992, %v10987_v33  ;;  %v14282_v44 = vld [vmem:[#allocation40_spill] sm:$0xff]  ;;  %v14283_v48 = vld [vmem:[#allocation50_spill] sm:$0xff] }
 0x284   :  { %vm2543_vm8 = vc.u32 %v11009_v30, %v11015_v18  ;;  %v2087_v3 = vmul.f32 %v10953_v42, %v2086_v17  ;;  %vm2088_vm10 = vweird.f32 %v10886_v2  ;;  %v2276_v54 = vmul.f32 -0.00019511016, %v10987_v33  ;;  %v14284_v20 = vld [vmem:[#allocation62_spill] sm:$0xff] }
 0x285   :  { %v2407_v53 = vor.u32 %v2406_v9, %v2405_v12  ;;  %v11030_v41 = vsub.f32 %v10719_v62, %v10758_v27  ;;  %v2544_v37 = vadd.s32 1, %v2540_v58  ;;  %vm2090_vm9 = vmor %vm2088_vm10, %vm2089_vm14  ;;  %v4020_v61 = vmul.f32 %v14276_v4, %v14276_v4  ;;  %v141_v9 = vpop.f32.mrf.mxu0 }
 0x286   :  { %v4022_v36 = vmul.f32 %v10942_v14, %v10942_v14  ;;  %v2541_v8 = vmul.u32 %v10789_v59, %v2487_v29  ;;  %v11038_v35 = vsel %vm2090_vm9, %v10953_v42, %v2087_v3  ;;  %v2110_v40 = vmul.f32 1.442695, %v2105_v32 }
 0x287   :  { %14277 = vst [vmem:[#allocation89_spill] sm:$0xff] %v11038_v35  ;;  %v2412_v57 = vand.u32 2147483647, %v2411_v39  ;;  %v2545_v23 = vsel %vm2543_vm8, %v2544_v37, %v2540_v58  ;;  %v11042_v27 = vmul.f32 %v11038_v35, %v10886_v2  ;;  %v2264_v1 = vsub.s32 4, %v14279_v6  ;;  %v14297_v58 = vld [vmem:[#allocation66_spill] sm:$0xff] }
 0x288   :  { %v2270_v25 = vadd.f32 0.041655596, %v2269_v34  ;;  %v4018_v28 = vmul.f32 %v11013_v60, %v11013_v60  ;;  %v2546_v22 = vadd.s32 %v2545_v23, %v2541_v8  ;;  %v2277_v19 = vadd.f32 0.008332121, %v2276_v54 }
 0x289   :  { %14278 = vst [vmem:[#allocation90_spill] sm:$0xff] %v11042_v27  ;;  %v2414_v26 = vcvt.s32.f32 %v2407_v53  ;;  %v8141_v59 = vcvt.f32.s32 %v11030_v41  ;;  %v11049_v42 = vmul.f32 1.0471976, %v11042_v27  ;;  %v11053_v49 = vmul.f32 %v10852_v43, %v10667_v56  ;;  %v14326_v27 = vld [vmem:[#allocation83_spill] sm:$0xff] }
 0x28a   :  { %v2128_v2 = vsub.f32 %v10811_v38, %v10904_v10  ;;  %v4028_v5 = vmul.f32 %v14282_v44, %v14282_v44  ;;  %v2547_v63 = vadd.s32 536870912, %v2546_v22  ;;  %v1794_v47 = vmul.f32 %v14284_v20, %v14283_v48 }
 0x28b   :  { %14280 = vst [vmem:[#allocation42_spill] sm:$0xff] %v11049_v42  ;;  %v4024_v11 = vadd.f32 %v4020_v61, %v10909_v7  ;;  %8259 = vpow2.f32 %v2110_v40  ;;  %v2415_v45 = vmul.f32 %v2414_v26, %v2412_v57  ;;  %v11064_v32 = vmul.f32 %v10811_v38, %v10864_v21 }
 0x28c   :  { %14281 = vst [vmem:[#allocation91_spill] sm:$0xff] %v11053_v49  ;;  %v2271_v43 = vmul.f32 %v2270_v25, %v10987_v33  ;;  %v11067_v17 = vshrl.u32 %v2547_v63, 30  ;;  %v2605_v10 = vand.u32 2139095040, %v11049_v42  ;;  %v2265_v12 = vsel %vm2142_vm13, %v2264_v1, %v14279_v6 }
 0x28d   :  { %14285 = vst [vmem:[#allocation50_spill] sm:$0xff] %v11064_v32  ;;  %v2278_v39 = vmul.f32 %v2277_v19, %v10987_v33  ;;  %v4026_v29 = vadd.f32 %v4022_v36, %v4018_v28  ;;  %v8142_v7 = vcvt.s32.f32 %v8141_v59  ;;  %v11076_v34 = vsel %vm9734_vm6, %v141_v9, 0.0  ;;  %v14291_v19 = vld [vmem:[#allocation31_spill] sm:$0xff] }
 0x28e   :  { %14287 = vst [vmem:[#allocation62_spill] sm:$0xff] %v11076_v34  ;;  %v11078_v38 = vmul.f32 3.0, %v2128_v2  ;;  %v2549_v21 = vshll.u32 %v11067_v17, 30  ;;  %v2606_v3 = vshrl.u32 %v2605_v10, 23  ;;  %v11082_v54 = vmul.f32 %v1794_v47, %v10676_v50 }
 0x28f   :  { %v11084_v53 = vadd.f32 %v4028_v5, %v4024_v11  ;;  %v4030_v37 = vmul.f32 %v10694_v51, %v10694_v51  ;;  %v2416_v61 = vxor.u32 2147483648, %v2415_v45  ;;  %v2267_v36 = vsel %vm10927_vm3, 0, %v2265_v12 }
 0x290   :  { %14288 = vst [vmem:[#allocation10_spill] sm:$0xff] %v11078_v38  ;;  %v2272_v8 = vadd.f32 -0.4999988, %v2271_v43  ;;  %v2550_v40 = vsub.s32 %v2546_v22, %v2549_v21  ;;  %v7659_v57 = vadd.s32 4294967169, %v2606_v3  ;;  %v2279_v6 = vadd.f32 -0.16666654, %v2278_v39 }
 0x291   :  { %14289 = vst [vmem:[#allocation92_spill] sm:$0xff] %v11082_v54  ;;  %v11090_v23 = vpop.eup %8259  ;;  %v11092_v1 = vadd.f32 %v4030_v37, %v4026_v29  ;;  %v8143_v25 = vand.u32 2147483647, %v8142_v7  ;;  %v8144_v28 = vand.u32 2147483648, %v11030_v41  ;;  %vm2296_vm6 = vcmp.lt.s32.totalorder %v14291_v19, 0 }
 0x292   :  { %v8139_v26 = vand.u32 2147483647, %v11030_v41  ;;  %vm2551_vm0 = vcmp.lt.s32.totalorder %v2550_v40, 0  ;;  %v2552_v59 = vsub.s32 0, %v2550_v40  ;;  %v11097_v2 = vand.u32 3, %v2267_v36 }
 0x293   :  { %14290 = vst [vmem:[#allocation93_spill] sm:$0xff] %v11092_v1  ;;  %v2908_v52 = vadd.s32 3, %v2267_v36  ;;  %v2417_v22 = vsel %vm2296_vm6, %v2416_v61, %v2415_v45  ;;  %v2612_v5 = vadd.s32 1, %v7659_v57  ;;  %v2273_v63 = vmul.f32 %v2272_v8, %v10987_v33  ;;  %v8325_v36 = vld [vmem:[%s13750_s0 + $0xf] ss:$0 sm:$0xff]  ;;  %v14299_v8 = vld [vmem:[#allocation75_spill] sm:$0xff] }
 0x294   :  { %v7647_v48 = vadd.f32 -2.0, %v11090_v23  ;;  %v14292_v20 = vand.u32 2147483647, %v14291_v19  ;;  %v2553_v9 = vsel %vm2551_vm0, %v2552_v59, %v2550_v40  ;;  %v2280_v11 = vmul.f32 %v2279_v6, %v10987_v33  ;;  %v11125_v33 = vld [vmem:[%s13750_s0 + $0xc] ss:$0 sm:$0xff] }
 0x295   :  { %v8145_v43 = vor.u32 %v8144_v28, %v8143_v25  ;;  %v2554_v10 = vclz %v2553_v9  ;;  %vm2613_vm1 = vcmp.gt.s32.totalorder %v2612_v5, 0  ;;  %vm11115_vm3 = vcmp.lt.f32.partialorder %v8139_v26, 8388608.0 }
 0x296   :  { %vm11105_vm13 = vcmp.le.f32.partialorder %v14292_v20, 0.7853982  ;;  %v13900_v39 = vand.u32 2147483647, %v11049_v42  ;;  %v2614_v29 = vsel %vm2613_vm1, %v2612_v5, 0  ;;  %v11120_v7 = vand.u32 3, %v2908_v52  ;;  %v5744_v42 = vpop.permute.xlu1 %5743 }
 0x297   :  { %v11113_v45 = vsel %vm11105_vm13, %v14291_v19, %v2417_v22  ;;  %v11129_v21 = vmul.f32 %v11125_v33, %v14297_v58  ;;  %v11133_v3 = vmul.f32 %v11090_v23, %v11090_v23  ;;  %v7657_v37 = vadd.s32 4294967294, %v2554_v10 }
 0x298   :  { %v11135_v61 = vadd.f32 1.0, %v2273_v63  ;;  %v11141_v57 = vmul.f32 %v8325_v36, %v14299_v8  ;;  %v11144_v6 = vmul.f32 %v11090_v23, %v7647_v48  ;;  %v2616_v25 = vand.u32 31, %v2614_v29 }
 0x299   :  { %14298 = vst [vmem:[#allocation31_spill] sm:$0xff] %v11129_v21  ;;  %v2281_v28 = vadd.f32 1.0, %v2280_v11  ;;  %v11148_v26 = vmul.f32 %v11113_v45, %v11113_v45  ;;  %v8146_v59 = vsel %vm11115_vm3, %v8145_v43, %v11030_v41  ;;  %vm7658_vm15 = vcmp.lt.s32.totalorder %v7657_v37, 0 }
 0x29a   :  { %14300 = vst [vmem:[#allocation66_spill] sm:$0xff] %v11144_v6  ;;  %v2542_v52 = vadd.s32 %v11015_v18, %v11009_v30  ;;  %v2557_v22 = vsel %vm7658_vm15, 0, %v7657_v37  ;;  %v2609_v5 = vand.u32 8388607, %v13900_v39  ;;  %v11157_v63 = vsub.s32 32, %v2616_v25 }
 0x29b   :  { %v2558_v48 = vsub.s32 32, %v2557_v22  ;;  %v2562_v20 = vsub.s32 4294967266, %v2557_v22  ;;  %v11159_v9 = vshrl.u32 %v2614_v29, 5  ;;  %v2619_v11 = vshll.u32 %v14047_v46, %v2616_v25 }
 0x29c   :  { %v2559_v10 = vshll.u32 %v2550_v40, %v2557_v22  ;;  %v14301_v12 = vmov 2475754826   ;;  %v14302_v30 = vmov 2131351028   ;;  %v14303_v39 = vmov 2102212464  }
 0x29d   :  { %v2620_v43 = vshrl.u32 %v14301_v12, %v11157_v63  ;;  %v2622_v58 = vshll.u32 %v14301_v12, %v2616_v25  ;;  %v2623_v18 = vshrl.u32 %v14302_v30, %v11157_v63  ;;  %v2560_v37 = vshrl.u32 %v2542_v52, %v2558_v48 }
 0x29e   :  { %v2563_v36 = vadd.s32 127, %v2562_v20  ;;  %v2625_v8 = vshll.u32 %v14302_v30, %v2616_v25  ;;  %v2626_v44 = vshrl.u32 %v14303_v39, %v11157_v63  ;;  %v2628_v4 = vshll.u32 %v14303_v39, %v2616_v25  ;;  %v14316_v39 = vld [vmem:[#allocation57_spill] sm:$0xff] }
 0x29f   :  { %v11170_v29 = vor.u32 %v2623_v18, %v2622_v58  ;;  %v14304_v40 = vmov 920167782   ;;  %v2561_v14 = vor.u32 %v2560_v37, %v2559_v10  ;;  %v14305_v52 = vmov 1326507024  }
 0x2a0   :  { %v2629_v22 = vshrl.u32 %v14304_v40, %v11157_v63  ;;  %v2631_v51 = vshll.u32 %v14304_v40, %v2616_v25  ;;  %v2564_v60 = vshll.u32 %v2563_v36, 23  ;;  %v11176_v24 = vor.u32 %v2626_v44, %v2625_v8  ;;  %v14306_v36 = vld [vmem:[#allocation45_spill] sm:$0xff] }
 0x2a1   :  { %v2632_v48 = vshrl.u32 %v14305_v52, %v11157_v63  ;;  %v11181_v20 = vmul.f32 %v2281_v28, %v10971_v15  ;;  %v2430_v58 = vmul.f32 -0.00019511016, %v11148_v26  ;;  %v11184_v18 = vor.u32 %v2620_v43, %v2619_v11  ;;  %v14315_v52 = vld [vmem:[#allocation54_spill] sm:$0xff] }
 0x2a2   :  { %v2630_v31 = vor.u32 %v2629_v22, %v2628_v4  ;;  %vm2289_vm4 = vcmp.eq.s32.totalorder %v11097_v2, 2  ;;  %v2565_v13 = vor.u32 4788187, %v2564_v60  ;;  %v2610_v49 = vor.u32 8388608, %v2609_v5 }
 0x2a3   :  { %v2633_v25 = vor.u32 %v2632_v48, %v2631_v51  ;;  %vm2637_vm12 = vcmp.lt.s32.totalorder %v11159_v9, 4  ;;  %v2423_v44 = vmul.f32 -0.001358992, %v11148_v26  ;;  %v5783_v10 = vsub.f32 %v11030_v41, %v8146_v59 }
 0x2a4   :  { %vm2634_vm7 = vcmp.lt.s32.totalorder %v11159_v9, 1  ;;  %v2643_v15 = vsel %vm2637_vm12, %v2630_v31, 920167782  ;;  %v2566_v28 = vand.u32 2147483647, %v2565_v13  ;;  %v2568_v11 = vcvt.s32.f32 %v2561_v14 }
 0x2a5   :  { %vm2636_vm14 = vcmp.lt.s32.totalorder %v11159_v9, 3  ;;  %v2646_v51 = vsel %vm2634_vm7, %v11170_v29, %v11176_v24  ;;  %vm2914_vm8 = vcmp.eq.s32.totalorder %v11120_v7, 2  ;;  %v2431_v60 = vadd.f32 0.008332121, %v2430_v58 }
 0x2a6   :  { %v2642_v41 = vsel %vm2634_vm7, %v11184_v18, %v11170_v29  ;;  %v2644_v13 = vsel %vm2636_vm14, %v11176_v24, %v2643_v15  ;;  %v2647_v14 = vsel %vm2637_vm12, %v2633_v25, 1326507024  ;;  %v2569_v4 = vmul.f32 %v2568_v11, %v2566_v28  ;;  %v11231_v28 = vld [vmem:[%s13750_s0 + $0x14] ss:$0 sm:$0xff] }
 0x2a7   :  { %vm13928_vm10 = vcmp.lt.s32.totalorder %v11159_v9, 2  ;;  %v2648_v59 = vsel %vm2636_vm14, %v2630_v31, %v2647_v14  ;;  %v11211_v5 = vshll.u32 %v2610_v49, 8  ;;  %v2290_v37 = vxor.u32 2147483648, %v11135_v61  ;;  %v8326_v49 = vld [vmem:[%s13750_s0 + $0x13] ss:$0 sm:$0xff]  ;;  %v14308_v14 = vld [vmem:[#allocation38_spill] sm:$0xff] }
 0x2a8   :  { %v11216_v8 = vadd.f32 -1.2, %v14306_v36  ;;  %v2649_v22 = vsel %vm13928_vm10, %v2646_v51, %v2648_v59  ;;  %vm2286_vm9 = vcmp.eq.s32.totalorder %v11097_v2, 0  ;;  %v2424_v48 = vadd.f32 0.041655596, %v2423_v44  ;;  %v14307_v51 = vld [vmem:[#allocation41_spill] sm:$0xff] }
 0x2a9   :  { %v2570_v58 = vxor.u32 2147483648, %v2569_v4  ;;  %v11223_v25 = vsel %vm13928_vm10, %v2642_v41, %v2644_v13  ;;  %v2654_v31 = vshrl.u32 %v2649_v22, 16  ;;  %v5819_v15 = vmul.f32 %v8326_v49, %v5783_v10 }
 0x2aa   :  { %v5839_v11 = vmul.f32 %v11231_v28, %v5783_v10  ;;  %v5787_v44 = vmul.f32 %v11125_v33, %v14307_v51  ;;  %vm13927_vm0 = vcmp.lt.s32.totalorder %v14308_v14, 0  ;;  %v2432_v41 = vmul.f32 %v2431_v60, %v11148_v26  ;;  %v14313_v33 = vld [vmem:[#allocation53_spill] sm:$0xff] }
 0x2ab   :  { %v14309_v13 = vand.u32 2147483647, %v14308_v14  ;;  %v14310_v59 = vmov 0  ;;  %v2571_v36 = vsel %vm13927_vm0, %v2570_v58, %v2569_v4  ;;  %v2651_v49 = vand.u32 65535, %v11211_v5 }
 0x2ac   :  { %v11250_v43 = vsel %vm2289_vm4, %v2290_v37, %v11181_v20  ;;  %v2418_v51 = vsub.s32 4, %v14313_v33  ;;  %v2425_v54 = vmul.f32 %v2424_v48, %v11148_v26  ;;  %v2653_v58 = vand.u32 65535, %v2649_v22 }
 0x2ad   :  { %vm11240_vm1 = vcmp.le.f32.partialorder %v14309_v13, 0.7853982  ;;  %v2676_v13 = vshrl.u32 %v11223_v25, 16  ;;  %v11264_v34 = vmul.u32 %v2654_v31, %v2651_v49  ;;  %v5795_v35 = vadd.f32 %v11141_v57, %v5787_v44  ;;  %v14322_v44 = vld [vmem:[#allocation60_spill] sm:$0xff] }
 0x2ae   :  { %v14311_v59 = vsel %vm11240_vm1, 4294967295, %v14310_v59  ;;  %v11256_v60 = vsel %vm11240_vm1, %v14308_v14, %v2571_v36  ;;  %v5799_v40 = vmul.f32 %v14315_v52, %v5783_v10  ;;  %v11269_v30 = vadd.f32 %v5819_v15, %v14316_v39  ;;  %v14318_v36 = vld [vmem:[#allocation84_spill] sm:$0xff] }
 0x2af   :  { %14312 = vst [vmem:[#allocation75_spill] sm:$0xff] %v14311_v59  ;;  %v11262_v4 = vmul.f32 %v11256_v60, %v11256_v60  ;;  %v11272_v12 = vadd.f32 %v5839_v11, %v14318_v36  ;;  %v11277_v48 = vsel %vm2914_vm8, %v2290_v37, %v11181_v20  ;;  %v2433_v1 = vadd.f32 -0.16666654, %v2432_v41  ;;  %v14321_v11 = vld [vmem:[#allocation36_spill] sm:$0xff] }
 0x2b0   :  { %14314 = vst [vmem:[#allocation45_spill] sm:$0xff] %v11256_v60  ;;  %v2652_v22 = vshrl.u32 %v11211_v5, 16  ;;  %v2675_v21 = vand.u32 65535, %v11223_v25  ;;  %v11282_v10 = vadd.f32 %v5799_v40, %v5795_v35  ;;  %v5758_v39 = vsub.f32 %v10719_v62, %v5744_v42  ;;  %v14324_v37 = vld [vmem:[#allocation56_spill] sm:$0xff]  ;;  %v11300_v62 = vpop.permute.xlu0 %4037 }
 0x2b1   :  { %14317 = vst [vmem:[#allocation41_spill] sm:$0xff] %v11269_v30  ;;  %v2584_v57 = vmul.f32 -0.00019511016, %v11262_v4  ;;  %v11285_v15 = vmul.u32 %v2676_v13, %v2651_v49  ;;  %v1774_v36 = vmul.f32 %v14322_v44, %v14321_v11  ;;  %v2659_v52 = vshll.u32 %v11264_v34, 16 }
 0x2b2   :  { %14319 = vst [vmem:[#allocation38_spill] sm:$0xff] %v11272_v12  ;;  %v14323_v12 = vld [vmem:[#allocation55_spill] sm:$0xff]  ;;  %v11291_v41 = vmul.u32 %v2653_v58, %v2652_v22  ;;  %v14325_v25 = vxor.u32 2147483648, %v11181_v20  ;;  %vm2911_vm3 = vcmp.eq.s32.totalorder %v11120_v7, 0  ;;  %v2419_v42 = vsel %vm2296_vm6, %v2418_v51, %v14313_v33 }
 0x2b3   :  { %14320 = vst [vmem:[#allocation53_spill] sm:$0xff] %v11282_v10  ;;  %v1773_v30 = vmul.f32 %v14324_v37, %v14323_v12  ;;  %v2426_v40 = vadd.f32 -0.4999988, %v2425_v54  ;;  %v8133_v12 = vcvt.f32.s32 %v5758_v39  ;;  %vm2285_vm15 = vcmp.lt.s32.totalorder %v11097_v2, 2 }
 0x2b4   :  { %v2288_v35 = vsel %vm2286_vm9, %v11135_v61, %v14325_v25  ;;  %v2434_v11 = vmul.f32 %v2433_v1, %v11148_v26  ;;  %v1778_v44 = vmul.f32 %v1774_v36, %v10676_v50  ;;  %v2655_v37 = vmul.u32 %v2653_v58, %v2651_v49 }
 0x2b5   :  { %v11308_v10 = vmul.u32 %v2675_v21, %v2652_v22  ;;  %v2585_v25 = vadd.f32 0.008332121, %v2584_v57  ;;  %v8134_v6 = vcvt.s32.f32 %v8133_v12  ;;  %v2658_v38 = vmul.u32 %v2654_v31, %v2652_v22 }
 0x2b6   :  { %v2681_v32 = vshll.u32 %v11285_v15, 16  ;;  %vm4052_vm4 = vcmp.eq.f32.partialorder %v11300_v62, %v14326_v27  ;;  %vm4056_vm6 = vcmp.lt.f32.partialorder %v11084_v53, 9.0  ;;  %v8131_v54 = vand.u32 2147483647, %v5758_v39  ;;  %3468 = vmatpush.msrb.mxu2 %v1778_v44 }
 0x2b7   :  { %v1777_v33 = vmul.f32 %v1773_v30, %v10667_v56  ;;  %v2661_v1 = vshll.u32 %v11291_v41, 16  ;;  %vm2663_vm8 = vc.u32 %v2655_v37, %v2659_v52  ;;  %v8135_v50 = vand.u32 2147483647, %v8134_v6 }
 0x2b8   :  { %v8136_v51 = vand.u32 2147483648, %v5758_v39  ;;  %v2664_v58 = vsel %vm2663_vm8, 1, %v14013_v16  ;;  %v2665_v57 = vadd.s32 %v2659_v52, %v2655_v37  ;;  %v2660_v31 = vshrl.u32 %v11264_v34, 16 }
 0x2b9   :  { %3469 = vmatpush.msrb.mxu2 %v1777_v33  ;;  %v2666_v36 = vadd.s32 %v2664_v58, %v2658_v38  ;;  %v2677_v12 = vmul.u32 %v2675_v21, %v2651_v49  ;;  %v2680_v60 = vmul.u32 %v2676_v13, %v2652_v22  ;;  %vm2910_vm9 = vcmp.lt.s32.totalorder %v11120_v7, 2 }
 0x2ba   :  { %v2577_v44 = vmul.f32 -0.001358992, %v11262_v4  ;;  %v2586_v56 = vmul.f32 %v2585_v25, %v11262_v4  ;;  %v8137_v30 = vor.u32 %v8136_v51, %v8135_v50  ;;  %vm2667_vm0 = vc.u32 %v2665_v57, %v2661_v1 }
 0x2bb   :  { %vm8132_vm10 = vcmp.lt.f32.partialorder %v8131_v54, 8388608.0  ;;  %v2668_v6 = vsel %vm2667_vm0, 1, %v14013_v16  ;;  %v2683_v59 = vshll.u32 %v11308_v10, 16  ;;  %vm2685_vm8 = vc.u32 %v2677_v12, %v2681_v32 }
 0x2bc   :  { %v8138_v52 = vsel %vm8132_vm10, %v8137_v30, %v5758_v39  ;;  %v2670_v37 = vadd.s32 %v2668_v6, %v2666_v36  ;;  %v2686_v34 = vsel %vm2685_vm8, 1, %v14013_v16  ;;  %v2687_v38 = vadd.s32 %v2681_v32, %v2677_v12 }
 0x2bd   :  { %v14327_v21 = vxor.u32 2147483648, %v11181_v20  ;;  %v2435_v13 = vadd.f32 1.0, %v2434_v11  ;;  %v11329_v22 = vsub.f32 %v5758_v39, %v8138_v52  ;;  %v2688_v25 = vadd.s32 %v2686_v34, %v2680_v60 }
 0x2be   :  { %v2292_v54 = vsel %vm2285_vm15, %v2288_v35, %v11250_v43  ;;  %v2578_v33 = vadd.f32 0.041655596, %v2577_v44  ;;  %v2671_v1 = vadd.s32 %v2670_v37, %v2660_v31  ;;  %vm2689_vm10 = vc.u32 %v2687_v38, %v2683_v59 }
 0x2bf   :  { %v2913_v49 = vsel %vm2911_vm3, %v11135_v61, %v14327_v21  ;;  %14328 = vst [vmem:[#allocation57_spill] sm:$0xff] %v11329_v22  ;;  %vm2283_vm0 = vweird.f32 %v14261_v0  ;;  %v2421_v32 = vsel %vm11105_vm13, 0, %v2419_v42  ;;  %v2427_v20 = vmul.f32 %v2426_v40, %v11148_v26  ;;  %vm11359_vm13 = vmand %vm4052_vm4, %vm4056_vm6 }
 0x2c0   :  { %v2618_v61 = vshrl.u32 %v14047_v46, %v11157_v63  ;;  %v2639_v60 = vsel %vm2637_vm12, %v11176_v24, 2102212464  ;;  %v2587_v39 = vadd.f32 -0.16666654, %v2586_v56  ;;  %v5838_v2 = vmul.f32 %v11231_v28, %v11329_v22  ;;  %v14340_v24 = vld [vmem:[#allocation50_spill] sm:$0xff] }
 0x2c1   :  { %v2662_v43 = vshrl.u32 %v11291_v41, 16  ;;  %v2690_v35 = vsel %vm2689_vm10, 1, %v14013_v16  ;;  %v11348_v47 = vmul.f32 %v2435_v13, %v11113_v45  ;;  %v2682_v63 = vshrl.u32 %v11285_v15, 16 }
 0x2c2   :  { %v2638_v26 = vsel %vm2634_vm7, %v2618_v61, %v11184_v18  ;;  %v2692_v42 = vadd.s32 %v2690_v35, %v2688_v25  ;;  %v2579_v28 = vmul.f32 %v2578_v33, %v11262_v4  ;;  %v11365_v45 = vadd.f32 %v5838_v2, %v10996_v55 }
 0x2c3   :  { %v2640_v18 = vsel %vm2636_vm14, %v11170_v29, %v2639_v60  ;;  %v11370_v15 = vadd.s32 %v2671_v1, %v2662_v43  ;;  %v2917_v41 = vsel %vm2910_vm9, %v2913_v49, %v11277_v48  ;;  %v2438_v27 = vand.u32 3, %v2421_v32  ;;  %v14338_v49 = vld [vmem:[#allocation45_spill] sm:$0xff] }
 0x2c4   :  { %14331 = vst [vmem:[#allocation84_spill] sm:$0xff] %v11365_v45  ;;  %v2684_v62 = vshrl.u32 %v11308_v10, 16  ;;  %v2693_v40 = vadd.s32 %v2692_v42, %v2682_v63  ;;  %v2428_v11 = vadd.f32 1.0, %v2427_v20  ;;  %v2588_v50 = vmul.f32 %v2587_v39, %v11262_v4 }
 0x2c5   :  { %v11377_v51 = vadd.s32 %v2687_v38, %v2683_v59  ;;  %vm4064_vm12 = vcmp.gt.f32.partialorder %v11084_v53, 1e-16  ;;  %v3063_v55 = vadd.s32 3, %v2421_v32  ;;  %v2572_v29 = vsub.s32 4, %v11067_v17 }
 0x2c6   :  { %vm14332_vm7 = vcmp.lt.s32.totalorder %v11159_v9, 2  ;;  %v2694_v57 = vadd.s32 %v2693_v40, %v2684_v62  ;;  %vm11385_vm14 = vmand %vm11359_vm13, %vm4064_vm12  ;;  %v14333_v7 = vmov 0  ;;  %v2441_v48 = vxor.u32 2147483648, %v11348_v47 }
 0x2c7   :  { %v2641_v58 = vsel %vm14332_vm7, %v2638_v26, %v2640_v18  ;;  %v14334_v7 = vsel %vm11385_vm14, 4294967295, %v14333_v7  ;;  %v2580_v10 = vadd.f32 -0.4999988, %v2579_v28  ;;  %vm2697_vm3 = vc.u32 %v11370_v15, %v11377_v51 }
 0x2c8   :  { %14335 = vst [vmem:[#allocation36_spill] sm:$0xff] %v14334_v7  ;;  %v11395_v59 = vsel %vm11385_vm14, %v11084_v53, 1.0  ;;  %v2129_v9 = vsub.f32 %v11090_v23, %v11133_v3  ;;  %vm2437_vm15 = vweird.f32 %v14291_v19  ;;  %v2106_v31 = vmul.f32 -1.5, %v11216_v8 }
 0x2c9   :  { %v2698_v36 = vadd.s32 1, %v2694_v57  ;;  %8261 = vrsqrt.f32 %v11395_v59  ;;  %v2293_v12 = vsel %vm2283_vm0, nan, %v2292_v54  ;;  %v2444_v44 = vxor.u32 2147483648, %v2428_v11 }
 0x2ca   :  { %v2589_v56 = vadd.f32 1.0, %v2588_v50  ;;  %v2695_v30 = vmul.u32 %v11211_v5, %v2641_v58  ;;  %v2918_v53 = vsel %vm2283_vm0, nan, %v2917_v41  ;;  %vm2440_vm4 = vcmp.eq.s32.totalorder %v2438_v27, 0 }
 0x2cb   :  { %vm14336_vm6 = vcmp.lt.s32.totalorder %v14308_v14, 0  ;;  %v2699_v3 = vsel %vm2697_vm3, %v2698_v36, %v2694_v57  ;;  %v2442_v8 = vsel %vm2440_vm4, %v2428_v11, %v2441_v48  ;;  %v3064_v6 = vand.u32 3, %v3063_v55  ;;  %v14341_v36 = vld [vmem:[#allocation10_spill] sm:$0xff] }
 0x2cc   :  { %v2573_v23 = vsel %vm14336_vm6, %v2572_v29, %v11067_v17  ;;  %v2581_v52 = vmul.f32 %v2580_v10, %v11262_v4  ;;  %v2700_v37 = vadd.s32 %v2699_v3, %v2695_v30  ;;  %v2756_v34 = vadd.f32 1.0, %v2293_v12  ;;  %v14339_v4 = vld [vmem:[#allocation90_spill] sm:$0xff]  ;;  %v144_v3 = vpop.f32.mrf.mxu0 }
 0x2cd   :  { %vm2439_vm9 = vcmp.lt.s32.totalorder %v2438_v27, 2  ;;  %vm2443_vm8 = vcmp.eq.s32.totalorder %v2438_v27, 2  ;;  %v2112_v38 = vmul.f32 1.442695, %v2106_v31  ;;  %v2575_v0 = vsel %vm11240_vm1, 0, %v2573_v23 }
 0x2ce   :  { %v2445_v5 = vsel %vm2443_vm8, %v2444_v44, %v11348_v47  ;;  %v11415_v13 = vmul.f32 %v2589_v56, %v14338_v49  ;;  %v2701_v25 = vadd.s32 536870912, %v2700_v37  ;;  %v3384_v54 = vmul.f32 -0.5235988, %v2918_v53 }
 0x2cf   :  { %v8262_v17 = vpop.eup %8261  ;;  %v11417_v33 = vmul.f32 3.0, %v2129_v9  ;;  %v2446_v1 = vsel %vm2439_vm9, %v2442_v8, %v2445_v5  ;;  %v7645_v32 = vadd.f32 -1.2, %v14339_v4  ;;  %vm3066_vm10 = vcmp.eq.s32.totalorder %v3064_v6, 0 }
 0x2d0   :  { %v2582_v20 = vadd.f32 1.0, %v2581_v52  ;;  %v11420_v61 = vshrl.u32 %v2701_v25, 30  ;;  %v4077_v60 = vmul.f32 %v8262_v17, %v11395_v59  ;;  %v11423_v39 = vmul.f32 0.5, %v2756_v34 }
 0x2d1   :  { %v3068_v2 = vsel %vm3066_vm10, %v2428_v11, %v2441_v48  ;;  %8263 = vpow2.f32 %v2112_v38  ;;  %v2592_v43 = vand.u32 3, %v2575_v0  ;;  %v2447_v35 = vsel %vm2437_vm15, nan, %v2446_v1 }
 0x2d2   :  { %v2595_v26 = vxor.u32 2147483648, %v11415_v13  ;;  %v3218_v63 = vadd.s32 3, %v2575_v0  ;;  %v2703_v42 = vshll.u32 %v11420_v61, 30  ;;  %v11430_v28 = vmul.f32 %v3384_v54, %v14340_v24  ;;  %v14343_v0 = vld [vmem:[#allocation76_spill] sm:$0xff] }
 0x2d3   :  { %vm3069_vm1 = vcmp.eq.s32.totalorder %v3064_v6, 2  ;;  %v2107_v18 = vmul.f32 -1.5, %v7645_v32  ;;  %v4078_v41 = vmul.f32 %v8262_v17, %v4077_v60  ;;  %vm3065_vm0 = vcmp.lt.s32.totalorder %v3064_v6, 2 }
 0x2d4   :  { %v3071_v27 = vsel %vm3069_vm1, %v2444_v44, %v11348_v47  ;;  %v2598_v62 = vxor.u32 2147483648, %v2582_v20  ;;  %v11433_v40 = vsub.s32 %v2700_v37, %v2703_v42  ;;  %v2757_v11 = vadd.f32 1.0, %v2447_v35 }
 0x2d5   :  { %v3072_v50 = vsel %vm3065_vm0, %v3068_v2, %v3071_v27  ;;  %vm2594_vm13 = vcmp.eq.s32.totalorder %v2592_v43, 0  ;;  %v4079_v55 = vmul.f32 0.5, %v4078_v41  ;;  %v3219_v58 = vand.u32 3, %v3218_v63 }
 0x2d6   :  { %v2596_v29 = vsel %vm2594_vm13, %v2582_v20, %v2595_v26  ;;  %vm2705_vm12 = vcmp.lt.s32.totalorder %v11433_v40, 0  ;;  %v2706_v57 = vsub.s32 0, %v11433_v40  ;;  %vm2593_vm7 = vcmp.lt.s32.totalorder %v2592_v43, 2 }
 0x2d7   :  { %v8264_v48 = vpop.eup %8263  ;;  %vm2597_vm3 = vcmp.eq.s32.totalorder %v2592_v43, 2  ;;  %v2114_v10 = vmul.f32 1.442695, %v2107_v18  ;;  %v4080_v9 = vsub.f32 1.5, %v4079_v55  ;;  %vm4082_vm4 = vweird.f32 %v11395_v59  ;;  %v14346_v18 = vld [vmem:[#allocation66_spill] sm:$0xff]  ;;  %v14360_v43 = vld [vmem:[#allocation63_spill] sm:$0xff] }
 0x2d8   :  { %v2599_v47 = vsel %vm2597_vm3, %v2598_v62, %v11415_v13  ;;  %v2707_v31 = vsel %vm2705_vm12, %v2706_v57, %v11433_v40  ;;  %vm4083_vm6 = vweird.f32 %v8262_v17  ;;  %v3396_v12 = vmul.f32 %v11423_v39, %v14341_v36 }
 0x2d9   :  { %v2600_v44 = vsel %vm2593_vm7, %v2596_v29, %v2599_v47  ;;  %v2708_v56 = vclz %v2707_v31  ;;  %v4081_v30 = vmul.f32 %v8262_v17, %v4080_v9  ;;  %v7648_v53 = vadd.f32 -2.0, %v8264_v48  ;;  %vm4084_vm10 = vmor %vm4082_vm4, %vm4083_vm6  ;;  %v14347_v31 = vld [vmem:[#allocation31_spill] sm:$0xff] }
 0x2da   :  { %v2126_v23 = vmul.f32 %v8264_v48, %v8264_v48  ;;  %vm2591_vm9 = vweird.f32 %v14308_v14  ;;  %vm3221_vm8 = vcmp.eq.s32.totalorder %v3219_v58, 0  ;;  %v11443_v8 = vmul.f32 0.5, %v2757_v11  ;;  %v14348_v14 = vld [vmem:[#allocation37_spill] sm:$0xff] }
 0x2db   :  { %v3073_v6 = vsel %vm2437_vm15, nan, %v3072_v50  ;;  %v3223_v52 = vsel %vm3221_vm8, %v2582_v20, %v2595_v26  ;;  %v7660_v37 = vadd.s32 4294967294, %v2708_v56  ;;  %v2601_v34 = vsel %vm2591_vm9, nan, %v2600_v44  ;;  %v14344_v20 = vld [vmem:[#allocation30_spill] sm:$0xff]  ;;  %v14350_v56 = vld [vmem:[#allocation79_spill] sm:$0xff] }
 0x2dc   :  { %vm3224_vm1 = vcmp.eq.s32.totalorder %v3219_v58, 2  ;;  %8265 = vpow2.f32 %v2114_v10  ;;  %v11451_v38 = vsel %vm4084_vm10, %v8262_v17, %v4081_v30  ;;  %vm3220_vm0 = vcmp.lt.s32.totalorder %v3219_v58, 2  ;;  %v14349_v44 = vld [vmem:[#allocation42_spill] sm:$0xff] }
 0x2dd   :  { %14342 = vst [vmem:[#allocation60_spill] sm:$0xff] %v11451_v38  ;;  %v3226_v5 = vsel %vm3224_vm1, %v2598_v62, %v11415_v13  ;;  %vm7661_vm13 = vcmp.lt.s32.totalorder %v7660_v37, 0  ;;  %v11456_v19 = vmul.f32 %v11451_v38, %v11395_v59  ;;  %v3385_v21 = vmul.f32 -0.5235988, %v3073_v6  ;;  %v147_v62 = vpop.f32.mrf.mxu0  ;;  %v14351_v30 = vld [vmem:[#allocation54_spill] sm:$0xff] }
 0x2de   :  { %v4017_v49 = vmul.f32 %v14343_v0, %v14343_v0  ;;  %v3227_v25 = vsel %vm3220_vm0, %v3223_v52, %v3226_v5  ;;  %v2711_v54 = vsel %vm7661_vm13, 0, %v7660_v37  ;;  %v2758_v1 = vadd.f32 1.0, %v2601_v34  ;;  %v14352_v52 = vld [vmem:[#allocation68_spill] sm:$0xff]  ;;  %v14353_v37 = vld [vmem:[#allocation81_spill] sm:$0xff] }
 0x2df   :  { %v2696_v4 = vadd.s32 %v11377_v51, %v11370_v15  ;;  %v2712_v17 = vsub.s32 32, %v2711_v54  ;;  %v2716_v32 = vsub.s32 4294967266, %v2711_v54  ;;  %v3397_v13 = vmul.f32 %v11443_v8, %v11417_v33 }
 0x2e0   :  { %v4021_v60 = vmul.f32 %v14344_v20, %v14344_v20  ;;  %v2130_v59 = vsub.f32 %v8264_v48, %v2126_v23  ;;  %v11467_v2 = vmul.f32 1.0471976, %v11456_v19  ;;  %v11471_v35 = vsel %vm9895_vm11, %v144_v3, 0.0 }
 0x2e1   :  { %v2713_v26 = vshll.u32 %v11433_v40, %v2711_v54  ;;  %v2714_v63 = vshrl.u32 %v2696_v4, %v2712_v17  ;;  %v2717_v15 = vadd.s32 127, %v2716_v32  ;;  %v3404_v42 = vadd.f32 %v11430_v28, %v3396_v12  ;;  %v14356_v17 = vld [vmem:[#allocation69_spill] sm:$0xff]  ;;  %v14357_v32 = vld [vmem:[#allocation82_spill] sm:$0xff] }
 0x2e2   :  { %v8266_v51 = vpop.eup %8265  ;;  %v3401_v33 = vmul.f32 %v3385_v21, %v14346_v18  ;;  %v3228_v41 = vsel %vm2591_vm9, nan, %v3227_v25  ;;  %v4167_v27 = vand.u32 2139095040, %v11467_v2  ;;  %v11479_v11 = vmul.f32 %v8264_v48, %v7648_v53 }
 0x2e3   :  { %v11481_v50 = vmul.f32 0.5, %v2758_v1  ;;  %v2715_v55 = vor.u32 %v2714_v63, %v2713_v26  ;;  %v2718_v29 = vshll.u32 %v2717_v15, 23  ;;  %v4025_v58 = vadd.f32 %v4021_v60, %v4017_v49  ;;  %v14359_v60 = vld [vmem:[#allocation52_spill] sm:$0xff] }
 0x2e4   :  { %v3405_v40 = vadd.f32 %v3401_v33, %v3397_v13  ;;  %v2134_v57 = vmul.f32 3.0, %v2130_v59  ;;  %v4168_v10 = vshrl.u32 %v4167_v27, 23  ;;  %v3386_v9 = vmul.f32 -0.5235988, %v3228_v41 }
 0x2e5   :  { %v2719_v28 = vor.u32 4788187, %v2718_v29  ;;  %v2726_v47 = vsub.s32 4, %v11420_v61  ;;  %v5796_v36 = vadd.f32 %v14348_v14, %v14347_v31  ;;  %v2127_v12 = vmul.f32 %v8266_v51, %v8266_v51  ;;  %v150_v33 = vpop.f32.mrf.mxu0  ;;  %v14366_v31 = vld [vmem:[#allocation7_spill] sm:$0xff] }
 0x2e6   :  { %vm2604_vm11 = vcmp.lt.s32.totalorder %v14349_v44, 0  ;;  %v7702_v48 = vadd.s32 4294967169, %v4168_v10  ;;  %v5800_v53 = vmul.f32 %v14351_v30, %v14350_v56  ;;  %v3398_v23 = vmul.f32 %v11481_v50, %v2134_v57 }
 0x2e7   :  { %v2720_v3 = vand.u32 2147483647, %v2719_v28  ;;  %v2722_v6 = vcvt.s32.f32 %v2715_v55  ;;  %v11492_v34 = vadd.f32 %v14353_v37, %v14352_v52  ;;  %v7649_v5 = vadd.f32 -2.0, %v8266_v51  ;;  %v14364_v28 = vld [vmem:[#allocation49_spill] sm:$0xff]  ;;  %v74_v37 = vpop.permute.xlu1 %73 }
 0x2e8   :  { %v13930_v21 = vand.u32 2147483647, %v11467_v2  ;;  %v4174_v49 = vadd.s32 1, %v7702_v48  ;;  %v11495_v25 = vadd.f32 %v5800_v53, %v5796_v36  ;;  %v3402_v54 = vmul.f32 %v3386_v9, %v11479_v11  ;;  %v11525_v9 = vld [vmem:[%s13750_s0 + $0x3] ss:$0 sm:$0xff] }
 0x2e9   :  { %14354 = vst [vmem:[#allocation55_spill] sm:$0xff] %v11492_v34  ;;  %v2723_v1 = vmul.f32 %v2722_v6, %v2720_v3  ;;  %v2727_v4 = vsel %vm2604_vm11, %v2726_v47, %v11420_v61  ;;  %v11503_v13 = vadd.f32 %v14357_v32, %v14356_v17  ;;  %v11506_v59 = vmul.f32 %v3404_v42, %v14359_v60  ;;  %v14365_v47 = vld [vmem:[#allocation93_spill] sm:$0xff] }
 0x2ea   :  { %14355 = vst [vmem:[#allocation56_spill] sm:$0xff] %v11495_v25  ;;  %v4029_v26 = vmul.f32 %v14360_v43, %v14360_v43  ;;  %v2131_v63 = vsub.f32 %v8266_v51, %v2127_v12  ;;  %vm4175_vm15 = vcmp.gt.s32.totalorder %v4174_v49, 0  ;;  %v3406_v15 = vadd.f32 %v3402_v54, %v3398_v23 }
 0x2eb   :  { %14358 = vst [vmem:[#allocation83_spill] sm:$0xff] %v11503_v13  ;;  %v14361_v41 = vand.u32 2147483647, %v14349_v44  ;;  %v2724_v61 = vxor.u32 2147483648, %v2723_v1  ;;  %v4176_v55 = vsel %vm4175_vm15, %v4174_v49, 0  ;;  %vm4054_vm7 = vcmp.eq.f32.partialorder %v14364_v28, %v11525_v9 }
 0x2ec   :  { %v11516_v29 = vadd.f32 %v4029_v26, %v4025_v58  ;;  %v4171_v57 = vand.u32 8388607, %v13930_v21  ;;  %v4178_v10 = vand.u32 31, %v4176_v55  ;;  %vm4058_vm3 = vcmp.lt.f32.partialorder %v14365_v47, 9.0 }
 0x2ed   :  { %vm11512_vm12 = vcmp.le.f32.partialorder %v14361_v41, 0.7853982  ;;  %v11531_v58 = vmul.f32 %v3405_v40, %v14366_v31  ;;  %v11535_v36 = vsel %vm10289_vm2, %v147_v62, 0.0  ;;  %v11537_v12 = vmul.f32 %v8266_v51, %v7649_v5  ;;  %v14369_v62 = vld [vmem:[#allocation35_spill] sm:$0xff]  ;;  %vm11604_vm8 = vmand %vm4054_vm7, %vm4058_vm3 }
 0x2ee   :  { %v2729_v42 = vsel %vm11512_vm12, 0, %v2727_v4  ;;  %v2725_v48 = vsel %vm2604_vm11, %v2724_v61, %v2723_v1  ;;  %v11543_v30 = vsel %vm10859_vm5, %v150_v33, 0.0  ;;  %v11545_v53 = vmul.f32 3.0, %v2131_v63 }
 0x2ef   :  { %v11550_v40 = vsel %vm11512_vm12, %v14349_v44, %v2725_v48  ;;  %v11552_v23 = vsub.s32 32, %v4178_v10  ;;  %v11555_v3 = vmul.f32 %v3406_v15, %v14369_v62  ;;  %v11559_v6 = vand.u32 3, %v2729_v42 }
 0x2f0   :  { %v2730_v51 = vmul.f32 %v11550_v40, %v11550_v40  ;;  %v3373_v52 = vadd.s32 3, %v2729_v42  ;;  %v4172_v5 = vor.u32 8388608, %v4171_v57  ;;  %v4181_v49 = vshll.u32 %v14047_v46, %v4178_v10 }
 0x2f1   :  { %v14370_v54 = vmov 2475754826   ;;  %vm14371_vm2 = vcmask 64512   ;;  %v14372_v60 = vmov 2131351028   ;;  %v11570_v33 = vshrl.u32 %v4176_v55, 5 }
 0x2f2   :  { %v4182_v1 = vshrl.u32 %v14370_v54, %v11552_v23  ;;  %v4184_v4 = vshll.u32 %v14370_v54, %v4178_v10  ;;  %v2731_v17 = vmul.f32 -0.001358992, %v2730_v51  ;;  %v2738_v32 = vmul.f32 -0.00019511016, %v2730_v51  ;;  %7607 = vmatmul.msk.f32.gmra.mxu0 %vm14371_vm2, %v74_v37  ;;  %v14434_v54 = vld [vmem:[#allocation13_spill] sm:$0xff] }
 0x2f3   :  { %v4185_v26 = vshrl.u32 %v14372_v60, %v11552_v23  ;;  %v14373_v63 = vmov 2102212464   ;;  %v4187_v41 = vshll.u32 %v14372_v60, %v4178_v10  ;;  %v14374_v61 = vmov 920167782  }
 0x2f4   :  { %v4188_v15 = vshrl.u32 %v14373_v63, %v11552_v23  ;;  %v4190_v27 = vshll.u32 %v14373_v63, %v4178_v10  ;;  %v4191_v42 = vshrl.u32 %v14374_v61, %v11552_v23  ;;  %v2732_v57 = vadd.f32 0.041655596, %v2731_v17 }
 0x2f5   :  { %v2739_v31 = vadd.f32 0.008332121, %v2738_v32  ;;  %v11576_v14 = vor.u32 %v4182_v1, %v4181_v49  ;;  %v11578_v48 = vor.u32 %v4185_v26, %v4184_v4  ;;  %v4193_v37 = vshll.u32 %v14374_v61, %v4178_v10 }
 0x2f6   :  { %v11580_v56 = vor.u32 %v4188_v15, %v4187_v41  ;;  %v4192_v62 = vor.u32 %v4191_v42, %v4190_v27  ;;  %v14375_v55 = vmov 1326507024   ;;  %v2733_v43 = vmul.f32 %v2732_v57, %v2730_v51 }
 0x2f7   :  { %v4194_v21 = vshrl.u32 %v14375_v55, %v11552_v23  ;;  %v2740_v20 = vmul.f32 %v2739_v31, %v2730_v51  ;;  %v3374_v13 = vand.u32 3, %v3373_v52  ;;  %v11587_v25 = vmul.f32 %v11481_v50, %v11479_v11 }
 0x2f8   :  { %vm4196_vm5 = vcmp.lt.s32.totalorder %v11570_v33, 1  ;;  %v11590_v49 = vshll.u32 %v4172_v5, 8  ;;  %vm4066_vm4 = vcmp.gt.f32.partialorder %v14365_v47, 1e-16  ;;  %v2734_v1 = vadd.f32 -0.4999988, %v2733_v43 }
 0x2f9   :  { %v4195_v17 = vor.u32 %v4194_v21, %v4193_v37  ;;  %v2741_v4 = vadd.f32 -0.16666654, %v2740_v20  ;;  %vm2751_vm6 = vcmp.eq.s32.totalorder %v11559_v6, 2  ;;  %vm4199_vm9 = vcmp.lt.s32.totalorder %v11570_v33, 4  ;;  %vm11636_vm12 = vmand %vm11604_vm8, %vm4066_vm4 }
 0x2fa   :  { %v4204_v10 = vsel %vm4196_vm5, %v11576_v14, %v11578_v48  ;;  %vm2748_vm10 = vcmp.eq.s32.totalorder %v11559_v6, 0  ;;  %vm4198_vm1 = vcmp.lt.s32.totalorder %v11570_v33, 3  ;;  %v4205_v20 = vsel %vm4199_vm9, %v4192_v62, 920167782 }
 0x2fb   :  { %v4208_v50 = vsel %vm4196_vm5, %v11578_v48, %v11580_v56  ;;  %v4209_v21 = vsel %vm4199_vm9, %v4195_v17, 1326507024  ;;  %v2735_v43 = vmul.f32 %v2734_v1, %v2730_v51  ;;  %v2742_v28 = vmul.f32 %v2741_v4, %v2730_v51 }
 0x2fc   :  { %vm2747_vm0 = vcmp.lt.s32.totalorder %v11559_v6, 2  ;;  %vm3375_vm13 = vcmp.lt.s32.totalorder %v3374_v13, 2  ;;  %vm4197_vm11 = vcmp.lt.s32.totalorder %v11570_v33, 2  ;;  %v4206_v52 = vsel %vm4198_vm1, %v11580_v56, %v4205_v20 }
 0x2fd   :  { %vm2745_vm15 = vweird.f32 %v14349_v44  ;;  %v7694_v5 = vadd.f32 -1.2, %v11456_v19  ;;  %v4207_v32 = vsel %vm4197_vm11, %v4204_v10, %v4206_v52  ;;  %v4210_v26 = vsel %vm4198_vm1, %v4192_v62, %v4209_v21 }
 0x2fe   :  { %v4213_v51 = vand.u32 65535, %v11590_v49  ;;  %v2736_v15 = vadd.f32 1.0, %v2735_v43  ;;  %v2743_v41 = vadd.f32 1.0, %v2742_v28  ;;  %v4211_v27 = vsel %vm4197_vm11, %v4208_v50, %v4210_v26 }
 0x2ff   :  { %v4237_v42 = vand.u32 65535, %v4207_v32  ;;  %v14378_v19 = vmov 0  ;;  %v4214_v57 = vshrl.u32 %v11590_v49, 16  ;;  %v4215_v31 = vand.u32 65535, %v4211_v27 }
 0x300   :  { %v14379_v19 = vsel %vm11636_vm12, 4294967295, %v14378_v19  ;;  %v4216_v62 = vshrl.u32 %v4211_v27, 16  ;;  %v4238_v37 = vshrl.u32 %v4207_v32, 16  ;;  %v2744_v17 = vmul.f32 %v2743_v41, %v11550_v40 }
 0x301   :  { %14380 = vst [vmem:[#allocation75_spill] sm:$0xff] %v14379_v19  ;;  %v2752_v1 = vxor.u32 2147483648, %v2736_v15  ;;  %vm3376_vm7 = vcmp.eq.s32.totalorder %v3374_v13, 0  ;;  %vm3379_vm3 = vcmp.eq.s32.totalorder %v3374_v13, 2  ;;  %v4128_v4 = vmul.f32 -1.5, %v7694_v5 }
 0x302   :  { %v4218_v10 = vmul.u32 %v4216_v62, %v4213_v51  ;;  %v4219_v20 = vmul.u32 %v4215_v31, %v4214_v57  ;;  %v11645_v11 = vsel %vm11636_vm12, %v14365_v47, 1.0  ;;  %v2749_v50 = vxor.u32 2147483648, %v2744_v17 }
 0x303   :  { %v4217_v21 = vmul.u32 %v4215_v31, %v4213_v51  ;;  %v4239_v43 = vmul.u32 %v4237_v42, %v4213_v51  ;;  %v4240_v28 = vmul.u32 %v4238_v37, %v4213_v51  ;;  %v2753_v52 = vsel %vm2751_vm6, %v2752_v1, %v2744_v17 }
 0x304   :  { %v3381_v32 = vsel %vm3379_vm3, %v2752_v1, %v2744_v17  ;;  %v4220_v40 = vmul.u32 %v4216_v62, %v4214_v57  ;;  %v4221_v26 = vshll.u32 %v4218_v10, 16  ;;  %v2750_v5 = vsel %vm2748_vm10, %v2736_v15, %v2749_v50 }
 0x305   :  { %v3378_v41 = vsel %vm3376_vm7, %v2736_v15, %v2749_v50  ;;  %v4223_v27 = vshll.u32 %v4219_v20, 16  ;;  %v4243_v34 = vshll.u32 %v4240_v28, 16  ;;  %v2754_v47 = vsel %vm2747_vm0, %v2750_v5, %v2753_v52 }
 0x306   :  { %v3382_v0 = vsel %vm3375_vm13, %v3378_v41, %v3381_v32  ;;  %vm4225_vm2 = vc.u32 %v4217_v21, %v4221_v26  ;;  %v4227_v31 = vadd.s32 %v4221_v26, %v4217_v21  ;;  %v2755_v51 = vsel %vm2745_vm15, nan, %v2754_v47 }
 0x307   :  { %v3383_v62 = vsel %vm2745_vm15, nan, %v3382_v0  ;;  %v4226_v17 = vsel %vm4225_vm2, 1, %v14013_v16  ;;  %v4241_v1 = vmul.u32 %v4237_v42, %v4214_v57  ;;  %v2759_v19 = vadd.f32 1.0, %v2755_v51 }
 0x308   :  { %v3387_v15 = vmul.f32 -0.5235988, %v3383_v62  ;;  %v4228_v50 = vadd.s32 %v4226_v17, %v4220_v40  ;;  %vm4229_vm4 = vc.u32 %v4227_v31, %v4223_v27  ;;  %v4132_v45 = vmul.f32 1.442695, %v4128_v4  ;;  %v14381_v31 = vld [vmem:[#allocation89_spill] sm:$0xff]  ;;  %v14383_v17 = vld [vmem:[#allocation44_spill] sm:$0xff] }
 0x309   :  { %v4230_v6 = vsel %vm4229_vm4, 1, %v14013_v16  ;;  %v4242_v13 = vmul.u32 %v4238_v37, %v4214_v57  ;;  %vm4247_vm6 = vc.u32 %v4239_v43, %v4243_v34  ;;  %v2763_v52 = vmul.f32 0.5, %v2759_v19 }
 0x30a   :  { %v4222_v21 = vshrl.u32 %v4218_v10, 16  ;;  %v4232_v32 = vadd.s32 %v4230_v6, %v4228_v50  ;;  %v4248_v26 = vsel %vm4247_vm6, 1, %v14013_v16  ;;  %v4245_v5 = vshll.u32 %v4241_v1, 16  ;;  %v14386_v6 = vld [vmem:[#allocation62_spill] sm:$0xff] }
 0x30b   :  { %v4249_v44 = vadd.s32 %v4243_v34, %v4239_v43  ;;  %v4250_v0 = vadd.s32 %v4248_v26, %v4242_v13  ;;  %8267 = vrsqrt.f32 %v11645_v11  ;;  %v3399_v42 = vmul.f32 %v2763_v52, %v11545_v53  ;;  %v14390_v26 = vld [vmem:[#allocation39_spill] sm:$0xff] }
 0x30c   :  { %v3403_v40 = vmul.f32 %v3387_v15, %v11537_v12  ;;  %v3391_v4 = vmul.f32 %v2763_v52, %v11537_v12  ;;  %v4233_v41 = vadd.s32 %v4232_v32, %v4222_v21  ;;  %v4180_v57 = vshrl.u32 %v14047_v46, %v11552_v23  ;;  %v14387_v52 = vld [vmem:[#allocation28_spill] sm:$0xff] }
 0x30d   :  { %v4201_v19 = vsel %vm4199_vm9, %v11580_v56, 2102212464  ;;  %vm4251_vm8 = vc.u32 %v4249_v44, %v4245_v5  ;;  %v3389_v34 = vmul.f32 %v11443_v8, %v14346_v18  ;;  %v4224_v53 = vshrl.u32 %v4219_v20, 16  ;;  %v14389_v21 = vld [vmem:[#allocation92_spill] sm:$0xff] }
 0x30e   :  { %v3407_v37 = vadd.f32 %v3403_v40, %v3399_v42  ;;  %v3395_v10 = vmul.f32 %v3391_v4, %v11543_v30  ;;  %v4252_v43 = vsel %vm4251_vm8, 1, %v14013_v16  ;;  %v3394_v12 = vmul.f32 %v11587_v25, %v11535_v36  ;;  %v14393_v42 = vld [vmem:[#allocation8_spill] sm:$0xff]  ;;  %v14429_v16 = vld [vmem:[#allocation9_spill] sm:$0xff] }
 0x30f   :  { %v4244_v27 = vshrl.u32 %v4240_v28, 16  ;;  %v4254_v47 = vadd.s32 %v4252_v43, %v4250_v0  ;;  %v3388_v23 = vmul.f32 %v11423_v39, %v14340_v24  ;;  %v4200_v8 = vsel %vm4196_vm5, %v4180_v57, %v11576_v14  ;;  %v14395_v57 = vld [vmem:[#allocation23_spill] sm:$0xff]  ;;  %v14400_v43 = vld [vmem:[#allocation78_spill] sm:$0xff] }
 0x310   :  { %v3411_v56 = vmul.f32 %v3407_v37, %v14381_v31  ;;  %3445 = vmatpush.msra.mxu1 %v3395_v10  ;;  %v4202_v18 = vsel %vm4198_vm1, %v11578_v48, %v4201_v19  ;;  %v11685_v20 = vadd.s32 %v4233_v41, %v4224_v53  ;;  %v11691_v25 = vmul.f32 %v11555_v3, %v11535_v36  ;;  %v14382_v48 = vld [vmem:[#allocation43_spill] sm:$0xff]  ;;  %v14385_v3 = vld [vmem:[#allocation5_spill] sm:$0xff] }
 0x311   :  { %v11687_v51 = vpop.eup %8267  ;;  %8269 = vpow2.f32 %v4132_v45  ;;  %v4246_v39 = vshrl.u32 %v4241_v1, 16  ;;  %v4255_v24 = vadd.s32 %v4254_v47, %v4244_v27  ;;  %v11696_v14 = vadd.s32 %v4249_v44, %v4245_v5  ;;  %v14384_v36 = vld [vmem:[#allocation71_spill] sm:$0xff]  ;;  %v14403_v27 = vld [vmem:[#allocation16_spill] sm:$0xff] }
 0x312   :  { %v11694_v28 = vmul.f32 %v3411_v56, %v11543_v30  ;;  %3446 = vmatpush.msra.mxu1 %v3394_v12  ;;  %v3393_v62 = vmul.f32 %v3389_v34, %v11471_v35  ;;  %v1771_v15 = vmul.f32 %v14383_v17, %v14382_v48  ;;  %v11703_v50 = vmul.f32 %v11531_v58, %v11471_v35  ;;  %v14388_v58 = vld [vmem:[#allocation33_spill] sm:$0xff]  ;;  %v14396_v19 = vld [vmem:[#allocation51_spill] sm:$0xff]  ;;  %v14401_v12 = vld [vmem:[#allocation74_spill] sm:$0xff] }
 0x313   :  { %vm4053_vm5 = vcmp.eq.f32.partialorder %v14384_v36, %v11525_v9  ;;  %v4203_v45 = vsel %vm4197_vm11, %v4200_v8, %v4202_v18  ;;  %v4256_v30 = vadd.s32 %v4255_v24, %v4246_v39  ;;  %vm4259_vm9 = vc.u32 %v11685_v20, %v11696_v14  ;;  %v14398_v37 = vld [vmem:[#allocation91_spill] sm:$0xff]  ;;  %v14407_v56 = vld [vmem:[#allocation25_spill] sm:$0xff]  ;;  %v14408_v8 = vld [vmem:[#allocation46_spill] sm:$0xff]  ;;  %v11780_v36 = vpop.permute.xlu1 %5875 }
 0x314   :  { %v11711_v1 = vmul.f32 %v11694_v28, %v14385_v3  ;;  %3447 = vmatpush.msra.mxu1 %v3393_v62  ;;  %v3392_v13 = vmul.f32 %v3388_v23, %v14386_v6  ;;  %v1775_v35 = vmul.f32 %v1771_v15, %v14387_v52  ;;  %v11719_v32 = vmul.f32 %v14389_v21, %v14388_v58  ;;  %v14409_v39 = vld [vmem:[#allocation80_spill] sm:$0xff]  ;;  %v14410_v62 = vld [vmem:[#allocation11_spill] sm:$0xff] }
 0x315   :  { %v4019_v33 = vmul.f32 %v14390_v26, %v14390_v26  ;;  %vm4057_vm10 = vcmp.lt.f32.partialorder %v11516_v29, 9.0  ;;  %v4260_v5 = vadd.s32 1, %v4256_v30  ;;  %v11726_v44 = vmul.f32 %v11506_v59, %v14386_v6  ;;  %v14397_v59 = vld [vmem:[#allocation21_spill] sm:$0xff]  ;;  %14411 = vst [vmem:[#allocation18_spill] sm:$0xff] %v11780_v36  ;;  %v14420_v36 = vld [vmem:[#allocation32_spill] sm:$0xff] }
 0x316   :  { %vm11728_vm1 = vmand %vm4053_vm5, %vm4057_vm10  ;;  %v11734_v40 = vmul.f32 %v11691_v25, %v14393_v42  ;;  %3488 = vmatpush.msra.mxu3 %v11711_v1  ;;  %v4257_v4 = vmul.u32 %v11590_v49, %v4203_v45  ;;  %3448 = vmatpush.msra.mxu1 %v3392_v13  ;;  %v11742_v34 = vmul.f32 %v14396_v19, %v14395_v57  ;;  %vm4065_vm0 = vcmp.gt.f32.partialorder %v11516_v29, 1e-16  ;;  %v14412_v45 = vld [vmem:[#allocation47_spill] sm:$0xff]  ;;  %v14414_v13 = vld [vmem:[#allocation34_spill] sm:$0xff] }
 0x317   :  { %v11738_v41 = vpop.eup %8269  ;;  %v11746_v10 = vmul.f32 %v14398_v37, %v14397_v59  ;;  %v4261_v53 = vsel %vm4259_vm9, %v4260_v5, %v4256_v30  ;;  %v11754_v49 = vadd.f32 %v14401_v12, %v14400_v43  ;;  %v11758_v47 = vmul.f32 %v11703_v50, %v14403_v27  ;;  %vm11765_vm13 = vmand %vm11728_vm1, %vm4065_vm0  ;;  %v14413_v30 = vld [vmem:[#allocation48_spill] sm:$0xff]  ;;  %v14417_v43 = vld [vmem:[#allocation29_spill] sm:$0xff] }
 0x318   :  { %14394 = vst [vmem:[#allocation45_spill] sm:$0xff] %v11738_v41  ;;  %3508 = vmatpush.msrb.mxu1 %v11719_v32  ;;  %v4262_v23 = vadd.s32 %v4261_v53, %v4257_v4  ;;  %3489 = vmatpush.msra.mxu3 %v11734_v40  ;;  %v14404_v31 = vmov 0  ;;  %v11771_v18 = vmul.f32 %v14408_v8, %v14407_v56  ;;  %v7698_v15 = vadd.f32 -2.0, %v11738_v41 }
 0x319   :  { %14399 = vst [vmem:[#allocation90_spill] sm:$0xff] %v11746_v10  ;;  %v14405_v31 = vsel %vm11765_vm13, 4294967295, %v14404_v31  ;;  %v4027_v24 = vadd.f32 %v14409_v39, %v4019_v33  ;;  %v11776_v48 = vmul.f32 %v11726_v44, %v14410_v62  ;;  %v1772_v6 = vmul.f32 %v14413_v30, %v14412_v45  ;;  %v14418_v39 = vld [vmem:[#allocation20_spill] sm:$0xff] }
 0x31a   :  { %14402 = vst [vmem:[#allocation50_spill] sm:$0xff] %v11754_v49  ;;  %3509 = vmatpush.msrb.mxu1 %v11746_v10  ;;  %v4263_v17 = vadd.s32 536870912, %v4262_v23  ;;  %3490 = vmatpush.msra.mxu3 %v11758_v47  ;;  %v11786_v52 = vmul.f32 %v14389_v21, %v14414_v13  ;;  %v4097_v33 = vmul.f32 %v11687_v51, %v11645_v11  ;;  %v11803_v53 = vsel %vm11765_vm13, %v11516_v29, 1.0 }
 0x31b   :  { %14406 = vst [vmem:[#allocation10_spill] sm:$0xff] %v14405_v31  ;;  %v4031_v5 = vmul.f32 %v11754_v49, %v11754_v49  ;;  %v11795_v0 = vmul.f32 %v11738_v41, %v11738_v41  ;;  %v1776_v12 = vmul.f32 %v1772_v6, %v14417_v43  ;;  %v11809_v45 = vmul.f32 %v14398_v37, %v14418_v39  ;;  %v14422_v43 = vld [vmem:[#allocation4_spill] sm:$0xff]  ;;  %v76_v55 = vpop.permute.xlu1 %75 }
 0x31c   :  { %14415 = vst [vmem:[#allocation66_spill] sm:$0xff] %v11786_v52  ;;  %3510 = vmatpush.msrb.mxu1 %v11742_v34  ;;  %v11797_v4 = vshrl.u32 %v4263_v17, 30  ;;  %3491 = vmatpush.msra.mxu3 %v11776_v48  ;;  %v11817_v49 = vmul.f32 %v14389_v21, %v14420_v36  ;;  %v11820_v29 = vmul.f32 %v11738_v41, %v7698_v15  ;;  %8271 = vrsqrt.f32 %v11803_v53  ;;  %v14423_v21 = vld [vmem:[#allocation6_spill] sm:$0xff]  ;;  %v14427_v31 = vld [vmem:[#allocation12_spill] sm:$0xff] }
 0x31d   :  { %14416 = vst [vmem:[#allocation31_spill] sm:$0xff] %v11795_v0  ;;  %v11812_v30 = vadd.f32 %v4031_v5, %v4027_v24  ;;  %3470 = vmatpush.msrb.mxu2 %v1776_v12  ;;  %v4098_v6 = vmul.f32 %v11687_v51, %v4097_v33  ;;  %v11827_v24 = vmul.f32 %v11694_v28, %v14422_v43  ;;  %v14425_v12 = vld [vmem:[#allocation17_spill] sm:$0xff]  ;;  %v14430_v5 = vld [vmem:[#allocation19_spill] sm:$0xff]  ;;  %vm3429_vm15 = vcmask 261120  }
 0x31e   :  { %3548 = vmatpush.msrb.mxu3 %v11786_v52  ;;  %14419 = vst [vmem:[#allocation37_spill] sm:$0xff] %v11809_v45  ;;  %3511 = vmatpush.msrb.mxu1 %v11771_v18  ;;  %v4265_v17 = vshll.u32 %v11797_v4, 30  ;;  %v11835_v15 = vmul.f32 %v11691_v25, %v14423_v21  ;;  %v11839_v22 = vmul.f32 %v11703_v50, %v14425_v12  ;;  %vm14433_vm7 = vcmask 64512  }
 0x31f   :  { %14421 = vst [vmem:[#allocation42_spill] sm:$0xff] %v11820_v29  ;;  %3471 = vmatpush.msrb.mxu2 %v1775_v35  ;;  %v11843_v33 = vmul.f32 %v11726_v44, %v14427_v31  ;;  %v3426_v38 = vmul.f32 %v11691_v25, %v14429_v16  ;;  %v1809_v29 = vmul.f32 %v14398_v37, %v14430_v5  ;;  %v11861_v25 = vld [vmem:[%s13751_s2 + $0x8] sm:$0xff]  ;;  %v11878_v37 = vld [vmem:[%s13751_s2] sm:$0xff]  ;;  %vm4103_vm2 = vweird.f32 %v11687_v51 }
 0x320   :  { %3549 = vmatpush.msrb.mxu3 %v11809_v45  ;;  %v11831_v26 = vsub.s32 %v4262_v23, %v4265_v17  ;;  %14424 = vst [vmem:[#allocation79_spill] sm:$0xff] %v11835_v15  ;;  %v3598_v23 = vmul.f32 %v11734_v40, %v14393_v42  ;;  %v11851_v17 = vadd.s32 %v11696_v14, %v11685_v20  ;;  %v14431_v42 = vld [vmem:[#allocation22_spill] sm:$0xff]  ;;  %v14432_v14 = vld [vmem:[#allocation15_spill] sm:$0xff]  ;;  %vm4166_vm4 = vcmp.lt.s32.totalorder %v11467_v2, 0 }
 0x321   :  { %14426 = vst [vmem:[#allocation54_spill] sm:$0xff] %v11839_v22  ;;  %3528 = vmatpush.msra.mxu2 %v11827_v24  ;;  %v11865_v20 = vmul.f32 %v14396_v19, %v14431_v42  ;;  %v3425_v61 = vmul.f32 %v11703_v50, %v14432_v14  ;;  %v3597_v63 = vmul.f32 %v11758_v47, %v14403_v27  ;;  %vm4102_vm6 = vweird.f32 %v11645_v11 }
 0x322   :  { %14428 = vst [vmem:[#allocation68_spill] sm:$0xff] %v11843_v33  ;;  %vm4267_vm11 = vcmp.lt.s32.totalorder %v11831_v26, 0  ;;  %v4268_v35 = vsub.s32 0, %v11831_v26  ;;  %7608 = vmatmul.msk.f32.gmra.mxu0 %vm14433_vm7, %v76_v55  ;;  %7674 = vmatmul.msk.f32.vlgmr.msra.gmra.mxu1 %vm3429_vm15, %v11861_v25  ;;  %v11882_v46 = vmul.f32 %v11726_v44, %v14434_v54  ;;  %v11886_v50 = vmul.f32 %v11776_v48, %v14410_v62  ;;  %v11888_v27 = vpop.eup %8271  ;;  %vm4104_vm8 = vmor %vm4102_vm6, %vm4103_vm2 }
 0x323   :  { %3529 = vmatpush.msra.mxu2 %v11835_v15  ;;  %7676 = vmatmul.msk.f32.vlgmr.msra.gmra.mxu3 %vm3429_vm15, %v11861_v25  ;;  %v11897_v0 = vmul.f32 %v11746_v10, %v14397_v59  ;;  %v11901_v44 = vmul.f32 %v11809_v45, %v14418_v39  ;;  %v1815_v62 = vmul.f32 %v11719_v32, %v14388_v58  ;;  %vm4093_vm5 = vweird.f32 %v11888_v27 }
 0x324   :  { %v4269_v60 = vsel %vm4267_vm11, %v4268_v35, %v11831_v26  ;;  %v14435_v35 = vld [vmem:[#allocation3_spill] sm:$0xff]  ;;  %7675 = vmatmul.msk.f32.vlgmr.msrb.gmra.mxu2 %vm3429_vm15, %v11878_v37  ;;  %3550 = vmatpush.msrb.mxu3 %v11865_v20  ;;  %v11914_v59 = vmul.f32 %v11835_v15, %v14423_v21  ;;  %v3599_v45 = vmul.f32 %v11711_v1, %v14385_v3  ;;  %v4099_v15 = vmul.f32 0.5, %v4098_v6 }
 0x325   :  { %v3427_v55 = vmul.f32 %v11694_v28, %v14435_v35  ;;  %v4270_v7 = vclz %v4269_v60  ;;  %v14436_v28 = vld [vmem:[#allocation26_spill] sm:$0xff]  ;;  %3530 = vmatpush.msra.mxu2 %v11839_v22  ;;  %v1819_v10 = vmul.f32 %v11786_v52, %v14414_v13  ;;  %v11928_v58 = vmul.f32 %v11843_v33, %v14427_v31 }
 0x326   :  { %v11908_v60 = vmul.f32 %v14408_v8, %v14436_v28  ;;  %v11923_v28 = vmul.f32 %v11839_v22, %v14425_v12  ;;  %v4087_v3 = vmul.f32 %v11888_v27, %v11803_v53  ;;  %v11938_v22 = vmul.f32 %v3426_v38, %v14429_v16 }
 0x327   :  { %v7703_v41 = vadd.s32 4294967294, %v4270_v7  ;;  %3568 = vmatpush.msra.mxu1 %v3427_v55  ;;  %14438 = vst [vmem:[#allocation69_spill] sm:$0xff] %v11928_v58  ;;  %v11932_v7 = vmul.f32 %v11817_v49, %v14420_v36  ;;  %3531 = vmatpush.msra.mxu2 %v11843_v33  ;;  %v11942_v52 = vmul.f32 %v11734_v40, %v14423_v21  ;;  %vm4092_vm10 = vweird.f32 %v11803_v53 }
 0x328   :  { %14437 = vst [vmem:[#allocation81_spill] sm:$0xff] %v11908_v60  ;;  %3551 = vmatpush.msrb.mxu3 %v11908_v60  ;;  %v11945_v58 = vmul.f32 %v1809_v29, %v14430_v5  ;;  %v4088_v6 = vmul.f32 %v11888_v27, %v4087_v3  ;;  %v3643_v21 = vmul.f32 %v11827_v24, %v14422_v43  ;;  %vm4059_vm1 = vcmp.lt.f32.partialorder %v11812_v30, 9.0  ;;  %vm4094_vm0 = vmor %vm4092_vm10, %vm4093_vm5 }
 0x329   :  { %14439 = vst [vmem:[#allocation82_spill] sm:$0xff] %v11932_v7  ;;  %vm7704_vm3 = vcmp.lt.s32.totalorder %v7703_v41, 0  ;;  %3588 = vmatpush.msrb.mxu2 %v11817_v49  ;;  %3569 = vmatpush.msra.mxu1 %v3426_v38  ;;  %v4100_v7 = vsub.f32 1.5, %v4099_v15  ;;  %v11959_v38 = vmul.f32 %v3427_v55, %v14435_v35  ;;  %v14444_v55 = vld [vmem:[#allocation24_spill] sm:$0xff]  ;;  %vm4067_vm7 = vcmp.gt.f32.partialorder %v11812_v30, 1e-16 }
 0x32a   :  { %3612 = vmatpush.msra.mxu3 %v3599_v45  ;;  %14440 = vst [vmem:[#allocation52_spill] sm:$0xff] %v11942_v52  ;;  %v4273_v60 = vsel %vm7704_vm3, 0, %v7703_v41  ;;  %v11954_v52 = vmul.f32 %v3425_v61, %v14432_v14  ;;  %7677 = vmatmul.msk.f32.vlgmr.msrb.gmra.mxu1 %vm3429_vm15, %v11878_v37  ;;  %v4089_v41 = vmul.f32 0.5, %v4088_v6 }
 0x32b   :  { %v4274_v45 = vsub.s32 32, %v4273_v60  ;;  %v4278_v33 = vsub.s32 4294967266, %v4273_v60  ;;  %3589 = vmatpush.msrb.mxu2 %v1809_v29  ;;  %v4101_v49 = vmul.f32 %v11687_v51, %v4100_v7  ;;  %v4275_v15 = vshll.u32 %v11831_v26, %v4273_v60  ;;  %3570 = vmatpush.msra.mxu1 %v3425_v61  ;;  %v14443_v61 = vld [vmem:[#allocation61_spill] sm:$0xff] }
 0x32c   :  { %3613 = vmatpush.msra.mxu3 %v3598_v23  ;;  %14441 = vst [vmem:[#allocation49_spill] sm:$0xff] %v11954_v52  ;;  %v14442_v52 = vld [vmem:[#allocation27_spill] sm:$0xff]  ;;  %7678 = vmatmul.msk.f32.vlgmr.msra.gmra.mxu2 %vm3429_vm15, %v11861_v25  ;;  %v11977_v26 = vmul.f32 %v11711_v1, %v14422_v43  ;;  %vm4055_vm9 = vcmp.eq.f32.partialorder %v14443_v61, %v11525_v9  ;;  %v4288_v7 = vsub.s32 4, %v11797_v4  ;;  %v14460_v61 = vld [vmem:[#allocation66_spill] sm:$0xff] }
 0x32d   :  { %v4276_v23 = vshrl.u32 %v11851_v17, %v4274_v45  ;;  %v4279_v3 = vadd.s32 127, %v4278_v33  ;;  %v11967_v29 = vmul.f32 %v14396_v19, %v14442_v52  ;;  %7679 = vmatmul.msk.f32.vlgmr.msrb.gmra.mxu3 %vm3429_vm15, %v11878_v37  ;;  %v4090_v33 = vsub.f32 1.5, %v4089_v41  ;;  %3571 = vmatpush.msra.mxu1 %v11882_v46  ;;  %v14461_v45 = vld [vmem:[#allocation79_spill] sm:$0xff] }
 0x32e   :  { %3614 = vmatpush.msra.mxu3 %v3597_v63  ;;  %v11981_v63 = vsel %vm4104_vm8, %v11687_v51, %v4101_v49  ;;  %v1807_v60 = vmul.f32 %v14408_v8, %v14444_v55  ;;  %v11997_v51 = vmul.f32 %v11758_v47, %v14425_v12 }
 0x32f   :  { %v4277_v19 = vor.u32 %v4276_v23, %v4275_v15  ;;  %v4280_v17 = vshll.u32 %v4279_v3, 23  ;;  %3590 = vmatpush.msrb.mxu2 %v11967_v29  ;;  %v11991_v43 = vmul.f32 %v11981_v63, %v11645_v11  ;;  %3632 = vmatpush.msrb.mxu1 %v1815_v62  ;;  %v4091_v6 = vmul.f32 %v11888_v27, %v4090_v33  ;;  %v153_v23 = vpop.f32.mrf.mxu0  ;;  %v14450_v3 = vld [vmem:[#allocation31_spill] sm:$0xff] }
 0x330   :  { %3615 = vmatpush.msra.mxu3 %v11886_v50  ;;  %v12004_v11 = vmul.f32 %v11882_v46, %v14434_v54  ;;  %v12008_v50 = vmul.f32 %v11776_v48, %v14427_v31  ;;  %v14445_v62 = vand.u32 2147483647, %v11467_v2  ;;  %v1813_v46 = vmul.f32 %v11742_v34, %v14395_v57 }
 0x331   :  { %v4281_v8 = vor.u32 4788187, %v4280_v17  ;;  %3591 = vmatpush.msrb.mxu2 %v1807_v60  ;;  %v12013_v12 = vmul.f32 1.0471976, %v11991_v43  ;;  %3633 = vmatpush.msrb.mxu1 %v11897_v0  ;;  %v12029_v31 = vsel %vm4094_vm0, %v11888_v27, %v4091_v6  ;;  %v4284_v49 = vcvt.s32.f32 %v4277_v19  ;;  %v14452_v17 = vld [vmem:[#allocation26_spill] sm:$0xff]  ;;  %v14459_v9 = vld [vmem:[#allocation52_spill] sm:$0xff] }
 0x332   :  { %3676 = vmatpush.msrb.mxu3 %v1819_v10  ;;  %vm12017_vm11 = vcmp.le.f32.partialorder %v14445_v62, 0.7853982  ;;  %v12026_v10 = vmul.f32 %v11719_v32, %v14414_v13  ;;  %v1817_v15 = vmul.f32 %v11865_v20, %v14431_v42  ;;  %v12036_v0 = vmul.f32 %v12029_v31, %v11803_v53  ;;  %7680 = vmatmul.msk.f32.vlgmr.msra.gmra.mxu1 %vm3429_vm15, %v11861_v25  ;;  %v14448_v53 = vld [vmem:[#allocation90_spill] sm:$0xff] }
 0x333   :  { %3656 = vmatpush.msra.mxu2 %v3643_v21  ;;  %v4282_v41 = vand.u32 2147483647, %v4281_v8  ;;  %v4289_v57 = vsel %vm4166_vm4, %v4288_v7, %v11797_v4  ;;  %3634 = vmatpush.msrb.mxu1 %v1813_v46  ;;  %v12044_v13 = vmul.f32 %v11719_v32, %v14420_v36  ;;  %v12048_v27 = vmul.f32 %v11711_v1, %v14435_v35  ;;  %v14449_v1 = vld [vmem:[#allocation45_spill] sm:$0xff] }
 0x334   :  { %3677 = vmatpush.msrb.mxu3 %v11901_v44  ;;  %v4475_v44 = vand.u32 2139095040, %v12013_v12  ;;  %v1812_v4 = vmul.f32 %v11771_v18, %v14407_v56  ;;  %v12060_v32 = vmul.f32 1.0471976, %v12036_v0  ;;  %v14451_v33 = vsub.f32 %v14449_v1, %v14450_v3  ;;  %v14453_v56 = vld [vmem:[#allocation81_spill] sm:$0xff]  ;;  %7681 = vmatmul.msk.f32.vlgmr.msrb.gmra.mxu2 %vm3429_vm15, %v11878_v37 }
 0x335   :  { %3657 = vmatpush.msra.mxu2 %v11914_v59  ;;  %v4285_v21 = vmul.f32 %v4284_v49, %v4282_v41  ;;  %v12057_v59 = vmul.f32 %v14448_v53, %v14418_v39  ;;  %7682 = vmatmul.msk.f32.vlgmr.msra.gmra.mxu3 %vm3429_vm15, %v11861_v25  ;;  %v1816_v7 = vmul.f32 %v14453_v56, %v14452_v17  ;;  %v4291_v62 = vsel %vm12017_vm11, 0, %v4289_v57  ;;  %v14454_v46 = vld [vmem:[#allocation69_spill] sm:$0xff] }
 0x336   :  { %3678 = vmatpush.msrb.mxu3 %v1817_v15  ;;  %v12065_v19 = vmul.f32 3.0, %v14451_v33  ;;  %v12073_v39 = vmul.f32 %v1807_v60, %v14444_v55  ;;  %v12077_v6 = vmul.f32 %v14448_v53, %v14430_v5  ;;  %3635 = vmatpush.msrb.mxu1 %v1812_v4  ;;  %v12089_v60 = vmul.f32 %v11758_v47, %v14432_v14 }
 0x337   :  { %3658 = vmatpush.msra.mxu2 %v11923_v28  ;;  %v4286_v8 = vxor.u32 2147483648, %v4285_v21  ;;  %v12085_v28 = vmul.f32 %v11734_v40, %v14429_v16  ;;  %v12094_v41 = vmul.f32 %v11771_v18, %v14452_v17  ;;  %v12098_v49 = vmul.f32 %v11771_v18, %v14444_v55 }
 0x338   :  { %3679 = vmatpush.msrb.mxu3 %v1816_v7  ;;  %v4321_v15 = vand.u32 2139095040, %v12060_v32  ;;  %v4476_v57 = vshrl.u32 %v4475_v44, 23  ;;  %v12103_v4 = vsel %vm11385_vm14, %v153_v23, 0.0  ;;  %3700 = vmatpush.msra.mxu1 %v11959_v38  ;;  %v12111_v53 = vmul.f32 %v11776_v48, %v14434_v54  ;;  %vm12122_vm14 = vmand %vm4055_vm9, %vm4059_vm1  ;;  %v14467_v44 = vld [vmem:[#allocation68_spill] sm:$0xff] }
 0x339   :  { %3659 = vmatpush.msra.mxu2 %v14454_v46  ;;  %v4287_v47 = vsel %vm4166_vm4, %v4286_v8, %v4285_v21  ;;  %v12115_v18 = vmul.f32 %v11827_v24, %v14435_v35  ;;  %v4932_v48 = vadd.s32 3, %v4291_v62  ;;  %v4318_v24 = vand.u32 2147483647, %v12060_v32  ;;  %v14462_v8 = vld [vmem:[#allocation49_spill] sm:$0xff]  ;;  %vm12166_vm3 = vmand %vm12122_vm14, %vm4067_vm7 }
 0x33a   :  { %3744 = vmatpush.msra.mxu3 %v11977_v26  ;;  %v12129_v38 = vsel %vm12017_vm11, %v11467_v2, %v4287_v47  ;;  %v14458_v26 = vld [vmem:[#allocation82_spill] sm:$0xff]  ;;  %v4322_v35 = vshrl.u32 %v4321_v15, 23  ;;  %3701 = vmatpush.msra.mxu1 %v11938_v22  ;;  %v12141_v23 = vmul.f32 %v14460_v61, %v14420_v36  ;;  %v12145_v1 = vmul.f32 %v14461_v45, %v14429_v16  ;;  %v14463_v16 = vld [vmem:[#allocation37_spill] sm:$0xff] }
 0x33b   :  { %3720 = vmatpush.msrb.mxu2 %v14458_v26  ;;  %v12135_v21 = vmul.f32 %v12129_v38, %v12129_v38  ;;  %v4472_v3 = vand.u32 2147483647, %v12013_v12  ;;  %v1821_v33 = vmul.f32 %v11967_v29, %v14442_v52  ;;  %v7708_v7 = vadd.s32 4294967169, %v4476_v57  ;;  %7683 = vmatmul.msk.f32.vlgmr.msrb.gmra.mxu1 %vm3429_vm15, %v11878_v37 }
 0x33c   :  { %3745 = vmatpush.msra.mxu3 %v14459_v9  ;;  %v7705_v17 = vadd.s32 4294967169, %v4322_v35  ;;  %3702 = vmatpush.msra.mxu1 %v14462_v8  ;;  %v12158_v46 = vmul.f32 %v14463_v16, %v14430_v5  ;;  %v12170_v57 = vand.u32 3, %v4291_v62  ;;  %v12172_v40 = vand.u32 3, %v4932_v48 }
 0x33d   :  { %3721 = vmatpush.msrb.mxu2 %v11945_v58  ;;  %v4293_v22 = vmul.f32 -0.001358992, %v12135_v21  ;;  %v4300_v36 = vmul.f32 -0.00019511016, %v12135_v21  ;;  %v14464_v58 = vld [vmem:[#allocation54_spill] sm:$0xff]  ;;  %v12182_v62 = vmul.f32 %v14467_v44, %v14434_v54  ;;  %7685 = vmatmul.msk.f32.vlgmr.msrb.gmra.mxu3 %vm3429_vm15, %v11878_v37  ;;  %v1825_v26 = vmul.f32 %v11742_v34, %v14431_v42 }
 0x33e   :  { %3746 = vmatpush.msra.mxu3 %v11997_v51  ;;  %v12162_v15 = vmul.f32 %v14464_v58, %v14432_v14  ;;  %v4325_v5 = vand.u32 8388607, %v4318_v24  ;;  %v4328_v51 = vadd.s32 1, %v7705_v17  ;;  %3703 = vmatpush.msra.mxu1 %v12004_v11  ;;  %v12186_v48 = vand.u32 8388607, %v4472_v3 }
 0x33f   :  { %3722 = vmatpush.msrb.mxu2 %v1821_v33  ;;  %v4294_v14 = vadd.f32 0.041655596, %v4293_v22  ;;  %v4301_v47 = vadd.f32 0.008332121, %v4300_v36  ;;  %v4482_v11 = vadd.s32 1, %v7708_v7  ;;  %v12197_v54 = vsel %vm12166_vm3, %v11812_v30, 1.0 }
 0x340   :  { %3747 = vmatpush.msra.mxu3 %v12008_v50  ;;  %7684 = vmatmul.msk.f32.vlgmr.msra.gmra.mxu2 %vm3429_vm15, %v11861_v25  ;;  %vm4329_vm2 = vcmp.gt.s32.totalorder %v4328_v51, 0  ;;  %v1829_v9 = vmul.f32 %v11742_v34, %v14442_v52  ;;  %vm4313_vm4 = vcmp.eq.s32.totalorder %v12170_v57, 2  ;;  %v12210_v30 = vmul.f32 %v11865_v20, %v14442_v52 }
 0x341   :  { %v4295_v50 = vmul.f32 %v4294_v14, %v12135_v21  ;;  %v4302_v35 = vmul.f32 %v4301_v47, %v12135_v21  ;;  %3723 = vmatpush.msrb.mxu2 %v12073_v39  ;;  %3764 = vmatpush.msrb.mxu1 %v12026_v10  ;;  %v4330_v61 = vsel %vm4329_vm2, %v4328_v51, 0  ;;  %v12214_v42 = vmul.f32 %v14453_v56, %v14444_v55 }
 0x342   :  { %3808 = vmatpush.msrb.mxu3 %v12044_v13  ;;  %v4326_v39 = vor.u32 8388608, %v4325_v5  ;;  %v4332_v10 = vand.u32 31, %v4330_v61  ;;  %vm4938_vm6 = vcmp.eq.s32.totalorder %v12172_v40, 2  ;;  %v4480_v34 = vor.u32 8388608, %v12186_v48 }
 0x343   :  { %3788 = vmatpush.msra.mxu2 %v12048_v27  ;;  %v4296_v45 = vadd.f32 -0.4999988, %v4295_v50  ;;  %v4303_v33 = vadd.f32 -0.16666654, %v4302_v35  ;;  %3765 = vmatpush.msrb.mxu1 %v12057_v59  ;;  %8273 = vrsqrt.f32 %v12197_v54  ;;  %vm4310_vm8 = vcmp.eq.s32.totalorder %v12170_v57, 0 }
 0x344   :  { %vm4935_vm5 = vcmp.eq.s32.totalorder %v12172_v40, 0  ;;  %3809 = vmatpush.msrb.mxu3 %v12077_v6  ;;  %v12224_v52 = vshrl.u32 %v4330_v61, 5  ;;  %v4333_v20 = vsub.s32 32, %v4332_v10  ;;  %v14468_v55 = vmov 683565275   ;;  %7686 = vmatmul.msk.f32.vlgmr.msra.gmra.mxu1 %vm3429_vm15, %v11861_v25 }
 0x345   :  { %3789 = vmatpush.msra.mxu2 %v12085_v28  ;;  %v4335_v13 = vshll.u32 %v14468_v55, %v4332_v10  ;;  %vm4483_vm9 = vcmp.gt.s32.totalorder %v4482_v11, 0  ;;  %v4297_v27 = vmul.f32 %v4296_v45, %v12135_v21  ;;  %v4304_v59 = vmul.f32 %v4303_v33, %v12135_v21  ;;  %3766 = vmatpush.msrb.mxu1 %v1825_v26 }
 0x346   :  { %vm4309_vm10 = vcmp.lt.s32.totalorder %v12170_v57, 2  ;;  %vm4934_vm1 = vcmp.lt.s32.totalorder %v12172_v40, 2  ;;  %v14469_v56 = vmov 2475754826   ;;  %v14470_v6 = vmov 2131351028   ;;  %3810 = vmatpush.msrb.mxu3 %v1829_v9 }
 0x347   :  { %v4338_v17 = vshll.u32 %v14469_v56, %v4332_v10  ;;  %v4341_v7 = vshll.u32 %v14470_v6, %v4332_v10  ;;  %vm4307_vm0 = vweird.f32 %v11467_v2  ;;  %3790 = vmatpush.msra.mxu2 %v12089_v60  ;;  %v4334_v28 = vshrl.u32 %v14468_v55, %v4333_v20  ;;  %3767 = vmatpush.msrb.mxu1 %v12094_v41 }
 0x348   :  { %v4336_v22 = vshrl.u32 %v14469_v56, %v4333_v20  ;;  %v4339_v21 = vshrl.u32 %v14470_v6, %v4333_v20  ;;  %v12238_v36 = vshll.u32 %v4326_v39, 8  ;;  %v4298_v8 = vadd.f32 1.0, %v4297_v27  ;;  %3811 = vmatpush.msrb.mxu3 %v12098_v49  ;;  %7687 = vmatmul.msk.f32.vlgmr.msrb.gmra.mxu2 %vm3429_vm15, %v11878_v37 }
 0x349   :  { %v4305_v16 = vadd.f32 1.0, %v4304_v59  ;;  %v14471_v58 = vmov 2102212464   ;;  %v14472_v47 = vmov 920167782   ;;  %v4484_v26 = vsel %vm4483_vm9, %v4482_v11, 0  ;;  %v12248_v50 = vpop.eup %8273  ;;  %3791 = vmatpush.msra.mxu2 %v12111_v53  ;;  %3832 = vmatpush.msra.mxu1 %v12115_v18 }
 0x34a   :  { %v4342_v5 = vshrl.u32 %v14471_v58, %v4333_v20  ;;  %v4344_v51 = vshll.u32 %v14471_v58, %v4332_v10  ;;  %v4337_v60 = vor.u32 %v4336_v22, %v4335_v13  ;;  %v4340_v14 = vor.u32 %v4339_v21, %v4338_v17  ;;  %7688 = vmatmul.msk.f32.vlgmr.msra.gmra.mxu3 %vm3429_vm15, %v11861_v25 }
 0x34b   :  { %v4345_v44 = vshrl.u32 %v14472_v47, %v4333_v20  ;;  %v4306_v35 = vmul.f32 %v4305_v16, %v12129_v38  ;;  %v4314_v41 = vxor.u32 2147483648, %v4298_v8  ;;  %vm4350_vm11 = vcmp.lt.s32.totalorder %v12224_v52, 1  ;;  %3852 = vmatpush.msrb.mxu2 %v12141_v23  ;;  %3833 = vmatpush.msra.mxu1 %v12145_v1 }
 0x34c   :  { %v4343_v9 = vor.u32 %v4342_v5, %v4341_v7  ;;  %v4347_v61 = vshll.u32 %v14472_v47, %v4332_v10  ;;  %v14473_v39 = vmov 1326507024   ;;  %vm4351_vm14 = vcmp.lt.s32.totalorder %v12224_v52, 2  ;;  %7689 = vmatmul.msk.f32.vlgmr.msrb.gmra.mxu1 %vm3429_vm15, %v11878_v37 }
 0x34d   :  { %v4346_v49 = vor.u32 %v4345_v44, %v4344_v51  ;;  %v4348_v11 = vshrl.u32 %v14473_v39, %v4333_v20  ;;  %v4311_v38 = vxor.u32 2147483648, %v4306_v35  ;;  %v4315_v53 = vsel %vm4313_vm4, %v4314_v41, %v4306_v35  ;;  %3853 = vmatpush.msrb.mxu2 %v12158_v46  ;;  %3834 = vmatpush.msra.mxu1 %v12162_v15 }
 0x34e   :  { %vm4352_vm7 = vcmp.lt.s32.totalorder %v12224_v52, 3  ;;  %vm4353_vm2 = vcmp.lt.s32.totalorder %v12224_v52, 4  ;;  %v4940_v18 = vsel %vm4938_vm6, %v4314_v41, %v4306_v35  ;;  %v4358_v33 = vsel %vm4350_vm11, %v4337_v60, %v4340_v14 }
 0x34f   :  { %v4349_v10 = vor.u32 %v4348_v11, %v4347_v61  ;;  %v4355_v45 = vsel %vm4353_vm2, %v4343_v9, 2102212464  ;;  %v4312_v20 = vsel %vm4310_vm8, %v4298_v8, %v4311_v38  ;;  %v4937_v23 = vsel %vm4935_vm5, %v4298_v8, %v4311_v38  ;;  %3854 = vmatpush.msrb.mxu2 %v12210_v30  ;;  %3835 = vmatpush.msra.mxu1 %v12182_v62 }
 0x350   :  { %v4354_v1 = vsel %vm4350_vm11, %v4334_v28, %v4337_v60  ;;  %v4359_v13 = vsel %vm4353_vm2, %v4346_v49, 920167782  ;;  %v4316_v27 = vsel %vm4309_vm10, %v4312_v20, %v4315_v53  ;;  %v4941_v59 = vsel %vm4934_vm1, %v4937_v23, %v4940_v18  ;;  %7690 = vmatmul.msk.f32.vlgmr.msra.gmra.mxu2 %vm3429_vm15, %v11861_v25 }
 0x351   :  { %v4356_v17 = vsel %vm4352_vm7, %v4340_v14, %v4355_v45  ;;  %v4360_v46 = vsel %vm4352_vm7, %v4343_v9, %v4359_v13  ;;  %v4317_v15 = vsel %vm4307_vm0, nan, %v4316_v27  ;;  %v4942_v7 = vsel %vm4307_vm0, nan, %v4941_v59  ;;  %3855 = vmatpush.msrb.mxu2 %v12214_v42  ;;  %v14475_v59 = vld [vmem:[#allocation60_spill] sm:$0xff] }
 0x352   :  { %v4361_v57 = vsel %vm4351_vm14, %v4358_v33, %v4360_v46  ;;  %v4362_v40 = vsel %vm4350_vm11, %v4340_v14, %v4343_v9  ;;  %v4780_v28 = vadd.f32 1.0, %v4317_v15  ;;  %v5408_v22 = vmul.f32 -0.5235988, %v4942_v7  ;;  %7691 = vmatmul.msk.f32.vlgmr.msrb.gmra.mxu3 %vm3429_vm15, %v11878_v37  ;;  %v14474_v9 = vld [vmem:[#allocation42_spill] sm:$0xff] }
 0x353   :  { %v4363_v21 = vsel %vm4353_vm2, %v4349_v10, 1326507024  ;;  %v4391_v8 = vand.u32 65535, %v4361_v57  ;;  %v4367_v62 = vand.u32 65535, %v12238_v36  ;;  %v4368_v30 = vshrl.u32 %v12238_v36, 16 }
 0x354   :  { %v4364_v2 = vsel %vm4352_vm7, %v4346_v49, %v4363_v21  ;;  %v4392_v16 = vshrl.u32 %v4361_v57, 16  ;;  %v4784_v5 = vmul.f32 0.5, %v4780_v28  ;;  %v12312_v60 = vshrl.u32 %v4484_v26, 5  ;;  %7692 = vmatmul.msk.f32.vlgmr.msra.gmra.mxu1 %vm3429_vm15, %v11861_v25 }
 0x355   :  { %v4365_v51 = vsel %vm4351_vm14, %v4362_v40, %v4364_v2  ;;  %v4486_v14 = vand.u32 31, %v4484_v26  ;;  %v12320_v42 = vsel %vm4351_vm14, %v4354_v1, %v4356_v17  ;;  %v5424_v11 = vmul.f32 %v5408_v22, %v14474_v9 }
 0x356   :  { %v4369_v44 = vand.u32 65535, %v4365_v51  ;;  %v4370_v35 = vshrl.u32 %v4365_v51, 16  ;;  %v4394_v41 = vmul.u32 %v4392_v16, %v4367_v62  ;;  %v5412_v49 = vmul.f32 %v4784_v5, %v14474_v9 }
 0x357   :  { %v5420_v61 = vmul.f32 %v4784_v5, %v12065_v19  ;;  %v4395_v26 = vmul.u32 %v4391_v8, %v4368_v30  ;;  %v4393_v18 = vmul.u32 %v4391_v8, %v4367_v62  ;;  %v4396_v10 = vmul.u32 %v4392_v16, %v4368_v30 }
 0x358   :  { %v4372_v38 = vmul.u32 %v4370_v35, %v4367_v62  ;;  %v4373_v53 = vmul.u32 %v4369_v44, %v4368_v30  ;;  %v12326_v45 = vmul.f32 %v5412_v49, %v12103_v4  ;;  %v4397_v33 = vshll.u32 %v4394_v41, 16  ;;  %7693 = vmatmul.msk.f32.vlgmr.msrb.gmra.mxu2 %vm3429_vm15, %v11878_v37 }
 0x359   :  { %v5428_v52 = vadd.f32 %v5424_v11, %v5420_v61  ;;  %v12328_v20 = vsub.s32 32, %v4486_v14  ;;  %v4371_v23 = vmul.u32 %v4369_v44, %v4367_v62  ;;  %v4374_v1 = vmul.u32 %v4370_v35, %v4368_v30 }
 0x35a   :  { %v4375_v13 = vshll.u32 %v4372_v38, 16  ;;  %v4398_v27 = vshrl.u32 %v4394_v41, 16  ;;  %v4377_v17 = vshll.u32 %v4373_v53, 16  ;;  %v4399_v46 = vshll.u32 %v4395_v26, 16 }
 0x35b   :  { %v5432_v19 = vmul.f32 %v5428_v52, %v14475_v59  ;;  %vm4401_vm4 = vc.u32 %v4393_v18, %v4397_v33  ;;  %v14476_v7 = vmov 0   ;;  %v4403_v40 = vadd.s32 %v4397_v33, %v4393_v18 }
 0x35c   :  { %vm4379_vm6 = vc.u32 %v4371_v23, %v4375_v13  ;;  %v4381_v15 = vadd.s32 %v4375_v13, %v4371_v23  ;;  %v4402_v57 = vsel %vm4401_vm4, 1, %v14476_v7  ;;  %v4376_v22 = vshrl.u32 %v4372_v38, 16 }
 0x35d   :  { %v12335_v28 = vmul.f32 %v5432_v19, %v12103_v4  ;;  %v4380_v21 = vsel %vm4379_vm6, 1, %v14476_v7  ;;  %v4404_v8 = vadd.s32 %v4402_v57, %v4396_v10  ;;  %v4378_v2 = vshrl.u32 %v4373_v53, 16 }
 0x35e   :  { %v4382_v62 = vadd.s32 %v4380_v21, %v4374_v1  ;;  %vm4383_vm8 = vc.u32 %v4381_v15, %v4377_v17  ;;  %vm4405_vm5 = vc.u32 %v4403_v40, %v4399_v46  ;;  %v4400_v30 = vshrl.u32 %v4395_v26, 16 }
 0x35f   :  { %14477 = vst [vmem:[#allocation93_spill] sm:$0xff] %v12335_v28  ;;  %v4384_v25 = vsel %vm4383_vm8, 1, %v14476_v7  ;;  %v4406_v16 = vsel %vm4405_vm5, 1, %v14476_v7  ;;  %v4489_v5 = vshll.u32 %v14468_v55, %v4486_v14  ;;  %v4490_v44 = vshrl.u32 %v14469_v56, %v12328_v20 }
 0x360   :  { %v4386_v4 = vadd.s32 %v4384_v25, %v4382_v62  ;;  %v4408_v51 = vadd.s32 %v4406_v16, %v4404_v8  ;;  %v4492_v35 = vshll.u32 %v14469_v56, %v4486_v14  ;;  %v4493_v37 = vshrl.u32 %v14470_v6, %v12328_v20 }
 0x361   :  { %v4495_v41 = vshll.u32 %v14470_v6, %v4486_v14  ;;  %v4496_v9 = vshrl.u32 %v14471_v58, %v12328_v20  ;;  %v4498_v49 = vshll.u32 %v14471_v58, %v4486_v14  ;;  %v12352_v26 = vor.u32 %v4490_v44, %v4489_v5 }
 0x362   :  { %v4387_v61 = vadd.s32 %v4386_v4, %v4376_v22  ;;  %v4409_v11 = vadd.s32 %v4408_v51, %v4398_v27  ;;  %v4499_v38 = vshrl.u32 %v14472_v47, %v12328_v20  ;;  %v12356_v53 = vor.u32 %v4493_v37, %v4492_v35 }
 0x363   :  { %v4497_v18 = vor.u32 %v4496_v9, %v4495_v41  ;;  %v4501_v10 = vshll.u32 %v14472_v47, %v4486_v14  ;;  %v4502_v52 = vshrl.u32 %v14473_v39, %v12328_v20  ;;  %v12363_v23 = vadd.s32 %v4403_v40, %v4399_v46 }
 0x364   :  { %v12361_v33 = vadd.s32 %v4387_v61, %v4378_v2  ;;  %v4410_v1 = vadd.s32 %v4409_v11, %v4400_v30  ;;  %v4500_v13 = vor.u32 %v4499_v38, %v4498_v49  ;;  %v4411_v27 = vmul.u32 %v12238_v36, %v12320_v42 }
 0x365   :  { %v4503_v59 = vor.u32 %v4502_v52, %v4501_v10  ;;  %v12369_v19 = vshll.u32 %v4480_v34, 8  ;;  %v4107_v14 = vmul.f32 %v12248_v50, %v12197_v54  ;;  %vm4504_vm10 = vcmp.lt.s32.totalorder %v12312_v60, 1 }
 0x366   :  { %vm4413_vm9 = vc.u32 %v12361_v33, %v12363_v23  ;;  %v4414_v17 = vadd.s32 1, %v4410_v1  ;;  %vm4507_vm1 = vcmp.lt.s32.totalorder %v12312_v60, 4  ;;  %vm4506_vm0 = vcmp.lt.s32.totalorder %v12312_v60, 3 }
 0x367   :  { %v4512_v48 = vsel %vm4504_vm10, %v12352_v26, %v12356_v53  ;;  %v4513_v34 = vsel %vm4507_vm1, %v4500_v13, 920167782  ;;  %v4516_v36 = vsel %vm4504_vm10, %v12356_v53, %v4497_v18  ;;  %vm4505_vm11 = vcmp.lt.s32.totalorder %v12312_v60, 2 }
 0x368   :  { %v4415_v42 = vsel %vm4413_vm9, %v4414_v17, %v4410_v1  ;;  %v4514_v46 = vsel %vm4506_vm0, %v4497_v18, %v4513_v34  ;;  %v4517_v15 = vsel %vm4507_vm1, %v4503_v59, 1326507024  ;;  %v4108_v21 = vmul.f32 %v12248_v50, %v4107_v14 }
 0x369   :  { %v4416_v57 = vadd.s32 %v4415_v42, %v4411_v27  ;;  %v4515_v40 = vsel %vm4505_vm11, %v4512_v48, %v4514_v46  ;;  %v4518_v22 = vsel %vm4506_vm0, %v4500_v13, %v4517_v15  ;;  %v4521_v2 = vand.u32 65535, %v12369_v19 }
 0x36a   :  { %v4519_v8 = vsel %vm4505_vm11, %v4516_v36, %v4518_v22  ;;  %v4545_v62 = vand.u32 65535, %v4515_v40  ;;  %v4546_v25 = vshrl.u32 %v4515_v40, 16  ;;  %v4522_v16 = vshrl.u32 %v12369_v19, 16 }
 0x36b   :  { %v4417_v30 = vadd.s32 536870912, %v4416_v57  ;;  %v4523_v5 = vand.u32 65535, %v4519_v8  ;;  %v4524_v4 = vshrl.u32 %v4519_v8, 16  ;;  %v4109_v10 = vmul.f32 0.5, %v4108_v21 }
 0x36c   :  { %v4548_v51 = vmul.u32 %v4546_v25, %v4521_v2  ;;  %v4549_v37 = vmul.u32 %v4545_v62, %v4522_v16  ;;  %v4547_v9 = vmul.u32 %v4545_v62, %v4521_v2  ;;  %v4509_v52 = vsel %vm4507_vm1, %v4497_v18, 2102212464 }
 0x36d   :  { %v12401_v44 = vshrl.u32 %v4417_v30, 30  ;;  %v4526_v35 = vmul.u32 %v4524_v4, %v4521_v2  ;;  %v4527_v41 = vmul.u32 %v4523_v5, %v4522_v16  ;;  %v4525_v11 = vmul.u32 %v4523_v5, %v4521_v2 }
 0x36e   :  { %v4551_v49 = vshll.u32 %v4548_v51, 16  ;;  %v4528_v1 = vmul.u32 %v4524_v4, %v4522_v16  ;;  %v4550_v13 = vmul.u32 %v4546_v25, %v4522_v16  ;;  %v4553_v14 = vshll.u32 %v4549_v37, 16 }
 0x36f   :  { %v4419_v61 = vshll.u32 %v12401_v44, 30  ;;  %v4529_v38 = vshll.u32 %v4526_v35, 16  ;;  %v4531_v17 = vshll.u32 %v4527_v41, 16  ;;  %v4488_v46 = vshrl.u32 %v14468_v55, %v12328_v20 }
 0x370   :  { %vm4555_vm14 = vc.u32 %v4547_v9, %v4551_v49  ;;  %v4557_v36 = vadd.s32 %v4551_v49, %v4547_v9  ;;  %v4110_v15 = vsub.f32 1.5, %v4109_v10  ;;  %v4510_v21 = vsel %vm4506_vm0, %v12356_v53, %v4509_v52 }
 0x371   :  { %v4420_v27 = vsub.s32 %v4416_v57, %v4419_v61  ;;  %vm4533_vm7 = vc.u32 %v4525_v11, %v4529_v38  ;;  %v4535_v59 = vadd.s32 %v4529_v38, %v4525_v11  ;;  %v4556_v34 = vsel %vm4555_vm14, 1, %v14476_v7 }
 0x372   :  { %v4534_v48 = vsel %vm4533_vm7, 1, %v14476_v7  ;;  %v4558_v40 = vadd.s32 %v4556_v34, %v4550_v13  ;;  %vm4559_vm6 = vc.u32 %v4557_v36, %v4553_v14  ;;  %v4508_v22 = vsel %vm4504_vm10, %v4488_v46, %v12352_v26 }
 0x373   :  { %vm4421_vm2 = vcmp.lt.s32.totalorder %v4420_v27, 0  ;;  %v4422_v42 = vsub.s32 0, %v4420_v27  ;;  %v4536_v18 = vadd.s32 %v4534_v48, %v4528_v1  ;;  %vm4537_vm4 = vc.u32 %v4535_v59, %v4531_v17 }
 0x374   :  { %v4538_v2 = vsel %vm4537_vm4, 1, %v14476_v7  ;;  %v4552_v62 = vshrl.u32 %v4548_v51, 16  ;;  %v4560_v20 = vsel %vm4559_vm6, 1, %v14476_v7  ;;  %v4530_v25 = vshrl.u32 %v4526_v35, 16 }
 0x375   :  { %v4423_v57 = vsel %vm4421_vm2, %v4422_v42, %v4420_v27  ;;  %v4540_v30 = vadd.s32 %v4538_v2, %v4536_v18  ;;  %v4562_v16 = vadd.s32 %v4560_v20, %v4558_v40  ;;  %v4111_v5 = vmul.f32 %v12248_v50, %v4110_v15 }
 0x376   :  { %v4424_v8 = vclz %v4423_v57  ;;  %v7695_v4 = vadd.f32 -1.2, %v12036_v0  ;;  %v4532_v49 = vshrl.u32 %v4527_v41, 16  ;;  %v4554_v26 = vshrl.u32 %v4549_v37, 16 }
 0x377   :  { %v4541_v61 = vadd.s32 %v4540_v30, %v4530_v25  ;;  %v4563_v11 = vadd.s32 %v4562_v16, %v4552_v62  ;;  %vm4112_vm8 = vweird.f32 %v12197_v54  ;;  %vm4113_vm5 = vweird.f32 %v12248_v50  ;;  %v14478_v62 = vld [vmem:[#allocation72_spill] sm:$0xff]  ;;  %v14479_v25 = vld [vmem:[#allocation73_spill] sm:$0xff] }
 0x378   :  { %v7706_v9 = vadd.s32 4294967294, %v4424_v8  ;;  %v4511_v53 = vsel %vm4505_vm11, %v4508_v22, %v4510_v21  ;;  %v12424_v51 = vadd.s32 %v4557_v36, %v4553_v14  ;;  %vm4114_vm10 = vmor %vm4112_vm8, %vm4113_vm5  ;;  %v4412_v37 = vadd.s32 %v12363_v23, %v12361_v33 }
 0x379   :  { %v12426_v38 = vadd.s32 %v4541_v61, %v4532_v49  ;;  %v4564_v0 = vadd.s32 %v4563_v11, %v4554_v26  ;;  %v12429_v41 = vsel %vm4114_vm10, %v12248_v50, %v4111_v5  ;;  %v4129_v60 = vmul.f32 -1.5, %v7695_v4 }
 0x37a   :  { %vm7707_vm9 = vcmp.lt.s32.totalorder %v7706_v9, 0  ;;  %v12435_v1 = vmul.f32 %v12429_v41, %v12197_v54  ;;  %v4565_v13 = vmul.u32 %v12369_v19, %v4511_v53  ;;  %v4442_v19 = vsub.s32 4, %v12401_v44 }
 0x37b   :  { %v4427_v35 = vsel %vm7707_vm9, 0, %v7706_v9  ;;  %vm4567_vm1 = vc.u32 %v12426_v38, %v12424_v51  ;;  %v4568_v59 = vadd.s32 1, %v4564_v0  ;;  %v4134_v42 = vmul.f32 1.442695, %v4129_v60 }
 0x37c   :  { %v4428_v10 = vsub.s32 32, %v4427_v35  ;;  %v4432_v52 = vsub.s32 4294967266, %v4427_v35  ;;  %v4429_v14 = vshll.u32 %v4420_v27, %v4427_v35  ;;  %v12441_v48 = vmul.f32 1.0471976, %v12435_v1 }
 0x37d   :  { %v4569_v33 = vsel %vm4567_vm1, %v4568_v59, %v4564_v0  ;;  %8275 = vpow2.f32 %v4134_v42  ;;  %vm4320_vm0 = vcmp.lt.s32.totalorder %v12060_v32, 0  ;;  %v5849_v20 = vmul.f32 %v14478_v62, %v14478_v62 }
 0x37e   :  { %v4430_v17 = vshrl.u32 %v4412_v37, %v4428_v10  ;;  %v4433_v50 = vadd.s32 127, %v4432_v52  ;;  %v4570_v36 = vadd.s32 %v4569_v33, %v4565_v13  ;;  %v4629_v54 = vand.u32 2139095040, %v12441_v48  ;;  %v14480_v10 = vld [vmem:[#allocation14_spill] sm:$0xff]  ;;  %v156_v13 = vpop.f32.mrf.mxu0 }
 0x37f   :  { %v4443_v8 = vsel %vm4320_vm0, %v4442_v19, %v12401_v44  ;;  %v5853_v30 = vmul.f32 %v14479_v25, %v14479_v25  ;;  %vm4319_vm11 = vcmp.le.f32.partialorder %v4318_v24, 0.7853982  ;;  %v4626_v9 = vand.u32 2147483647, %v12441_v48 }
 0x380   :  { %v4431_v23 = vor.u32 %v4430_v17, %v4429_v14  ;;  %v4434_v34 = vshll.u32 %v4433_v50, 23  ;;  %v4571_v15 = vadd.s32 536870912, %v4570_v36  ;;  %v4630_v18 = vshrl.u32 %v4629_v54, 23 }
 0x381   :  { %v4445_v49 = vsel %vm4319_vm11, 0, %v4443_v8  ;;  %v5857_v11 = vadd.f32 %v5853_v30, %v5849_v20  ;;  %v4633_v37 = vand.u32 8388607, %v4626_v9  ;;  %v5861_v52 = vmul.f32 %v14480_v10, %v14480_v10 }
 0x382   :  { %v4435_v46 = vor.u32 4788187, %v4434_v34  ;;  %v4438_v57 = vcvt.s32.f32 %v4431_v23  ;;  %v12445_v27 = vshrl.u32 %v4571_v15, 30  ;;  %v7711_v22 = vadd.s32 4294967169, %v4630_v18 }
 0x383   :  { %v12457_v61 = vpop.eup %8275  ;;  %v5087_v0 = vadd.s32 3, %v4445_v49  ;;  %v12472_v33 = vadd.f32 %v5861_v52, %v5857_v11  ;;  %v12474_v23 = vand.u32 3, %v4445_v49  ;;  %v12480_v15 = vsel %vm11765_vm13, %v156_v13, 0.0 }
 0x384   :  { %v4436_v40 = vand.u32 2147483647, %v4435_v46  ;;  %v4573_v2 = vshll.u32 %v12445_v27, 30  ;;  %v4636_v16 = vadd.s32 1, %v7711_v22  ;;  %v12470_v59 = vmul.f32 %v12457_v61, %v12457_v61 }
 0x385   :  { %v12476_v54 = vand.u32 3, %v5087_v0  ;;  %v4634_v46 = vor.u32 8388608, %v4633_v37  ;;  %v12483_v18 = vadd.f32 -2.0, %v12457_v61  ;;  %vm4467_vm4 = vcmp.eq.s32.totalorder %v12474_v23, 2 }
 0x386   :  { %v4439_v21 = vmul.f32 %v4438_v57, %v4436_v40  ;;  %v4574_v4 = vsub.s32 %v4570_v36, %v4573_v2  ;;  %vm4637_vm7 = vcmp.gt.s32.totalorder %v4636_v16, 0  ;;  %v4153_v57 = vsub.f32 %v12457_v61, %v12470_v59 }
 0x387   :  { %v4638_v50 = vsel %vm4637_vm7, %v4636_v16, 0  ;;  %v4566_v2 = vadd.s32 %v12424_v51, %v12426_v38  ;;  %vm5093_vm13 = vcmp.eq.s32.totalorder %v12476_v54, 2  ;;  %vm4464_vm6 = vcmp.eq.s32.totalorder %v12474_v23, 0 }
 0x388   :  { %v4440_v5 = vxor.u32 2147483648, %v4439_v21  ;;  %vm4575_vm14 = vcmp.lt.s32.totalorder %v4574_v4, 0  ;;  %v4576_v44 = vsub.s32 0, %v4574_v4  ;;  %v4640_v40 = vand.u32 31, %v4638_v50 }
 0x389   :  { %vm5090_vm8 = vcmp.eq.s32.totalorder %v12476_v54, 0  ;;  %vm4463_vm5 = vcmp.lt.s32.totalorder %v12474_v23, 2  ;;  %vm5089_vm9 = vcmp.lt.s32.totalorder %v12476_v54, 2  ;;  %v12501_v37 = vshrl.u32 %v4638_v50, 5 }
 0x38a   :  { %v4441_v26 = vsel %vm4320_vm0, %v4440_v5, %v4439_v21  ;;  %v4577_v24 = vsel %vm4575_vm14, %v4576_v44, %v4574_v4  ;;  %v12490_v16 = vsub.s32 32, %v4640_v40  ;;  %vm4461_vm10 = vweird.f32 %v12060_v32 }
 0x38b   :  { %v12460_v53 = vsel %vm4319_vm11, %v12060_v32, %v4441_v26  ;;  %v4578_v60 = vclz %v4577_v24  ;;  %v12493_v26 = vshll.u32 %v4634_v46, 8  ;;  %v4643_v13 = vshll.u32 %v14468_v55, %v4640_v40 }
 0x38c   :  { %v4446_v35 = vmul.f32 %v12460_v53, %v12460_v53  ;;  %v4644_v51 = vshrl.u32 %v14469_v56, %v12490_v16  ;;  %v4647_v52 = vshrl.u32 %v14470_v6, %v12490_v16  ;;  %vm4474_vm1 = vcmp.lt.s32.totalorder %v12013_v12, 0 }
 0x38d   :  { %v7709_v34 = vadd.s32 4294967294, %v4578_v60  ;;  %v4650_v50 = vshrl.u32 %v14471_v58, %v12490_v16  ;;  %vm12514_vm0 = vcmp.le.f32.partialorder %v4472_v3, 0.7853982  ;;  %v4652_v19 = vshll.u32 %v14471_v58, %v4640_v40 }
 0x38e   :  { %v4447_v14 = vmul.f32 -0.001358992, %v4446_v35  ;;  %v4454_v17 = vmul.f32 -0.00019511016, %v4446_v35  ;;  %v12518_v46 = vor.u32 %v4644_v51, %v4643_v13  ;;  %vm4658_vm11 = vcmp.lt.s32.totalorder %v12501_v37, 1 }
 0x38f   :  { %vm7710_vm2 = vcmp.lt.s32.totalorder %v7709_v34, 0  ;;  %vm4661_vm14 = vcmp.lt.s32.totalorder %v12501_v37, 4  ;;  %vm4660_vm7 = vcmp.lt.s32.totalorder %v12501_v37, 3 }
 0x390   :  { %v4448_v36 = vadd.f32 0.041655596, %v4447_v14  ;;  %v4455_v42 = vadd.f32 0.008332121, %v4454_v17  ;;  %v4581_v8 = vsel %vm7710_vm2, 0, %v7709_v34  ;;  %v4646_v14 = vshll.u32 %v14469_v56, %v4640_v40 }
 0x391   :  { %v4582_v20 = vsub.s32 32, %v4581_v8  ;;  %v4586_v30 = vsub.s32 4294967266, %v4581_v8  ;;  %v4583_v44 = vshll.u32 %v4574_v4, %v4581_v8  ;;  %vm4659_vm2 = vcmp.lt.s32.totalorder %v12501_v37, 2 }
 0x392   :  { %v4449_v22 = vmul.f32 %v4448_v36, %v4446_v35  ;;  %v4456_v21 = vmul.f32 %v4455_v42, %v4446_v35 }
 0x393   :  { %v4584_v11 = vshrl.u32 %v4566_v2, %v4582_v20  ;;  %v4587_v0 = vadd.s32 127, %v4586_v30  ;;  %v12524_v2 = vor.u32 %v4647_v52, %v4646_v14  ;;  %v4656_v20 = vshrl.u32 %v14473_v39, %v12490_v16 }
 0x394   :  { %v4450_v5 = vadd.f32 -0.4999988, %v4449_v22  ;;  %v4457_v49 = vadd.f32 -0.16666654, %v4456_v21  ;;  %v4653_v22 = vshrl.u32 %v14472_v47, %v12490_v16 }
 0x395   :  { %v4585_v60 = vor.u32 %v4584_v11, %v4583_v44  ;;  %v4588_v4 = vshll.u32 %v4587_v0, 23  ;;  %v4666_v52 = vsel %vm4658_vm11, %v12518_v46, %v12524_v2 }
 0x396   :  { %v4451_v38 = vmul.f32 %v4450_v5, %v4446_v35  ;;  %v4458_v24 = vmul.f32 %v4457_v49, %v4446_v35  ;;  %v4649_v35 = vshll.u32 %v14470_v6, %v4640_v40  ;;  %v4654_v5 = vor.u32 %v4653_v22, %v4652_v19 }
 0x397   :  { %v4589_v42 = vor.u32 4788187, %v4588_v4  ;;  %v4592_v30 = vcvt.s32.f32 %v4585_v60  ;;  %v4655_v49 = vshll.u32 %v14472_v47, %v4640_v40  ;;  %v4145_v19 = vmul.f32 %v12457_v61, %v12483_v18 }
 0x398   :  { %v4452_v17 = vadd.f32 1.0, %v4451_v38  ;;  %v4459_v34 = vadd.f32 1.0, %v4458_v24  ;;  %v12531_v0 = vor.u32 %v4650_v50, %v4649_v35  ;;  %v4667_v60 = vsel %vm4661_vm14, %v4654_v5, 920167782 }
 0x399   :  { %v4590_v3 = vand.u32 2147483647, %v4589_v42  ;;  %v4657_v38 = vor.u32 %v4656_v20, %v4655_v49  ;;  %v4675_v49 = vand.u32 65535, %v12493_v26 }
 0x39a   :  { %v4460_v21 = vmul.f32 %v4459_v34, %v12460_v53  ;;  %v4468_v8 = vxor.u32 2147483648, %v4452_v17  ;;  %v4668_v35 = vsel %vm4660_vm7, %v12531_v0, %v4667_v60  ;;  %v4670_v22 = vsel %vm4658_vm11, %v12524_v2, %v12531_v0 }
 0x39b   :  { %v4593_v51 = vmul.f32 %v4592_v30, %v4590_v3  ;;  %v4669_v42 = vsel %vm4659_vm2, %v4666_v52, %v4668_v35 }
 0x39c   :  { %v4465_v44 = vxor.u32 2147483648, %v4460_v21  ;;  %v4469_v11 = vsel %vm4467_vm4, %v4468_v8, %v4460_v21  ;;  %v5095_v53 = vsel %vm5093_vm13, %v4468_v8, %v4460_v21  ;;  %v4671_v21 = vsel %vm4661_vm14, %v4657_v38, 1326507024 }
 0x39d   :  { %v4594_v14 = vxor.u32 2147483648, %v4593_v51  ;;  %v4157_v8 = vmul.f32 3.0, %v4153_v57  ;;  %v4672_v3 = vsel %vm4660_vm7, %v4654_v5, %v4671_v21  ;;  %v5880_v57 = vpop.permute.xlu0 %5879  ;;  %v4699_v52 = vand.u32 65535, %v4669_v42 }
 0x39e   :  { %v4466_v24 = vsel %vm4464_vm6, %v4452_v17, %v4465_v44  ;;  %v5092_v40 = vsel %vm5090_vm8, %v4452_v17, %v4465_v44  ;;  %v4673_v30 = vsel %vm4659_vm2, %v4670_v22, %v4672_v3  ;;  %v4676_v44 = vshrl.u32 %v12493_v26, 16 }
 0x39f   :  { %v4470_v4 = vsel %vm4463_vm5, %v4466_v24, %v4469_v11  ;;  %v5096_v13 = vsel %vm5089_vm9, %v5092_v40, %v5095_v53  ;;  %v4595_v54 = vsel %vm4474_vm1, %v4594_v14, %v4593_v51  ;;  %v4700_v11 = vshrl.u32 %v4669_v42, 16 }
 0x3a0   :  { %v4471_v17 = vsel %vm4461_vm10, nan, %v4470_v4  ;;  %v5097_v34 = vsel %vm4461_vm10, nan, %v5096_v13  ;;  %v12569_v32 = vsel %vm12514_vm0, %v12013_v12, %v4595_v54  ;;  %v4677_v24 = vand.u32 65535, %v4673_v30 }
 0x3a1   :  { %v4781_v23 = vadd.f32 1.0, %v4471_v17  ;;  %v5409_v50 = vmul.f32 -0.5235988, %v5097_v34  ;;  %v12582_v18 = vmul.f32 %v12569_v32, %v12569_v32  ;;  %v4678_v40 = vshrl.u32 %v4673_v30, 16  ;;  %v12600_v34 = vld [vmem:[%s13750_s0 + $0x3] ss:$0 sm:$0xff] }
 0x3a2   :  { %v12595_v13 = vmul.u32 %v4700_v11, %v4675_v49  ;;  %v4681_v17 = vmul.u32 %v4677_v24, %v4676_v44  ;;  %vm5885_vm4 = vcmp.eq.f32.partialorder %v5880_v57, %v12600_v34  ;;  %vm5889_vm13 = vcmp.lt.f32.partialorder %v12472_v33, 9.0  ;;  %v8330_v57 = vld [vmem:[%s13750_s0 + $0xf] ss:$0 sm:$0xff] }
 0x3a3   :  { %v4785_v20 = vmul.f32 0.5, %v4781_v23  ;;  %v5425_v61 = vmul.f32 %v5409_v50, %v4145_v19  ;;  %v4608_v59 = vmul.f32 -0.00019511016, %v12582_v18  ;;  %v4601_v38 = vmul.f32 -0.001358992, %v12582_v18  ;;  %vm12620_vm9 = vmand %vm5885_vm4, %vm5889_vm13 }
 0x3a4   :  { %v4680_v14 = vmul.u32 %v4678_v40, %v4675_v49  ;;  %v7696_v23 = vadd.f32 -1.2, %v11991_v43  ;;  %v4679_v54 = vmul.u32 %v4677_v24, %v4675_v49  ;;  %v4682_v3 = vmul.u32 %v4678_v40, %v4676_v44 }
 0x3a5   :  { %v5413_v53 = vmul.f32 %v4785_v20, %v4145_v19  ;;  %v5421_v51 = vmul.f32 %v4785_v20, %v4157_v8  ;;  %v4609_v4 = vadd.f32 0.008332121, %v4608_v59  ;;  %v4701_v19 = vmul.u32 %v4699_v52, %v4675_v49  ;;  %v5868_v37 = vpop.permute.xlu0 %5867 }
 0x3a6   :  { %v4683_v42 = vshll.u32 %v4680_v14, 16  ;;  %v4602_v21 = vadd.f32 0.041655596, %v4601_v38  ;;  %v4703_v8 = vmul.u32 %v4699_v52, %v4676_v44  ;;  %v4705_v20 = vshll.u32 %v12595_v13, 16 }
 0x3a7   :  { %v12593_v5 = vmul.f32 %v5413_v53, %v12480_v15  ;;  %v5429_v60 = vadd.f32 %v5425_v61, %v5421_v51  ;;  %v4610_v50 = vmul.f32 %v4609_v4, %v12582_v18  ;;  %v4685_v30 = vshll.u32 %v4681_v17, 16 }
 0x3a8   :  { %vm4687_vm6 = vc.u32 %v4679_v54, %v4683_v42  ;;  %v4130_v53 = vmul.f32 -1.5, %v7696_v23  ;;  %v4596_v43 = vsub.s32 4, %v12445_v27  ;;  %v4704_v49 = vmul.u32 %v4700_v11, %v4676_v44 }
 0x3a9   :  { %v5433_v35 = vmul.f32 %v5429_v60, %v12029_v31  ;;  %v4689_v31 = vadd.s32 %v4683_v42, %v4679_v54  ;;  %v4611_v51 = vadd.f32 -0.16666654, %v4610_v50  ;;  %v4688_v61 = vsel %vm4687_vm6, 1, %v14476_v7  ;;  %v14487_v50 = vld [vmem:[#allocation86_spill] sm:$0xff] }
 0x3aa   :  { %v4690_v59 = vadd.s32 %v4688_v61, %v4682_v3  ;;  %vm4709_vm5 = vc.u32 %v4701_v19, %v4705_v20  ;;  %v4684_v38 = vshrl.u32 %v4680_v14, 16  ;;  %v4707_v4 = vshll.u32 %v4703_v8, 16 }
 0x3ab   :  { %v12608_v22 = vmul.f32 %v5433_v35, %v12480_v15  ;;  %vm4691_vm8 = vc.u32 %v4689_v31, %v4685_v30  ;;  %v4603_v15 = vmul.f32 %v4602_v21, %v12582_v18  ;;  %v4710_v40 = vsel %vm4709_vm5, 1, %v14476_v7  ;;  %v14488_v21 = vld [vmem:[#allocation64_spill] sm:$0xff] }
 0x3ac   :  { %v4692_v24 = vsel %vm4691_vm8, 1, %v14476_v7  ;;  %v4711_v35 = vadd.s32 %v4705_v20, %v4701_v19  ;;  %v4712_v44 = vadd.s32 %v4710_v40, %v4704_v49  ;;  %v4612_v11 = vmul.f32 %v4611_v51, %v12582_v18  ;;  %v8331_v19 = vld [vmem:[%s13750_s0 + $0xc] ss:$0 sm:$0xff]  ;;  %v14492_v40 = vld [vmem:[#allocation57_spill] sm:$0xff] }
 0x3ad   :  { %14484 = vst [vmem:[#allocation7_spill] sm:$0xff] %v12608_v22  ;;  %v4694_v60 = vadd.s32 %v4692_v24, %v4690_v59  ;;  %v4642_v14 = vshrl.u32 %v14468_v55, %v12490_v16  ;;  %v4663_v23 = vsel %vm4661_vm14, %v12531_v0, 2102212464  ;;  %v5790_v54 = vmul.f32 %v8330_v57, %v14487_v50  ;;  %v14494_v57 = vld [vmem:[#allocation87_spill] sm:$0xff] }
 0x3ae   :  { %vm4713_vm10 = vc.u32 %v4711_v35, %v4707_v4  ;;  %v5786_v20 = vmul.f32 %v8331_v19, %v14488_v21  ;;  %vm5897_vm4 = vcmp.gt.f32.partialorder %v12472_v33, 1e-16  ;;  %v4604_v16 = vadd.f32 -0.4999988, %v4603_v15 }
 0x3af   :  { %v4695_v42 = vadd.s32 %v4694_v60, %v4684_v38  ;;  %v4662_v0 = vsel %vm4658_vm11, %v4642_v14, %v12518_v46  ;;  %v4686_v3 = vshrl.u32 %v4681_v17, 16  ;;  %v4714_v30 = vsel %vm4713_vm10, 1, %v14476_v7  ;;  %vm12645_vm14 = vmand %vm12620_vm9, %vm5897_vm4 }
 0x3b0   :  { %v14489_v31 = vmov 0  ;;  %v4706_v51 = vshrl.u32 %v12595_v13, 16  ;;  %v4716_v61 = vadd.s32 %v4714_v30, %v4712_v44  ;;  %v5794_v59 = vadd.f32 %v5790_v54, %v5786_v20 }
 0x3b1   :  { %v14490_v31 = vsel %vm12645_vm14, 4294967295, %v14489_v31  ;;  %v12653_v49 = vsel %vm12645_vm14, %v12472_v33, 1.0  ;;  %v4613_v15 = vadd.f32 1.0, %v4612_v11  ;;  %v4664_v46 = vsel %vm4660_vm7, %v12524_v2, %v4663_v23  ;;  %v8332_v33 = vld [vmem:[%s13750_s0 + $0x13] ss:$0 sm:$0xff] }
 0x3b2   :  { %14491 = vst [vmem:[#allocation65_spill] sm:$0xff] %v14490_v31  ;;  %v12658_v17 = vadd.s32 %v4695_v42, %v4686_v3  ;;  %8277 = vrsqrt.f32 %v12653_v49  ;;  %v4597_v13 = vsel %vm4474_vm1, %v4596_v43, %v12445_v27  ;;  %v4708_v38 = vshrl.u32 %v4703_v8, 16 }
 0x3b3   :  { %v4717_v24 = vadd.s32 %v4716_v61, %v4706_v51  ;;  %v5818_v52 = vmul.f32 %v8332_v33, %v14492_v40  ;;  %v4605_v60 = vmul.f32 %v4604_v16, %v12582_v18  ;;  %v12669_v44 = vadd.s32 %v4711_v35, %v4707_v4  ;;  %v8333_v18 = vld [vmem:[%s13750_s0 + $0x12] ss:$0 sm:$0xff]  ;;  %v14496_v61 = vld [vmem:[#allocation84_spill] sm:$0xff] }
 0x3b4   :  { %v4136_v2 = vmul.f32 1.442695, %v4130_v53  ;;  %v4665_v11 = vsel %vm4659_vm2, %v4662_v0, %v4664_v46  ;;  %v4599_v27 = vsel %vm12514_vm0, 0, %v4597_v13  ;;  %v12676_v8 = vmul.f32 %v4613_v15, %v12569_v32 }
 0x3b5   :  { %v4718_v14 = vadd.s32 %v4717_v24, %v4708_v38  ;;  %vm4721_vm1 = vc.u32 %v12658_v17, %v12669_v44  ;;  %v5798_v43 = vmul.f32 %v8333_v18, %v14492_v40  ;;  %v4606_v35 = vadd.f32 1.0, %v4605_v60 }
 0x3b6   :  { %v4719_v23 = vmul.u32 %v12493_v26, %v4665_v11  ;;  %v12688_v32 = vadd.f32 %v5818_v52, %v14494_v57  ;;  %8279 = vpow2.f32 %v4136_v2  ;;  %v4616_v50 = vand.u32 3, %v4599_v27 }
 0x3b7   :  { %v4722_v53 = vadd.s32 1, %v4718_v14  ;;  %v12685_v36 = vadd.f32 %v5798_v43, %v5794_v59  ;;  %v4619_v19 = vxor.u32 2147483648, %v12676_v8  ;;  %vm5882_vm0 = vcmp.eq.f32.partialorder %v5868_v37, %v12600_v34 }
 0x3b8   :  { %v8278_v4 = vpop.eup %8277  ;;  %14495 = vst [vmem:[#allocation35_spill] sm:$0xff] %v12688_v32  ;;  %v5850_v16 = vmul.f32 %v12688_v32, %v12688_v32  ;;  %v5242_v26 = vadd.s32 3, %v4599_v27  ;;  %v4622_v3 = vxor.u32 2147483648, %v4606_v35  ;;  %v5858_v59 = vmul.f32 %v14496_v61, %v14496_v61 }
 0x3b9   :  { %14493 = vst [vmem:[#allocation70_spill] sm:$0xff] %v12685_v36  ;;  %v4723_v54 = vsel %vm4721_vm1, %v4722_v53, %v4718_v14  ;;  %v5937_v42 = vmul.f32 %v8278_v4, %v12653_v49  ;;  %v5846_v20 = vmul.f32 %v12685_v36, %v12685_v36  ;;  %vm4618_vm11 = vcmp.eq.s32.totalorder %v4616_v50, 0 }
 0x3ba   :  { %v4724_v21 = vadd.s32 %v4723_v54, %v4719_v23  ;;  %v7697_v15 = vadd.f32 -1.2, %v12435_v1  ;;  %vm5943_vm7 = vweird.f32 %v8278_v4  ;;  %vm4617_vm2 = vcmp.lt.s32.totalorder %v4616_v50, 2 }
 0x3bb   :  { %v5938_v0 = vmul.f32 %v8278_v4, %v5937_v42  ;;  %v5854_v51 = vadd.f32 %v5850_v16, %v5846_v20  ;;  %v4620_v13 = vsel %vm4618_vm11, %v4606_v35, %v4619_v19  ;;  %vm4621_vm13 = vcmp.eq.s32.totalorder %v4616_v50, 2 }
 0x3bc   :  { %v4725_v30 = vadd.s32 536870912, %v4724_v21  ;;  %v8280_v33 = vpop.eup %8279  ;;  %v5243_v40 = vand.u32 3, %v5242_v26  ;;  %vm5942_vm6 = vweird.f32 %v12653_v49  ;;  %v4623_v60 = vsel %vm4621_vm13, %v4622_v3, %v12676_v8 }
 0x3bd   :  { %v5939_v46 = vmul.f32 0.5, %v5938_v0  ;;  %v5862_v24 = vadd.f32 %v5858_v59, %v5854_v51  ;;  %vm5944_vm9 = vmor %vm5942_vm6, %vm5943_vm7  ;;  %v4624_v1 = vsel %vm4617_vm2, %v4620_v13, %v4623_v60  ;;  %vm4615_vm4 = vweird.f32 %v12013_v12 }
 0x3be   :  { %v12700_v38 = vshrl.u32 %v4725_v30, 30  ;;  %v4131_v14 = vmul.f32 -1.5, %v7697_v15  ;;  %v4150_v43 = vmul.f32 %v8280_v33, %v8280_v33  ;;  %vm5245_vm11 = vcmp.eq.s32.totalorder %v5243_v40, 0 }
 0x3bf   :  { %v5940_v52 = vsub.f32 1.5, %v5939_v46  ;;  %vm5886_vm8 = vcmp.lt.f32.partialorder %v5862_v24, 9.0  ;;  %vm5894_vm5 = vcmp.gt.f32.partialorder %v5862_v24, 1e-16  ;;  %v4625_v37 = vsel %vm4615_vm4, nan, %v4624_v1 }
 0x3c0   :  { %v4727_v2 = vshll.u32 %v12700_v38, 30  ;;  %vm5890_vm10 = vmand %vm5882_vm0, %vm5886_vm8  ;;  %v5247_v57 = vsel %vm5245_vm11, %v4606_v35, %v4619_v19  ;;  %vm5248_vm7 = vcmp.eq.s32.totalorder %v5243_v40, 2  ;;  %vm5244_vm2 = vcmp.lt.s32.totalorder %v5243_v40, 2 }
 0x3c1   :  { %v5941_v11 = vmul.f32 %v8278_v4, %v5940_v52  ;;  %vm12708_vm1 = vmand %vm5890_vm10, %vm5894_vm5  ;;  %v5250_v42 = vsel %vm5248_vm7, %v4622_v3, %v12676_v8  ;;  %v4154_v35 = vsub.f32 %v8280_v33, %v4150_v43  ;;  %v7700_v30 = vadd.f32 -2.0, %v8280_v33 }
 0x3c2   :  { %v4728_v27 = vsub.s32 %v4724_v21, %v4727_v2  ;;  %v12714_v53 = vsel %vm12708_vm1, %v5862_v24, 1.0  ;;  %v4138_v21 = vmul.f32 1.442695, %v4131_v14  ;;  %v5251_v16 = vsel %vm5244_vm2, %v5247_v57, %v5250_v42 }
 0x3c3   :  { %v12716_v23 = vsel %vm5944_vm9, %v8278_v4, %v5941_v11  ;;  %8281 = vrsqrt.f32 %v12714_v53  ;;  %v4782_v4 = vadd.f32 1.0, %v4625_v37  ;;  %v5252_v51 = vsel %vm4615_vm4, nan, %v5251_v16  ;;  %v14500_v37 = vld [vmem:[#allocation41_spill] sm:$0xff]  ;;  %v159_v16 = vpop.f32.mrf.mxu0 }
 0x3c4   :  { %14499 = vst [vmem:[#allocation89_spill] sm:$0xff] %v12716_v23  ;;  %vm4729_vm0 = vcmp.lt.s32.totalorder %v4728_v27, 0  ;;  %v4730_v50 = vsub.s32 0, %v4728_v27  ;;  %v12723_v54 = vmul.f32 %v12716_v23, %v12653_v49  ;;  %8283 = vpow2.f32 %v4138_v21 }
 0x3c5   :  { %v4786_v15 = vmul.f32 0.5, %v4782_v4  ;;  %v4158_v8 = vmul.f32 3.0, %v4154_v35  ;;  %v5410_v13 = vmul.f32 -0.5235988, %v5252_v51  ;;  %v4720_v24 = vadd.s32 %v12669_v44, %v12658_v17 }
 0x3c6   :  { %v4731_v20 = vsel %vm4729_vm0, %v4730_v50, %v4728_v27  ;;  %v12727_v0 = vmul.f32 1.0471976, %v12723_v54  ;;  %v4146_v60 = vmul.f32 %v8280_v33, %v7700_v30  ;;  %v5851_v57 = vmul.f32 %v14500_v37, %v14500_v37 }
 0x3c7   :  { %v4732_v26 = vclz %v4731_v20  ;;  %v5422_v1 = vmul.f32 %v4786_v15, %v4158_v8  ;;  %v14501_v20 = vld [vmem:[#allocation53_spill] sm:$0xff]  ;;  %v4750_v33 = vsub.s32 4, %v12700_v38  ;;  %vm5912_vm8 = vweird.f32 %v12714_v53 }
 0x3c8   :  { %v6459_v49 = vand.u32 2139095040, %v12727_v0  ;;  %v5847_v4 = vmul.f32 %v14501_v20, %v14501_v20  ;;  %v5426_v17 = vmul.f32 %v5410_v13, %v4146_v60  ;;  %vm4628_vm9 = vcmp.lt.s32.totalorder %v12441_v48, 0 }
 0x3c9   :  { %v7712_v19 = vadd.s32 4294967294, %v4732_v26  ;;  %v8282_v59 = vpop.eup %8281  ;;  %v4751_v13 = vsel %vm4628_vm9, %v4750_v33, %v12700_v38  ;;  %vm4627_vm4 = vcmp.le.f32.partialorder %v4626_v9, 0.7853982  ;;  %v12811_v29 = vadd.f32 -1.2, %v12723_v54 }
 0x3ca   :  { %v5907_v46 = vmul.f32 %v8282_v59, %v12714_v53  ;;  %v6460_v12 = vshrl.u32 %v6459_v49, 23  ;;  %v8284_v21 = vpop.eup %8283  ;;  %vm5913_vm6 = vweird.f32 %v8282_v59 }
 0x3cb   :  { %vm7713_vm13 = vcmp.lt.s32.totalorder %v7712_v19, 0  ;;  %v4151_v51 = vmul.f32 %v8284_v21, %v8284_v21  ;;  %vm5914_vm10 = vmor %vm5912_vm8, %vm5913_vm6  ;;  %v162_v9 = vpop.f32.mrf.mxu0  ;;  %vm4769_vm6 = vweird.f32 %v12441_v48 }
 0x3cc   :  { %v4735_v3 = vsel %vm7713_vm13, 0, %v7712_v19  ;;  %v5908_v2 = vmul.f32 %v8282_v59, %v5907_v46  ;;  %v7753_v42 = vadd.s32 4294967169, %v6460_v12  ;;  %v5430_v19 = vadd.f32 %v5426_v17, %v5422_v1 }
 0x3cd   :  { %v4736_v40 = vsub.s32 32, %v4735_v3  ;;  %v4740_v52 = vsub.s32 4294967266, %v4735_v3  ;;  %v4737_v11 = vshll.u32 %v4728_v27, %v4735_v3  ;;  %v5855_v46 = vadd.f32 %v5851_v57, %v5847_v4 }
 0x3ce   :  { %v5909_v50 = vmul.f32 0.5, %v5908_v2  ;;  %v6466_v27 = vadd.s32 1, %v7753_v42  ;;  %v13961_v1 = vand.u32 2147483647, %v12727_v0  ;;  %v4155_v57 = vsub.f32 %v8284_v21, %v4151_v51 }
 0x3cf   :  { %v4738_v14 = vshrl.u32 %v4720_v24, %v4736_v40  ;;  %v4741_v43 = vadd.s32 127, %v4740_v52  ;;  %v5434_v52 = vmul.f32 %v5430_v19, %v11981_v63 }
 0x3d0   :  { %v5910_v35 = vsub.f32 1.5, %v5909_v50  ;;  %vm6467_vm5 = vcmp.gt.s32.totalorder %v6466_v27, 0  ;;  %v6463_v19 = vand.u32 8388607, %v13961_v1 }
 0x3d1   :  { %v4739_v44 = vor.u32 %v4738_v14, %v4737_v11  ;;  %v4742_v26 = vshll.u32 %v4741_v43, 23  ;;  %v6468_v40 = vsel %vm6467_vm5, %v6466_v27, 0  ;;  %v14503_v11 = vld [vmem:[#allocation38_spill] sm:$0xff]  ;;  %v7701_v43 = vadd.f32 -2.0, %v8284_v21 }
 0x3d2   :  { %v5911_v49 = vmul.f32 %v8282_v59, %v5910_v35  ;;  %v5859_v14 = vmul.f32 %v14503_v11, %v14503_v11  ;;  %v12760_v63 = vand.u32 31, %v6468_v40  ;;  %v6464_v17 = vor.u32 8388608, %v6463_v19 }
 0x3d3   :  { %v4743_v30 = vor.u32 4788187, %v4742_v26  ;;  %v4746_v3 = vcvt.s32.f32 %v4739_v44  ;;  %v4122_v44 = vsel %vm11636_vm12, %v159_v16, 0.0  ;;  %v5414_v26 = vmul.f32 %v4786_v15, %v4146_v60 }
 0x3d4   :  { %v12745_v24 = vsel %vm5914_vm10, %v8282_v59, %v5911_v49  ;;  %v4753_v59 = vsel %vm4627_vm4, 0, %v4751_v13  ;;  %v12762_v42 = vadd.f32 %v5859_v14, %v5855_v46  ;;  %v12770_v33 = vmul.f32 %v5434_v52, %v4122_v44  ;;  %v14506_v46 = vld [vmem:[#allocation76_spill] sm:$0xff] }
 0x3d5   :  { %v4744_v8 = vand.u32 2147483647, %v4743_v30  ;;  %14502 = vst [vmem:[#allocation43_spill] sm:$0xff] %v12745_v24  ;;  %v12750_v12 = vmul.f32 %v12745_v24, %v12714_v53  ;;  %v14504_v53 = vld [vmem:[#allocation59_spill] sm:$0xff]  ;;  %v12777_v30 = vmul.f32 %v8284_v21, %v7701_v43  ;;  %v5397_v49 = vadd.s32 3, %v4753_v59  ;;  %v14507_v14 = vld [vmem:[#allocation88_spill] sm:$0xff] }
 0x3d6   :  { %v12766_v4 = vmul.f32 %v12335_v28, %v14504_v53  ;;  %v12783_v15 = vmul.f32 3.0, %v4155_v57  ;;  %v12794_v21 = vmul.f32 %v12608_v22, %v14506_v46  ;;  %v12796_v13 = vmul.f32 %v5414_v26, %v4122_v44 }
 0x3d7   :  { %v4747_v2 = vmul.f32 %v4746_v3, %v4744_v8  ;;  %v12758_v50 = vmul.f32 1.0471976, %v12750_v12  ;;  %v12790_v3 = vsub.s32 32, %v12760_v63  ;;  %v12800_v52 = vsel %vm12166_vm3, %v162_v9, 0.0 }
 0x3d8   :  { %v12804_v43 = vmul.f32 %v12770_v33, %v14507_v14  ;;  %v12808_v1 = vand.u32 3, %v5397_v49  ;;  %v12815_v11 = vshrl.u32 %v6468_v40, 5  ;;  %v6476_v40 = vshll.u32 %v14469_v56, %v12760_v63 }
 0x3d9   :  { %v4748_v38 = vxor.u32 2147483648, %v4747_v2  ;;  %v13962_v27 = vand.u32 2147483647, %v12758_v50  ;;  %v5997_v16 = vand.u32 2139095040, %v12758_v50  ;;  %v6474_v9 = vshrl.u32 %v14469_v56, %v12790_v3 }
 0x3da   :  { %v6477_v19 = vshrl.u32 %v14470_v6, %v12790_v3  ;;  %vm5403_vm11 = vcmp.eq.s32.totalorder %v12808_v1, 2  ;;  %vm5400_vm7 = vcmp.eq.s32.totalorder %v12808_v1, 0  ;;  %vm5399_vm13 = vcmp.lt.s32.totalorder %v12808_v1, 2 }
 0x3db   :  { %v4749_v35 = vsel %vm4628_vm9, %v4748_v38, %v4747_v2  ;;  %v6001_v8 = vand.u32 8388607, %v13962_v27  ;;  %v5998_v2 = vshrl.u32 %v5997_v16, 23 }
 0x3dc   :  { %v12780_v51 = vsel %vm4627_vm4, %v12441_v48, %v4749_v35  ;;  %v12806_v35 = vand.u32 3, %v4753_v59  ;;  %v6480_v59 = vshrl.u32 %v14471_v58, %v12790_v3  ;;  %vm6488_vm4 = vcmp.lt.s32.totalorder %v12815_v11, 1 }
 0x3dd   :  { %v4754_v60 = vmul.f32 %v12780_v51, %v12780_v51  ;;  %v7744_v27 = vadd.s32 4294967169, %v5998_v2  ;;  %v6002_v61 = vor.u32 8388608, %v6001_v8  ;;  %v6473_v8 = vshll.u32 %v14468_v55, %v12760_v63 }
 0x3de   :  { %vm4775_vm3 = vcmp.eq.s32.totalorder %v12806_v35, 2  ;;  %vm4772_vm0 = vcmp.eq.s32.totalorder %v12806_v35, 0  ;;  %vm4771_vm2 = vcmp.lt.s32.totalorder %v12806_v35, 2 }
 0x3df   :  { %v4755_v57 = vmul.f32 -0.001358992, %v4754_v60  ;;  %v4762_v38 = vmul.f32 -0.00019511016, %v4754_v60  ;;  %v6004_v16 = vadd.s32 1, %v7744_v27  ;;  %v12825_v54 = vshll.u32 %v6002_v61, 8 }
 0x3e0   :  { %v6479_v27 = vshll.u32 %v14470_v6, %v12760_v63 }
 0x3e1   :  { %v4756_v44 = vadd.f32 0.041655596, %v4755_v57  ;;  %v4763_v26 = vadd.f32 0.008332121, %v4762_v38  ;;  %v12823_v57 = vshll.u32 %v6464_v17, 8  ;;  %vm6005_vm12 = vcmp.gt.s32.totalorder %v6004_v16, 0 }
 0x3e2   :  { %v12837_v17 = vor.u32 %v6477_v19, %v6476_v40  ;;  %v12839_v37 = vor.u32 %v6480_v59, %v6479_v27  ;;  %v14508_v19 = vld [vmem:[#allocation85_spill] sm:$0xff] }
 0x3e3   :  { %v4757_v49 = vmul.f32 %v4756_v44, %v4754_v60  ;;  %v4764_v2 = vmul.f32 %v4763_v26, %v4754_v60  ;;  %v6006_v44 = vsel %vm6005_vm12, %v6004_v16, 0  ;;  %v12833_v26 = vor.u32 %v6474_v9, %v6473_v8 }
 0x3e4   :  { %v6008_v61 = vand.u32 31, %v6006_v44  ;;  %v12849_v9 = vshrl.u32 %v14472_v47, %v12790_v3  ;;  %v12853_v16 = vshll.u32 %v14472_v47, %v12760_v63  ;;  %v12858_v59 = vmul.f32 %v12770_v33, %v14508_v19 }
 0x3e5   :  { %v4758_v38 = vadd.f32 -0.4999988, %v4757_v49  ;;  %v4765_v32 = vadd.f32 -0.16666654, %v4764_v2  ;;  %v12843_v49 = vshll.u32 %v14471_v58, %v12760_v63  ;;  %v12870_v63 = vshrl.u32 %v12825_v54, 16 }
 0x3e6   :  { %v6009_v8 = vsub.s32 32, %v6008_v61  ;;  %v6011_v10 = vshll.u32 %v14468_v55, %v6008_v61  ;;  %v6014_v25 = vshll.u32 %v14469_v56, %v6008_v61  ;;  %v6017_v46 = vshll.u32 %v14470_v6, %v6008_v61 }
 0x3e7   :  { %v4759_v2 = vmul.f32 %v4758_v38, %v4754_v60  ;;  %v4766_v20 = vmul.f32 %v4765_v32, %v4754_v60  ;;  %v12861_v32 = vand.u32 65535, %v12825_v54  ;;  %v12865_v60 = vshrl.u32 %v14473_v39, %v12790_v3 }
 0x3e8   :  { %v12867_v38 = vshrl.u32 %v6006_v44, 5  ;;  %v6012_v36 = vshrl.u32 %v14469_v56, %v6009_v8  ;;  %v6015_v62 = vshrl.u32 %v14470_v6, %v6009_v8  ;;  %v6010_v44 = vshrl.u32 %v14468_v55, %v6009_v8 }
 0x3e9   :  { %v4760_v40 = vadd.f32 1.0, %v4759_v2  ;;  %v4767_v27 = vadd.f32 1.0, %v4766_v20  ;;  %v6018_v20 = vshrl.u32 %v14471_v58, %v6009_v8  ;;  %v6020_v22 = vshll.u32 %v14471_v58, %v6008_v61 }
 0x3ea   :  { %v6013_v2 = vor.u32 %v6012_v36, %v6011_v10  ;;  %v6021_v19 = vshrl.u32 %v14472_v47, %v6009_v8  ;;  %v6016_v53 = vor.u32 %v6015_v62, %v6014_v25  ;;  %v6023_v56 = vshll.u32 %v14472_v47, %v6008_v61 }
 0x3eb   :  { %v4768_v23 = vmul.f32 %v4767_v27, %v12780_v51  ;;  %v4776_v24 = vxor.u32 2147483648, %v4760_v40  ;;  %v6019_v28 = vor.u32 %v6018_v20, %v6017_v46  ;;  %v6024_v14 = vshrl.u32 %v14473_v39, %v6009_v8 }
 0x3ec   :  { %v6022_v6 = vor.u32 %v6021_v19, %v6020_v22  ;;  %vm6026_vm8 = vcmp.lt.s32.totalorder %v12867_v38, 1  ;;  %vm6027_vm5 = vcmp.lt.s32.totalorder %v12867_v38, 2  ;;  %vm6029_vm9 = vcmp.lt.s32.totalorder %v12867_v38, 4 }
 0x3ed   :  { %v4773_v31 = vxor.u32 2147483648, %v4768_v23  ;;  %v4777_v51 = vsel %vm4775_vm3, %v4776_v24, %v4768_v23  ;;  %v5405_v27 = vsel %vm5403_vm11, %v4776_v24, %v4768_v23  ;;  %v6025_v23 = vor.u32 %v6024_v14, %v6023_v56 }
 0x3ee   :  { %v6034_v46 = vsel %vm6026_vm8, %v6013_v2, %v6016_v53  ;;  %vm6028_vm10 = vcmp.lt.s32.totalorder %v12867_v38, 3  ;;  %v6035_v35 = vsel %vm6029_vm9, %v6022_v6, 920167782  ;;  %v6030_v56 = vsel %vm6026_vm8, %v6010_v44, %v6013_v2 }
 0x3ef   :  { %v4774_v10 = vsel %vm4772_vm0, %v4760_v40, %v4773_v31  ;;  %v5402_v36 = vsel %vm5400_vm7, %v4760_v40, %v4773_v31  ;;  %v6031_v31 = vsel %vm6029_vm9, %v6019_v28, 2102212464  ;;  %v6036_v1 = vsel %vm6028_vm10, %v6019_v28, %v6035_v35 }
 0x3f0   :  { %v4778_v62 = vsel %vm4771_vm2, %v4774_v10, %v4777_v51  ;;  %v5406_v25 = vsel %vm5399_vm13, %v5402_v36, %v5405_v27  ;;  %v6038_v14 = vsel %vm6026_vm8, %v6016_v53, %v6019_v28  ;;  %v6039_v8 = vsel %vm6029_vm9, %v6025_v23, 1326507024 }
 0x3f1   :  { %v4779_v22 = vsel %vm4769_vm6, nan, %v4778_v62  ;;  %v5407_v24 = vsel %vm4769_vm6, nan, %v5406_v25  ;;  %v6032_v48 = vsel %vm6028_vm10, %v6016_v53, %v6031_v31  ;;  %v6037_v20 = vsel %vm6027_vm5, %v6034_v46, %v6036_v1 }
 0x3f2   :  { %v4783_v61 = vadd.f32 1.0, %v4779_v22  ;;  %v5411_v19 = vmul.f32 -0.5235988, %v5407_v24  ;;  %v6040_v51 = vsel %vm6028_vm10, %v6022_v6, %v6039_v8  ;;  %v6067_v36 = vand.u32 65535, %v6037_v20 }
 0x3f3   :  { %v6041_v10 = vsel %vm6027_vm5, %v6038_v14, %v6040_v51  ;;  %v6068_v62 = vshrl.u32 %v6037_v20, 16  ;;  %v6484_v6 = vor.u32 %v12849_v9, %v12843_v49  ;;  %v6487_v22 = vor.u32 %v12865_v60, %v12853_v16  ;;  %v14509_v20 = vld [vmem:[#allocation39_spill] sm:$0xff] }
 0x3f4   :  { %v4787_v40 = vmul.f32 0.5, %v4783_v61  ;;  %v5427_v27 = vmul.f32 %v5411_v19, %v12777_v30  ;;  %v6045_v25 = vand.u32 65535, %v6041_v10  ;;  %v6046_v28 = vshrl.u32 %v6041_v10, 16 }
 0x3f5   :  { %v6070_v23 = vmul.u32 %v6068_v62, %v12861_v32  ;;  %v12919_v53 = vmul.u32 %v6067_v36, %v12870_v63  ;;  %vm6490_vm12 = vcmp.lt.s32.totalorder %v12815_v11, 3  ;;  %vm6491_vm3 = vcmp.lt.s32.totalorder %v12815_v11, 4 }
 0x3f6   :  { %v5415_v44 = vmul.f32 %v4787_v40, %v12777_v30  ;;  %v5423_v2 = vmul.f32 %v4787_v40, %v12783_v15  ;;  %v6048_v15 = vmul.u32 %v6046_v28, %v12861_v32  ;;  %v12932_v31 = vsel %vm6027_vm5, %v6030_v56, %v6032_v48 }
 0x3f7   :  { %v6049_v49 = vmul.u32 %v6045_v25, %v12870_v63  ;;  %v6069_v9 = vmul.u32 %v6067_v36, %v12861_v32  ;;  %v6073_v16 = vshll.u32 %v6070_v23, 16  ;;  %vm6489_vm11 = vcmp.lt.s32.totalorder %v12815_v11, 2 }
 0x3f8   :  { %v5419_v24 = vmul.f32 %v5415_v44, %v12800_v52  ;;  %v5431_v30 = vadd.f32 %v5427_v27, %v5423_v2  ;;  %v6047_v46 = vmul.u32 %v6045_v25, %v12861_v32  ;;  %v6051_v61 = vshll.u32 %v6048_v15, 16 }
 0x3f9   :  { %v6072_v19 = vmul.u32 %v6068_v62, %v12870_v63  ;;  %v6050_v35 = vmul.u32 %v6046_v28, %v12870_v63  ;;  %v6074_v38 = vshrl.u32 %v6070_v23, 16  ;;  %v6075_v56 = vshll.u32 %v12919_v53, 16  ;;  %v14510_v63 = vld [vmem:[#allocation77_spill] sm:$0xff] }
 0x3fa   :  { %v5435_v60 = vmul.f32 %v5431_v30, %v12429_v41  ;;  %5468 = vmatpush.msra.mxu3 %v5419_v24  ;;  %vm6077_vm0 = vc.u32 %v6069_v9, %v6073_v16  ;;  %vm6055_vm7 = vc.u32 %v6047_v46, %v6051_v61  ;;  %v6057_v14 = vadd.s32 %v6051_v61, %v6047_v46 }
 0x3fb   :  { %v6078_v41 = vsel %vm6077_vm0, 1, %v14476_v7  ;;  %v6053_v8 = vshll.u32 %v6049_v49, 16  ;;  %v6056_v32 = vsel %vm6055_vm7, 1, %v14476_v7  ;;  %v6079_v40 = vadd.s32 %v6073_v16, %v6069_v9  ;;  %v5872_v16 = vpop.permute.xlu2 %5871 }
 0x3fc   :  { %v5439_v1 = vmul.f32 %v5435_v60, %v12800_v52  ;;  %5469 = vmatpush.msra.mxu3 %v12796_v13  ;;  %v6080_v48 = vadd.s32 %v6078_v41, %v6072_v19  ;;  %v6052_v10 = vshrl.u32 %v6048_v15, 16  ;;  %v6058_v36 = vadd.s32 %v6056_v32, %v6050_v35  ;;  %v14511_v13 = vld [vmem:[#allocation50_spill] sm:$0xff] }
 0x3fd   :  { %v6054_v62 = vshrl.u32 %v6049_v49, 16  ;;  %vm6059_vm2 = vc.u32 %v6057_v14, %v6053_v8  ;;  %vm6081_vm13 = vc.u32 %v6079_v40, %v6075_v56  ;;  %v6496_v25 = vsel %vm6488_vm4, %v12833_v26, %v12837_v17 }
 0x3fe   :  { %v12947_v51 = vmul.f32 %v5439_v1, %v14509_v20  ;;  %v12950_v27 = vmul.f32 %v5439_v1, %v14510_v63  ;;  %5470 = vmatpush.msra.mxu3 %v12593_v5  ;;  %v12954_v52 = vmul.f32 %v5439_v1, %v14511_v13  ;;  %v6060_v44 = vsel %vm6059_vm2, 1, %v14476_v7 }
 0x3ff   :  { %v6082_v2 = vsel %vm6081_vm13, 1, %v14476_v7  ;;  %v6497_v5 = vsel %vm6491_vm3, %v6484_v6, 920167782  ;;  %v6062_v28 = vadd.s32 %v6060_v44, %v6058_v36  ;;  %v6500_v30 = vsel %vm6488_vm4, %v12837_v17, %v12839_v37 }
 0x400   :  { %5489 = vmatpush.msrb.mxu1 %v12947_v51  ;;  %5510 = vmatpush.msra.mxu2 %v12950_v27  ;;  %v6084_v23 = vadd.s32 %v6082_v2, %v6080_v48  ;;  %v6498_v24 = vsel %vm6490_vm12, %v12839_v37, %v6497_v5  ;;  %v6076_v15 = vshrl.u32 %v12919_v53, 16  ;;  %v12977_v49 = vadd.s32 %v6079_v40, %v6075_v56 }
 0x401   :  { %5471 = vmatpush.msra.mxu3 %v12326_v45  ;;  %v6499_v45 = vsel %vm6489_vm11, %v6496_v25, %v6498_v24  ;;  %v6501_v9 = vsel %vm6491_vm3, %v6487_v22, 1326507024  ;;  %v6063_v60 = vadd.s32 %v6062_v28, %v6052_v10  ;;  %v6505_v35 = vand.u32 65535, %v12823_v57 }
 0x402   :  { %5490 = vmatpush.msrb.mxu1 %v12804_v43  ;;  %5511 = vmatpush.msra.mxu2 %v12858_v59  ;;  %v6085_v46 = vadd.s32 %v6084_v23, %v6074_v38  ;;  %v6502_v61 = vsel %vm6490_vm12, %v6484_v6, %v6501_v9  ;;  %v6529_v19 = vand.u32 65535, %v6499_v45  ;;  %v6506_v56 = vshrl.u32 %v12823_v57, 16 }
 0x403   :  { %5531 = vmatpush.msrb.mxu3 %v12954_v52  ;;  %v6503_v53 = vsel %vm6489_vm11, %v6500_v30, %v6502_v61  ;;  %v6530_v1 = vshrl.u32 %v6499_v45, 16  ;;  %v12991_v22 = vadd.s32 %v6063_v60, %v6054_v62  ;;  %vm5883_vm6 = vcmp.eq.f32.partialorder %v5872_v16, %v12600_v34 }
 0x404   :  { %5491 = vmatpush.msrb.mxu1 %v12794_v21  ;;  %v6086_v14 = vadd.s32 %v6085_v46, %v6076_v15  ;;  %v6507_v38 = vand.u32 65535, %v6503_v53  ;;  %v6508_v41 = vshrl.u32 %v6503_v53, 16  ;;  %vm5887_vm8 = vcmp.lt.f32.partialorder %v12762_v42, 9.0 }
 0x405   :  { %v6532_v6 = vmul.u32 %v6530_v1, %v6505_v35  ;;  %v6533_v8 = vmul.u32 %v6529_v19, %v6506_v56  ;;  %vm6089_vm5 = vc.u32 %v12991_v22, %v12977_v49  ;;  %v5961_v40 = vmul.f32 -1.5, %v12811_v29  ;;  %vm13003_vm9 = vmand %vm5883_vm6, %vm5887_vm8 }
 0x406   :  { %5492 = vmatpush.msrb.mxu1 %v12766_v4  ;;  %v6090_v32 = vadd.s32 1, %v6086_v14  ;;  %v6472_v48 = vshrl.u32 %v14468_v55, %v12790_v3  ;;  %v6087_v10 = vmul.u32 %v12825_v54, %v12932_v31  ;;  %v6510_v36 = vmul.u32 %v6508_v41, %v6505_v35 }
 0x407   :  { %v6511_v62 = vmul.u32 %v6507_v38, %v6506_v56  ;;  %v6535_v44 = vshll.u32 %v6532_v6, 16  ;;  %v6509_v5 = vmul.u32 %v6507_v38, %v6505_v35  ;;  %v6531_v28 = vmul.u32 %v6529_v19, %v6505_v35 }
 0x408   :  { %v6091_v25 = vsel %vm6089_vm5, %v6090_v32, %v6086_v14  ;;  %v6534_v23 = vmul.u32 %v6530_v1, %v6506_v56  ;;  %v6512_v30 = vmul.u32 %v6508_v41, %v6506_v56  ;;  %v6513_v29 = vshll.u32 %v6510_v36, 16 }
 0x409   :  { %v6092_v24 = vadd.s32 %v6091_v25, %v6087_v10  ;;  %v6537_v15 = vshll.u32 %v6533_v8, 16  ;;  %v6515_v45 = vshll.u32 %v6511_v62, 16  ;;  %vm6539_vm10 = vc.u32 %v6531_v28, %v6535_v44 }
 0x40a   :  { %v6541_v3 = vadd.s32 %v6535_v44, %v6531_v28  ;;  %vm5895_vm0 = vcmp.gt.f32.partialorder %v12762_v42, 1e-16  ;;  %vm6517_vm7 = vc.u32 %v6509_v5, %v6513_v29  ;;  %v6519_v31 = vadd.s32 %v6513_v29, %v6509_v5  ;;  %v14517_v28 = vld [vmem:[#allocation55_spill] sm:$0xff]  ;;  %v14518_v29 = vld [vmem:[#allocation56_spill] sm:$0xff] }
 0x40b   :  { %v6093_v54 = vadd.s32 536870912, %v6092_v24  ;;  %v6540_v9 = vsel %vm6539_vm10, 1, %v14476_v7  ;;  %vm13011_vm2 = vmand %vm13003_vm9, %vm5895_vm0  ;;  %v14514_v16 = vmov 0  ;;  %v6493_v60 = vsel %vm6491_vm3, %v12839_v37, 2102212464 }
 0x40c   :  { %v14515_v16 = vsel %vm13011_vm2, 4294967295, %v14514_v16  ;;  %v6518_v46 = vsel %vm6517_vm7, 1, %v14476_v7  ;;  %v6542_v61 = vadd.s32 %v6540_v9, %v6534_v23  ;;  %vm6543_vm13 = vc.u32 %v6541_v3, %v6537_v15 }
 0x40d   :  { %14516 = vst [vmem:[#allocation44_spill] sm:$0xff] %v14515_v16  ;;  %v13019_v19 = vshrl.u32 %v6093_v54, 30  ;;  %v6520_v53 = vadd.s32 %v6518_v46, %v6512_v30  ;;  %vm6521_vm6 = vc.u32 %v6519_v31, %v6515_v45  ;;  %v6544_v35 = vsel %vm6543_vm13, 1, %v14476_v7 }
 0x40e   :  { %v6522_v56 = vsel %vm6521_vm6, 1, %v14476_v7  ;;  %v6536_v1 = vshrl.u32 %v6532_v6, 16  ;;  %v6546_v14 = vadd.s32 %v6544_v35, %v6542_v61  ;;  %v13026_v38 = vsel %vm13011_vm2, %v12762_v42, 1.0 }
 0x40f   :  { %v6095_v37 = vshll.u32 %v13019_v19, 30  ;;  %v6514_v41 = vshrl.u32 %v6510_v36, 16  ;;  %v6524_v32 = vadd.s32 %v6522_v56, %v6520_v53  ;;  %8285 = vrsqrt.f32 %v13026_v38 }
 0x410   :  { %v7736_v10 = vadd.f32 -1.2, %v12750_v12  ;;  %v6538_v44 = vshrl.u32 %v6533_v8, 16  ;;  %v6547_v2 = vadd.s32 %v6546_v14, %v6536_v1  ;;  %v6492_v6 = vsel %vm6488_vm4, %v6472_v48, %v12833_v26  ;;  %v13060_v1 = vld [vmem:[%s13751_s2 + $0x10] sm:$0xff] }
 0x411   :  { %v6096_v25 = vsub.s32 %v6092_v24, %v6095_v37  ;;  %v6494_v42 = vsel %vm6490_vm12, %v12837_v17, %v6493_v60  ;;  %v6525_v5 = vadd.s32 %v6524_v32, %v6514_v41  ;;  %v5852_v36 = vmul.f32 %v14517_v28, %v14517_v28  ;;  %7726 = vmatmul.msk.f32.vlgmr.msra.gmra.mxu3 %vm3429_vm15, %v13060_v1 }
 0x412   :  { %v6516_v23 = vshrl.u32 %v6511_v62, 16  ;;  %v6548_v30 = vadd.s32 %v6547_v2, %v6538_v44  ;;  %v5848_v12 = vmul.f32 %v14518_v29, %v14518_v29  ;;  %v5968_v24 = vmul.f32 1.442695, %v5961_v40  ;;  %v14519_v62 = vld [vmem:[#allocation83_spill] sm:$0xff]  ;;  %7727 = vmatmul.msk.f32.vlgmr.msrb.gmra.mxu1 %vm3429_vm15, %v13060_v1  ;;  %v14520_v2 = vld [vmem:[#allocation18_spill] sm:$0xff] }
 0x413   :  { %vm6097_vm3 = vcmp.lt.s32.totalorder %v6096_v25, 0  ;;  %v6098_v8 = vsub.s32 0, %v6096_v25  ;;  %v6495_v45 = vsel %vm6489_vm11, %v6492_v6, %v6494_v42  ;;  %v13045_v48 = vadd.s32 %v6541_v3, %v6537_v15 }
 0x414   :  { %v13043_v26 = vadd.s32 %v6525_v5, %v6516_v23  ;;  %v6552_v17 = vadd.s32 1, %v6548_v30  ;;  %v5958_v31 = vmul.f32 -1.5, %v7736_v10  ;;  %v5860_v60 = vmul.f32 %v14519_v62, %v14519_v62  ;;  %v14541_v62 = vld [vmem:[#allocation85_spill] sm:$0xff] }
 0x415   :  { %v13047_v54 = vpop.eup %8285  ;;  %v6099_v9 = vsel %vm6097_vm3, %v6098_v8, %v6096_v25  ;;  %v5856_v40 = vadd.f32 %v5852_v36, %v5848_v12  ;;  %v6549_v11 = vmul.u32 %v12823_v57, %v6495_v45  ;;  %8287 = vpow2.f32 %v5968_v24 }
 0x416   :  { %v6100_v46 = vclz %v6099_v9  ;;  %vm6551_vm4 = vc.u32 %v13043_v26, %v13045_v48  ;;  %v5917_v15 = vmul.f32 %v13047_v54, %v13026_v38  ;;  %v5962_v53 = vmul.f32 1.442695, %v5958_v31 }
 0x417   :  { %v6553_v61 = vsel %vm6551_vm4, %v6552_v17, %v6548_v30  ;;  %v5864_v14 = vadd.f32 %v5860_v60, %v5856_v40  ;;  %v6088_v41 = vadd.s32 %v12977_v49, %v12991_v22  ;;  %vm5884_vm11 = vcmp.eq.f32.partialorder %v14520_v2, %v12600_v34 }
 0x418   :  { %v7745_v3 = vadd.s32 4294967294, %v6100_v46  ;;  %v6554_v35 = vadd.s32 %v6553_v61, %v6549_v11  ;;  %v5918_v56 = vmul.f32 %v13047_v54, %v5917_v15  ;;  %8289 = vpow2.f32 %v5962_v53  ;;  %v165_v53 = vpop.f32.mrf.mxu0 }
 0x419   :  { %vm5888_vm8 = vcmp.lt.f32.partialorder %v5864_v14, 9.0  ;;  %v6118_v22 = vsub.s32 4, %v13019_v19  ;;  %vm5923_vm9 = vweird.f32 %v13047_v54  ;;  %vm5896_vm0 = vcmp.gt.f32.partialorder %v5864_v14, 1e-16 }
 0x41a   :  { %vm7746_vm12 = vcmp.lt.s32.totalorder %v7745_v3, 0  ;;  %v6555_v57 = vadd.s32 536870912, %v6554_v35  ;;  %v5919_v44 = vmul.f32 0.5, %v5918_v56  ;;  %vm13073_vm5 = vmand %vm5884_vm11, %vm5888_vm8  ;;  %vm5996_vm7 = vcmp.lt.s32.totalorder %v12758_v50, 0 }
 0x41b   :  { %v6103_v37 = vsel %vm7746_vm12, 0, %v7745_v3  ;;  %v8288_v42 = vpop.eup %8287  ;;  %vm5922_vm13 = vweird.f32 %v13026_v38  ;;  %vm13090_vm6 = vmand %vm13073_vm5, %vm5896_vm0  ;;  %v14523_v11 = vmov 0  ;;  %v6119_v61 = vsel %vm5996_vm7, %v6118_v22, %v13019_v19  ;;  %v14530_v19 = vld [vmem:[#allocation67_spill] sm:$0xff] }
 0x41c   :  { %v6104_v32 = vsub.s32 32, %v6103_v37  ;;  %v6108_v10 = vsub.s32 4294967266, %v6103_v37  ;;  %v13070_v6 = vshrl.u32 %v6555_v57, 30  ;;  %v6105_v5 = vshll.u32 %v6096_v25, %v6103_v37  ;;  %vm5924_vm3 = vmor %vm5922_vm13, %vm5923_vm9 }
 0x41d   :  { %v5920_v30 = vsub.f32 1.5, %v5919_v44  ;;  %v5981_v34 = vmul.f32 %v8288_v42, %v8288_v42  ;;  %v7743_v9 = vadd.f32 -2.0, %v8288_v42  ;;  %v14524_v11 = vsel %vm13090_vm6, 4294967295, %v14523_v11 }
 0x41e   :  { %v6106_v36 = vshrl.u32 %v6088_v41, %v6104_v32  ;;  %v6109_v23 = vadd.s32 127, %v6108_v10  ;;  %v6557_v12 = vshll.u32 %v13070_v6, 30  ;;  %v13082_v31 = vpop.eup %8289  ;;  %14525 = vst [vmem:[#allocation71_spill] sm:$0xff] %v14524_v11  ;;  %v14527_v41 = vand.u32 2147483647, %v12758_v50 }
 0x41f   :  { %v5921_v25 = vmul.f32 %v13047_v54, %v5920_v30  ;;  %v5985_v15 = vsub.f32 %v8288_v42, %v5981_v34  ;;  %vm6458_vm12 = vcmp.lt.s32.totalorder %v12727_v0, 0  ;;  %v13111_v10 = vmul.f32 %v12770_v33, %v14530_v19 }
 0x420   :  { %v6107_v8 = vor.u32 %v6106_v36, %v6105_v5  ;;  %v6110_v24 = vshll.u32 %v6109_v23, 23  ;;  %v13078_v45 = vsub.s32 %v6554_v35, %v6557_v12  ;;  %v7740_v35 = vadd.f32 -2.0, %v13082_v31 }
 0x421   :  { %v13100_v57 = vsel %vm5924_vm3, %v13047_v54, %v5921_v25  ;;  %vm13104_vm4 = vcmp.le.f32.partialorder %v14527_v41, 0.7853982  ;;  %v13115_v44 = vsel %vm13090_vm6, %v5864_v14, 1.0  ;;  %v13119_v5 = vmul.f32 %v8288_v42, %v7743_v9  ;;  %5532 = vmatpush.msrb.mxu3 %v13111_v10 }
 0x422   :  { %v6111_v17 = vor.u32 4788187, %v6110_v24  ;;  %vm6559_vm10 = vcmp.lt.s32.totalorder %v13078_v45, 0  ;;  %v6560_v60 = vsub.s32 0, %v13078_v45  ;;  %v6114_v40 = vcvt.s32.f32 %v6107_v8  ;;  %14526 = vst [vmem:[#allocation5_spill] sm:$0xff] %v13100_v57 }
 0x423   :  { %v6121_v54 = vsel %vm13104_vm4, 0, %v6119_v61  ;;  %v13123_v23 = vsel %vm12708_vm1, %v165_v53, 0.0  ;;  %v5978_v30 = vmul.f32 %v13082_v31, %v13082_v31  ;;  %v13127_v33 = vmul.f32 3.0, %v5985_v15 }
 0x424   :  { %v6112_v46 = vand.u32 2147483647, %v6111_v17  ;;  %v6561_v3 = vsel %vm6559_vm10, %v6560_v60, %v13078_v45  ;;  %v14531_v12 = vand.u32 2147483647, %v12727_v0  ;;  %v13138_v42 = vmul.f32 %v13100_v57, %v13026_v38 }
 0x425   :  { %v6562_v37 = vclz %v6561_v3  ;;  %v13141_v18 = vmul.f32 %v13082_v31, %v7740_v35  ;;  %8291 = vrsqrt.f32 %v13115_v44  ;;  %v6762_v49 = vadd.s32 3, %v6121_v54 }
 0x426   :  { %v6115_v56 = vmul.f32 %v6114_v40, %v6112_v46  ;;  %vm13131_vm11 = vcmp.le.f32.partialorder %v14531_v12, 0.7853982  ;;  %v6580_v34 = vsub.s32 4, %v13070_v6  ;;  %v6550_v17 = vadd.s32 %v13045_v48, %v13043_v26  ;;  %v14535_v48 = vld [vmem:[#allocation88_spill] sm:$0xff] }
 0x427   :  { %v7754_v36 = vadd.s32 4294967294, %v6562_v37  ;;  %v5982_v60 = vsub.f32 %v13082_v31, %v5978_v30  ;;  %v5543_v40 = vmul.f32 %v12947_v51, %v14509_v20  ;;  %v13161_v61 = vmul.f32 1.0471976, %v13138_v42  ;;  %v14537_v30 = vld [vmem:[#allocation93_spill] sm:$0xff] }
 0x428   :  { %v6116_v2 = vxor.u32 2147483648, %v6115_v56  ;;  %v13165_v37 = vand.u32 3, %v6762_v49  ;;  %v6581_v26 = vsel %vm6458_vm12, %v6580_v34, %v13070_v6  ;;  %vm6137_vm13 = vweird.f32 %v12758_v50 }
 0x429   :  { %vm7755_vm1 = vcmp.lt.s32.totalorder %v7754_v36, 0  ;;  %14534 = vst [vmem:[#allocation62_spill] sm:$0xff] %v13161_v61  ;;  %5556 = vmatpush.msra.mxu1 %v5543_v40  ;;  %v6151_v6 = vand.u32 2139095040, %v13161_v61  ;;  %v13222_v28 = vmul.f32 %v12858_v59, %v14541_v62 }
 0x42a   :  { %v6117_v8 = vsel %vm5996_vm7, %v6116_v2, %v6115_v56  ;;  %v6565_v22 = vsel %vm7755_vm1, 0, %v7754_v36  ;;  %v13163_v56 = vand.u32 3, %v6121_v54  ;;  %v13174_v36 = vmul.f32 3.0, %v5982_v60  ;;  %v14536_v54 = vld [vmem:[#allocation58_spill] sm:$0xff] }
 0x42b   :  { %v13149_v24 = vsel %vm13104_vm4, %v12758_v50, %v6117_v8  ;;  %v6566_v25 = vsub.s32 32, %v6565_v22  ;;  %v6570_v9 = vsub.s32 4294967266, %v6565_v22  ;;  %v6567_v46 = vshll.u32 %v13078_v45, %v6565_v22  ;;  %v13172_v20 = vpop.eup %8291  ;;  %v14538_v8 = vld [vmem:[#allocation40_spill] sm:$0xff] }
 0x42c   :  { %v6122_v38 = vmul.f32 %v13149_v24, %v13149_v24  ;;  %v5542_v45 = vmul.f32 %v12804_v43, %v14535_v48  ;;  %v13178_v12 = vmul.f32 %v14537_v30, %v14536_v54  ;;  %v13182_v49 = vmul.f32 %v14537_v30, %v14538_v8  ;;  %v14539_v48 = vld [vmem:[#allocation59_spill] sm:$0xff] }
 0x42d   :  { %v6568_v53 = vshrl.u32 %v6550_v17, %v6566_v25  ;;  %v6571_v35 = vadd.s32 127, %v6570_v9  ;;  %v6583_v25 = vsel %vm13131_vm11, 0, %v6581_v26  ;;  %vm6143_vm8 = vcmp.eq.s32.totalorder %v13163_v56, 2 }
 0x42e   :  { %v6123_v15 = vmul.f32 -0.001358992, %v6122_v38  ;;  %v6130_v3 = vmul.f32 -0.00019511016, %v6122_v38  ;;  %5557 = vmatpush.msra.mxu1 %v5542_v45  ;;  %v13976_v9 = vand.u32 2147483647, %v13161_v61  ;;  %v13196_v45 = vmul.f32 %v12766_v4, %v14539_v48 }
 0x42f   :  { %v6569_v32 = vor.u32 %v6568_v53, %v6567_v46  ;;  %v6572_v2 = vshll.u32 %v6571_v35, 23  ;;  %v6152_v60 = vshrl.u32 %v6151_v6, 23  ;;  %v5927_v46 = vmul.f32 %v13172_v20, %v13115_v44 }
 0x430   :  { %v6124_v31 = vadd.f32 0.041655596, %v6123_v15  ;;  %v6131_v41 = vadd.f32 0.008332121, %v6130_v3  ;;  %vm6768_vm5 = vcmp.eq.s32.totalorder %v13165_v37, 2  ;;  %v174_v3 = vpop.f32.mrf.mxu2  ;;  %vm6140_vm9 = vcmp.eq.s32.totalorder %v13163_v56, 0 }
 0x431   :  { %v6573_v17 = vor.u32 4788187, %v6572_v2  ;;  %v6576_v35 = vcvt.s32.f32 %v6569_v32  ;;  %vm6765_vm10 = vcmp.eq.s32.totalorder %v13165_v37, 0  ;;  %v7227_v26 = vadd.s32 3, %v6583_v25 }
 0x432   :  { %v6125_v22 = vmul.f32 %v6124_v31, %v6122_v38  ;;  %v6132_v34 = vmul.f32 %v6131_v41, %v6122_v38  ;;  %v13200_v31 = vmul.f32 %v13178_v12, %v14536_v54  ;;  %v7747_v41 = vadd.s32 4294967169, %v6152_v60 }
 0x433   :  { %v6574_v53 = vand.u32 2147483647, %v6573_v17  ;;  %vm6139_vm0 = vcmp.lt.s32.totalorder %v13163_v56, 2  ;;  %vm6764_vm7 = vcmp.lt.s32.totalorder %v13165_v37, 2  ;;  %v13206_v6 = vmul.f32 %v13182_v49, %v14538_v8 }
 0x434   :  { %v6126_v40 = vadd.f32 -0.4999988, %v6125_v22  ;;  %v6133_v15 = vadd.f32 -0.16666654, %v6132_v34  ;;  %v13211_v34 = vsel %vm12645_vm14, %v174_v3, 0.0  ;;  %v13213_v17 = vand.u32 3, %v6583_v25 }
 0x435   :  { %v6577_v32 = vmul.f32 %v6576_v35, %v6574_v53  ;;  %v5928_v60 = vmul.f32 %v13172_v20, %v5927_v46  ;;  %v6158_v35 = vadd.s32 1, %v7747_v41  ;;  %v13218_v48 = vand.u32 3, %v7227_v26 }
 0x436   :  { %v6127_v2 = vmul.f32 %v6126_v40, %v6122_v38  ;;  %v6134_v30 = vmul.f32 %v6133_v15, %v6122_v38  ;;  %v6155_v38 = vand.u32 8388607, %v13976_v9  ;;  %v5592_v3 = vmul.f32 %v13111_v10, %v14530_v19 }
 0x437   :  { %v6578_v53 = vxor.u32 2147483648, %v6577_v32  ;;  %v13228_v25 = vmul.f32 %v12804_v43, %v14541_v62  ;;  %v13235_v26 = vmul.f32 %v12804_v43, %v14530_v19  ;;  %v13244_v10 = vmul.f32 %v12858_v59, %v14530_v19  ;;  %v14544_v59 = vld [vmem:[#allocation63_spill] sm:$0xff] }
 0x438   :  { %v6128_v40 = vadd.f32 1.0, %v6127_v2  ;;  %v6135_v15 = vadd.f32 1.0, %v6134_v30  ;;  %v6156_v62 = vor.u32 8388608, %v6155_v38  ;;  %v13246_v30 = vmul.f32 0.5, %v5928_v60  ;;  %v14545_v38 = vld [vmem:[#allocation76_spill] sm:$0xff] }
 0x439   :  { %v6579_v2 = vsel %vm6458_vm12, %v6578_v53, %v6577_v32  ;;  %vm6159_vm14 = vcmp.gt.s32.totalorder %v6158_v35, 0  ;;  %v14543_v53 = vld [vmem:[#allocation7_spill] sm:$0xff]  ;;  %v5541_v60 = vmul.f32 %v12794_v21, %v14545_v38  ;;  %vm6605_vm3 = vcmp.eq.s32.totalorder %v13213_v17, 2 }
 0x43a   :  { %v6136_v22 = vmul.f32 %v6135_v15, %v13149_v24  ;;  %v6144_v46 = vxor.u32 2147483648, %v6128_v40  ;;  %v13240_v41 = vsel %vm13131_vm11, %v12727_v0, %v6579_v2  ;;  %v14542_v15 = vld [vmem:[#allocation30_spill] sm:$0xff]  ;;  %v5449_v19 = vmul.f32 %v14543_v53, %v14544_v59 }
 0x43b   :  { %v6584_v43 = vmul.f32 %v13240_v41, %v13240_v41  ;;  %v13256_v2 = vmul.f32 %v14543_v53, %v14542_v15  ;;  %v5593_v53 = vmul.f32 %v12954_v52, %v14511_v13  ;;  %v6160_v38 = vsel %vm6159_vm14, %v6158_v35, 0  ;;  %5558 = vmatpush.msra.mxu1 %v5541_v60 }
 0x43c   :  { %v6141_v24 = vxor.u32 2147483648, %v6136_v22  ;;  %v6145_v32 = vsel %vm6143_vm8, %v6144_v46, %v6136_v22  ;;  %v6770_v14 = vsel %vm6768_vm5, %v6144_v46, %v6136_v22  ;;  %5533 = vmatpush.msrb.mxu3 %v5449_v19  ;;  %v5618_v52 = vmul.f32 %v12947_v51, %v14510_v63 }
 0x43d   :  { %v6585_v11 = vmul.f32 -0.001358992, %v6584_v43  ;;  %v6592_v57 = vmul.f32 -0.00019511016, %v6584_v43  ;;  %5512 = vmatpush.msra.mxu2 %v13256_v2  ;;  %v13285_v50 = vshll.u32 %v6156_v62, 8  ;;  %v5566_v62 = vmul.f32 %v13256_v2, %v14542_v15  ;;  %5559 = vmatpush.msra.mxu1 %v13196_v45 }
 0x43e   :  { %v6142_v9 = vsel %vm6140_vm9, %v6128_v40, %v6141_v24  ;;  %v6767_v29 = vsel %vm6765_vm10, %v6128_v40, %v6141_v24  ;;  %5534 = vmatpush.msrb.mxu3 %v13182_v49  ;;  %vm6602_vm4 = vcmp.eq.s32.totalorder %v13213_v17, 0  ;;  %vm7230_vm12 = vcmp.eq.s32.totalorder %v13218_v48, 0  ;;  %7730 = vmatmul.msk.f32.vlgmr.msra.gmra.mxu1 %vm3429_vm15, %v13060_v1 }
 0x43f   :  { %v6146_v22 = vsel %vm6139_vm0, %v6142_v9, %v6145_v32  ;;  %v6771_v46 = vsel %vm6764_vm7, %v6767_v29, %v6770_v14  ;;  %v6586_v24 = vadd.f32 0.041655596, %v6585_v11  ;;  %v6593_v61 = vadd.f32 0.008332121, %v6592_v57  ;;  %5513 = vmatpush.msra.mxu2 %v13178_v12  ;;  %7729 = vmatmul.msk.f32.vlgmr.msrb.gmra.mxu3 %vm3429_vm15, %v13060_v1 }
 0x440   :  { %v6147_v16 = vsel %vm6137_vm13, nan, %v6146_v22  ;;  %v6772_v40 = vsel %vm6137_vm13, nan, %v6771_v46  ;;  %v5568_v29 = vmul.f32 %v12950_v27, %v14510_v63  ;;  %7728 = vmatmul.msk.f32.vlgmr.msra.gmra.mxu2 %vm3429_vm15, %v13060_v1  ;;  %5606 = vmatpush.msra.mxu3 %v5593_v53  ;;  %v5643_v57 = vmul.f32 %v12947_v51, %v14511_v13 }
 0x441   :  { %v6610_v56 = vadd.f32 1.0, %v6147_v16  ;;  %v7238_v9 = vmul.f32 -0.5235988, %v6772_v40  ;;  %v6587_v37 = vmul.f32 %v6586_v24, %v6584_v43  ;;  %v6594_v35 = vmul.f32 %v6593_v61, %v6584_v43  ;;  %5631 = vmatpush.msrb.mxu1 %v5618_v52 }
 0x442   :  { %v5930_v16 = vsub.f32 1.5, %v13246_v30  ;;  %5581 = vmatpush.msrb.mxu2 %v5568_v29  ;;  %v5668_v63 = vmul.f32 %v12950_v27, %v14511_v13  ;;  %v13294_v61 = vand.u32 31, %v6160_v38  ;;  %5607 = vmatpush.msra.mxu3 %v5592_v3  ;;  %v5591_v30 = vmul.f32 %v5449_v19, %v14544_v59 }
 0x443   :  { %v6614_v11 = vmul.f32 0.5, %v6610_v56  ;;  %v6588_v49 = vadd.f32 -0.4999988, %v6587_v37  ;;  %v6595_v32 = vadd.f32 -0.16666654, %v6594_v35  ;;  %v7254_v27 = vmul.f32 %v7238_v9, %v13141_v18  ;;  %5632 = vmatpush.msrb.mxu1 %v13228_v25  ;;  %v14548_v9 = vld [vmem:[#allocation43_spill] sm:$0xff] }
 0x444   :  { %vm7233_vm11 = vcmp.eq.s32.totalorder %v13218_v48, 2  ;;  %5582 = vmatpush.msrb.mxu2 %v13222_v28  ;;  %v13309_v13 = vsub.s32 32, %v13294_v61  ;;  %vm6601_vm1 = vcmp.lt.s32.totalorder %v13213_v17, 2  ;;  %vm7229_vm8 = vcmp.lt.s32.totalorder %v13218_v48, 2  ;;  %5608 = vmatpush.msra.mxu3 %v5591_v30 }
 0x445   :  { %v7242_v14 = vmul.f32 %v6614_v11, %v13141_v18  ;;  %v7250_v51 = vmul.f32 %v6614_v11, %v13174_v36  ;;  %v6589_v3 = vmul.f32 %v6588_v49, %v6584_v43  ;;  %v6596_v45 = vmul.f32 %v6595_v32, %v6584_v43 }
 0x446   :  { %v13316_v18 = vand.u32 65535, %v13285_v50  ;;  %v13319_v36 = vmul.f32 %v13172_v20, %v5930_v16  ;;  %vm6599_vm5 = vweird.f32 %v12727_v0  ;;  %5583 = vmatpush.msrb.mxu2 %v5566_v62  ;;  %v5616_v43 = vmul.f32 %v12794_v21, %v14542_v15  ;;  %5609 = vmatpush.msra.mxu3 %v13206_v6 }
 0x447   :  { %v13322_v28 = vmul.f32 %v7242_v14, %v13123_v23  ;;  %v7258_v19 = vadd.f32 %v7254_v27, %v7250_v51  ;;  %v13328_v60 = vshrl.u32 %v6160_v38, 5  ;;  %v6590_v22 = vadd.f32 1.0, %v6589_v3  ;;  %7732 = vmatmul.msk.f32.vlgmr.msra.gmra.mxu3 %vm3429_vm15, %v13060_v1 }
 0x448   :  { %v6597_v46 = vadd.f32 1.0, %v6596_v45  ;;  %v14546_v53 = vmov 2475754826   ;;  %v14547_v24 = vmov 2131351028   ;;  %5584 = vmatpush.msrb.mxu2 %v13200_v31  ;;  %5681 = vmatpush.msrb.mxu3 %v5668_v63  ;;  %v6165_v25 = vshll.u32 %v14468_v55, %v13294_v61 }
 0x449   :  { %v6166_v40 = vshrl.u32 %v14546_v53, %v13309_v13  ;;  %v6169_v56 = vshrl.u32 %v14547_v24, %v13309_v13  ;;  %v7262_v29 = vmul.f32 %v7258_v19, %v14548_v9  ;;  %v6172_v15 = vshrl.u32 %v14471_v58, %v13309_v13  ;;  %5633 = vmatpush.msrb.mxu1 %v5616_v43 }
 0x44a   :  { %v13342_v38 = vshrl.u32 %v13285_v50, 16  ;;  %v6598_v6 = vmul.f32 %v6597_v46, %v13240_v41  ;;  %v6606_v52 = vxor.u32 2147483648, %v6590_v22  ;;  %5656 = vmatpush.msra.mxu2 %v5643_v57  ;;  %v5641_v37 = vmul.f32 %v12794_v21, %v14544_v59  ;;  %5682 = vmatpush.msrb.mxu3 %v13244_v10 }
 0x44b   :  { %v6168_v31 = vshll.u32 %v14546_v53, %v13294_v61  ;;  %v13350_v35 = vmul.f32 %v7262_v29, %v13123_v23  ;;  %7731 = vmatmul.msk.f32.vlgmr.msrb.gmra.mxu2 %vm3429_vm15, %v13060_v1  ;;  %v13356_v16 = vor.u32 %v6166_v40, %v6165_v25  ;;  %v6171_v41 = vshll.u32 %v14547_v24, %v13294_v61 }
 0x44c   :  { %vm6180_vm9 = vcmp.lt.s32.totalorder %v13328_v60, 1  ;;  %v6603_v21 = vxor.u32 2147483648, %v6598_v6  ;;  %5657 = vmatpush.msra.mxu2 %v13235_v26  ;;  %v6174_v11 = vshll.u32 %v14471_v58, %v13294_v61  ;;  %v6175_v57 = vshrl.u32 %v14472_v47, %v13309_v13 }
 0x44d   :  { %v13363_v23 = vor.u32 %v6169_v56, %v6168_v31  ;;  %v6607_v63 = vsel %vm6605_vm3, %v6606_v52, %v6598_v6  ;;  %v13371_v49 = vor.u32 %v6172_v15, %v6171_v41  ;;  %v6177_v32 = vshll.u32 %v14472_v47, %v13294_v61 }
 0x44e   :  { %v6178_v26 = vshrl.u32 %v14473_v39, %v13309_v13  ;;  %vm5933_vm10 = vweird.f32 %v13172_v20  ;;  %v6604_v10 = vsel %vm6602_vm4, %v6590_v22, %v6603_v21  ;;  %v7232_v62 = vsel %vm7230_vm12, %v6590_v22, %v6603_v21  ;;  %5658 = vmatpush.msra.mxu2 %v5641_v37 }
 0x44f   :  { %v7235_v30 = vsel %vm7233_vm11, %v6606_v52, %v6598_v6  ;;  %v6176_v14 = vor.u32 %v6175_v57, %v6174_v11  ;;  %v6608_v51 = vsel %vm6601_vm1, %v6604_v10, %v6607_v63  ;;  %vm6182_vm0 = vcmp.lt.s32.totalorder %v13328_v60, 3  ;;  %v14549_v10 = vld [vmem:[#allocation89_spill] sm:$0xff] }
 0x450   :  { %v7236_v61 = vsel %vm7229_vm8, %v7232_v62, %v7235_v30  ;;  %v6179_v27 = vor.u32 %v6178_v26, %v6177_v32  ;;  %v6609_v3 = vsel %vm6599_vm5, nan, %v6608_v51  ;;  %vm6183_vm7 = vcmp.lt.s32.totalorder %v13328_v60, 4 }
 0x451   :  { %v7237_v45 = vsel %vm6599_vm5, nan, %v7236_v61  ;;  %v6188_v17 = vsel %vm6180_vm9, %v13356_v16, %v13363_v23  ;;  %v6613_v19 = vadd.f32 1.0, %v6609_v3  ;;  %v6189_v48 = vsel %vm6183_vm7, %v6176_v14, 920167782 }
 0x452   :  { %v7241_v43 = vmul.f32 -0.5235988, %v7237_v45  ;;  %v6192_v22 = vsel %vm6180_vm9, %v13363_v23, %v13371_v49  ;;  %vm6181_vm13 = vcmp.lt.s32.totalorder %v13328_v60, 2  ;;  %v6190_v0 = vsel %vm6182_vm0, %v13371_v49, %v6189_v48 }
 0x453   :  { %v6193_v46 = vsel %vm6183_vm7, %v6179_v27, 1326507024  ;;  %v5615_v40 = vmul.f32 %v12766_v4, %v14536_v54  ;;  %v6617_v56 = vmul.f32 0.5, %v6613_v19  ;;  %v6191_v29 = vsel %vm6181_vm13, %v6188_v17, %v6190_v0 }
 0x454   :  { %v7257_v9 = vmul.f32 %v7241_v43, %v13119_v5  ;;  %v6194_v25 = vsel %vm6182_vm0, %v6176_v14, %v6193_v46  ;;  %v6221_v6 = vand.u32 65535, %v6191_v29  ;;  %v6222_v52 = vshrl.u32 %v6191_v29, 16 }
 0x455   :  { %v6195_v15 = vsel %vm6181_vm13, %v6192_v22, %v6194_v25  ;;  %5634 = vmatpush.msrb.mxu1 %v5615_v40  ;;  %v5640_v37 = vmul.f32 %v12766_v4, %v14538_v8  ;;  %v7245_v54 = vmul.f32 %v6617_v56, %v13119_v5  ;;  %v7253_v31 = vmul.f32 %v6617_v56, %v13127_v33 }
 0x456   :  { %v6199_v41 = vand.u32 65535, %v6195_v15  ;;  %v6200_v21 = vshrl.u32 %v6195_v15, 16  ;;  %7733 = vmatmul.msk.f32.vlgmr.msrb.gmra.mxu1 %vm3429_vm15, %v13060_v1  ;;  %v6224_v11 = vmul.u32 %v6222_v52, %v13316_v18  ;;  %v6225_v57 = vmul.u32 %v6221_v6, %v13342_v38 }
 0x457   :  { %5659 = vmatpush.msra.mxu2 %v5640_v37  ;;  %v7249_v63 = vmul.f32 %v7245_v54, %v13211_v34  ;;  %v7261_v32 = vadd.f32 %v7257_v9, %v7253_v31  ;;  %vm5932_vm14 = vweird.f32 %v13115_v44  ;;  %v6223_v5 = vmul.u32 %v6221_v6, %v13316_v18 }
 0x458   :  { %v6202_v26 = vmul.u32 %v6200_v21, %v13316_v18  ;;  %7734 = vmatmul.msk.f32.vlgmr.msra.gmra.mxu2 %vm3429_vm15, %v13060_v1  ;;  %v6203_v4 = vmul.u32 %v6199_v41, %v13342_v38  ;;  %v6227_v33 = vshll.u32 %v6224_v11, 16  ;;  %vm5934_vm3 = vmor %vm5932_vm14, %vm5933_vm10  ;;  %v6201_v30 = vmul.u32 %v6199_v41, %v13316_v18 }
 0x459   :  { %v7265_v62 = vmul.f32 %v7261_v32, %v14549_v10  ;;  %7298 = vmatpush.msra.mxu1 %v7249_v63  ;;  %v13440_v51 = vsel %vm5934_vm3, %v13172_v20, %v13319_v36  ;;  %v6204_v61 = vmul.u32 %v6200_v21, %v13342_v38  ;;  %v6226_v27 = vmul.u32 %v6222_v52, %v13342_v38  ;;  %v14550_v20 = vld [vmem:[#allocation72_spill] sm:$0xff] }
 0x45a   :  { %v6205_v14 = vshll.u32 %v6202_v26, 16  ;;  %v6229_v3 = vshll.u32 %v6225_v57, 16  ;;  %vm6231_vm4 = vc.u32 %v6223_v5, %v6227_v33  ;;  %v6207_v18 = vshll.u32 %v6203_v4, 16 }
 0x45b   :  { %v13445_v45 = vmul.f32 %v7265_v62, %v13211_v34  ;;  %v6232_v19 = vsel %vm6231_vm4, 1, %v14476_v7  ;;  %v6233_v48 = vadd.s32 %v6227_v33, %v6223_v5  ;;  %v6185_v38 = vsel %vm6183_vm7, %v13371_v49, 2102212464 }
 0x45c   :  { %vm6209_vm12 = vc.u32 %v6201_v30, %v6205_v14  ;;  %v6211_v17 = vadd.s32 %v6205_v14, %v6201_v30  ;;  %v6234_v22 = vadd.s32 %v6232_v19, %v6226_v27  ;;  %v13458_v34 = vmul.f32 %v13440_v51, %v13115_v44 }
 0x45d   :  { %v6210_v43 = vsel %vm6209_vm12, 1, %v14476_v7  ;;  %v13451_v36 = vmul.f32 %v13445_v45, %v14550_v20  ;;  %vm6235_vm1 = vc.u32 %v6233_v48, %v6229_v3  ;;  %v6164_v46 = vshrl.u32 %v14468_v55, %v13309_v13 }
 0x45e   :  { %v6212_v0 = vadd.s32 %v6210_v43, %v6204_v61  ;;  %vm6213_vm11 = vc.u32 %v6211_v17, %v6207_v18  ;;  %v6228_v56 = vshrl.u32 %v6224_v11, 16  ;;  %v6236_v9 = vsel %vm6235_vm1, 1, %v14476_v7 }
 0x45f   :  { %v6214_v40 = vsel %vm6213_vm11, 1, %v14476_v7  ;;  %7319 = vmatpush.msrb.mxu2 %v13451_v36  ;;  %v6206_v29 = vshrl.u32 %v6202_v26, 16  ;;  %v6238_v15 = vadd.s32 %v6236_v9, %v6234_v22  ;;  %v13466_v49 = vmul.f32 1.0471976, %v13458_v34 }
 0x460   :  { %v6216_v25 = vadd.s32 %v6214_v40, %v6212_v0  ;;  %v6184_v44 = vsel %vm6180_vm9, %v6164_v46, %v13356_v16  ;;  %v6186_v13 = vsel %vm6182_vm0, %v13363_v23, %v6185_v38  ;;  %v6208_v6 = vshrl.u32 %v6203_v4, 16 }
 0x461   :  { %v6230_v37 = vshrl.u32 %v6225_v57, 16  ;;  %v6239_v54 = vadd.s32 %v6238_v15, %v6228_v56  ;;  %v6305_v31 = vand.u32 2139095040, %v13466_v49  ;;  %v6187_v41 = vsel %vm6181_vm13, %v6184_v44, %v6186_v13 }
 0x462   :  { %v6217_v52 = vadd.s32 %v6216_v25, %v6206_v29  ;;  %v6237_v11 = vadd.s32 %v6233_v48, %v6229_v3  ;;  %v6241_v16 = vmul.u32 %v13285_v50, %v6187_v41  ;;  %v6302_v14 = vand.u32 2147483647, %v13466_v49 }
 0x463   :  { %v6240_v63 = vadd.s32 %v6239_v54, %v6230_v37  ;;  %v6306_v32 = vshrl.u32 %v6305_v31, 23 }
 0x464   :  { %v6218_v21 = vadd.s32 %v6217_v52, %v6208_v6  ;;  %v6309_v19 = vand.u32 8388607, %v6302_v14  ;;  %v7737_v6 = vadd.f32 -1.2, %v13138_v42 }
 0x465   :  { %v6244_v26 = vadd.s32 1, %v6240_v63  ;;  %v7750_v5 = vadd.s32 4294967169, %v6306_v32 }
 0x466   :  { %vm6243_vm8 = vc.u32 %v6218_v21, %v6237_v11  ;;  %v13525_v32 = vmul.f32 -1.5, %v7737_v6 }
 0x467   :  { %v6245_v33 = vsel %vm6243_vm8, %v6244_v26, %v6240_v63  ;;  %v6312_v4 = vadd.s32 1, %v7750_v5 }
 0x468   :  { %v6246_v23 = vadd.s32 %v6245_v33, %v6241_v16 }
 0x469   :  { %vm6313_vm5 = vcmp.gt.s32.totalorder %v6312_v4, 0 }
 0x46a   :  { %v6247_v10 = vadd.s32 536870912, %v6246_v23  ;;  %v6314_v57 = vsel %vm6313_vm5, %v6312_v4, 0 }
 0x46b   :  { %v6316_v30 = vand.u32 31, %v6314_v57  ;;  %v13497_v46 = vshrl.u32 %v6314_v57, 5 }
 0x46c   :  { %v13478_v62 = vshrl.u32 %v6247_v10, 30 }
 0x46d   :  { %v13482_v61 = vsub.s32 32, %v6316_v30  ;;  %v6319_v18 = vshll.u32 %v14468_v55, %v6316_v30  ;;  %v6322_v43 = vshll.u32 %v14546_v53, %v6316_v30  ;;  %v6328_v22 = vshll.u32 %v14471_v58, %v6316_v30 }
 0x46e   :  { %v6249_v60 = vshll.u32 %v13478_v62, 30  ;;  %v6325_v40 = vshll.u32 %v14547_v24, %v6316_v30  ;;  %v6331_v44 = vshll.u32 %v14472_v47, %v6316_v30  ;;  %vm6334_vm10 = vcmp.lt.s32.totalorder %v13497_v46, 1 }
 0x46f   :  { %v6320_v50 = vshrl.u32 %v14546_v53, %v13482_v61  ;;  %v6323_v3 = vshrl.u32 %v14547_v24, %v13482_v61  ;;  %v6326_v48 = vshrl.u32 %v14471_v58, %v13482_v61  ;;  %v6329_v0 = vshrl.u32 %v14472_v47, %v13482_v61 }
 0x470   :  { %v6250_v27 = vsub.s32 %v6246_v23, %v6249_v60  ;;  %v6310_v53 = vor.u32 8388608, %v6309_v19  ;;  %v6332_v58 = vshrl.u32 %v14473_v39, %v13482_v61  ;;  %vm6337_vm0 = vcmp.lt.s32.totalorder %v13497_v46, 4 }
 0x471   :  { %v13500_v9 = vor.u32 %v6320_v50, %v6319_v18  ;;  %v13502_v29 = vor.u32 %v6323_v3, %v6322_v43  ;;  %v6330_v25 = vor.u32 %v6329_v0, %v6328_v22  ;;  %v6327_v15 = vor.u32 %v6326_v48, %v6325_v40  ;;  %v14552_v48 = vld [vmem:[#allocation73_spill] sm:$0xff] }
 0x472   :  { %vm6251_vm9 = vcmp.lt.s32.totalorder %v6250_v27, 0  ;;  %v6252_v17 = vsub.s32 0, %v6250_v27  ;;  %v6333_v52 = vor.u32 %v6332_v58, %v6331_v44  ;;  %vm6336_vm13 = vcmp.lt.s32.totalorder %v13497_v46, 3 }
 0x473   :  { %v6342_v24 = vsel %vm6334_vm10, %v13500_v9, %v13502_v29  ;;  %v6343_v47 = vsel %vm6337_vm0, %v6330_v25, 920167782  ;;  %v6242_v39 = vadd.s32 %v6237_v11, %v6218_v21  ;;  %v13519_v54 = vshll.u32 %v6310_v53, 8 }
 0x474   :  { %v6253_v38 = vsel %vm6251_vm9, %v6252_v17, %v6250_v27  ;;  %v6344_v42 = vsel %vm6336_vm13, %v6327_v15, %v6343_v47  ;;  %vm6335_vm14 = vcmp.lt.s32.totalorder %v13497_v46, 2  ;;  %v6346_v63 = vsel %vm6334_vm10, %v13502_v29, %v6327_v15  ;;  %v14551_v17 = vld [vmem:[#allocation62_spill] sm:$0xff] }
 0x475   :  { %v6254_v56 = vclz %v6253_v38  ;;  %v6345_v21 = vsel %vm6335_vm14, %v6342_v24, %v6344_v42  ;;  %v6347_v11 = vsel %vm6337_vm0, %v6333_v52, 1326507024  ;;  %v6351_v10 = vand.u32 65535, %v13519_v54 }
 0x476   :  { %v6348_v33 = vsel %vm6336_vm13, %v6330_v25, %v6347_v11  ;;  %v6375_v23 = vand.u32 65535, %v6345_v21  ;;  %v6352_v57 = vshrl.u32 %v13519_v54, 16  ;;  %v6376_v30 = vshrl.u32 %v6345_v21, 16 }
 0x477   :  { %v7748_v13 = vadd.s32 4294967294, %v6254_v56  ;;  %v6349_v4 = vsel %vm6335_vm14, %v6346_v63, %v6348_v33  ;;  %v5666_v50 = vmul.f32 %v13256_v2, %v14544_v59  ;;  %vm6150_vm3 = vcmp.lt.s32.totalorder %v14551_v17, 0 }
 0x478   :  { %v6353_v3 = vand.u32 65535, %v6349_v4  ;;  %v5665_v19 = vmul.f32 %v13178_v12, %v14538_v8  ;;  %v6354_v18 = vshrl.u32 %v6349_v4, 16  ;;  %v6378_v43 = vmul.u32 %v6376_v30, %v6351_v10 }
 0x479   :  { %vm7749_vm7 = vcmp.lt.s32.totalorder %v7748_v13, 0  ;;  %v13544_v22 = vmul.f32 %v13445_v45, %v14552_v48  ;;  %v14553_v0 = vand.u32 2147483647, %v14551_v17  ;;  %v6272_v2 = vsub.s32 4, %v13478_v62  ;;  %5683 = vmatpush.msrb.mxu3 %v5666_v50 }
 0x47a   :  { %v6257_v37 = vsel %vm7749_vm7, 0, %v7748_v13  ;;  %v6379_v59 = vmul.u32 %v6375_v23, %v6352_v57  ;;  %v6318_v12 = vshrl.u32 %v14468_v55, %v13482_v61  ;;  %v6356_v8 = vmul.u32 %v6354_v18, %v6351_v10 }
 0x47b   :  { %v6258_v31 = vsub.s32 32, %v6257_v37  ;;  %v6262_v41 = vsub.s32 4294967266, %v6257_v37  ;;  %v6259_v26 = vshll.u32 %v6250_v27, %v6257_v37  ;;  %vm13548_vm4 = vcmp.le.f32.partialorder %v14553_v0, 0.7853982  ;;  %5684 = vmatpush.msrb.mxu3 %v5665_v19 }
 0x47c   :  { %v6357_v56 = vmul.u32 %v6353_v3, %v6352_v57  ;;  %v6381_v25 = vshll.u32 %v6378_v43, 16  ;;  %v6339_v58 = vsel %vm6337_vm0, %v6327_v15, 2102212464  ;;  %v6377_v13 = vmul.u32 %v6375_v23, %v6351_v10  ;;  %7735 = vmatmul.msk.f32.vlgmr.msrb.gmra.mxu3 %vm3429_vm15, %v13060_v1 }
 0x47d   :  { %v6260_v16 = vshrl.u32 %v6242_v39, %v6258_v31  ;;  %v6263_v5 = vadd.s32 127, %v6262_v41  ;;  %7340 = vmatpush.msra.mxu3 %v13544_v22  ;;  %v6355_v6 = vmul.u32 %v6353_v3, %v6351_v10  ;;  %v6358_v52 = vmul.u32 %v6354_v18, %v6352_v57 }
 0x47e   :  { %v6359_v24 = vshll.u32 %v6356_v8, 16  ;;  %v6380_v47 = vmul.u32 %v6376_v30, %v6352_v57  ;;  %v6383_v55 = vshll.u32 %v6379_v59, 16  ;;  %vm6385_vm12 = vc.u32 %v6377_v13, %v6381_v25 }
 0x47f   :  { %v6261_v60 = vor.u32 %v6260_v16, %v6259_v26  ;;  %v6264_v27 = vshll.u32 %v6263_v5, 23  ;;  %v6387_v61 = vadd.s32 %v6381_v25, %v6377_v13  ;;  %v6361_v37 = vshll.u32 %v6357_v56, 16 }
 0x480   :  { %vm6363_vm11 = vc.u32 %v6355_v6, %v6359_v24  ;;  %v6365_v42 = vadd.s32 %v6359_v24, %v6355_v6  ;;  %v6386_v31 = vsel %vm6385_vm12, 1, %v14476_v7  ;;  %v6338_v26 = vsel %vm6334_vm10, %v6318_v12, %v13500_v9 }
 0x481   :  { %v6265_v40 = vor.u32 4788187, %v6264_v27  ;;  %v6268_v44 = vcvt.s32.f32 %v6261_v60  ;;  %v6364_v41 = vsel %vm6363_vm11, 1, %v14476_v7  ;;  %v6388_v63 = vadd.s32 %v6386_v31, %v6380_v47 }
 0x482   :  { %vm6389_vm1 = vc.u32 %v6387_v61, %v6383_v55  ;;  %v6366_v21 = vadd.s32 %v6364_v41, %v6358_v52  ;;  %vm6367_vm8 = vc.u32 %v6365_v42, %v6361_v37  ;;  %v6382_v5 = vshrl.u32 %v6378_v43, 16 }
 0x483   :  { %v6266_v53 = vand.u32 2147483647, %v6265_v40  ;;  %v6390_v1 = vsel %vm6389_vm1, 1, %v14476_v7  ;;  %v6368_v16 = vsel %vm6367_vm8, 1, %v14476_v7  ;;  %v6340_v4 = vsel %vm6336_vm13, %v13502_v29, %v6339_v58 }
 0x484   :  { %v6392_v33 = vadd.s32 %v6390_v1, %v6388_v63  ;;  %v6360_v9 = vshrl.u32 %v6356_v8, 16  ;;  %v6370_v10 = vadd.s32 %v6368_v16, %v6366_v21  ;;  %v6384_v30 = vshrl.u32 %v6379_v59, 16 }
 0x485   :  { %v6269_v39 = vmul.f32 %v6268_v44, %v6266_v53  ;;  %v5964_v27 = vmul.f32 1.442695, %v13525_v32  ;;  %v6273_v7 = vsel %vm6150_vm3, %v6272_v2, %v13478_v62  ;;  %v6362_v50 = vshrl.u32 %v6357_v56, 16 }
 0x486   :  { %v6393_v60 = vadd.s32 %v6392_v33, %v6382_v5  ;;  %v6371_v3 = vadd.s32 %v6370_v10, %v6360_v9  ;;  %v6341_v43 = vsel %vm6335_vm14, %v6338_v26, %v6340_v4  ;;  %v13583_v40 = vadd.s32 %v6387_v61, %v6383_v55 }
 0x487   :  { %v6270_v15 = vxor.u32 2147483648, %v6269_v39  ;;  %v6275_v32 = vsel %vm13548_vm4, 0, %v6273_v7  ;;  %v6395_v62 = vmul.u32 %v13519_v54, %v6341_v43  ;;  %8293 = vpow2.f32 %v5964_v27 }
 0x488   :  { %v6394_v0 = vadd.s32 %v6393_v60, %v6384_v30  ;;  %v13581_v29 = vadd.s32 %v6371_v3, %v6362_v50  ;;  %v6917_v58 = vadd.s32 3, %v6275_v32  ;;  %v6292_v24 = vand.u32 3, %v6275_v32  ;;  %v168_v30 = vpop.f32.mrf.mxu0 }
 0x489   :  { %v6271_v11 = vsel %vm6150_vm3, %v6270_v15, %v6269_v39  ;;  %vm6291_vm9 = vweird.f32 %v14551_v17  ;;  %v5951_v43 = vsel %vm13011_vm2, %v168_v30, 0.0  ;;  %vm6304_vm2 = vcmp.lt.s32.totalorder %v13466_v49, 0 }
 0x48a   :  { %v6274_v23 = vsel %vm13548_vm4, %v14551_v17, %v6271_v11  ;;  %v6398_v8 = vadd.s32 1, %v6394_v0  ;;  %vm6397_vm5 = vc.u32 %v13581_v29, %v13583_v40  ;;  %v6918_v55 = vand.u32 3, %v6917_v58 }
 0x48b   :  { %v6276_v57 = vmul.f32 %v6274_v23, %v6274_v23  ;;  %vm6293_vm10 = vcmp.lt.s32.totalorder %v6292_v24, 2  ;;  %vm6294_vm0 = vcmp.eq.s32.totalorder %v6292_v24, 0  ;;  %vm6297_vm7 = vcmp.eq.s32.totalorder %v6292_v24, 2 }
 0x48c   :  { %v6399_v56 = vsel %vm6397_vm5, %v6398_v8, %v6394_v0  ;;  %vm6919_vm13 = vcmp.lt.s32.totalorder %v6918_v55, 2  ;;  %vm6920_vm14 = vcmp.eq.s32.totalorder %v6918_v55, 0  ;;  %vm6923_vm3 = vcmp.eq.s32.totalorder %v6918_v55, 2 }
 0x48d   :  { %v6277_v19 = vmul.f32 -0.001358992, %v6276_v57  ;;  %v6284_v18 = vmul.f32 -0.00019511016, %v6276_v57  ;;  %v6400_v25 = vadd.s32 %v6399_v56, %v6395_v62  ;;  %v8294_v38 = vpop.eup %8293  ;;  %v6396_v17 = vadd.s32 %v13583_v40, %v13581_v29 }
 0x48e   :  { %v7741_v31 = vadd.f32 -2.0, %v8294_v38  ;;  %v5979_v15 = vmul.f32 %v8294_v38, %v8294_v38  ;;  %vm6303_vm11 = vcmp.le.f32.partialorder %v6302_v14, 0.7853982  ;;  %vm6445_vm1 = vweird.f32 %v13466_v49 }
 0x48f   :  { %v6278_v59 = vadd.f32 0.041655596, %v6277_v19  ;;  %v6285_v12 = vadd.f32 0.008332121, %v6284_v18  ;;  %v6401_v13 = vadd.s32 536870912, %v6400_v25 }
 0x490   :  { %v5983_v5 = vsub.f32 %v8294_v38, %v5979_v15  ;;  %v5975_v50 = vmul.f32 %v8294_v38, %v7741_v31 }
 0x491   :  { %v6279_v2 = vmul.f32 %v6278_v59, %v6276_v57  ;;  %v6286_v46 = vmul.f32 %v6285_v12, %v6276_v57  ;;  %v13590_v47 = vshrl.u32 %v6401_v13, 30 }
 0x492   :  { %v5987_v3 = vmul.f32 3.0, %v5983_v5 }
 0x493   :  { %v6280_v53 = vadd.f32 -0.4999988, %v6279_v2  ;;  %v6287_v44 = vadd.f32 -0.16666654, %v6286_v46  ;;  %v6403_v61 = vshll.u32 %v13590_v47, 30 }
 0x495   :  { %v6281_v6 = vmul.f32 %v6280_v53, %v6276_v57  ;;  %v6288_v52 = vmul.f32 %v6287_v44, %v6276_v57  ;;  %v6404_v41 = vsub.s32 %v6400_v25, %v6403_v61  ;;  %v14557_v44 = vld [vmem:[#allocation5_spill] sm:$0xff] }
 0x497   :  { %v6282_v39 = vadd.f32 1.0, %v6281_v6  ;;  %v6289_v54 = vadd.f32 1.0, %v6288_v52  ;;  %vm6405_vm4 = vcmp.lt.s32.totalorder %v6404_v41, 0  ;;  %v6406_v26 = vsub.s32 0, %v6404_v41 }
 0x499   :  { %v6290_v37 = vmul.f32 %v6289_v54, %v6274_v23  ;;  %v6298_v42 = vxor.u32 2147483648, %v6282_v39  ;;  %v6407_v4 = vsel %vm6405_vm4, %v6406_v26, %v6404_v41  ;;  %v7738_v54 = vadd.f32 -1.2, %v13458_v34 }
 0x49a   :  { %v6408_v57 = vclz %v6407_v4 }
 0x49b   :  { %v6295_v63 = vxor.u32 2147483648, %v6290_v37  ;;  %v6299_v1 = vsel %vm6297_vm7, %v6298_v42, %v6290_v37  ;;  %v6925_v16 = vsel %vm6923_vm3, %v6298_v42, %v6290_v37  ;;  %v5960_v55 = vmul.f32 -1.5, %v7738_v54 }
 0x49c   :  { %v7751_v7 = vadd.s32 4294967294, %v6408_v57  ;;  %v6426_v37 = vsub.s32 4, %v13590_v47 }
 0x49d   :  { %v6296_v21 = vsel %vm6294_vm0, %v6282_v39, %v6295_v63  ;;  %v6922_v11 = vsel %vm6920_vm14, %v6282_v39, %v6295_v63  ;;  %v5966_v15 = vmul.f32 1.442695, %v5960_v55  ;;  %v3450_v55 = vpop.f32.mrf.mxu1 }
 0x49e   :  { %v6300_v33 = vsel %vm6293_vm10, %v6296_v21, %v6299_v1  ;;  %v6926_v23 = vsel %vm6919_vm13, %v6922_v11, %v6925_v16  ;;  %vm7752_vm12 = vcmp.lt.s32.totalorder %v7751_v7, 0  ;;  %v6427_v26 = vsel %vm6304_vm2, %v6426_v37, %v13590_v47 }
 0x49f   :  { %v6301_v9 = vsel %vm6291_vm9, nan, %v6300_v33  ;;  %v6927_v10 = vsel %vm6291_vm9, nan, %v6926_v23  ;;  %v6411_v8 = vsel %vm7752_vm12, 0, %v7751_v7  ;;  %8295 = vpow2.f32 %v5966_v15 }
 0x4a0   :  { %v6611_v60 = vadd.f32 1.0, %v6301_v9  ;;  %v7239_v27 = vmul.f32 -0.5235988, %v6927_v10  ;;  %v6412_v32 = vsub.s32 32, %v6411_v8  ;;  %v6416_v62 = vsub.s32 4294967266, %v6411_v8 }
 0x4a1   :  { %v6413_v56 = vshll.u32 %v6404_v41, %v6411_v8  ;;  %v6429_v1 = vsel %vm6303_vm11, 0, %v6427_v26  ;;  %v14562_v26 = vld [vmem:[#allocation14_spill] sm:$0xff] }
 0x4a2   :  { %v6615_v19 = vmul.f32 0.5, %v6611_v60  ;;  %v7255_v12 = vmul.f32 %v7239_v27, %v5975_v50  ;;  %v6414_v25 = vshrl.u32 %v6396_v17, %v6412_v32  ;;  %v6417_v53 = vadd.s32 127, %v6416_v62  ;;  %v171_v62 = vpop.f32.mrf.mxu0 }
 0x4a3   :  { %v7072_v14 = vadd.s32 3, %v6429_v1  ;;  %v6446_v30 = vand.u32 3, %v6429_v1 }
 0x4a4   :  { %v7243_v0 = vmul.f32 %v6615_v19, %v5975_v50  ;;  %v7251_v59 = vmul.f32 %v6615_v19, %v5987_v3  ;;  %v6415_v13 = vor.u32 %v6414_v25, %v6413_v56  ;;  %v6418_v6 = vshll.u32 %v6417_v53, 23 }
 0x4a5   :  { %v8296_v9 = vpop.eup %8295  ;;  %v7073_v60 = vand.u32 3, %v7072_v14  ;;  %vm6447_vm8 = vcmp.lt.s32.totalorder %v6446_v30, 2  ;;  %vm6448_vm5 = vcmp.eq.s32.totalorder %v6446_v30, 0  ;;  %vm6451_vm9 = vcmp.eq.s32.totalorder %v6446_v30, 2 }
 0x4a6   :  { %v13602_v2 = vmul.f32 %v7243_v0, %v5951_v43  ;;  %v7259_v46 = vadd.f32 %v7255_v12, %v7251_v59  ;;  %v6419_v24 = vor.u32 4788187, %v6418_v6  ;;  %v6422_v39 = vcvt.s32.f32 %v6415_v13 }
 0x4a7   :  { %v5980_v50 = vmul.f32 %v8296_v9, %v8296_v9  ;;  %vm7074_vm10 = vcmp.lt.s32.totalorder %v7073_v60, 2  ;;  %vm7075_vm0 = vcmp.eq.s32.totalorder %v7073_v60, 0  ;;  %vm7078_vm7 = vcmp.eq.s32.totalorder %v7073_v60, 2 }
 0x4a8   :  { %v7263_v58 = vmul.f32 %v7259_v46, %v14557_v44  ;;  %v6420_v38 = vand.u32 2147483647, %v6419_v24  ;;  %v7742_v0 = vadd.f32 -2.0, %v8296_v9  ;;  %v5952_v13 = vsel %vm13090_vm6, %v171_v62, 0.0 }
 0x4a9   :  { %v5984_v59 = vsub.f32 %v8296_v9, %v5980_v50  ;;  %v7373_v14 = vmul.f32 %v13451_v36, %v14550_v20  ;;  %v14568_v50 = vld [vmem:[#allocation84_spill] sm:$0xff] }
 0x4aa   :  { %v13605_v52 = vmul.f32 %v7263_v58, %v5951_v43  ;;  %v6423_v29 = vmul.f32 %v6422_v39, %v6420_v38  ;;  %v5976_v25 = vmul.f32 %v8296_v9, %v7742_v0  ;;  %v14567_v9 = vld [vmem:[#allocation38_spill] sm:$0xff]  ;;  %v7448_v0 = vmul.f32 %v13451_v36, %v14552_v48 }
 0x4ab   :  { %v5988_v53 = vmul.f32 3.0, %v5984_v59  ;;  %v7473_v59 = vmul.f32 %v13451_v36, %v14562_v26 }
 0x4ac   :  { %v6424_v40 = vxor.u32 2147483648, %v6423_v29 }
 0x4ae   :  { %v6425_v61 = vsel %vm6304_vm2, %v6424_v40, %v6423_v29 }
 0x4af   :  { %v6428_v42 = vsel %vm6303_vm11, %v13466_v49, %v6425_v61  ;;  %v13626_v49 = vld [vmem:[%s13751_s2 + $0x18] sm:$0xff]  ;;  %v3473_v61 = vpop.f32.mrf.mxu2 }
 0x4b0   :  { %v6430_v31 = vmul.f32 %v6428_v42, %v6428_v42  ;;  %v13628_v37 = vadd.f32 %v3473_v61, %v3450_v55 }
 0x4b2   :  { %v6431_v41 = vmul.f32 -0.001358992, %v6430_v31  ;;  %v6438_v63 = vmul.f32 -0.00019511016, %v6430_v31 }
 0x4b4   :  { %v6432_v34 = vadd.f32 0.041655596, %v6431_v41  ;;  %v6439_v21 = vadd.f32 0.008332121, %v6438_v63  ;;  %v14560_v41 = vld [vmem:[#allocation55_spill] sm:$0xff] }
 0x4b6   :  { %v6433_v11 = vmul.f32 %v6432_v34, %v6430_v31  ;;  %v6440_v16 = vmul.f32 %v6439_v21, %v6430_v31  ;;  %v7281_v34 = vmul.f32 %v13445_v45, %v14562_v26  ;;  %v14563_v21 = vld [vmem:[#allocation53_spill] sm:$0xff] }
 0x4b7   :  { %v7271_v1 = vmul.f32 %v13605_v52, %v14563_v21  ;;  %v3533_v30 = vpop.f32.mrf.mxu2 }
 0x4b8   :  { %v6434_v5 = vadd.f32 -0.4999988, %v6433_v11  ;;  %v6441_v33 = vadd.f32 -0.16666654, %v6440_v16  ;;  %v14564_v11 = vld [vmem:[#allocation41_spill] sm:$0xff] }
 0x4b9   :  { %v13648_v16 = vmul.f32 %v13605_v52, %v14564_v11  ;;  %v7471_v62 = vmul.f32 %v7271_v1, %v14567_v9 }
 0x4ba   :  { %v6435_v23 = vmul.f32 %v6434_v5, %v6430_v31  ;;  %v6442_v4 = vmul.f32 %v6441_v33, %v6430_v31  ;;  %v14559_v31 = vld [vmem:[#allocation56_spill] sm:$0xff]  ;;  %v14566_v33 = vld [vmem:[#allocation83_spill] sm:$0xff] }
 0x4bc   :  { %v6436_v10 = vadd.f32 1.0, %v6435_v23  ;;  %v6443_v57 = vadd.f32 1.0, %v6442_v4  ;;  %v7398_v23 = vmul.f32 %v13544_v22, %v14552_v48  ;;  %v3513_v4 = vpop.f32.mrf.mxu1 }
 0x4be   :  { %v6444_v27 = vmul.f32 %v6443_v57, %v6428_v42  ;;  %v6452_v7 = vxor.u32 2147483648, %v6436_v10  ;;  %v3493_v42 = vpop.f32.mrf.mxu3 }
 0x4bf   :  { %v13668_v57 = vadd.f32 %v3513_v4, %v3493_v42 }
 0x4c0   :  { %v6449_v47 = vxor.u32 2147483648, %v6444_v27  ;;  %v6453_v19 = vsel %vm6451_vm9, %v6452_v7, %v6444_v27  ;;  %v7080_v43 = vsel %vm7078_vm7, %v6452_v7, %v6444_v27 }
 0x4c2   :  { %v6450_v3 = vsel %vm6448_vm5, %v6436_v10, %v6449_v47  ;;  %v7077_v18 = vsel %vm7075_vm0, %v6436_v10, %v6449_v47  ;;  %v7279_v10 = vmul.f32 %v13605_v52, %v14567_v9  ;;  %v7278_v47 = vmul.f32 %v13350_v35, %v14568_v50 }
 0x4c3   :  { %v6454_v12 = vsel %vm6447_vm8, %v6450_v3, %v6453_v19  ;;  %v7081_v8 = vsel %vm7074_vm10, %v7077_v18, %v7080_v43  ;;  %v7371_v52 = vmul.f32 %v7271_v1, %v14563_v21  ;;  %v7396_v3 = vmul.f32 %v13648_v16, %v14564_v11 }
 0x4c4   :  { %v6455_v17 = vsel %vm6445_vm1, nan, %v6454_v12  ;;  %v7082_v32 = vsel %vm6445_vm1, nan, %v7081_v8  ;;  %v7423_v19 = vmul.f32 %v7281_v34, %v14562_v26  ;;  %v13692_v12 = vpop.f32.mrf.mxu1  ;;  %v7421_v8 = vmul.f32 %v7279_v10, %v14567_v9 }
 0x4c5   :  { %v6612_v46 = vadd.f32 1.0, %v6455_v17  ;;  %v7240_v56 = vmul.f32 -0.5235988, %v7082_v32  ;;  %v7420_v36 = vmul.f32 %v7278_v47, %v14568_v50  ;;  %v7446_v32 = vmul.f32 %v7271_v1, %v14564_v11 }
 0x4c6   :  { %v3553_v60 = vpop.f32.mrf.mxu3 }
 0x4c7   :  { %v6616_v44 = vmul.f32 0.5, %v6612_v46  ;;  %v7256_v38 = vmul.f32 %v7240_v56, %v5976_v25  ;;  %v13673_v7 = vadd.f32 %v3553_v60, %v3533_v30  ;;  %v7498_v46 = vmul.f32 %v13544_v22, %v14562_v26 }
 0x4c9   :  { %v7244_v6 = vmul.f32 %v6616_v44, %v5976_v25  ;;  %v7252_v24 = vmul.f32 %v6616_v44, %v5988_v53 }
 0x4cb   :  { %v7248_v39 = vmul.f32 %v7244_v6, %v5952_v13  ;;  %v7260_v54 = vadd.f32 %v7256_v38, %v7252_v24  ;;  %v3593_v24 = vpop.f32.mrf.mxu2 }
 0x4cc   :  { %v3637_v58 = vpop.f32.mrf.mxu1 }
 0x4cd   :  { %v7264_v29 = vmul.f32 %v7260_v54, %v13440_v51  ;;  %7299 = vmatpush.msra.mxu1 %v7248_v39  ;;  %v14561_v51 = vld [vmem:[#allocation70_spill] sm:$0xff] }
 0x4ce   :  { %v3617_v44 = vpop.f32.mrf.mxu3 }
 0x4cf   :  { %v7268_v40 = vmul.f32 %v7264_v29, %v5952_v13  ;;  %7300 = vmatpush.msra.mxu1 %v13602_v2  ;;  %v13637_v2 = vmul.f32 %v13350_v35, %v14561_v51  ;;  %v3638_v22 = vadd.f32 %v3637_v58, %v3617_v44  ;;  %v7496_v13 = vmul.f32 %v13648_v16, %v14567_v9 }
 0x4d1   :  { %v7272_v15 = vmul.f32 %v7268_v40, %v14559_v31  ;;  %v13632_v63 = vmul.f32 %v7268_v40, %v14560_v41  ;;  %7301 = vmatpush.msra.mxu1 %v13322_v28  ;;  %v14565_v28 = vld [vmem:[#allocation35_spill] sm:$0xff]  ;;  %v7280_v45 = vmul.f32 %v7268_v40, %v14566_v33  ;;  %v7370_v18 = vmul.f32 %v13637_v2, %v14561_v51 }
 0x4d2   :  { %7768 = vmatmul.msk.f32.vlgmr.msra.gmra.mxu1 %vm3429_vm15, %v13626_v49  ;;  %v13652_v5 = vmul.f32 %v13350_v35, %v14565_v28  ;;  %v7445_v56 = vmul.f32 %v13637_v2, %v14565_v28  ;;  %v7470_v25 = vmul.f32 %v13637_v2, %v14568_v50 }
 0x4d3   :  { %7320 = vmatpush.msrb.mxu2 %v7272_v15  ;;  %7341 = vmatpush.msra.mxu3 %v13632_v63  ;;  %v7372_v20 = vmul.f32 %v7272_v15, %v14559_v31  ;;  %v7397_v27 = vmul.f32 %v13632_v63, %v14560_v41  ;;  %v7422_v35 = vmul.f32 %v7280_v45, %v14566_v33  ;;  %v3661_v39 = vpop.f32.mrf.mxu2 }
 0x4d4   :  { %7361 = vmatpush.msrb.mxu1 %v7281_v34  ;;  %v7395_v43 = vmul.f32 %v13652_v5, %v14565_v28  ;;  %v7447_v17 = vmul.f32 %v7272_v15, %v14560_v41  ;;  %v7472_v48 = vmul.f32 %v7272_v15, %v14566_v33  ;;  %v7497_v53 = vmul.f32 %v13632_v63, %v14566_v33  ;;  %v3705_v38 = vpop.f32.mrf.mxu1 }
 0x4d5   :  { %7321 = vmatpush.msrb.mxu2 %v7271_v1  ;;  %7342 = vmatpush.msra.mxu3 %v13648_v16  ;;  %v7495_v6 = vmul.f32 %v13652_v5, %v14568_v50  ;;  %v3594_v33 = vadd.f32 %v3593_v24, %v13692_v12 }
 0x4d6   :  { %7362 = vmatpush.msrb.mxu1 %v7280_v45  ;;  %v3681_v54 = vpop.f32.mrf.mxu3 }
 0x4d7   :  { %7322 = vmatpush.msrb.mxu2 %v13637_v2  ;;  %7343 = vmatpush.msra.mxu3 %v13652_v5 }
 0x4d8   :  { %7769 = vmatmul.msk.f32.vlgmr.msrb.gmra.mxu2 %vm3429_vm15, %v13626_v49  ;;  %7770 = vmatmul.msk.f32.vlgmr.msra.gmra.mxu3 %vm3429_vm15, %v13626_v49 }
 0x4d9   :  { %7386 = vmatpush.msra.mxu2 %v7373_v14  ;;  %7411 = vmatpush.msrb.mxu3 %v7398_v23 }
 0x4da   :  { %7363 = vmatpush.msrb.mxu1 %v7279_v10 }
 0x4db   :  { %7387 = vmatpush.msra.mxu2 %v7372_v20  ;;  %7412 = vmatpush.msrb.mxu3 %v7397_v27  ;;  %v3725_v40 = vpop.f32.mrf.mxu2 }
 0x4dc   :  { %7364 = vmatpush.msrb.mxu1 %v7278_v47  ;;  %v13724_v29 = vpop.f32.mrf.mxu1 }
 0x4dd   :  { %7388 = vmatpush.msra.mxu2 %v7371_v52  ;;  %7413 = vmatpush.msrb.mxu3 %v7396_v3  ;;  %v3726_v3 = vadd.f32 %v3725_v40, %v3705_v38 }
 0x4de   :  { %7436 = vmatpush.msra.mxu1 %v7423_v19  ;;  %v13726_v55 = vpop.f32.mrf.mxu3  ;;  %v7541_v19 = vlaneseq }
 0x4df   :  { %7771 = vmatmul.msk.f32.vlgmr.msrb.gmra.mxu1 %vm3429_vm15, %v13626_v49  ;;  %7389 = vmatpush.msra.mxu2 %v7370_v18 }
 0x4e0   :  { %7414 = vmatpush.msrb.mxu3 %v7395_v43  ;;  %7437 = vmatpush.msra.mxu1 %v7422_v35  ;;  %v3682_v43 = vadd.f32 %v3681_v54, %v3661_v39  ;;  %v3770_v39 = vadd.f32 %v13724_v29, %v13726_v55 }
 0x4e1   :  { %7461 = vmatpush.msrb.mxu2 %v7448_v0  ;;  %7773 = vmatmul.msk.f32.vlgmr.msrb.gmra.mxu3 %vm3429_vm15, %v13626_v49 }
 0x4e2   :  { %7486 = vmatpush.msra.mxu3 %v7473_v59  ;;  %7772 = vmatmul.msk.f32.vlgmr.msra.gmra.mxu2 %vm3429_vm15, %v13626_v49 }
 0x4e3   :  { %7438 = vmatpush.msra.mxu1 %v7421_v8  ;;  %7462 = vmatpush.msrb.mxu2 %v7447_v17  ;;  %v13728_v42 = vpop.f32.mrf.mxu2 }
 0x4e4   :  { %7487 = vmatpush.msra.mxu3 %v7472_v48  ;;  %v3837_v61 = vpop.f32.mrf.mxu1 }
 0x4e5   :  { %7439 = vmatpush.msra.mxu1 %v7420_v36  ;;  %7463 = vmatpush.msrb.mxu2 %v7446_v32  ;;  %v7542_v36 = vshrl.u32 %v7541_v19, 7 }
 0x4e6   :  { %7488 = vmatpush.msra.mxu3 %v7471_v62  ;;  %v13730_v31 = vpop.f32.mrf.mxu3 }
 0x4e7   :  { %7511 = vmatpush.msrb.mxu1 %v7498_v46  ;;  %7464 = vmatpush.msrb.mxu2 %v7445_v56  ;;  %vm7545_vm6 = vcmp.eq.s32.totalorder %v7542_v36, 1  ;;  %v3814_v54 = vadd.f32 %v13730_v31, %v13728_v42  ;;  %vm7548_vm13 = vcmp.eq.s32.totalorder %v7542_v36, 2  ;;  %v7553_v31 = vand.u32 127, %v7541_v19 }
 0x4e8   :  { %7774 = vmatmul.msk.f32.vlgmr.msra.gmra.mxu1 %vm3429_vm15, %v13626_v49  ;;  %7489 = vmatpush.msra.mxu3 %v7470_v25 }
 0x4e9   :  { %7512 = vmatpush.msrb.mxu1 %v7497_v53  ;;  %7776 = vmatmul.msk.f32.vlgmr.msra.gmra.mxu3 %vm3429_vm15, %v13626_v49  ;;  %vm7554_vm14 = vcmp.eq.s32.totalorder %v7553_v31, 0  ;;  %vm7558_vm3 = vcmp.eq.s32.totalorder %v7553_v31, 1  ;;  %vm7563_vm4 = vcmp.eq.s32.totalorder %v7553_v31, 2  ;;  %vm7568_vm12 = vcmp.eq.s32.totalorder %v7553_v31, 3 }
 0x4ea   :  { %7775 = vmatmul.msk.f32.vlgmr.msrb.gmra.mxu2 %vm3429_vm15, %v13626_v49  ;;  %vm7573_vm2 = vcmp.eq.s32.totalorder %v7553_v31, 4  ;;  %vm7578_vm11 = vcmp.eq.s32.totalorder %v7553_v31, 5  ;;  %vm7583_vm1 = vcmp.eq.s32.totalorder %v7553_v31, 6 }
 0x4eb   :  { %7513 = vmatpush.msrb.mxu1 %v7496_v13  ;;  %v3857_v41 = vpop.f32.mrf.mxu2 }
 0x4ec   :  { %v5494_v15 = vpop.f32.mrf.mxu1 }
 0x4ed   :  { %7514 = vmatpush.msrb.mxu1 %v7495_v6  ;;  %v5497_v45 = vadd.f32 %v5494_v15, %v13668_v57 }
 0x4ee   :  { %v5473_v63 = vpop.f32.mrf.mxu3 }
 0x4ef   :  { %v5476_v1 = vadd.f32 %v5473_v63, %v13628_v37 }
 0x4f0   :  { %7777 = vmatmul.msk.f32.vlgmr.msrb.gmra.mxu1 %vm3429_vm15, %v13626_v49  ;;  %vm7543_vm15 = vcmp.eq.s32.totalorder %v7542_v36, 0 }
 0x4f3   :  { %v5515_v2 = vpop.f32.mrf.mxu2 }
 0x4f4   :  { %v5561_v51 = vpop.f32.mrf.mxu1  ;;  %v5518_v14 = vadd.f32 %v5515_v2, %v13673_v7 }
 0x4f5   :  { %v5564_v59 = vadd.f32 %v5561_v51, %v3638_v22  ;;  %v3858_v22 = vadd.f32 %v3857_v41, %v3837_v61 }
 0x4f6   :  { %v5536_v49 = vpop.f32.mrf.mxu3 }
 0x4f7   :  { %v5539_v23 = vadd.f32 %v5536_v49, %v3594_v33 }
 0x4fb   :  { %v5586_v34 = vpop.f32.mrf.mxu2 }
 0x4fc   :  { %v13732_v26 = vpop.f32.mrf.mxu1  ;;  %v5589_v12 = vadd.f32 %v5586_v34, %v3682_v43 }
 0x4fd   :  { %v5639_v2 = vadd.f32 %v13732_v26, %v3770_v39 }
 0x4fe   :  { %v5611_v21 = vpop.f32.mrf.mxu3 }
 0x4ff   :  { %v5614_v0 = vadd.f32 %v5611_v21, %v3726_v3 }
 0x503   :  { %v5661_v28 = vpop.f32.mrf.mxu2 }
 0x504   :  { %v5664_v49 = vadd.f32 %v5661_v28, %v3814_v54 }
 0x506   :  { %v5686_v5 = vpop.f32.mrf.mxu3 }
 0x507   :  { %v5689_v63 = vadd.f32 %v5686_v5, %v3858_v22 }
 0x54f   :  { %v7303_v11 = vpop.f32.mrf.mxu1 }
 0x550   :  { %v7306_v16 = vadd.f32 %v7303_v11, %v5476_v1 }
 0x552   :  { %7555 = vadd.xlane.f32.xlu2 %v7306_v16 }
 0x55b   :  { %v7324_v4 = vpop.f32.mrf.mxu2  ;;  %v7345_v9 = vpop.f32.mrf.mxu3 }
 0x55c   :  { %v7327_v10 = vadd.f32 %v7324_v4, %v5497_v45  ;;  %v7348_v30 = vadd.f32 %v7345_v9, %v5518_v14  ;;  %v7366_v60 = vpop.f32.mrf.mxu1 }
 0x55d   :  { %v7369_v20 = vadd.f32 %v7366_v60, %v5539_v23 }
 0x55e   :  { %v7520_v27 = vrot.slane %v7327_v10, 4  ;;  %v7527_v37 = vrot.slane %v7348_v30, 4 }
 0x55f   :  { %v7534_v50 = vrot.slane %v7369_v20, 4 }
 0x560   :  { %v7521_v47 = vadd.f32 %v7520_v27, %v7327_v10  ;;  %v7528_v52 = vadd.f32 %v7527_v37, %v7348_v30 }
 0x561   :  { %v7535_v18 = vadd.f32 %v7534_v50, %v7369_v20 }
 0x562   :  { %v7522_v35 = vrot.slane %v7521_v47, 2  ;;  %v7529_v57 = vrot.slane %v7528_v52, 2 }
 0x563   :  { %v7536_v7 = vrot.slane %v7535_v18, 2 }
 0x564   :  { %v7523_v8 = vadd.f32 %v7522_v35, %v7521_v47  ;;  %v7530_v17 = vadd.f32 %v7529_v57, %v7528_v52  ;;  %v7416_v46 = vpop.f32.mrf.mxu3 }
 0x565   :  { %v7441_v48 = vpop.f32.mrf.mxu1  ;;  %v7537_v32 = vadd.f32 %v7536_v7, %v7535_v18  ;;  %v7391_v62 = vpop.f32.mrf.mxu2  ;;  %v7419_v58 = vadd.f32 %v7416_v46, %v5589_v12 }
 0x566   :  { %v7444_v56 = vadd.f32 %v7441_v48, %v5614_v0  ;;  %v7524_v25 = vrot.slane %v7523_v8, 1  ;;  %v7531_v53 = vrot.slane %v7530_v17, 1  ;;  %v7394_v44 = vadd.f32 %v7391_v62, %v5564_v59 }
 0x567   :  { %v7538_v13 = vrot.slane %v7537_v32, 1  ;;  %7564 = vadd.xlane.f32.xlu1 %v7419_v58 }
 0x568   :  { %7569 = vadd.xlane.f32.xlu2 %v7444_v56  ;;  %v7525_v6 = vadd.f32 %v7524_v25, %v7523_v8  ;;  %v7532_v24 = vadd.f32 %v7531_v53, %v7530_v17  ;;  %7559 = vadd.xlane.f32.xlu0 %v7394_v44 }
 0x569   :  { %v7539_v38 = vadd.f32 %v7538_v13, %v7537_v32 }
 0x56a   :  { %v7526_v40 = vsub.f32 0.0, %v7525_v6  ;;  %v7533_v15 = vsub.f32 0.0, %v7532_v24 }
 0x56b   :  { %v7540_v51 = vsub.f32 0.0, %v7539_v38 }
 0x56c   :  { %v7544_v34 = vsel %vm7543_vm15, %v7526_v40, 0.0  ;;  %v7546_v21 = vsel %vm7545_vm6, %v7533_v15, 0.0  ;;  %v7491_v11 = vpop.f32.mrf.mxu3 }
 0x56d   :  { %v7516_v61 = vpop.f32.mrf.mxu1  ;;  %v7547_v41 = vadd.f32 %v7546_v21, %v7544_v34  ;;  %v7466_v1 = vpop.f32.mrf.mxu2  ;;  %v7549_v33 = vsel %vm7548_vm13, %v7540_v51, 0.0  ;;  %v7494_v55 = vadd.f32 %v7491_v11, %v5664_v49 }
 0x56e   :  { %v7519_v16 = vadd.f32 %v7516_v61, %v5689_v63  ;;  %v7469_v29 = vadd.f32 %v7466_v1, %v5639_v2 }
 0x56f   :  { %v7550_v45 = vadd.f32 %v7549_v33, %v7547_v41 }
 0x570   :  { %7579 = vadd.xlane.f32.xlu0 %v7494_v55  ;;  %7584 = vadd.xlane.f32.xlu1 %v7519_v16 }
 0x571   :  { %7574 = vadd.xlane.f32.xlu2 %v7469_v29  ;;  %7551 = vst [vmem:[%s13752_s3] sm:$0xff] %v7550_v45 }
 0x5c5   :  { %v7556_v42 = vpop.xlane.xlu2 %7555 }
 0x5c6   :  { %v7557_v5 = vsel %vm7554_vm14, %v7556_v42, 0.0 }
 0x5da   :  { %v7565_v14 = vpop.xlane.xlu1 %7564 }
 0x5db   :  { %v7570_v26 = vpop.xlane.xlu2 %7569  ;;  %v7560_v28 = vpop.xlane.xlu0 %7559  ;;  %v7566_v9 = vsel %vm7563_vm4, %v7565_v14, 0.0 }
 0x5dc   :  { %v7561_v23 = vsel %vm7558_vm3, %v7560_v28, 0.0  ;;  %v7571_v30 = vsel %vm7568_vm12, %v7570_v26, 0.0 }
 0x5dd   :  { %v7562_v4 = vadd.f32 %v7561_v23, %v7557_v5 }
 0x5df   :  { %v7567_v10 = vadd.f32 %v7566_v9, %v7562_v4 }
 0x5e1   :  { %v7572_v60 = vadd.f32 %v7571_v30, %v7567_v10 }
 0x5e3   :  { %v7580_v20 = vpop.xlane.xlu0 %7579  ;;  %v7585_v50 = vpop.xlane.xlu1 %7584 }
 0x5e4   :  { %v7575_v27 = vpop.xlane.xlu2 %7574  ;;  %v7581_v52 = vsel %vm7578_vm11, %v7580_v20, 0.0  ;;  %v7586_v19 = vsel %vm7583_vm1, %v7585_v50, 0.0 }
 0x5e5   :  { %v7576_v37 = vsel %vm7573_vm2, %v7575_v27, 0.0 }
 0x5e6   :  { %v7577_v47 = vadd.f32 %v7576_v37, %v7572_v60 }
 0x5e8   :  { %v7582_v3 = vadd.f32 %v7581_v52, %v7577_v47 }
 0x5ea   :  { %v7587_v18 = vadd.f32 %v7586_v19, %v7582_v3 }
 0x5ec   :  { %v7588_v43 = vmul.f32 0.5, %v7587_v18 }
 0x5ee   :  { %7589 = vst [vmem:[%s13752_s3 + $0x8] sm:$0xff] %v7588_v43 }

</bundles_post_ra>
